<compile_context>
chip_gen: v7x
topology: tpu7x:2x2x1
jax: 0.10.0
libtpu: 0.0.40
codegen_flags: <defaults>
</compile_context>

<pallas_src>
import numpy as np
import jax
import jax.numpy as jnp
from jax import lax
from jax.experimental import pallas as pl
from jax.experimental.pallas import tpu as pltpu

# --- model config (gym-microrts per-unit action space) -----------------------
ACTION_SPACE = (6, 4, 4, 4, 4, 7, 49)     # sum == 78
N_ACT = sum(ACTION_SPACE)
H = W = 16
C_IN = 27
ROW_STRIDE = W * C_IN                      # 432 lanes per input row
X_FLAT = H * ROW_STRIDE                    # 6912 (= 54 * 128, lane-dense)
OH1 = OW1 = 7                              # conv1 output (k=3, s=2)
OH2 = OW2 = 6                              # conv2 output (k=2, s=1)
C1, C2 = 16, 32
CNN_OUTPUT_DIM = C2 * OH2 * OW2            # 1152
FC_OUT = 256
N_ACT_PAD = 128                            # lane-dense padded actor head width

W1_K = 1408        # lane-aligned conv1 lhs window (3 input rows + <=96 lane shift)
W1_N = 128         # 7*16 = 112 conv1 outputs per output row, padded to 128
H1_COLS = OH1 * W1_N                       # 896
N2_CHUNK = 384                             # conv2 output-column chunk (1152 = 3*384)


def _round_up(x, m):
    return (x + m - 1) // m * m


def _pick_tb(B):
    """Batch tile.  <=128 rows per tile; split so grid >= 2 when it helps v7x."""
    if B <= 128:
        return _round_up(max(B, 1), 8)
    if B <= 256:
        return _round_up((B + 1) // 2, 8)   # two grid steps -> both v7x TCs busy
    return 128


# --- fused forward kernel -----------------------------------------------------
def _actor_fused_kernel(x_ref, w1_ref, b1_ref, w2_ref, b2_ref,
                        wfc_ref, bfc_ref, wact_ref, bact_ref,
                        out_ref, xb_s, h1_s, h2_s):
    f32 = jnp.float32
    bf16 = jnp.bfloat16
    tb = out_ref.shape[0]

    # 0) single f32 -> bf16 cast of the input tile; every conv1 lhs slices it.
    xb_s[...] = x_ref[...].astype(bf16)

    # 1) conv1 (27->16, k=3, s=2) + ReLU as 7 banded matmuls, one per output
    #    row.  The lhs window is a lane-aligned 1408-lane slice covering input
    #    rows 2*oi .. 2*oi+2; the sub-128 misalignment is pre-shifted into one
    #    of 4 phase copies of the banded weight.  Output lanes = (oj, cout),
    #    padded 112 -> 128 with zeros.
    b1b = jnp.broadcast_to(b1_ref[...], (tb, W1_N))        # hoisted broadcast
    for oi in range(OH1):
        start = 2 * oi * ROW_STRIDE                         # 864 * oi
        start -= (start % 128)                              # lane-aligned window
        phase = oi % 4
        lhs = xb_s[:, start:start + W1_K]                   # (tb, 1408) bf16
        w = w1_ref[phase * W1_K:(phase + 1) * W1_K, :]      # (1408, 128) bf16
        h = jnp.dot(lhs, w, preferred_element_type=f32) + b1b
        h1_s[:, oi * W1_N:(oi + 1) * W1_N] = jnp.maximum(h, 0.0).astype(bf16)

    # 2) conv2 (16->32, k=2, s=1) + ReLU as one dense (banded-weight) matmul,
    #    chunked over output columns to bound live f32 vregs.  h2 column order
    #    is (i, j, cout) -> matches the pre-permuted fc weight.
    for n in range(0, CNN_OUTPUT_DIM, N2_CHUNK):
        acc = jnp.dot(h1_s[...], w2_ref[:, n:n + N2_CHUNK],
                      preferred_element_type=f32)
        acc = acc + b2_ref[:, n:n + N2_CHUNK]
        h2_s[:, n:n + N2_CHUNK] = jnp.maximum(acc, 0.0).astype(bf16)

    # 3) Linear(1152, 256) + ReLU: single full-K dot (MXU accumulates).
    h3 = jnp.dot(h2_s[...], wfc_ref[...], preferred_element_type=f32) + bfc_ref[...]
    h3 = jnp.maximum(h3, 0.0).astype(bf16)                  # (tb, 256)

    # 4) actor head Linear(256, 78), N padded to 128 -> lane-dense HBM store.
    out_ref[...] = (jnp.dot(h3, wact_ref[...], preferred_element_type=f32)
                    + bact_ref[...])


# --- parameters (deterministic synthetic init, PyTorch layer_init style) ------
def init_params(key):
    ks = jax.random.split(key, 8)
    ortho = jax.nn.initializers.orthogonal
    g = 2.0 ** 0.5
    conv1_w = ortho(g)(ks[0], (C1, C_IN * 9), jnp.float32).reshape(C1, C_IN, 3, 3)
    conv2_w = ortho(g)(ks[1], (C2, C1 * 4), jnp.float32).reshape(C2, C1, 2, 2)
    fc_w = ortho(g)(ks[2], (FC_OUT, CNN_OUTPUT_DIM), jnp.float32)   # (out, in)
    actor_w = ortho(g)(ks[3], (N_ACT, FC_OUT), jnp.float32)
    # layer_init zeroes biases; use small random biases so the kernel's bias
    # plumbing is actually exercised by the correctness check.
    return {
        "conv1_w": conv1_w, "conv1_b": 0.1 * jax.random.normal(ks[4], (C1,)),
        "conv2_w": conv2_w, "conv2_b": 0.1 * jax.random.normal(ks[5], (C2,)),
        "fc_w": fc_w,       "fc_b": 0.1 * jax.random.normal(ks[6], (FC_OUT,)),
        "actor_w": actor_w, "actor_b": 0.1 * jax.random.normal(ks[7], (N_ACT,)),
    }


def prepare_kernel_params(params):
    """One-time weight re-layout: all patch gathering is baked into banded
    matrices so the kernel only does lane-aligned slices + matmuls."""
    c1w = np.asarray(params["conv1_w"], np.float32)   # (16, 27, 3, 3)
    c2w = np.asarray(params["conv2_w"], np.float32)   # (32, 16, 2, 2)
    fcw = np.asarray(params["fc_w"], np.float32)      # (256, 1152)
    aw = np.asarray(params["actor_w"], np.float32)    # (78, 256)

    # conv1: banded weight, 4 lane-alignment phases (window offsets 0/96/64/32).
    # lhs lane (relative to the aligned window) d + ki*432 + (2*oj+kj)*27 + c
    # multiplies conv1_w[co, c, ki, kj] into output column oj*16 + co.
    w1 = np.zeros((4, W1_K, W1_N), np.float32)
    w1_knc = c1w.transpose(2, 3, 1, 0)                 # (ki, kj, c, co)
    for p in range(4):
        d = (2 * p * ROW_STRIDE) % 128                 # 0, 96, 64, 32
        for oj in range(OW1):
            for ki in range(3):
                r = d + ki * ROW_STRIDE + 2 * oj * C_IN
                w1[p, r:r + 3 * C_IN, oj * C1:(oj + 1) * C1] = (
                    w1_knc[ki].reshape(3 * C_IN, C1))
    w1 = w1.reshape(4 * W1_K, W1_N)

    # conv2: dense banded weight.  h1 lane oi*128 + oj*16 + ci multiplies
    # conv2_w[co, ci, oi-i, oj-j] into h2 column (i*6+j)*32 + co.
    w2d = np.zeros((H1_COLS, CNN_OUTPUT_DIM), np.float32)
    for i in range(OH2):
        for j in range(OW2):
            c0 = (i * OW2 + j) * C2
            for ki in range(2):
                for kj in range(2):
                    r0 = (i + ki) * W1_N + (j + kj) * C1
                    w2d[r0:r0 + C1, c0:c0 + C2] = c2w[:, :, ki, kj].T

    # fc: rows permuted to consume the kernel's (i, j, c) h2 order (PyTorch
    # consumes the NCHW (c, i, j) flatten).
    wfc = fcw.reshape(FC_OUT, C2, OH2, OW2).transpose(2, 3, 1, 0)
    wfc = wfc.reshape(CNN_OUTPUT_DIM, FC_OUT)

    # actor head: (out, in) -> (in, out), N padded 78 -> 128.
    wact = np.zeros((FC_OUT, N_ACT_PAD), np.float32)
    wact[:, :N_ACT] = aw.T

    b1_row = np.zeros((1, W1_N), np.float32)
    b1_row[0, :OW1 * C1] = np.tile(np.asarray(params["conv1_b"], np.float32), OW1)
    b2_row = np.tile(np.asarray(params["conv2_b"], np.float32),
                     OH2 * OW2).reshape(1, CNN_OUTPUT_DIM)
    bact = np.zeros((1, N_ACT_PAD), np.float32)
    bact[0, :N_ACT] = np.asarray(params["actor_b"], np.float32)

    return {
        "w1": jnp.asarray(w1, jnp.bfloat16),
        "b1": jnp.asarray(b1_row, jnp.float32),
        "w2": jnp.asarray(w2d, jnp.bfloat16),
        "b2": jnp.asarray(b2_row, jnp.float32),
        "wfc": jnp.asarray(wfc, jnp.bfloat16),
        "bfc": jnp.asarray(np.asarray(params["fc_b"], np.float32).reshape(1, FC_OUT)),
        "wact": jnp.asarray(wact, jnp.bfloat16),
        "bact": jnp.asarray(bact, jnp.float32),
    }


# --- forward pass --------------------------------------------------------------
@jax.jit
def actor_forward(kparams, states):
    """states: (B, 16, 16, 27) NHWC f32 -> logits (B, 78) f32."""
    B = states.shape[0]
    assert states.shape[1:] == (H, W, C_IN), states.shape
    tb = _pick_tb(B)
    bp = _round_up(B, tb)

    # Free (contiguous) collapse; raw states is the only activation read from HBM.
    x = states.reshape(B, X_FLAT)
    if bp != B:
        x = jnp.pad(x, ((0, bp - B), (0, 0)))

    const = lambda a: pl.BlockSpec(a.shape, lambda t: (0, 0))   # VMEM-resident weight
    out_pad = pl.pallas_call(
        _actor_fused_kernel,
        out_shape=jax.ShapeDtypeStruct((bp, N_ACT_PAD), jnp.float32),
        grid=(bp // tb,),
        in_specs=[
            pl.BlockSpec((tb, X_FLAT), lambda t: (t, 0)),
            const(kparams["w1"]),  const(kparams["b1"]),
            const(kparams["w2"]),  const(kparams["b2"]),
            const(kparams["wfc"]), const(kparams["bfc"]),
            const(kparams["wact"]), const(kparams["bact"]),
        ],
        out_specs=pl.BlockSpec((tb, N_ACT_PAD), lambda t: (t, 0)),
        scratch_shapes=[
            pltpu.VMEM((tb, X_FLAT), jnp.bfloat16),          # bf16 input tile
            pltpu.VMEM((tb, H1_COLS), jnp.bfloat16),         # h1: (tb, 896)
            pltpu.VMEM((tb, CNN_OUTPUT_DIM), jnp.bfloat16),  # h2: (tb, 1152)
        ],
        compiler_params=pltpu.CompilerParams(
            dimension_semantics=("parallel",),
            vmem_limit_bytes=40 * 1024 * 1024),
    )(x, kparams["w1"], kparams["b1"], kparams["w2"], kparams["b2"],
      kparams["wfc"], kparams["bfc"], kparams["wact"], kparams["bact"])

    return out_pad[:B, :N_ACT]


# --- pure-JAX reference (PyTorch semantics) for a correctness check ------------
def actor_reference(params, states):
    dn = ("NHWC", "OIHW", "NHWC")
    h = lax.conv_general_dilated(states, params["conv1_w"], (2, 2), "VALID",
                                 dimension_numbers=dn)
    h = jax.nn.relu(h + params["conv1_b"])
    h = lax.conv_general_dilated(h, params["conv2_w"], (1, 1), "VALID",
                                 dimension_numbers=dn)
    h = jax.nn.relu(h + params["conv2_b"])
    flat = jnp.transpose(h, (0, 3, 1, 2)).reshape(states.shape[0], -1)  # NCHW flatten
    h3 = jax.nn.relu(flat @ params["fc_w"].T + params["fc_b"])
    return h3 @ params["actor_w"].T + params["actor_b"]


if __name__ == "__main__":
    key = jax.random.PRNGKey(0)
    pkey, xkey = jax.random.split(key)
    params = init_params(pkey)
    kparams = prepare_kernel_params(params)

    # small deterministic example input: (batch=2, H=16, W=16, C=27) NHWC
    states = jax.random.uniform(xkey, (2, H, W, C_IN), jnp.float32)

    out = jax.block_until_ready(actor_forward(kparams, states))
    assert out.shape == (2, N_ACT), out.shape
    assert out.dtype == jnp.float32

    ref = jax.block_until_ready(actor_reference(params, states))
    # bf16 MXU inputs with f32 accumulation -> loose tolerance.
    max_err = float(jnp.max(jnp.abs(out - ref)))
    assert bool(jnp.allclose(out, ref, rtol=1e-1, atol=1e-1)), max_err
    print("KERNEL_OK")
</pallas_src>

<mosaic_0001>
module attributes {stable_mosaic.version = 11 : i64} {
  func.func @_actor_fused_kernel(%arg0: i32, %arg1: memref<8x6912xf32, #tpu.memory_space<vmem>>, %arg2: memref<5632x128xbf16, #tpu.memory_space<vmem>>, %arg3: memref<1x128xf32, #tpu.memory_space<vmem>>, %arg4: memref<896x1152xbf16, #tpu.memory_space<vmem>>, %arg5: memref<1x1152xf32, #tpu.memory_space<vmem>>, %arg6: memref<1152x256xbf16, #tpu.memory_space<vmem>>, %arg7: memref<1x256xf32, #tpu.memory_space<vmem>>, %arg8: memref<256x128xbf16, #tpu.memory_space<vmem>>, %arg9: memref<1x128xf32, #tpu.memory_space<vmem>>, %arg10: memref<8x128xf32, #tpu.memory_space<vmem>>, %arg11: memref<8x6912xbf16, #tpu.memory_space<vmem>>, %arg12: memref<8x896xbf16, #tpu.memory_space<vmem>>, %arg13: memref<8x1152xbf16, #tpu.memory_space<vmem>>) attributes {dimension_semantics = [#tpu.dimension_semantics<parallel>], iteration_bounds = array<i64: 1>, scalar_prefetch = 0 : i64, scratch_operands = 3 : i64, tpu.core_type = #tpu.core_type<tc>, window_params = [{transform_indices = @transform_0, window_bounds = array<i64: 8, 6912>}, {pipeline_mode = #tpu.pipeline_mode<synchronous>, transform_indices = @transform_1, window_bounds = array<i64: 5632, 128>}, {pipeline_mode = #tpu.pipeline_mode<synchronous>, transform_indices = @transform_2, window_bounds = array<i64: 1, 128>}, {pipeline_mode = #tpu.pipeline_mode<synchronous>, transform_indices = @transform_3, window_bounds = array<i64: 896, 1152>}, {pipeline_mode = #tpu.pipeline_mode<synchronous>, transform_indices = @transform_4, window_bounds = array<i64: 1, 1152>}, {pipeline_mode = #tpu.pipeline_mode<synchronous>, transform_indices = @transform_5, window_bounds = array<i64: 1152, 256>}, {pipeline_mode = #tpu.pipeline_mode<synchronous>, transform_indices = @transform_6, window_bounds = array<i64: 1, 256>}, {pipeline_mode = #tpu.pipeline_mode<synchronous>, transform_indices = @transform_7, window_bounds = array<i64: 256, 128>}, {pipeline_mode = #tpu.pipeline_mode<synchronous>, transform_indices = @transform_8, window_bounds = array<i64: 1, 128>}, {transform_indices = @transform_9, window_bounds = array<i64: 8, 128>}]} {
    %c0 = arith.constant 0 : index
    %c0_0 = arith.constant 0 : index
    %0 = vector.load %arg1[%c0, %c0_0] : memref<8x6912xf32, #tpu.memory_space<vmem>>, vector<8x6912xf32>
    %1 = arith.truncf %0 : vector<8x6912xf32> to vector<8x6912xbf16>
    %c0_1 = arith.constant 0 : index
    %c0_2 = arith.constant 0 : index
    %2 = vector.load %arg11[%c0_1, %c0_2] : memref<8x6912xbf16, #tpu.memory_space<vmem>>, vector<8x6912xbf16>
    tpu.vector_store %arg11[%c0_1, %c0_2], %1 {strides = array<i32>} : memref<8x6912xbf16, #tpu.memory_space<vmem>>, vector<8x6912xbf16>,
    %c0_3 = arith.constant 0 : index
    %c0_4 = arith.constant 0 : index
    %3 = vector.load %arg3[%c0_3, %c0_4] : memref<1x128xf32, #tpu.memory_space<vmem>>, vector<1x128xf32>
    %4 = vector.shape_cast %3 : vector<1x128xf32> to vector<1x128xf32>
    %5 = vector.broadcast %4 : vector<1x128xf32> to vector<8x128xf32>
    %c0_5 = arith.constant 0 : index
    %c0_6 = arith.constant 0 : index
    %6 = vector.load %arg11[%c0_5, %c0_6] : memref<8x6912xbf16, #tpu.memory_space<vmem>>, vector<8x1408xbf16>
    %c0_7 = arith.constant 0 : index
    %c0_8 = arith.constant 0 : index
    %7 = vector.load %arg2[%c0_7, %c0_8] : memref<5632x128xbf16, #tpu.memory_space<vmem>>, vector<1408x128xbf16>
    %cst = arith.constant dense<0.000000e+00> : vector<8x128xf32>
    %8 = tpu.matmul %6, %7, %cst {dimension_numbers = #tpu.dot_dimension_numbers<[1], [0], [0], [1], [0, 0, 1, 1], [], []>} : vector<8x1408xbf16>, vector<1408x128xbf16>, vector<8x128xf32> -> vector<8x128xf32>
    %9 = arith.addf %8, %5 : vector<8x128xf32>
    %cst_9 = arith.constant 0.000000e+00 : f32
    %10 = vector.broadcast %cst_9 : f32 to vector<8x128xf32>
    %11 = arith.maximumf %9, %10 : vector<8x128xf32>
    %12 = arith.truncf %11 : vector<8x128xf32> to vector<8x128xbf16>
    %c0_10 = arith.constant 0 : index
    %c0_11 = arith.constant 0 : index
    %13 = vector.load %arg12[%c0_10, %c0_11] : memref<8x896xbf16, #tpu.memory_space<vmem>>, vector<8x128xbf16>
    tpu.vector_store %arg12[%c0_10, %c0_11], %12 {strides = array<i32>} : memref<8x896xbf16, #tpu.memory_space<vmem>>, vector<8x128xbf16>,
    %c0_12 = arith.constant 0 : index
    %c768 = arith.constant 768 : index
    %14 = vector.load %arg11[%c0_12, %c768] : memref<8x6912xbf16, #tpu.memory_space<vmem>>, vector<8x1408xbf16>
    %c1408 = arith.constant 1408 : index
    %c0_13 = arith.constant 0 : index
    %15 = vector.load %arg2[%c1408, %c0_13] : memref<5632x128xbf16, #tpu.memory_space<vmem>>, vector<1408x128xbf16>
    %cst_14 = arith.constant dense<0.000000e+00> : vector<8x128xf32>
    %16 = tpu.matmul %14, %15, %cst_14 {dimension_numbers = #tpu.dot_dimension_numbers<[1], [0], [0], [1], [0, 0, 1, 1], [], []>} : vector<8x1408xbf16>, vector<1408x128xbf16>, vector<8x128xf32> -> vector<8x128xf32>
    %17 = arith.addf %16, %5 : vector<8x128xf32>
    %cst_15 = arith.constant 0.000000e+00 : f32
    %18 = vector.broadcast %cst_15 : f32 to vector<8x128xf32>
    %19 = arith.maximumf %17, %18 : vector<8x128xf32>
    %20 = arith.truncf %19 : vector<8x128xf32> to vector<8x128xbf16>
    %c0_16 = arith.constant 0 : index
    %c128 = arith.constant 128 : index
    %21 = vector.load %arg12[%c0_16, %c128] : memref<8x896xbf16, #tpu.memory_space<vmem>>, vector<8x128xbf16>
    tpu.vector_store %arg12[%c0_16, %c128], %20 {strides = array<i32>} : memref<8x896xbf16, #tpu.memory_space<vmem>>, vector<8x128xbf16>,
    %c0_17 = arith.constant 0 : index
    %c1664 = arith.constant 1664 : index
    %22 = vector.load %arg11[%c0_17, %c1664] : memref<8x6912xbf16, #tpu.memory_space<vmem>>, vector<8x1408xbf16>
    %c2816 = arith.constant 2816 : index
    %c0_18 = arith.constant 0 : index
    %23 = vector.load %arg2[%c2816, %c0_18] : memref<5632x128xbf16, #tpu.memory_space<vmem>>, vector<1408x128xbf16>
    %cst_19 = arith.constant dense<0.000000e+00> : vector<8x128xf32>
    %24 = tpu.matmul %22, %23, %cst_19 {dimension_numbers = #tpu.dot_dimension_numbers<[1], [0], [0], [1], [0, 0, 1, 1], [], []>} : vector<8x1408xbf16>, vector<1408x128xbf16>, vector<8x128xf32> -> vector<8x128xf32>
    %25 = arith.addf %24, %5 : vector<8x128xf32>
    %cst_20 = arith.constant 0.000000e+00 : f32
    %26 = vector.broadcast %cst_20 : f32 to vector<8x128xf32>
    %27 = arith.maximumf %25, %26 : vector<8x128xf32>
    %28 = arith.truncf %27 : vector<8x128xf32> to vector<8x128xbf16>
    %c0_21 = arith.constant 0 : index
    %c256 = arith.constant 256 : index
    %29 = vector.load %arg12[%c0_21, %c256] : memref<8x896xbf16, #tpu.memory_space<vmem>>, vector<8x128xbf16>
    tpu.vector_store %arg12[%c0_21, %c256], %28 {strides = array<i32>} : memref<8x896xbf16, #tpu.memory_space<vmem>>, vector<8x128xbf16>,
    %c0_22 = arith.constant 0 : index
    %c2560 = arith.constant 2560 : index
    %30 = vector.load %arg11[%c0_22, %c2560] : memref<8x6912xbf16, #tpu.memory_space<vmem>>, vector<8x1408xbf16>
    %c4224 = arith.constant 4224 : index
    %c0_23 = arith.constant 0 : index
    %31 = vector.load %arg2[%c4224, %c0_23] : memref<5632x128xbf16, #tpu.memory_space<vmem>>, vector<1408x128xbf16>
    %cst_24 = arith.constant dense<0.000000e+00> : vector<8x128xf32>
    %32 = tpu.matmul %30, %31, %cst_24 {dimension_numbers = #tpu.dot_dimension_numbers<[1], [0], [0], [1], [0, 0, 1, 1], [], []>} : vector<8x1408xbf16>, vector<1408x128xbf16>, vector<8x128xf32> -> vector<8x128xf32>
    %33 = arith.addf %32, %5 : vector<8x128xf32>
    %cst_25 = arith.constant 0.000000e+00 : f32
    %34 = vector.broadcast %cst_25 : f32 to vector<8x128xf32>
    %35 = arith.maximumf %33, %34 : vector<8x128xf32>
    %36 = arith.truncf %35 : vector<8x128xf32> to vector<8x128xbf16>
    %c0_26 = arith.constant 0 : index
    %c384 = arith.constant 384 : index
    %37 = vector.load %arg12[%c0_26, %c384] : memref<8x896xbf16, #tpu.memory_space<vmem>>, vector<8x128xbf16>
    tpu.vector_store %arg12[%c0_26, %c384], %36 {strides = array<i32>} : memref<8x896xbf16, #tpu.memory_space<vmem>>, vector<8x128xbf16>,
    %c0_27 = arith.constant 0 : index
    %c3456 = arith.constant 3456 : index
    %38 = vector.load %arg11[%c0_27, %c3456] : memref<8x6912xbf16, #tpu.memory_space<vmem>>, vector<8x1408xbf16>
    %c0_28 = arith.constant 0 : index
    %c0_29 = arith.constant 0 : index
    %39 = vector.load %arg2[%c0_28, %c0_29] : memref<5632x128xbf16, #tpu.memory_space<vmem>>, vector<1408x128xbf16>
    %cst_30 = arith.constant dense<0.000000e+00> : vector<8x128xf32>
    %40 = tpu.matmul %38, %39, %cst_30 {dimension_numbers = #tpu.dot_dimension_numbers<[1], [0], [0], [1], [0, 0, 1, 1], [], []>} : vector<8x1408xbf16>, vector<1408x128xbf16>, vector<8x128xf32> -> vector<8x128xf32>
    %41 = arith.addf %40, %5 : vector<8x128xf32>
    %cst_31 = arith.constant 0.000000e+00 : f32
    %42 = vector.broadcast %cst_31 : f32 to vector<8x128xf32>
    %43 = arith.maximumf %41, %42 : vector<8x128xf32>
    %44 = arith.truncf %43 : vector<8x128xf32> to vector<8x128xbf16>
    %c0_32 = arith.constant 0 : index
    %c512 = arith.constant 512 : index
    %45 = vector.load %arg12[%c0_32, %c512] : memref<8x896xbf16, #tpu.memory_space<vmem>>, vector<8x128xbf16>
    tpu.vector_store %arg12[%c0_32, %c512], %44 {strides = array<i32>} : memref<8x896xbf16, #tpu.memory_space<vmem>>, vector<8x128xbf16>,
    %c0_33 = arith.constant 0 : index
    %c4224_34 = arith.constant 4224 : index
    %46 = vector.load %arg11[%c0_33, %c4224_34] : memref<8x6912xbf16, #tpu.memory_space<vmem>>, vector<8x1408xbf16>
    %c1408_35 = arith.constant 1408 : index
    %c0_36 = arith.constant 0 : index
    %47 = vector.load %arg2[%c1408_35, %c0_36] : memref<5632x128xbf16, #tpu.memory_space<vmem>>, vector<1408x128xbf16>
    %cst_37 = arith.constant dense<0.000000e+00> : vector<8x128xf32>
    %48 = tpu.matmul %46, %47, %cst_37 {dimension_numbers = #tpu.dot_dimension_numbers<[1], [0], [0], [1], [0, 0, 1, 1], [], []>} : vector<8x1408xbf16>, vector<1408x128xbf16>, vector<8x128xf32> -> vector<8x128xf32>
    %49 = arith.addf %48, %5 : vector<8x128xf32>
    %cst_38 = arith.constant 0.000000e+00 : f32
    %50 = vector.broadcast %cst_38 : f32 to vector<8x128xf32>
    %51 = arith.maximumf %49, %50 : vector<8x128xf32>
    %52 = arith.truncf %51 : vector<8x128xf32> to vector<8x128xbf16>
    %c0_39 = arith.constant 0 : index
    %c640 = arith.constant 640 : index
    %53 = vector.load %arg12[%c0_39, %c640] : memref<8x896xbf16, #tpu.memory_space<vmem>>, vector<8x128xbf16>
    tpu.vector_store %arg12[%c0_39, %c640], %52 {strides = array<i32>} : memref<8x896xbf16, #tpu.memory_space<vmem>>, vector<8x128xbf16>,
    %c0_40 = arith.constant 0 : index
    %c5120 = arith.constant 5120 : index
    %54 = vector.load %arg11[%c0_40, %c5120] : memref<8x6912xbf16, #tpu.memory_space<vmem>>, vector<8x1408xbf16>
    %c2816_41 = arith.constant 2816 : index
    %c0_42 = arith.constant 0 : index
    %55 = vector.load %arg2[%c2816_41, %c0_42] : memref<5632x128xbf16, #tpu.memory_space<vmem>>, vector<1408x128xbf16>
    %cst_43 = arith.constant dense<0.000000e+00> : vector<8x128xf32>
    %56 = tpu.matmul %54, %55, %cst_43 {dimension_numbers = #tpu.dot_dimension_numbers<[1], [0], [0], [1], [0, 0, 1, 1], [], []>} : vector<8x1408xbf16>, vector<1408x128xbf16>, vector<8x128xf32> -> vector<8x128xf32>
    %57 = arith.addf %56, %5 : vector<8x128xf32>
    %cst_44 = arith.constant 0.000000e+00 : f32
    %58 = vector.broadcast %cst_44 : f32 to vector<8x128xf32>
    %59 = arith.maximumf %57, %58 : vector<8x128xf32>
    %60 = arith.truncf %59 : vector<8x128xf32> to vector<8x128xbf16>
    %c0_45 = arith.constant 0 : index
    %c768_46 = arith.constant 768 : index
    %61 = vector.load %arg12[%c0_45, %c768_46] : memref<8x896xbf16, #tpu.memory_space<vmem>>, vector<8x128xbf16>
    tpu.vector_store %arg12[%c0_45, %c768_46], %60 {strides = array<i32>} : memref<8x896xbf16, #tpu.memory_space<vmem>>, vector<8x128xbf16>,
    %c0_47 = arith.constant 0 : index
    %c0_48 = arith.constant 0 : index
    %62 = vector.load %arg12[%c0_47, %c0_48] : memref<8x896xbf16, #tpu.memory_space<vmem>>, vector<8x896xbf16>
    %c0_49 = arith.constant 0 : index
    %c0_50 = arith.constant 0 : index
    %63 = vector.load %arg4[%c0_49, %c0_50] : memref<896x1152xbf16, #tpu.memory_space<vmem>>, vector<896x384xbf16>
    %cst_51 = arith.constant dense<0.000000e+00> : vector<8x384xf32>
    %64 = tpu.matmul %62, %63, %cst_51 {dimension_numbers = #tpu.dot_dimension_numbers<[1], [0], [0], [1], [0, 0, 1, 1], [], []>} : vector<8x896xbf16>, vector<896x384xbf16>, vector<8x384xf32> -> vector<8x384xf32>
    %c0_52 = arith.constant 0 : index
    %c0_53 = arith.constant 0 : index
    %65 = vector.load %arg5[%c0_52, %c0_53] : memref<1x1152xf32, #tpu.memory_space<vmem>>, vector<1x384xf32>
    %66 = vector.broadcast %65 : vector<1x384xf32> to vector<8x384xf32>
    %67 = arith.addf %64, %66 : vector<8x384xf32>
    %cst_54 = arith.constant 0.000000e+00 : f32
    %68 = vector.broadcast %cst_54 : f32 to vector<8x384xf32>
    %69 = arith.maximumf %67, %68 : vector<8x384xf32>
    %70 = arith.truncf %69 : vector<8x384xf32> to vector<8x384xbf16>
    %c0_55 = arith.constant 0 : index
    %c0_56 = arith.constant 0 : index
    %71 = vector.load %arg13[%c0_55, %c0_56] : memref<8x1152xbf16, #tpu.memory_space<vmem>>, vector<8x384xbf16>
    tpu.vector_store %arg13[%c0_55, %c0_56], %70 {strides = array<i32>} : memref<8x1152xbf16, #tpu.memory_space<vmem>>, vector<8x384xbf16>,
    %c0_57 = arith.constant 0 : index
    %c0_58 = arith.constant 0 : index
    %72 = vector.load %arg12[%c0_57, %c0_58] : memref<8x896xbf16, #tpu.memory_space<vmem>>, vector<8x896xbf16>
    %c0_59 = arith.constant 0 : index
    %c384_60 = arith.constant 384 : index
    %73 = vector.load %arg4[%c0_59, %c384_60] : memref<896x1152xbf16, #tpu.memory_space<vmem>>, vector<896x384xbf16>
    %cst_61 = arith.constant dense<0.000000e+00> : vector<8x384xf32>
    %74 = tpu.matmul %72, %73, %cst_61 {dimension_numbers = #tpu.dot_dimension_numbers<[1], [0], [0], [1], [0, 0, 1, 1], [], []>} : vector<8x896xbf16>, vector<896x384xbf16>, vector<8x384xf32> -> vector<8x384xf32>
    %c0_62 = arith.constant 0 : index
    %c384_63 = arith.constant 384 : index
    %75 = vector.load %arg5[%c0_62, %c384_63] : memref<1x1152xf32, #tpu.memory_space<vmem>>, vector<1x384xf32>
    %76 = vector.broadcast %75 : vector<1x384xf32> to vector<8x384xf32>
    %77 = arith.addf %74, %76 : vector<8x384xf32>
    %cst_64 = arith.constant 0.000000e+00 : f32
    %78 = vector.broadcast %cst_64 : f32 to vector<8x384xf32>
    %79 = arith.maximumf %77, %78 : vector<8x384xf32>
    %80 = arith.truncf %79 : vector<8x384xf32> to vector<8x384xbf16>
    %c0_65 = arith.constant 0 : index
    %c384_66 = arith.constant 384 : index
    %81 = vector.load %arg13[%c0_65, %c384_66] : memref<8x1152xbf16, #tpu.memory_space<vmem>>, vector<8x384xbf16>
    tpu.vector_store %arg13[%c0_65, %c384_66], %80 {strides = array<i32>} : memref<8x1152xbf16, #tpu.memory_space<vmem>>, vector<8x384xbf16>,
    %c0_67 = arith.constant 0 : index
    %c0_68 = arith.constant 0 : index
    %82 = vector.load %arg12[%c0_67, %c0_68] : memref<8x896xbf16, #tpu.memory_space<vmem>>, vector<8x896xbf16>
    %c0_69 = arith.constant 0 : index
    %c768_70 = arith.constant 768 : index
    %83 = vector.load %arg4[%c0_69, %c768_70] : memref<896x1152xbf16, #tpu.memory_space<vmem>>, vector<896x384xbf16>
    %cst_71 = arith.constant dense<0.000000e+00> : vector<8x384xf32>
    %84 = tpu.matmul %82, %83, %cst_71 {dimension_numbers = #tpu.dot_dimension_numbers<[1], [0], [0], [1], [0, 0, 1, 1], [], []>} : vector<8x896xbf16>, vector<896x384xbf16>, vector<8x384xf32> -> vector<8x384xf32>
    %c0_72 = arith.constant 0 : index
    %c768_73 = arith.constant 768 : index
    %85 = vector.load %arg5[%c0_72, %c768_73] : memref<1x1152xf32, #tpu.memory_space<vmem>>, vector<1x384xf32>
    %86 = vector.broadcast %85 : vector<1x384xf32> to vector<8x384xf32>
    %87 = arith.addf %84, %86 : vector<8x384xf32>
    %cst_74 = arith.constant 0.000000e+00 : f32
    %88 = vector.broadcast %cst_74 : f32 to vector<8x384xf32>
    %89 = arith.maximumf %87, %88 : vector<8x384xf32>
    %90 = arith.truncf %89 : vector<8x384xf32> to vector<8x384xbf16>
    %c0_75 = arith.constant 0 : index
    %c768_76 = arith.constant 768 : index
    %91 = vector.load %arg13[%c0_75, %c768_76] : memref<8x1152xbf16, #tpu.memory_space<vmem>>, vector<8x384xbf16>
    tpu.vector_store %arg13[%c0_75, %c768_76], %90 {strides = array<i32>} : memref<8x1152xbf16, #tpu.memory_space<vmem>>, vector<8x384xbf16>,
    %c0_77 = arith.constant 0 : index
    %c0_78 = arith.constant 0 : index
    %92 = vector.load %arg13[%c0_77, %c0_78] : memref<8x1152xbf16, #tpu.memory_space<vmem>>, vector<8x1152xbf16>
    %c0_79 = arith.constant 0 : index
    %c0_80 = arith.constant 0 : index
    %93 = vector.load %arg6[%c0_79, %c0_80] : memref<1152x256xbf16, #tpu.memory_space<vmem>>, vector<1152x256xbf16>
    %cst_81 = arith.constant dense<0.000000e+00> : vector<8x256xf32>
    %94 = tpu.matmul %92, %93, %cst_81 {dimension_numbers = #tpu.dot_dimension_numbers<[1], [0], [0], [1], [0, 0, 1, 1], [], []>} : vector<8x1152xbf16>, vector<1152x256xbf16>, vector<8x256xf32> -> vector<8x256xf32>
    %c0_82 = arith.constant 0 : index
    %c0_83 = arith.constant 0 : index
    %95 = vector.load %arg7[%c0_82, %c0_83] : memref<1x256xf32, #tpu.memory_space<vmem>>, vector<1x256xf32>
    %96 = vector.broadcast %95 : vector<1x256xf32> to vector<8x256xf32>
    %97 = arith.addf %94, %96 : vector<8x256xf32>
    %cst_84 = arith.constant 0.000000e+00 : f32
    %98 = vector.broadcast %cst_84 : f32 to vector<8x256xf32>
    %99 = arith.maximumf %97, %98 : vector<8x256xf32>
    %100 = arith.truncf %99 : vector<8x256xf32> to vector<8x256xbf16>
    %c0_85 = arith.constant 0 : index
    %c0_86 = arith.constant 0 : index
    %101 = vector.load %arg8[%c0_85, %c0_86] : memref<256x128xbf16, #tpu.memory_space<vmem>>, vector<256x128xbf16>
    %cst_87 = arith.constant dense<0.000000e+00> : vector<8x128xf32>
    %102 = tpu.matmul %100, %101, %cst_87 {dimension_numbers = #tpu.dot_dimension_numbers<[1], [0], [0], [1], [0, 0, 1, 1], [], []>} : vector<8x256xbf16>, vector<256x128xbf16>, vector<8x128xf32> -> vector<8x128xf32>
    %c0_88 = arith.constant 0 : index
    %c0_89 = arith.constant 0 : index
    %103 = vector.load %arg9[%c0_88, %c0_89] : memref<1x128xf32, #tpu.memory_space<vmem>>, vector<1x128xf32>
    %104 = vector.broadcast %103 : vector<1x128xf32> to vector<8x128xf32>
    %105 = arith.addf %102, %104 : vector<8x128xf32>
    %c0_90 = arith.constant 0 : index
    %c0_91 = arith.constant 0 : index
    %106 = vector.load %arg10[%c0_90, %c0_91] : memref<8x128xf32, #tpu.memory_space<vmem>>, vector<8x128xf32>
    tpu.vector_store %arg10[%c0_90, %c0_91], %105 {strides = array<i32>} : memref<8x128xf32, #tpu.memory_space<vmem>>, vector<8x128xf32>,
    return
  }
  func.func @transform_0(%arg0: i32) -> (i32, i32) {
    %c0_i32 = arith.constant 0 : i32
    %c0_i32_0 = arith.constant 0 : i32
    return %arg0, %c0_i32 : i32, i32
  }
  func.func @transform_1(%arg0: i32) -> (i32, i32) {
    %c0_i32 = arith.constant 0 : i32
    %c0_i32_0 = arith.constant 0 : i32
    %c0_i32_1 = arith.constant 0 : i32
    return %c0_i32, %c0_i32_0 : i32, i32
  }
  func.func @transform_2(%arg0: i32) -> (i32, i32) {
    %c0_i32 = arith.constant 0 : i32
    %c0_i32_0 = arith.constant 0 : i32
    %c0_i32_1 = arith.constant 0 : i32
    return %c0_i32, %c0_i32_0 : i32, i32
  }
  func.func @transform_3(%arg0: i32) -> (i32, i32) {
    %c0_i32 = arith.constant 0 : i32
    %c0_i32_0 = arith.constant 0 : i32
    %c0_i32_1 = arith.constant 0 : i32
    return %c0_i32, %c0_i32_0 : i32, i32
  }
  func.func @transform_4(%arg0: i32) -> (i32, i32) {
    %c0_i32 = arith.constant 0 : i32
    %c0_i32_0 = arith.constant 0 : i32
    %c0_i32_1 = arith.constant 0 : i32
    return %c0_i32, %c0_i32_0 : i32, i32
  }
  func.func @transform_5(%arg0: i32) -> (i32, i32) {
    %c0_i32 = arith.constant 0 : i32
    %c0_i32_0 = arith.constant 0 : i32
    %c0_i32_1 = arith.constant 0 : i32
    return %c0_i32, %c0_i32_0 : i32, i32
  }
  func.func @transform_6(%arg0: i32) -> (i32, i32) {
    %c0_i32 = arith.constant 0 : i32
    %c0_i32_0 = arith.constant 0 : i32
    %c0_i32_1 = arith.constant 0 : i32
    return %c0_i32, %c0_i32_0 : i32, i32
  }
  func.func @transform_7(%arg0: i32) -> (i32, i32) {
    %c0_i32 = arith.constant 0 : i32
    %c0_i32_0 = arith.constant 0 : i32
    %c0_i32_1 = arith.constant 0 : i32
    return %c0_i32, %c0_i32_0 : i32, i32
  }
  func.func @transform_8(%arg0: i32) -> (i32, i32) {
    %c0_i32 = arith.constant 0 : i32
    %c0_i32_0 = arith.constant 0 : i32
    %c0_i32_1 = arith.constant 0 : i32
    return %c0_i32, %c0_i32_0 : i32, i32
  }
  func.func @transform_9(%arg0: i32) -> (i32, i32) {
    %c0_i32 = arith.constant 0 : i32
    %c0_i32_0 = arith.constant 0 : i32
    return %arg0, %c0_i32 : i32, i32
  }
}

</mosaic_0001>

<bundles_post_ra>
// kernel: actor_forward.1
= control target key start
LH: loop header
LB: loop body
LE: loop exit
PB: predicated region body
PF: predicated region fallthrough
CT: control target
= control target key end

     0   :  { %14 = vsyncpa [#allocation6], 0  ;;  %s18611_s0 = inlined_call_operand.vmem [shape: f32[8,6912], index: 0, kind: input, shape index: {}]   ;;  %s18612_s1 = inlined_call_operand.hbm [shape: bf16[5632,128], index: 1, kind: input, shape index: {}]   ;;  %s18613_s2 = inlined_call_operand.hbm [shape: f32[1,128], index: 2, kind: input, shape index: {}]   ;;  %s18614_s3 = inlined_call_operand.hbm [shape: bf16[896,1152], index: 3, kind: input, shape index: {}]   ;;  %s18615_s4 = inlined_call_operand.hbm [shape: f32[1,1152], index: 4, kind: input, shape index: {}]   ;;  %s18616_s5 = inlined_call_operand.hbm [shape: bf16[1152,256], index: 5, kind: input, shape index: {}]   ;;  %s18617_s6 = inlined_call_operand.hbm [shape: f32[1,256], index: 6, kind: input, shape index: {}]   ;;  %s18618_s7 = inlined_call_operand.hbm [shape: bf16[256,128], index: 7, kind: input, shape index: {}]   ;;  %s18619_s8 = inlined_call_operand.hbm [shape: f32[1,128], index: 8, kind: input, shape index: {}]   ;;  %s18620_s9 = inlined_call_operand.vmem [shape: f32[8,128], index: 9, kind: output, shape index: {}]  }
   0x1   :  { %15 = vsyncpa [#allocation8], 0 }
   0x2   :  { %16 = vsyncpa [#allocation11], 0 }
   0x3   :  { %17 = vsyncpa [#allocation14], 0 }
   0x4   :  { %18 = vsyncpa [#allocation17], 0  ;;  %s17830_s30 = smov [#allocation7]   ;;  %s17831_s11 = smov [#allocation10]  }
   0x5   :  { %s39_s10 = sshll.u32 %s17830_s30, 4  ;;  %s61_s12 = sshll.u32 %s17831_s11, 4  ;;  %s40_s10 = int_to_ptr.vmem [resolvable:$true] %s39_s10  ;;  %s62_s12 = int_to_ptr.vmem [resolvable:$true] %s61_s12 }
   0x6   :  { %s17644_s15 = scalar_lea.hbm %s18613_s2, 16 }
   0x7   :  { %p17645_p0 = scmp.ne.s32.totalorder %s18613_s2, %s17644_s15  ;;  %p17648_p1 = scmp.lt.u32.totalorder %s17644_s15, %s18613_s2 }
   0x9   :  { %p17650_p2 = pnand %p17648_p1, %p17645_p0 }
   0xb   :  { %17653 = shalt.err (!%p17650_p2)
}
   0xc   :  { %s17654_s20 = scalar_lea.vmem %s40_s10, 16  ;;  %s17658_s21 = scalar_lea.vmem %s40_s10, 32 }
   0xd   :  { %p17655_p3 = scmp.ne.s32.totalorder %s40_s10, %s17654_s20  ;;  %p17659_p4 = scmp.lt.s32.totalorder %s40_s10, %s40_s10 }
   0xe   :  { %p17660_p5 = scmp.lt.s32.totalorder %s17658_s21, %s17654_s20 }
  0x10   :  { %p17661_p6 = por %p17660_p5, %p17659_p4 }
  0x12   :  { %p17662_p7 = pnand %p17661_p6, %p17655_p3 }
  0x14   :  { %17665 = shalt.err (!%p17662_p7)
}
  0x15   :  { %42 = dma.hbm_to_vmem [thread:$0]  %s18613_s2, 16, %s40_s10, [#allocation8]  }
  0x16   :  { %s17666_s26 = scalar_lea.hbm %s18615_s4, 144 }
  0x17   :  { %p17667_p8 = scmp.ne.s32.totalorder %s18615_s4, %s17666_s26  ;;  %p17670_p9 = scmp.lt.u32.totalorder %s17666_s26, %s18615_s4 }
  0x19   :  { %p17672_p10 = pnand %p17670_p9, %p17667_p8 }
  0x1b   :  { %17675 = shalt.err (!%p17672_p10)
}
  0x1c   :  { %s17676_s11 = scalar_lea.vmem %s62_s12, 144  ;;  %s17680_s13 = scalar_lea.vmem %s62_s12, 160 }
  0x1d   :  { %p17677_p11 = scmp.ne.s32.totalorder %s62_s12, %s17676_s11  ;;  %p17681_p12 = scmp.lt.s32.totalorder %s62_s12, %s62_s12 }
  0x1e   :  { %p17682_p13 = scmp.lt.s32.totalorder %s17680_s13, %s17676_s11 }
  0x20   :  { %p17683_p0 = por %p17682_p13, %p17681_p12 }
  0x22   :  { %p17684_p1 = pnand %p17683_p0, %p17677_p11 }
  0x24   :  { %17687 = shalt.err (!%p17684_p1)
}
  0x25   :  { %64 = dma.hbm_to_vmem [thread:$0]  %s18615_s4, 144, %s62_s12, [#allocation11]  }
  0x26   :  { %s17832_s14 = smov [#allocation13]   ;;  %s17833_s16 = smov [#allocation5]  }
  0x27   :  { %s83_s15 = sshll.u32 %s17832_s14, 4  ;;  %s26_s17 = sshll.u32 %s17833_s16, 4  ;;  %s84_s15 = int_to_ptr.vmem [resolvable:$true] %s83_s15  ;;  %s17921_s17 = int_to_ptr.vmem [resolvable:$true] %s26_s17 }
  0x28   :  { %s17688_s20 = scalar_lea.hbm %s18617_s6, 32 }
  0x29   :  { %p17689_p2 = scmp.ne.s32.totalorder %s18617_s6, %s17688_s20  ;;  %p17692_p3 = scmp.lt.u32.totalorder %s17688_s20, %s18617_s6 }
  0x2b   :  { %p17694_p4 = pnand %p17692_p3, %p17689_p2 }
  0x2d   :  { %17697 = shalt.err (!%p17694_p4)
}
  0x2e   :  { %s17698_s4 = scalar_lea.vmem %s84_s15, 32  ;;  %p17703_p6 = scmp.lt.s32.totalorder %s84_s15, %s84_s15 }
  0x2f   :  { %p17699_p5 = scmp.ne.s32.totalorder %s84_s15, %s17698_s4  ;;  %p17704_p7 = scmp.lt.s32.totalorder %s17698_s4, %s17698_s4 }
  0x31   :  { %p17705_p8 = por %p17704_p7, %p17703_p6 }
  0x33   :  { %p17706_p9 = pnand %p17705_p8, %p17699_p5 }
  0x35   :  { %17709 = shalt.err (!%p17706_p9)
}
  0x36   :  { %86 = dma.hbm_to_vmem [thread:$0]  %s18617_s6, 32, %s84_s15, [#allocation14]  }
  0x37   :  { %s17710_s28 = scalar_lea.hbm %s18612_s1, 45056 }
  0x38   :  { %p17711_p10 = scmp.ne.s32.totalorder %s18612_s1, %s17710_s28  ;;  %p17714_p11 = scmp.lt.u32.totalorder %s17710_s28, %s18612_s1 }
  0x3a   :  { %p17716_p12 = pnand %p17714_p11, %p17711_p10 }
  0x3c   :  { %17719 = shalt.err (!%p17716_p12)
}
  0x3d   :  { %s17720_s2 = scalar_lea.vmem %s17921_s17, 45056  ;;  %p17725_p0 = scmp.lt.s32.totalorder %s17921_s17, %s17921_s17 }
  0x3e   :  { %p17721_p13 = scmp.ne.s32.totalorder %s17921_s17, %s17720_s2  ;;  %p17726_p1 = scmp.lt.s32.totalorder %s17720_s2, %s17720_s2 }
  0x40   :  { %p17727_p2 = por %p17726_p1, %p17725_p0 }
  0x42   :  { %p17728_p3 = pnand %p17727_p2, %p17721_p13 }
  0x44   :  { %17731 = shalt.err (!%p17728_p3)
}
  0x45   :  { %s17834_s6 = smov 64   ;;  %s17835_s10 = smov 4  }
  0x46   :  { %32 = dma.hbm_to_vmem [thread:$0]  %s18612_s1, 45056, %s17921_s17, [#allocation6], %s17834_s6, %s17834_s6, %s17835_s10  }
  0x47   :  { %s17836_s16 = smov [#allocation9]   ;;  %s17732_s21 = scalar_lea.hbm %s18614_s3, 64512 }
  0x48   :  { %s48_s18 = sshll.u32 %s17836_s16, 4  ;;  %p17733_p4 = scmp.ne.s32.totalorder %s18614_s3, %s17732_s21  ;;  %s49_s18 = int_to_ptr.vmem [resolvable:$true] %s48_s18 }
  0x49   :  { %p17736_p5 = scmp.lt.u32.totalorder %s17732_s21, %s18614_s3 }
  0x4b   :  { %p17738_p6 = pnand %p17736_p5, %p17733_p4 }
  0x4d   :  { %17741 = shalt.err (!%p17738_p6)
}
  0x4e   :  { %s17742_s12 = scalar_lea.vmem %s49_s18, 64512  ;;  %p17747_p8 = scmp.lt.s32.totalorder %s49_s18, %s49_s18 }
  0x4f   :  { %p17743_p7 = scmp.ne.s32.totalorder %s49_s18, %s17742_s12  ;;  %p17748_p9 = scmp.lt.s32.totalorder %s17742_s12, %s17742_s12 }
  0x51   :  { %p17749_p10 = por %p17748_p9, %p17747_p8 }
  0x53   :  { %p17750_p11 = pnand %p17749_p10, %p17743_p7 }
  0x55   :  { %17753 = shalt.err (!%p17750_p11)
}
  0x56   :  { %s17837_s1 = smov 576   ;;  %s17838_s17 = smov 36  }
  0x57   :  { %54 = dma.hbm_to_vmem [thread:$0]  %s18614_s3, 64512, %s49_s18, [#allocation8], %s17837_s1, %s17837_s1, %s17838_s17  }
  0x58   :  { %s17839_s27 = smov [#allocation12]   ;;  %s17754_s11 = scalar_lea.hbm %s18616_s5, 18432 }
  0x59   :  { %s70_s28 = sshll.u32 %s17839_s27, 4  ;;  %p17755_p12 = scmp.ne.s32.totalorder %s18616_s5, %s17754_s11  ;;  %s71_s28 = int_to_ptr.vmem [resolvable:$true] %s70_s28 }
  0x5a   :  { %p17758_p13 = scmp.lt.u32.totalorder %s17754_s11, %s18616_s5 }
  0x5c   :  { %p17760_p0 = pnand %p17758_p13, %p17755_p12 }
  0x5e   :  { %17763 = shalt.err (!%p17760_p0)
}
  0x5f   :  { %s17764_s16 = scalar_lea.vmem %s71_s28, 18432  ;;  %p17769_p2 = scmp.lt.s32.totalorder %s71_s28, %s71_s28 }
  0x60   :  { %p17765_p1 = scmp.ne.s32.totalorder %s71_s28, %s17764_s16  ;;  %p17770_p3 = scmp.lt.s32.totalorder %s17764_s16, %s17764_s16 }
  0x62   :  { %p17771_p4 = por %p17770_p3, %p17769_p2 }
  0x64   :  { %p17772_p5 = pnand %p17771_p4, %p17765_p1 }
  0x66   :  { %17775 = shalt.err (!%p17772_p5)
}
  0x67   :  { %s17840_s3 = smov 128   ;;  %s17841_s18 = smov 8  }
  0x68   :  { %76 = dma.hbm_to_vmem [thread:$0]  %s18616_s5, 18432, %s71_s28, [#allocation11], %s17840_s3, %s17840_s3, %s17841_s18  }
  0x69   :  { %s17842_s21 = smov [#allocation15]   ;;  %s17843_s23 = smov [#allocation16]  }
  0x6a   :  { %s92_s22 = sshll.u32 %s17842_s21, 4  ;;  %s105_s24 = sshll.u32 %s17843_s23, 4  ;;  %s93_s22 = int_to_ptr.vmem [resolvable:$true] %s92_s22  ;;  %s106_s24 = int_to_ptr.vmem [resolvable:$true] %s105_s24 }
  0x6b   :  { %s17776_s1 = scalar_lea.hbm %s18618_s7, 2048 }
  0x6c   :  { %p17777_p6 = scmp.ne.s32.totalorder %s18618_s7, %s17776_s1  ;;  %p17780_p7 = scmp.lt.u32.totalorder %s17776_s1, %s18618_s7 }
  0x6e   :  { %p17782_p8 = pnand %p17780_p7, %p17777_p6 }
  0x70   :  { %17785 = shalt.err (!%p17782_p8)
}
  0x71   :  { %s17786_s5 = scalar_lea.vmem %s93_s22, 2048  ;;  %p17791_p10 = scmp.lt.s32.totalorder %s93_s22, %s93_s22 }
  0x72   :  { %p17787_p9 = scmp.ne.s32.totalorder %s93_s22, %s17786_s5  ;;  %p17792_p11 = scmp.lt.s32.totalorder %s17786_s5, %s17786_s5 }
  0x74   :  { %p17793_p12 = por %p17792_p11, %p17791_p10 }
  0x76   :  { %p17794_p13 = pnand %p17793_p12, %p17787_p9 }
  0x78   :  { %17797 = shalt.err (!%p17794_p13)
}
  0x79   :  { %98 = dma.hbm_to_vmem [thread:$0]  %s18618_s7, 2048, %s93_s22, [#allocation14], %s17834_s6, %s17834_s6, %s17835_s10  }
  0x7a   :  { %s17798_s13 = scalar_lea.hbm %s18619_s8, 16 }
  0x7b   :  { %p17799_p0 = scmp.ne.s32.totalorder %s18619_s8, %s17798_s13  ;;  %p17802_p1 = scmp.lt.u32.totalorder %s17798_s13, %s18619_s8 }
  0x7d   :  { %p17804_p2 = pnand %p17802_p1, %p17799_p0 }
  0x7f   :  { %17807 = shalt.err (!%p17804_p2)
}
  0x80   :  { %s17808_s3 = scalar_lea.vmem %s106_s24, 16  ;;  %s17812_s18 = scalar_lea.vmem %s106_s24, 32 }
  0x81   :  { %p17809_p3 = scmp.ne.s32.totalorder %s106_s24, %s17808_s3  ;;  %p17813_p4 = scmp.lt.s32.totalorder %s106_s24, %s106_s24 }
  0x82   :  { %p17814_p5 = scmp.lt.s32.totalorder %s17812_s18, %s17808_s3 }
  0x84   :  { %p17815_p6 = por %p17814_p5, %p17813_p4 }
  0x86   :  { %p17816_p7 = pnand %p17815_p6, %p17809_p3 }
  0x88   :  { %17819 = shalt.err (!%p17816_p7)
}
  0x89   :  { %108 = dma.hbm_to_vmem [thread:$0]  %s18619_s8, 16, %s106_s24, [#allocation17]  }
  0x8a   :  { %17820 = dma.done.wait [#allocation6], 45056  }
  0x8b   :  { %17821 = vsyncadd [#allocation6], 4294922240 }
  0x8c   :  { %17822 = dma.done.wait [#allocation8], 64528  }
  0x8d   :  { %17823 = vsyncadd [#allocation8], 4294902768 }
  0x8e   :  { %17824 = dma.done.wait [#allocation11], 18576  }
  0x8f   :  { %17825 = vsyncadd [#allocation11], 4294948720 }
  0x90   :  { %17826 = dma.done.wait [#allocation14], 2080  }
  0x91   :  { %17827 = vsyncadd [#allocation14], 4294965216 }
  0x92   :  { %17828 = dma.done.wait [#allocation17], 16  }
  0x93   :  { %17829 = vsyncadd [#allocation17], 4294967280  ;;  %v16023_v0 = vld [vmem:[#allocation5 + $0x40] sm:$0xff]   ;;  %v16027_v4 = vld [vmem:[#allocation5 + $0x48] sm:$0xff]   ;;  %vm17845_vm0 = vmmov 0  }
  0x94   :  { %v16024_v1 = vld [vmem:[#allocation5 + $0xc0] sm:$0xff]   ;;  %14668 = vmatprep.subr.bf16.mxu0 %v16023_v0  ;;  %v16028_v5 = vld [vmem:[#allocation5 + $0xc8] sm:$0xff]   ;;  %v16031_v8 = vld [vmem:[#allocation5 + $0x50] sm:$0xff]  }
  0x95   :  { %v16025_v2 = vld [vmem:[#allocation5] sm:$0xff]   ;;  %14690 = vmatprep.subr.bf16.mxu1 %v16024_v1  ;;  %v16029_v6 = vld [vmem:[#allocation5 + $0x8] sm:$0xff]   ;;  %v16032_v9 = vld [vmem:[#allocation5 + $0xd0] sm:$0xff]  }
  0x96   :  { %v16026_v3 = vld [vmem:[#allocation5 + $0x80] sm:$0xff]   ;;  %14669 = vmatpush3.bf16.msra.mxu0 %v16025_v2  ;;  %v16030_v7 = vld [vmem:[#allocation5 + $0x88] sm:$0xff]   ;;  %v16033_v10 = vld [vmem:[#allocation5 + $0x10] sm:$0xff]  }
  0x97   :  { %14691 = vmatpush3.bf16.msra.mxu1 %v16026_v3  ;;  %14670 = vmatprep.subr.bf16.mxu0 %v16027_v4  ;;  %v16034_v11 = vld [vmem:[#allocation5 + $0x90] sm:$0xff]   ;;  %v16035_v12 = vld [vmem:[#allocation5 + $0x58] sm:$0xff]   ;;  %v16039_v16 = vld [vmem:[#allocation5 + $0x60] sm:$0xff]  }
  0x98   :  { %14692 = vmatprep.subr.bf16.mxu1 %v16028_v5  ;;  %v16036_v13 = vld [vmem:[#allocation5 + $0xd8] sm:$0xff]   ;;  %v16040_v17 = vld [vmem:[#allocation5 + $0xe0] sm:$0xff]   ;;  %v16043_v20 = vld [vmem:[#allocation5 + $0x68] sm:$0xff]  }
  0x99   :  { %v16037_v14 = vld [vmem:[#allocation5 + $0x18] sm:$0xff]   ;;  %v16041_v18 = vld [vmem:[#allocation5 + $0x20] sm:$0xff]   ;;  %v16044_v21 = vld [vmem:[#allocation5 + $0xe8] sm:$0xff]  }
  0x9a   :  { %14671 = vmatpush3.bf16.msra.mxu0 %v16029_v6  ;;  %v16038_v15 = vld [vmem:[#allocation5 + $0x98] sm:$0xff]   ;;  %v16042_v19 = vld [vmem:[#allocation5 + $0xa0] sm:$0xff]   ;;  %v16045_v22 = vld [vmem:[#allocation5 + $0x28] sm:$0xff]  }
  0x9b   :  { %14693 = vmatpush3.bf16.msra.mxu1 %v16030_v7  ;;  %14672 = vmatprep.subr.bf16.mxu0 %v16031_v8  ;;  %v16046_v23 = vld [vmem:[#allocation5 + $0xa8] sm:$0xff]   ;;  %v16047_v24 = vld [vmem:[#allocation5 + $0x70] sm:$0xff]   ;;  %v16051_v28 = vld [vmem:[#allocation5 + $0x78] sm:$0xff]  }
  0x9c   :  { %14694 = vmatprep.subr.bf16.mxu1 %v16032_v9  ;;  %v16048_v25 = vld [vmem:[#allocation5 + $0xf0] sm:$0xff]   ;;  %v16052_v29 = vld [vmem:[#allocation5 + $0xf8] sm:$0xff]   ;;  %v134_v32 = vld [vmem:[%s18611_s0] sm:$0xff] }
  0x9d   :  { %v16049_v26 = vld [vmem:[#allocation5 + $0x30] sm:$0xff]   ;;  %v16053_v30 = vld [vmem:[#allocation5 + $0x38] sm:$0xff]   ;;  %v137_v35 = vld [vmem:[%s18611_s0 + $0x18] sm:$0xff]  ;;  %v17604_v38 = vpack.c.bf16 %v134_v32, %v134_v32 }
  0x9e   :  { %14673 = vmatpush3.bf16.msra.mxu0 %v16033_v10  ;;  %v16050_v27 = vld [vmem:[#allocation5 + $0xb0] sm:$0xff]   ;;  %v16054_v31 = vld [vmem:[#allocation5 + $0xb8] sm:$0xff]   ;;  %v16055_v36 = vld [vmem:[#allocation5 + $0x140] sm:$0xff]   ;;  %v17607_v41 = vpack.c.bf16 %v137_v35, %v137_v35 }
  0x9f   :  { %14695 = vmatpush3.bf16.msra.mxu1 %v16034_v11  ;;  %14674 = vmatprep.subr.bf16.mxu0 %v16035_v12  ;;  %v135_v33 = vld [vmem:[%s18611_s0 + $0x8] sm:$0xff]  ;;  %v136_v34 = vld [vmem:[%s18611_s0 + $0x10] sm:$0xff]  ;;  %v16056_v37 = vld [vmem:[#allocation5 + $0x1c0] sm:$0xff]  }
  0xa0   :  { %14696 = vmatprep.subr.bf16.mxu1 %v16036_v13  ;;  %v17605_v39 = vpack.c.bf16 %v135_v33, %v135_v33  ;;  %v17606_v40 = vpack.c.bf16 %v136_v34, %v136_v34  ;;  %v16057_v42 = vld [vmem:[#allocation5 + $0x100] sm:$0xff]   ;;  %1259 = vmatprep.mubr.bf16.mxu1 %v17607_v41  ;;  %v16059_v44 = vld [vmem:[#allocation5 + $0x148] sm:$0xff]   ;;  %v16063_v48 = vld [vmem:[#allocation5 + $0x150] sm:$0xff]  }
  0xa1   :  { %v16058_v43 = vld [vmem:[#allocation5 + $0x180] sm:$0xff]   ;;  %v16060_v45 = vld [vmem:[#allocation5 + $0x1c8] sm:$0xff]   ;;  %v16064_v49 = vld [vmem:[#allocation5 + $0x1d0] sm:$0xff]  }
  0xa2   :  { %14675 = vmatpush3.bf16.msra.mxu0 %v16037_v14  ;;  %1219 = vmatprep.mubr.bf16.mxu0 %v17605_v39  ;;  %v16061_v46 = vld [vmem:[#allocation5 + $0x108] sm:$0xff]   ;;  %v16065_v50 = vld [vmem:[#allocation5 + $0x110] sm:$0xff]   ;;  %v16067_v52 = vld [vmem:[#allocation5 + $0x158] sm:$0xff]  }
  0xa3   :  { %14697 = vmatpush3.bf16.msra.mxu1 %v16038_v15  ;;  %14676 = vmatprep.subr.bf16.mxu0 %v16039_v16  ;;  %v16062_v47 = vld [vmem:[#allocation5 + $0x188] sm:$0xff]   ;;  %v16066_v51 = vld [vmem:[#allocation5 + $0x190] sm:$0xff]   ;;  %v16068_v53 = vld [vmem:[#allocation5 + $0x1d8] sm:$0xff]   ;;  %v17844_v15 = vmov 0.0  }
  0xa4   :  { %14698 = vmatprep.subr.bf16.mxu1 %v16040_v17  ;;  %v16069_v54 = vld [vmem:[#allocation5 + $0x118] sm:$0xff]   ;;  %v16071_v56 = vld [vmem:[#allocation5 + $0x160] sm:$0xff]   ;;  %v16075_v60 = vld [vmem:[#allocation5 + $0x168] sm:$0xff]  }
  0xa5   :  { %v16070_v55 = vld [vmem:[#allocation5 + $0x198] sm:$0xff]   ;;  %v16072_v57 = vld [vmem:[#allocation5 + $0x1e0] sm:$0xff]   ;;  %v16076_v61 = vld [vmem:[#allocation5 + $0x1e8] sm:$0xff]  }
  0xa6   :  { %14677 = vmatpush3.bf16.msra.mxu0 %v16041_v18  ;;  %v16073_v58 = vld [vmem:[#allocation5 + $0x120] sm:$0xff]   ;;  %v16077_v62 = vld [vmem:[#allocation5 + $0x128] sm:$0xff]   ;;  %v16079_v0 = vld [vmem:[#allocation5 + $0x170] sm:$0xff]  }
  0xa7   :  { %14699 = vmatpush3.bf16.msra.mxu1 %v16042_v19  ;;  %14678 = vmatprep.subr.bf16.mxu0 %v16043_v20  ;;  %v16074_v59 = vld [vmem:[#allocation5 + $0x1a0] sm:$0xff]   ;;  %v16078_v63 = vld [vmem:[#allocation5 + $0x1a8] sm:$0xff]   ;;  %v16080_v1 = vld [vmem:[#allocation5 + $0x1f0] sm:$0xff]  }
  0xa8   :  { %14700 = vmatprep.subr.bf16.mxu1 %v16044_v21  ;;  %v16081_v2 = vld [vmem:[#allocation5 + $0x130] sm:$0xff]   ;;  %v16083_v4 = vld [vmem:[#allocation5 + $0x178] sm:$0xff]   ;;  %v138_v8 = vld [vmem:[%s18611_s0 + $0x20] sm:$0xff] }
  0xa9   :  { %v16082_v3 = vld [vmem:[#allocation5 + $0x1b0] sm:$0xff]   ;;  %v16084_v5 = vld [vmem:[#allocation5 + $0x1f8] sm:$0xff]   ;;  %v141_v11 = vld [vmem:[%s18611_s0 + $0x38] sm:$0xff]  ;;  %v17608_v13 = vpack.c.bf16 %v138_v8, %v138_v8 }
  0xaa   :  { %14679 = vmatpush3.bf16.msra.mxu0 %v16045_v22  ;;  %v16085_v6 = vld [vmem:[#allocation5 + $0x138] sm:$0xff]   ;;  %v139_v9 = vld [vmem:[%s18611_s0 + $0x28] sm:$0xff]  ;;  %v16087_v12 = vld [vmem:[#allocation5 + $0x240] sm:$0xff]   ;;  %v18033_v18 = vpack.c.bf16 %v141_v11, %v141_v11 }
  0xab   :  { %14701 = vmatpush3.bf16.msra.mxu1 %v16046_v23  ;;  %14680 = vmatprep.subr.bf16.mxu0 %v16047_v24  ;;  %v16086_v7 = vld [vmem:[#allocation5 + $0x1b8] sm:$0xff]   ;;  %v17609_v14 = vpack.c.bf16 %v139_v9, %v139_v9  ;;  %v16088_v16 = vld [vmem:[#allocation5 + $0x200] sm:$0xff]   ;;  %v16090_v20 = vld [vmem:[#allocation5 + $0x248] sm:$0xff]  }
  0xac   :  { %14702 = vmatprep.subr.bf16.mxu1 %v16048_v25  ;;  %v140_v10 = vld [vmem:[%s18611_s0 + $0x30] sm:$0xff]  ;;  %v16089_v19 = vld [vmem:[#allocation5 + $0x280] sm:$0xff]   ;;  %v16091_v21 = vld [vmem:[#allocation5 + $0x208] sm:$0xff]  }
  0xad   :  { %v18031_v17 = vpack.c.bf16 %v140_v10, %v140_v10  ;;  %v16092_v22 = vld [vmem:[#allocation5 + $0x288] sm:$0xff]   ;;  %v16093_v23 = vld [vmem:[#allocation5 + $0x250] sm:$0xff]  }
  0xae   :  { %14681 = vmatpush3.bf16.msra.mxu0 %v16049_v26  ;;  %v16094_v24 = vld [vmem:[#allocation5 + $0x210] sm:$0xff]   ;;  %v16096_v26 = vld [vmem:[#allocation5 + $0x258] sm:$0xff]   ;;  %v16102_v32 = vld [vmem:[#allocation5 + $0x268] sm:$0xff]  }
  0xaf   :  { %14703 = vmatpush3.bf16.msra.mxu1 %v16050_v27  ;;  %14682 = vmatprep.subr.bf16.mxu0 %v16051_v28  ;;  %v16095_v25 = vld [vmem:[#allocation5 + $0x290] sm:$0xff]   ;;  %v16097_v27 = vld [vmem:[#allocation5 + $0x218] sm:$0xff]   ;;  %v16103_v33 = vld [vmem:[#allocation5 + $0x228] sm:$0xff]  }
  0xb0   :  { %14704 = vmatprep.subr.bf16.mxu1 %v16052_v29  ;;  %v16098_v28 = vld [vmem:[#allocation5 + $0x298] sm:$0xff]   ;;  %v16099_v29 = vld [vmem:[#allocation5 + $0x260] sm:$0xff]   ;;  %v16104_v34 = vld [vmem:[#allocation5 + $0x2a8] sm:$0xff]  }
  0xb1   :  { %v16105_v35 = vld [vmem:[#allocation5 + $0x270] sm:$0xff]   ;;  %v16135_v9 = vld [vmem:[#allocation5 + $0x368] sm:$0xff]  }
  0xb2   :  { %14683 = vmatpush3.bf16.msra.mxu0 %v16053_v30  ;;  %v16100_v30 = vld [vmem:[#allocation5 + $0x220] sm:$0xff]   ;;  %v16107_v39 = vld [vmem:[#allocation5 + $0x2b0] sm:$0xff]  }
  0xb3   :  { %14705 = vmatpush3.bf16.msra.mxu1 %v16054_v31  ;;  %14712 = vmatprep.subr.bf16.mxu0 %v16055_v36  ;;  %v16101_v31 = vld [vmem:[#allocation5 + $0x2a0] sm:$0xff]   ;;  %v16106_v36 = vld [vmem:[#allocation5 + $0x230] sm:$0xff]  }
  0xb4   :  { %14734 = vmatprep.subr.bf16.mxu1 %v16056_v37  ;;  %v142_v37 = vld [vmem:[%s18611_s0 + $0x40] sm:$0xff]  ;;  %v16136_v8 = vld [vmem:[#allocation5 + $0x330] sm:$0xff]  }
  0xb5   :  { %1220 = vmatmul.mubr.bf16.vlgmr.msra.gmra.mrb[0].mxu0 %v17604_v38  ;;  %v143_v38 = vld [vmem:[%s18611_s0 + $0x48] sm:$0xff] }
  0xb6   :  { %1260 = vmatmul.mubr.bf16.vlgmr.msra.gmra.mrb[0].mxu1 %v17606_v40  ;;  %14713 = vmatpush3.bf16.msra.mxu0 %v16057_v42  ;;  %v16108_v40 = vld [vmem:[#allocation5 + $0x278] sm:$0xff]   ;;  %v17612_v41 = vpack.c.bf16 %v143_v38, %v143_v38  ;;  %v16137_v10 = vld [vmem:[#allocation5 + $0x3b0] sm:$0xff]   ;;  %v16164_v38 = vld [vmem:[#allocation5 + $0x428] sm:$0xff]  }
  0xb7   :  { %14735 = vmatpush3.bf16.msra.mxu1 %v16058_v43  ;;  %14714 = vmatprep.subr.bf16.mxu0 %v16059_v44  ;;  %v18053_v42 = vld [vmem:[%s18611_s0 + $0x50] sm:$0xff]  ;;  %v18058_v43 = vld [vmem:[%s18611_s0 + $0x58] sm:$0xff]  ;;  %v16138_v11 = vld [vmem:[#allocation5 + $0x2f0] sm:$0xff]  }
  0xb8   :  { %14736 = vmatprep.subr.bf16.mxu1 %v16060_v45  ;;  %1299 = vmatprep.mubr.bf16.mxu0 %v17609_v14  ;;  %v14640_v44 = vpack.c.bf16 %v18058_v43, %v18053_v42  ;;  %v16109_v45 = vld [vmem:[#allocation5 + $0x238] sm:$0xff]  }
  0xb9   :  { %1339 = vmatprep.mubr.bf16.mxu1 %v18033_v18  ;;  %v16141_v14 = vld [vmem:[#allocation5 + $0x3b8] sm:$0xff]  }
  0xba   :  { %14715 = vmatpush3.bf16.msra.mxu0 %v16061_v46  ;;  %v16110_v46 = vld [vmem:[#allocation5 + $0x2b8] sm:$0xff]   ;;  %409 = vst [vmem:[#allocation2 + $0x28] sm:$0xff] %v14640_v44  ;;  %v16167_v44 = vld [vmem:[#allocation5 + $0x468] sm:$0xff]  }
  0xbb   :  { %14737 = vmatpush3.bf16.msra.mxu1 %v16062_v47  ;;  %14716 = vmatprep.subr.bf16.mxu0 %v16063_v48  ;;  %v16111_v47 = vld [vmem:[#allocation5 + $0x300] sm:$0xff]  }
  0xbc   :  { %14738 = vmatprep.subr.bf16.mxu1 %v16064_v49  ;;  %v16112_v48 = vld [vmem:[#allocation5 + $0x380] sm:$0xff]   ;;  %v18064_v49 = vpack.c.bf16 %v142_v37, %v142_v37 }
  0xbd   :  { %v16162_v37 = vld [vmem:[#allocation5 + $0x3e0] sm:$0xff]  }
  0xbe   :  { %14717 = vmatpush3.bf16.msra.mxu0 %v16065_v50  ;;  %v16114_v50 = vld [vmem:[#allocation5 + $0x2c0] sm:$0xff]  }
  0xbf   :  { %14739 = vmatpush3.bf16.msra.mxu1 %v16066_v51  ;;  %14718 = vmatprep.subr.bf16.mxu0 %v16067_v52  ;;  %v16115_v51 = vld [vmem:[#allocation5 + $0x340] sm:$0xff]   ;;  %v16116_v52 = vld [vmem:[#allocation5 + $0x308] sm:$0xff]  }
  0xc0   :  { %14740 = vmatprep.subr.bf16.mxu1 %v16068_v53  ;;  %v16117_v53 = vld [vmem:[#allocation5 + $0x388] sm:$0xff]  }
  0xc2   :  { %14719 = vmatpush3.bf16.msra.mxu0 %v16069_v54  ;;  %v16113_v54 = vld [vmem:[#allocation2 + $0x28] ss:$0 sps:$4 sm:$0xff]  }
  0xc3   :  { %14741 = vmatpush3.bf16.msra.mxu1 %v16070_v55  ;;  %14720 = vmatprep.subr.bf16.mxu0 %v16071_v56  ;;  %v16118_v55 = vld [vmem:[#allocation5 + $0x2c8] sm:$0xff]   ;;  %v16120_v56 = vld [vmem:[#allocation5 + $0x310] sm:$0xff]  }
  0xc4   :  { %14742 = vmatprep.subr.bf16.mxu1 %v16072_v57  ;;  %v16119_v57 = vld [vmem:[#allocation5 + $0x348] sm:$0xff]  }
  0xc6   :  { %14721 = vmatpush3.bf16.msra.mxu0 %v16073_v58  ;;  %v16121_v58 = vld [vmem:[#allocation5 + $0x390] sm:$0xff]  }
  0xc7   :  { %14743 = vmatpush3.bf16.msra.mxu1 %v16074_v59  ;;  %14722 = vmatprep.subr.bf16.mxu0 %v16075_v60  ;;  %v16122_v59 = vld [vmem:[#allocation5 + $0x2d0] sm:$0xff]   ;;  %v16124_v60 = vld [vmem:[#allocation5 + $0x318] sm:$0xff]  }
  0xc8   :  { %14744 = vmatprep.subr.bf16.mxu1 %v16076_v61  ;;  %v16123_v61 = vld [vmem:[#allocation5 + $0x350] sm:$0xff]  }
  0xca   :  { %14723 = vmatpush3.bf16.msra.mxu0 %v16077_v62  ;;  %v16125_v62 = vld [vmem:[#allocation5 + $0x398] sm:$0xff]  }
  0xcb   :  { %14745 = vmatpush3.bf16.msra.mxu1 %v16078_v63  ;;  %14724 = vmatprep.subr.bf16.mxu0 %v16079_v0  ;;  %v16126_v63 = vld [vmem:[#allocation5 + $0x2d8] sm:$0xff]   ;;  %v16128_v0 = vld [vmem:[#allocation5 + $0x320] sm:$0xff]  }
  0xcc   :  { %14746 = vmatprep.subr.bf16.mxu1 %v16080_v1  ;;  %v16127_v1 = vld [vmem:[#allocation5 + $0x358] sm:$0xff]  }
  0xce   :  { %14725 = vmatpush3.bf16.msra.mxu0 %v16081_v2  ;;  %v16129_v2 = vld [vmem:[#allocation5 + $0x3a0] sm:$0xff]  }
  0xcf   :  { %14747 = vmatpush3.bf16.msra.mxu1 %v16082_v3  ;;  %14726 = vmatprep.subr.bf16.mxu0 %v16083_v4  ;;  %v16130_v3 = vld [vmem:[#allocation5 + $0x2e0] sm:$0xff]   ;;  %v16132_v4 = vld [vmem:[#allocation5 + $0x328] sm:$0xff]  }
  0xd0   :  { %14748 = vmatprep.subr.bf16.mxu1 %v16084_v5  ;;  %v16131_v5 = vld [vmem:[#allocation5 + $0x360] sm:$0xff]  }
  0xd2   :  { %14727 = vmatpush3.bf16.msra.mxu0 %v16085_v6  ;;  %v16133_v6 = vld [vmem:[#allocation5 + $0x3a8] sm:$0xff]  }
  0xd3   :  { %14749 = vmatpush3.bf16.msra.mxu1 %v16086_v7  ;;  %14756 = vmatprep.subr.bf16.mxu0 %v16087_v12  ;;  %v16134_v7 = vld [vmem:[#allocation5 + $0x2e8] sm:$0xff]   ;;  %v16140_v12 = vld [vmem:[#allocation5 + $0x338] sm:$0xff]  }
  0xd4   :  { %15748 = vmatprep.subr.bf16.mxu1 %v17844_v15 }
  0xd5   :  { %1300 = vmatmul.mubr.bf16.vlgmr.msra.gmra.mrb[4].mxu0 %v17608_v13  ;;  %v16139_v13 = vld [vmem:[#allocation5 + $0x370] sm:$0xff]  }
  0xd6   :  { %1340 = vmatmul.mubr.bf16.vlgmr.msra.gmra.mrb[4].mxu1 %v18031_v17  ;;  %14757 = vmatpush3.bf16.msra.mxu0 %v16088_v16  ;;  %v16142_v16 = vld [vmem:[#allocation5 + $0x2f8] sm:$0xff]  }
  0xd7   :  { %15749 = vmatpush3.bf16.msra.mxu1 %v16089_v19  ;;  %14758 = vmatprep.subr.bf16.mxu0 %v16090_v20  ;;  %v16143_v19 = vld [vmem:[#allocation5 + $0x378] sm:$0xff]   ;;  %v16145_v20 = vld [vmem:[#allocation5 + $0x480] sm:$0xff]  }
  0xd8   :  { %15750 = vmatprep.subr.bf16.mxu1 %v17844_v15  ;;  %15764 = vmatprep.mubr.msk.bf16.mxu1 %vm17845_vm0, %v17844_v15 }
  0xd9   :  { %1379 = vmatprep.mubr.bf16.mxu0 %v17612_v41 }
  0xda   :  { %14759 = vmatpush3.bf16.msra.mxu0 %v16091_v21  ;;  %v16146_v21 = vld [vmem:[#allocation5 + $0x3c0] sm:$0xff]  }
  0xdb   :  { %15751 = vmatpush3.bf16.msra.mxu1 %v16092_v22  ;;  %14760 = vmatprep.subr.bf16.mxu0 %v16093_v23  ;;  %v17614_v22 = vpack.c.bf16 %v18058_v43, %v18058_v43  ;;  %v16148_v23 = vld [vmem:[#allocation5 + $0x408] sm:$0xff]   ;;  %v16168_v43 = vld [vmem:[#allocation5 + $0x430] sm:$0xff]  }
  0xdc   :  { %15752 = vmatprep.subr.bf16.mxu1 %v17844_v15 }
  0xde   :  { %14761 = vmatpush3.bf16.msra.mxu0 %v16094_v24  ;;  %v16147_v24 = vld [vmem:[#allocation5 + $0x440] sm:$0xff]  }
  0xdf   :  { %15753 = vmatpush3.bf16.msra.mxu1 %v16095_v25  ;;  %14762 = vmatprep.subr.bf16.mxu0 %v16096_v26  ;;  %v16149_v25 = vld [vmem:[#allocation5 + $0x488] sm:$0xff]  }
  0xe0   :  { %15754 = vmatprep.subr.bf16.mxu1 %v17844_v15  ;;  %v16150_v26 = vld [vmem:[#allocation5 + $0x3c8] sm:$0xff]  }
  0xe2   :  { %14763 = vmatpush3.bf16.msra.mxu0 %v16097_v27  ;;  %v16152_v27 = vld [vmem:[#allocation5 + $0x410] sm:$0xff]  }
  0xe3   :  { %15755 = vmatpush3.bf16.msra.mxu1 %v16098_v28  ;;  %14764 = vmatprep.subr.bf16.mxu0 %v16099_v29  ;;  %v16151_v28 = vld [vmem:[#allocation5 + $0x448] sm:$0xff]   ;;  %v16153_v29 = vld [vmem:[#allocation5 + $0x490] sm:$0xff]  }
  0xe4   :  { %15756 = vmatprep.subr.bf16.mxu1 %v17844_v15 }
  0xe6   :  { %14765 = vmatpush3.bf16.msra.mxu0 %v16100_v30  ;;  %v16154_v30 = vld [vmem:[#allocation5 + $0x3d0] sm:$0xff]  }
  0xe7   :  { %15757 = vmatpush3.bf16.msra.mxu1 %v16101_v31  ;;  %14766 = vmatprep.subr.bf16.mxu0 %v16102_v32  ;;  %v16156_v31 = vld [vmem:[#allocation5 + $0x418] sm:$0xff]   ;;  %v16155_v32 = vld [vmem:[#allocation5 + $0x450] sm:$0xff]  }
  0xe8   :  { %15758 = vmatprep.subr.bf16.mxu1 %v17844_v15 }
  0xea   :  { %14767 = vmatpush3.bf16.msra.mxu0 %v16103_v33  ;;  %v16158_v33 = vld [vmem:[#allocation5 + $0x3d8] sm:$0xff]  }
  0xeb   :  { %15759 = vmatpush3.bf16.msra.mxu1 %v16104_v34  ;;  %14768 = vmatprep.subr.bf16.mxu0 %v16105_v35  ;;  %v16160_v34 = vld [vmem:[#allocation5 + $0x420] sm:$0xff]   ;;  %v16159_v35 = vld [vmem:[#allocation5 + $0x458] sm:$0xff]  }
  0xec   :  { %15760 = vmatprep.subr.bf16.mxu1 %v17844_v15 }
  0xee   :  { %14769 = vmatpush3.bf16.msra.mxu0 %v16106_v36  ;;  %v16161_v36 = vld [vmem:[#allocation5 + $0x4a0] sm:$0xff]  }
  0xef   :  { %15761 = vmatpush3.bf16.msra.mxu1 %v16107_v39  ;;  %14770 = vmatprep.subr.bf16.mxu0 %v16108_v40  ;;  %v16163_v39 = vld [vmem:[#allocation5 + $0x460] sm:$0xff]   ;;  %v16165_v40 = vld [vmem:[#allocation5 + $0x4a8] sm:$0xff]  }
  0xf0   :  { %15762 = vmatprep.subr.bf16.mxu1 %v17844_v15 }
  0xf2   :  { %14771 = vmatpush3.bf16.msra.mxu0 %v16109_v45  ;;  %v16169_v45 = vld [vmem:[#allocation5 + $0x4b0] sm:$0xff]  }
  0xf3   :  { %15763 = vmatpush3.bf16.msra.mxu1 %v16110_v46  ;;  %14787 = vmatprep.subr.bf16.mxu0 %v16111_v47  ;;  %v16170_v46 = vld [vmem:[#allocation5 + $0x3f0] sm:$0xff]   ;;  %v146_v47 = vld [vmem:[%s18611_s0 + $0x60] sm:$0xff] }
  0xf4   :  { %14809 = vmatprep.subr.bf16.mxu1 %v16112_v48  ;;  %v147_v48 = vld [vmem:[%s18611_s0 + $0x68] sm:$0xff] }
  0xf5   :  { %1380 = vmatmul.mubr.bf16.vlgmr.msra.gmra.mrb[8].mxu0 %v18064_v49 }
  0xf6   :  { %14788 = vmatpush3.bf16.msra.mxu0 %v16114_v50  ;;  %2211 = vmatprep.mubr.bf16.mxu0 %v18033_v18  ;;  %v16144_v18 = vld [vmem:[#allocation5 + $0x400] sm:$0xff]   ;;  %v14641_v50 = vpack.c.bf16 %v147_v48, %v146_v47 }
  0xf7   :  { %15765 = vmatmul.mubr.bf16.vlgmr.msra.gmra.mrb[8].mxu1 %v16113_v54  ;;  %14789 = vmatprep.subr.bf16.mxu0 %v16116_v52  ;;  %v16173_v52 = vld [vmem:[#allocation5 + $0x4b8] sm:$0xff]  }
  0xf8   :  { %14810 = vmatpush3.bf16.msra.mxu1 %v16115_v51  ;;  %2251 = vmatprep.mubr.bf16.mxu1 %v17612_v41  ;;  %v16166_v41 = vld [vmem:[#allocation5 + $0x3e8] sm:$0xff]   ;;  %v16171_v51 = vld [vmem:[#allocation5 + $0x470] sm:$0xff]   ;;  %410 = vst [vmem:[#allocation2 + $0x30] sm:$0xff] %v14641_v50  ;;  %v16174_v54 = vld [vmem:[#allocation5 + $0x3f8] sm:$0xff]  }
  0xf9   :  { %14811 = vmatprep.subr.bf16.mxu1 %v16117_v53  ;;  %v17615_v53 = vpack.c.bf16 %v147_v48, %v147_v48  ;;  %v16221_v48 = vld [vmem:[#allocation5 + $0x5e8] sm:$0xff]  }
  0xfa   :  { %14790 = vmatpush3.bf16.msra.mxu0 %v16118_v55  ;;  %v16176_v55 = vld [vmem:[#allocation5 + $0x500] sm:$0xff]  }
  0xfb   :  { %14791 = vmatprep.subr.bf16.mxu0 %v16120_v56  ;;  %v16175_v56 = vld [vmem:[#allocation5 + $0x478] sm:$0xff]  }
  0xfc   :  { %14812 = vmatpush3.bf16.msra.mxu1 %v16119_v57  ;;  %v17616_v57 = vpack.c.bf16 %v18053_v42, %v18053_v42  ;;  %v16183_v42 = vld [vmem:[#allocation5 + $0x4d0] sm:$0xff]  }
  0xfd   :  { %14813 = vmatprep.subr.bf16.mxu1 %v16121_v58  ;;  %v16177_v58 = vld [vmem:[#allocation5 + $0x4c0] sm:$0xff]  }
  0xfe   :  { %14792 = vmatpush3.bf16.msra.mxu0 %v16122_v59  ;;  %v17617_v59 = vpack.c.bf16 %v146_v47, %v146_v47  ;;  %v16220_v47 = vld [vmem:[#allocation5 + $0x620] sm:$0xff]  }
  0xff   :  { %14793 = vmatprep.subr.bf16.mxu0 %v16124_v60  ;;  %v16179_v60 = vld [vmem:[#allocation5 + $0x508] sm:$0xff]  }
 0x100   :  { %14814 = vmatpush3.bf16.msra.mxu1 %v16123_v61  ;;  %v16178_v61 = vld [vmem:[#allocation5 + $0x540] sm:$0xff]  }
 0x101   :  { %14815 = vmatprep.subr.bf16.mxu1 %v16125_v62  ;;  %v16180_v62 = vld [vmem:[#allocation5 + $0x4c8] sm:$0xff]  }
 0x102   :  { %14794 = vmatpush3.bf16.msra.mxu0 %v16126_v63  ;;  %v16182_v63 = vld [vmem:[#allocation5 + $0x510] sm:$0xff]  }
 0x103   :  { %14795 = vmatprep.subr.bf16.mxu0 %v16128_v0  ;;  %v16181_v0 = vld [vmem:[#allocation5 + $0x548] sm:$0xff]  }
 0x104   :  { %14816 = vmatpush3.bf16.msra.mxu1 %v16127_v1  ;;  %v16185_v1 = vld [vmem:[#allocation5 + $0x518] sm:$0xff]  }
 0x105   :  { %14817 = vmatprep.subr.bf16.mxu1 %v16129_v2  ;;  %v16184_v2 = vld [vmem:[#allocation5 + $0x550] sm:$0xff]  }
 0x106   :  { %14796 = vmatpush3.bf16.msra.mxu0 %v16130_v3  ;;  %v16186_v3 = vld [vmem:[#allocation5 + $0x4d8] sm:$0xff]  }
 0x107   :  { %14797 = vmatprep.subr.bf16.mxu0 %v16132_v4  ;;  %v16188_v4 = vld [vmem:[#allocation5 + $0x520] sm:$0xff]  }
 0x108   :  { %14818 = vmatpush3.bf16.msra.mxu1 %v16131_v5  ;;  %v16187_v5 = vld [vmem:[#allocation5 + $0x558] sm:$0xff]  }
 0x109   :  { %14819 = vmatprep.subr.bf16.mxu1 %v16133_v6  ;;  %v16189_v6 = vld [vmem:[#allocation5 + $0x4e0] sm:$0xff]  }
 0x10a   :  { %14798 = vmatpush3.bf16.msra.mxu0 %v16134_v7  ;;  %v16191_v7 = vld [vmem:[#allocation5 + $0x528] sm:$0xff]  }
 0x10b   :  { %14799 = vmatprep.subr.bf16.mxu0 %v16136_v8  ;;  %v148_v8 = vld [vmem:[%s18611_s0 + $0x70] sm:$0xff] }
 0x10c   :  { %14820 = vmatpush3.bf16.msra.mxu1 %v16135_v9  ;;  %v149_v9 = vld [vmem:[%s18611_s0 + $0x78] sm:$0xff] }
 0x10d   :  { %14821 = vmatprep.subr.bf16.mxu1 %v16137_v10  ;;  %v16190_v10 = vld [vmem:[#allocation5 + $0x560] sm:$0xff]  }
 0x10e   :  { %14800 = vmatpush3.bf16.msra.mxu0 %v16138_v11  ;;  %v14642_v11 = vpack.c.bf16 %v149_v9, %v148_v8 }
 0x10f   :  { %14801 = vmatprep.subr.bf16.mxu0 %v16140_v12  ;;  %v16192_v12 = vld [vmem:[#allocation5 + $0x4e8] sm:$0xff]  }
 0x110   :  { %14822 = vmatpush3.bf16.msra.mxu1 %v16139_v13  ;;  %v150_v13 = vld [vmem:[%s18611_s0 + $0x80] sm:$0xff]  ;;  %411 = vst [vmem:[#allocation2 + $0x38] sm:$0xff] %v14642_v11  ;;  %v16247_v11 = vld [vmem:[#allocation5 + $0x690] sm:$0xff]  }
 0x111   :  { %14823 = vmatprep.subr.bf16.mxu1 %v16141_v14  ;;  %v17618_v14 = vpack.c.bf16 %v149_v9, %v149_v9  ;;  %v16244_v9 = vld [vmem:[#allocation5 + $0x708] sm:$0xff]  }
 0x112   :  { %14802 = vmatpush3.bf16.msra.mxu0 %v16142_v16  ;;  %v151_v16 = vld [vmem:[%s18611_s0 + $0x88] sm:$0xff] }
 0x113   :  { %14831 = vmatprep.subr.bf16.mxu0 %v16144_v18  ;;  %v16194_v18 = vld [vmem:[#allocation5 + $0x530] sm:$0xff]  }
 0x114   :  { %14824 = vmatpush3.bf16.msra.mxu1 %v16143_v19  ;;  %v14643_v19 = vpack.c.bf16 %v151_v16, %v150_v13  ;;  %v16249_v13 = vld [vmem:[#allocation5 + $0x6d8] sm:$0xff]  }
 0x115   :  { %2212 = vmatmul.mubr.bf16.vlgmr.msra.gmra.mrb[12].mxu0 %v18031_v17  ;;  %14853 = vmatprep.subr.bf16.mxu1 %v16145_v20  ;;  %v16157_v17 = vld [vmem:[#allocation5 + $0x498] sm:$0xff]   ;;  %v16193_v20 = vld [vmem:[#allocation5 + $0x568] sm:$0xff]  }
 0x116   :  { %14832 = vmatpush3.bf16.msra.mxu0 %v16146_v21  ;;  %2291 = vmatprep.mubr.bf16.mxu0 %v17614_v22  ;;  %412 = vst [vmem:[#allocation2 + $0x40] sm:$0xff] %v14643_v19  ;;  %v16195_v21 = vld [vmem:[#allocation5 + $0x4f0] sm:$0xff]   ;;  %v16197_v22 = vld [vmem:[#allocation5 + $0x538] sm:$0xff]   ;;  %v16253_v19 = vld [vmem:[#allocation5 + $0x6e0] sm:$0xff]  }
 0x117   :  { %2252 = vmatmul.mubr.bf16.vlgmr.msra.gmra.mrb[12].mxu1 %v18064_v49  ;;  %14833 = vmatprep.subr.bf16.mxu0 %v16148_v23  ;;  %v16172_v49 = vld [vmem:[#allocation5 + $0x438] sm:$0xff]   ;;  %v16196_v23 = vld [vmem:[#allocation5 + $0x570] sm:$0xff]  }
 0x118   :  { %14854 = vmatpush3.bf16.msra.mxu1 %v16147_v24  ;;  %2331 = vmatprep.mubr.bf16.mxu1 %v17615_v53  ;;  %v16198_v24 = vld [vmem:[#allocation5 + $0x4f8] sm:$0xff]  }
 0x119   :  { %14855 = vmatprep.subr.bf16.mxu1 %v16149_v25  ;;  %v16200_v25 = vld [vmem:[#allocation5 + $0x5c0] sm:$0xff]   ;;  %v16251_v16 = vld [vmem:[#allocation5 + $0x698] sm:$0xff]  }
 0x11a   :  { %14834 = vmatpush3.bf16.msra.mxu0 %v16150_v26  ;;  %v16199_v26 = vld [vmem:[#allocation5 + $0x578] sm:$0xff]  }
 0x11b   :  { %14835 = vmatprep.subr.bf16.mxu0 %v16152_v27  ;;  %v16201_v27 = vld [vmem:[#allocation5 + $0x640] sm:$0xff]  }
 0x11c   :  { %14856 = vmatpush3.bf16.msra.mxu1 %v16151_v28  ;;  %v17619_v28 = vpack.c.bf16 %v148_v8, %v148_v8  ;;  %v2422_v50 = vld [vmem:[#allocation2 + $0x34] sm:$0xff]  ;;  %v16245_v8 = vld [vmem:[#allocation5 + $0x6d0] sm:$0xff]  }
 0x11d   :  { %14857 = vmatprep.subr.bf16.mxu1 %v16153_v29  ;;  %v16203_v29 = vld [vmem:[#allocation5 + $0x580] sm:$0xff]   ;;  %v13440_v53 = vcombine.high %v2422_v50, %v2422_v50 }
 0x11e   :  { %14836 = vmatpush3.bf16.msra.mxu0 %v16154_v30  ;;  %v16204_v30 = vld [vmem:[#allocation5 + $0x600] sm:$0xff]  }
 0x11f   :  { %14837 = vmatprep.subr.bf16.mxu0 %v16156_v31  ;;  %v16205_v31 = vld [vmem:[#allocation5 + $0x5c8] sm:$0xff]  }
 0x120   :  { %14858 = vmatpush3.bf16.msra.mxu1 %v16155_v32  ;;  %v16202_v32 = vld [vmem:[#allocation2 + $0x40] ss:$0 sps:$4 sm:$0xff]  }
 0x121   :  { %14859 = vmatprep.subr.bf16.mxu1 %v16157_v17  ;;  %v16206_v17 = vld [vmem:[#allocation5 + $0x648] sm:$0xff]  }
 0x122   :  { %14838 = vmatpush3.bf16.msra.mxu0 %v16158_v33  ;;  %v16207_v33 = vld [vmem:[#allocation5 + $0x588] sm:$0xff]  }
 0x123   :  { %14839 = vmatprep.subr.bf16.mxu0 %v16160_v34  ;;  %v16208_v34 = vld [vmem:[#allocation5 + $0x608] sm:$0xff]  }
 0x124   :  { %14860 = vmatpush3.bf16.msra.mxu1 %v16159_v35  ;;  %v16209_v35 = vld [vmem:[#allocation5 + $0x5d0] sm:$0xff]  }
 0x125   :  { %14861 = vmatprep.subr.bf16.mxu1 %v16161_v36  ;;  %v16210_v36 = vld [vmem:[#allocation5 + $0x650] sm:$0xff]  }
 0x126   :  { %14840 = vmatpush3.bf16.msra.mxu0 %v16162_v37  ;;  %v16211_v37 = vld [vmem:[#allocation5 + $0x590] sm:$0xff]  }
 0x127   :  { %14841 = vmatprep.subr.bf16.mxu0 %v16164_v38  ;;  %v16212_v38 = vld [vmem:[#allocation5 + $0x610] sm:$0xff]  }
 0x128   :  { %14862 = vmatpush3.bf16.msra.mxu1 %v16163_v39  ;;  %v16213_v39 = vld [vmem:[#allocation5 + $0x5d8] sm:$0xff]  }
 0x129   :  { %14863 = vmatprep.subr.bf16.mxu1 %v16165_v40  ;;  %v16214_v40 = vld [vmem:[#allocation5 + $0x658] sm:$0xff]  }
 0x12a   :  { %14842 = vmatpush3.bf16.msra.mxu0 %v16166_v41  ;;  %v16215_v41 = vld [vmem:[#allocation5 + $0x598] sm:$0xff]  }
 0x12b   :  { %14843 = vmatprep.subr.bf16.mxu0 %v16168_v43  ;;  %v16216_v43 = vld [vmem:[#allocation5 + $0x618] sm:$0xff]  }
 0x12c   :  { %14864 = vmatpush3.bf16.msra.mxu1 %v16167_v44  ;;  %v16217_v44 = vld [vmem:[#allocation5 + $0x5e0] sm:$0xff]  }
 0x12d   :  { %14865 = vmatprep.subr.bf16.mxu1 %v16169_v45  ;;  %v16218_v45 = vld [vmem:[#allocation5 + $0x660] sm:$0xff]  }
 0x12e   :  { %14844 = vmatpush3.bf16.msra.mxu0 %v16170_v46  ;;  %v16219_v46 = vld [vmem:[#allocation5 + $0x5a0] sm:$0xff]  }
 0x12f   :  { %14845 = vmatprep.subr.bf16.mxu0 %v16172_v49  ;;  %v16222_v49 = vld [vmem:[#allocation5 + $0x668] sm:$0xff]  }
 0x130   :  { %14866 = vmatpush3.bf16.msra.mxu1 %v16171_v51  ;;  %v2423_v51 = vld [vmem:[#allocation2 + $0x3c] sm:$0xff] }
 0x131   :  { %14867 = vmatprep.subr.bf16.mxu1 %v16173_v52  ;;  %v16223_v52 = vld [vmem:[#allocation5 + $0x5a8] sm:$0xff]  }
 0x132   :  { %14846 = vmatpush3.bf16.msra.mxu0 %v16174_v54  ;;  %v13442_v54 = vcombine.high %v2423_v51, %v2423_v51 }
 0x133   :  { %14875 = vmatprep.subr.bf16.mxu0 %v16176_v55  ;;  %v16225_v55 = vld [vmem:[#allocation5 + $0x5f0] sm:$0xff]  }
 0x134   :  { %14868 = vmatpush3.bf16.msra.mxu1 %v16175_v56  ;;  %v16224_v56 = vld [vmem:[#allocation5 + $0x628] sm:$0xff]  }
 0x135   :  { %2292 = vmatmul.mubr.bf16.vlgmr.msra.gmra.mrb[16].mxu0 %v17616_v57  ;;  %15768 = vmatprep.subr.bf16.mxu1 %v17844_v15  ;;  %v16226_v57 = vld [vmem:[#allocation5 + $0x670] sm:$0xff]  }
 0x136   :  { %14876 = vmatpush3.bf16.msra.mxu0 %v16177_v58  ;;  %2371 = vmatprep.mubr.bf16.mxu0 %v17618_v14  ;;  %v16227_v58 = vld [vmem:[#allocation5 + $0x5b0] sm:$0xff]   ;;  %v16250_v14 = vld [vmem:[#allocation5 + $0x758] sm:$0xff]  }
 0x137   :  { %2332 = vmatmul.mubr.bf16.vlgmr.msra.gmra.mrb[16].mxu1 %v17617_v59  ;;  %14877 = vmatprep.subr.bf16.mxu0 %v16179_v60  ;;  %v16229_v59 = vld [vmem:[#allocation5 + $0x5f8] sm:$0xff]   ;;  %v16228_v60 = vld [vmem:[#allocation5 + $0x630] sm:$0xff]  }
 0x138   :  { %15769 = vmatpush3.bf16.msra.mxu1 %v16178_v61  ;;  %15784 = vmatprep.mubr.msk.bf16.mxu1 %vm17845_vm0, %v17844_v15  ;;  %v16230_v61 = vld [vmem:[#allocation5 + $0x678] sm:$0xff]  }
 0x139   :  { %15770 = vmatprep.subr.bf16.mxu1 %v17844_v15 }
 0x13a   :  { %14878 = vmatpush3.bf16.msra.mxu0 %v16180_v62  ;;  %v16231_v62 = vld [vmem:[#allocation5 + $0x5b8] sm:$0xff]  }
 0x13b   :  { %14879 = vmatprep.subr.bf16.mxu0 %v16182_v63  ;;  %v16237_v63 = vld [vmem:[#allocation5 + $0x6c0] sm:$0xff]  }
 0x13c   :  { %15771 = vmatpush3.bf16.msra.mxu1 %v16181_v0  ;;  %v16232_v0 = vld [vmem:[#allocation5 + $0x638] sm:$0xff]  }
 0x13d   :  { %15772 = vmatprep.subr.bf16.mxu1 %v17844_v15 }
 0x13e   :  { %14880 = vmatpush3.bf16.msra.mxu0 %v16183_v42  ;;  %v13439_v42 = vcombine.low %v2422_v50, %v2422_v50  ;;  %v16266_v50 = vld [vmem:[#allocation5 + $0x778] sm:$0xff]  }
 0x13f   :  { %14881 = vmatprep.subr.bf16.mxu0 %v16185_v1  ;;  %v16238_v1 = vld [vmem:[#allocation5 + $0x740] sm:$0xff]  }
 0x140   :  { %15773 = vmatpush3.bf16.msra.mxu1 %v16184_v2  ;;  %v16239_v2 = vld [vmem:[#allocation5 + $0x680] sm:$0xff]  }
 0x141   :  { %15774 = vmatprep.subr.bf16.mxu1 %v17844_v15 }
 0x142   :  { %14882 = vmatpush3.bf16.msra.mxu0 %v16186_v3  ;;  %v13441_v3 = vcombine.low %v2423_v51, %v2423_v51 }
 0x143   :  { %14883 = vmatprep.subr.bf16.mxu0 %v16188_v4  ;;  %v16241_v4 = vld [vmem:[#allocation5 + $0x6c8] sm:$0xff]  }
 0x144   :  { %15775 = vmatpush3.bf16.msra.mxu1 %v16187_v5  ;;  %v16240_v5 = vld [vmem:[#allocation5 + $0x700] sm:$0xff]  }
 0x145   :  { %15776 = vmatprep.subr.bf16.mxu1 %v17844_v15 }
 0x146   :  { %14884 = vmatpush3.bf16.msra.mxu0 %v16189_v6  ;;  %v16242_v6 = vld [vmem:[#allocation5 + $0x748] sm:$0xff]  }
 0x147   :  { %14885 = vmatprep.subr.bf16.mxu0 %v16191_v7  ;;  %v16243_v7 = vld [vmem:[#allocation5 + $0x688] sm:$0xff]  }
 0x148   :  { %15777 = vmatpush3.bf16.msra.mxu1 %v16190_v10  ;;  %v16246_v10 = vld [vmem:[#allocation5 + $0x750] sm:$0xff]  }
 0x149   :  { %15778 = vmatprep.subr.bf16.mxu1 %v17844_v15 }
 0x14a   :  { %14886 = vmatpush3.bf16.msra.mxu0 %v16192_v12  ;;  %v16248_v12 = vld [vmem:[#allocation5 + $0x710] sm:$0xff]  }
 0x14b   :  { %14887 = vmatprep.subr.bf16.mxu0 %v16194_v18  ;;  %v16252_v18 = vld [vmem:[#allocation5 + $0x718] sm:$0xff]  }
 0x14c   :  { %15779 = vmatpush3.bf16.msra.mxu1 %v16193_v20  ;;  %v16254_v20 = vld [vmem:[#allocation5 + $0x760] sm:$0xff]  }
 0x14d   :  { %15780 = vmatprep.subr.bf16.mxu1 %v17844_v15 }
 0x14e   :  { %14888 = vmatpush3.bf16.msra.mxu0 %v16195_v21  ;;  %v16255_v21 = vld [vmem:[#allocation5 + $0x6a0] sm:$0xff]  }
 0x14f   :  { %14889 = vmatprep.subr.bf16.mxu0 %v16197_v22  ;;  %v16256_v22 = vld [vmem:[#allocation5 + $0x720] sm:$0xff]  }
 0x150   :  { %15781 = vmatpush3.bf16.msra.mxu1 %v16196_v23  ;;  %v16257_v23 = vld [vmem:[#allocation5 + $0x6e8] sm:$0xff]  }
 0x151   :  { %15782 = vmatprep.subr.bf16.mxu1 %v17844_v15 }
 0x152   :  { %14890 = vmatpush3.bf16.msra.mxu0 %v16198_v24  ;;  %v16258_v24 = vld [vmem:[#allocation5 + $0x768] sm:$0xff]  }
 0x153   :  { %14906 = vmatprep.subr.bf16.mxu0 %v16200_v25  ;;  %v16259_v25 = vld [vmem:[#allocation5 + $0x6a8] sm:$0xff]  }
 0x154   :  { %15783 = vmatpush3.bf16.msra.mxu1 %v16199_v26  ;;  %v18102_v26 = vld [vmem:[#allocation7] ss:$0 sm:$0xff] }
 0x155   :  { %2372 = vmatmul.mubr.bf16.vlgmr.msra.gmra.mrb[20].mxu0 %v17619_v28  ;;  %14928 = vmatprep.subr.bf16.mxu1 %v16201_v27  ;;  %v16260_v27 = vld [vmem:[#allocation5 + $0x728] sm:$0xff]   ;;  %v152_v28 = vld [vmem:[%s18611_s0 + $0x90] sm:$0xff] }
 0x156   :  { %14907 = vmatpush3.bf16.msra.mxu0 %v16203_v29  ;;  %3203 = vmatprep.mubr.bf16.mxu0 %v13440_v53  ;;  %v153_v29 = vld [vmem:[%s18611_s0 + $0x98] sm:$0xff]  ;;  %v16268_v53 = vld [vmem:[#allocation5 + $0x738] sm:$0xff]  }
 0x157   :  { %15785 = vmatmul.mubr.bf16.vlgmr.msra.gmra.mrb[20].mxu1 %v16202_v32  ;;  %14908 = vmatprep.subr.bf16.mxu0 %v16205_v31 }
 0x158   :  { %14929 = vmatpush3.bf16.msra.mxu1 %v16204_v30  ;;  %3243 = vmatprep.mubr.bf16.mxu1 %v13442_v54  ;;  %v18113_v30 = vld [vmem:[%s18611_s0 + $0xa0] sm:$0xff]  ;;  %v16273_v54 = vld [vmem:[#allocation5 + $0x7c0] sm:$0xff]  }
 0x159   :  { %14930 = vmatprep.subr.bf16.mxu1 %v16206_v17  ;;  %v16261_v17 = vld [vmem:[#allocation5 + $0x6f0] sm:$0xff]  }
 0x15a   :  { %14909 = vmatpush3.bf16.msra.mxu0 %v16207_v33  ;;  %v14644_v33 = vpack.c.bf16 %v153_v29, %v152_v28 }
 0x15b   :  { %14910 = vmatprep.subr.bf16.mxu0 %v16209_v35 }
 0x15c   :  { %14931 = vmatpush3.bf16.msra.mxu1 %v16208_v34  ;;  %v18118_v34 = vld [vmem:[%s18611_s0 + $0xa8] sm:$0xff]  ;;  %413 = vst [vmem:[#allocation2 + $0x48] sm:$0xff] %v14644_v33 }
 0x15d   :  { %14932 = vmatprep.subr.bf16.mxu1 %v16210_v36 }
 0x15e   :  { %14911 = vmatpush3.bf16.msra.mxu0 %v16211_v37  ;;  %v14645_v37 = vpack.c.bf16 %v18118_v34, %v18113_v30 }
 0x15f   :  { %14912 = vmatprep.subr.bf16.mxu0 %v16213_v39 }
 0x160   :  { %14933 = vmatpush3.bf16.msra.mxu1 %v16212_v38  ;;  %414 = vst [vmem:[#allocation2 + $0x50] sm:$0xff] %v14645_v37 }
 0x161   :  { %14934 = vmatprep.subr.bf16.mxu1 %v16214_v40 }
 0x162   :  { %14913 = vmatpush3.bf16.msra.mxu0 %v16215_v41 }
 0x163   :  { %14914 = vmatprep.subr.bf16.mxu0 %v16217_v44  ;;  %v16263_v44 = vld [vmem:[#allocation5 + $0x6b0] sm:$0xff]  }
 0x164   :  { %14935 = vmatpush3.bf16.msra.mxu1 %v16216_v43  ;;  %v16262_v43 = vld [vmem:[#allocation5 + $0x770] sm:$0xff]  }
 0x165   :  { %14936 = vmatprep.subr.bf16.mxu1 %v16218_v45 }
 0x166   :  { %14915 = vmatpush3.bf16.msra.mxu0 %v16219_v46 }
 0x167   :  { %14916 = vmatprep.subr.bf16.mxu0 %v16221_v48 }
 0x168   :  { %14937 = vmatpush3.bf16.msra.mxu1 %v16220_v47  ;;  %v16264_v47 = vld [vmem:[#allocation5 + $0x730] sm:$0xff]  }
 0x169   :  { %14938 = vmatprep.subr.bf16.mxu1 %v16222_v49  ;;  %v16265_v49 = vld [vmem:[#allocation5 + $0x6f8] sm:$0xff]  }
 0x16a   :  { %14917 = vmatpush3.bf16.msra.mxu0 %v16223_v52  ;;  %v16267_v52 = vld [vmem:[#allocation5 + $0x6b8] sm:$0xff]  }
 0x16b   :  { %14918 = vmatprep.subr.bf16.mxu0 %v16225_v55  ;;  %v2424_v55 = vld [vmem:[#allocation2 + $0x44] sm:$0xff] }
 0x16c   :  { %14939 = vmatpush3.bf16.msra.mxu1 %v16224_v56  ;;  %v13443_v56 = vcombine.low %v2424_v55, %v2424_v55 }
 0x16d   :  { %14940 = vmatprep.subr.bf16.mxu1 %v16226_v57  ;;  %v13444_v57 = vcombine.high %v2424_v55, %v2424_v55  ;;  %v16311_v55 = vld [vmem:[#allocation5 + $0x8d0] sm:$0xff]  }
 0x16e   :  { %14919 = vmatpush3.bf16.msra.mxu0 %v16227_v58  ;;  %v2425_v58 = vld [vmem:[#allocation2 + $0x4c] sm:$0xff] }
 0x16f   :  { %14920 = vmatprep.subr.bf16.mxu0 %v16229_v59  ;;  %v13446_v59 = vcombine.high %v2425_v58, %v2425_v58 }
 0x170   :  { %14941 = vmatpush3.bf16.msra.mxu1 %v16228_v60  ;;  %v16274_v60 = vld [vmem:[#allocation5 + $0x780] sm:$0xff]  }
 0x171   :  { %14942 = vmatprep.subr.bf16.mxu1 %v16230_v61  ;;  %v13445_v61 = vcombine.low %v2425_v58, %v2425_v58  ;;  %v16314_v58 = vld [vmem:[#allocation5 + $0x858] sm:$0xff]  }
 0x172   :  { %14921 = vmatpush3.bf16.msra.mxu0 %v16231_v62  ;;  %v16276_v62 = vld [vmem:[#allocation5 + $0x7c8] sm:$0xff]  }
 0x173   :  { %14950 = vmatprep.subr.bf16.mxu0 %v16237_v63  ;;  %v16275_v63 = vld [vmem:[#allocation5 + $0x800] sm:$0xff]  }
 0x174   :  { %14943 = vmatpush3.bf16.msra.mxu1 %v16232_v0  ;;  %v16277_v0 = vld [vmem:[#allocation5 + $0x788] sm:$0xff]  }
 0x175   :  { %3204 = vmatmul.mubr.bf16.vlgmr.msra.gmra.mrb[24].mxu0 %v13439_v42  ;;  %14972 = vmatprep.subr.bf16.mxu1 %v16238_v1  ;;  %v16279_v42 = vld [vmem:[#allocation5 + $0x7d0] sm:$0xff]   ;;  %v16278_v1 = vld [vmem:[#allocation5 + $0x808] sm:$0xff]  }
 0x176   :  { %14951 = vmatpush3.bf16.msra.mxu0 %v16239_v2  ;;  %3283 = vmatprep.mubr.bf16.mxu0 %v13444_v57  ;;  %v16280_v2 = vld [vmem:[#allocation5 + $0x790] sm:$0xff]   ;;  %v16313_v57 = vld [vmem:[#allocation5 + $0x918] sm:$0xff]  }
 0x177   :  { %3244 = vmatmul.mubr.bf16.vlgmr.msra.gmra.mrb[24].mxu1 %v13441_v3  ;;  %14952 = vmatprep.subr.bf16.mxu0 %v16241_v4  ;;  %v16282_v3 = vld [vmem:[#allocation5 + $0x7d8] sm:$0xff]   ;;  %v16281_v4 = vld [vmem:[#allocation5 + $0x810] sm:$0xff]  }
 0x178   :  { %14973 = vmatpush3.bf16.msra.mxu1 %v16240_v5  ;;  %3323 = vmatprep.mubr.bf16.mxu1 %v13446_v59  ;;  %v16283_v5 = vld [vmem:[#allocation5 + $0x798] sm:$0xff]  }
 0x179   :  { %14974 = vmatprep.subr.bf16.mxu1 %v16242_v6  ;;  %v16285_v6 = vld [vmem:[#allocation5 + $0x7e0] sm:$0xff]   ;;  %v16315_v59 = vld [vmem:[#allocation5 + $0x8d8] sm:$0xff]  }
 0x17a   :  { %14953 = vmatpush3.bf16.msra.mxu0 %v16243_v7  ;;  %v16284_v7 = vld [vmem:[#allocation5 + $0x818] sm:$0xff]  }
 0x17b   :  { %14954 = vmatprep.subr.bf16.mxu0 %v16245_v8  ;;  %v18133_v8 = vld [vmem:[%s18611_s0 + $0xb0] sm:$0xff] }
 0x17c   :  { %14975 = vmatpush3.bf16.msra.mxu1 %v16244_v9  ;;  %v18139_v9 = vld [vmem:[%s18611_s0 + $0xb8] sm:$0xff] }
 0x17d   :  { %14976 = vmatprep.subr.bf16.mxu1 %v16246_v10  ;;  %v16286_v10 = vld [vmem:[#allocation5 + $0x7a0] sm:$0xff]  }
 0x17e   :  { %14955 = vmatpush3.bf16.msra.mxu0 %v16247_v11  ;;  %v14646_v11 = vpack.c.bf16 %v18139_v9, %v18133_v8 }
 0x17f   :  { %14956 = vmatprep.subr.bf16.mxu0 %v16249_v13  ;;  %v16287_v13 = vld [vmem:[#allocation5 + $0x820] sm:$0xff]  }
 0x180   :  { %14977 = vmatpush3.bf16.msra.mxu1 %v16248_v12  ;;  %v16288_v12 = vld [vmem:[#allocation5 + $0x7e8] sm:$0xff]   ;;  %415 = vst [vmem:[#allocation2 + $0x58] sm:$0xff] %v14646_v11 }
 0x181   :  { %14978 = vmatprep.subr.bf16.mxu1 %v16250_v14  ;;  %v16289_v14 = vld [vmem:[#allocation5 + $0x7a8] sm:$0xff]  }
 0x182   :  { %14957 = vmatpush3.bf16.msra.mxu0 %v16251_v16  ;;  %v16291_v16 = vld [vmem:[#allocation5 + $0x7f0] sm:$0xff]  }
 0x183   :  { %14958 = vmatprep.subr.bf16.mxu0 %v16253_v19  ;;  %v16290_v19 = vld [vmem:[#allocation5 + $0x828] sm:$0xff]  }
 0x184   :  { %14979 = vmatpush3.bf16.msra.mxu1 %v16252_v18 }
 0x185   :  { %14980 = vmatprep.subr.bf16.mxu1 %v16254_v20 }
 0x186   :  { %14959 = vmatpush3.bf16.msra.mxu0 %v16255_v21 }
 0x187   :  { %14960 = vmatprep.subr.bf16.mxu0 %v16257_v23 }
 0x188   :  { %v14684_v31 = vpop.f32.mrb[0].mxu0  ;;  %14981 = vmatpush3.bf16.msra.mxu1 %v16256_v22  ;;  %v16292_v22 = vld [vmem:[#allocation5 + $0x7b0] sm:$0xff]  }
 0x189   :  { %v14706_v32 = vpop.f32.mrb[0].mxu1  ;;  %v14685_v35 = vpop.f32.mrb[1].mxu0  ;;  %14982 = vmatprep.subr.bf16.mxu1 %v16258_v24 }
 0x18a   :  { %v14707_v36 = vpop.f32.mrb[1].mxu1  ;;  %v14686_v38 = vadd.f32 %v14685_v35, %v14684_v31  ;;  %v14687_v39 = vpop.f32.mrb[2].mxu0  ;;  %14961 = vmatpush3.bf16.msra.mxu0 %v16259_v25  ;;  %v16294_v31 = vld [vmem:[#allocation5 + $0x7f8] sm:$0xff]   ;;  %v16293_v35 = vld [vmem:[#allocation5 + $0x830] sm:$0xff]  }
 0x18b   :  { %v14708_v40 = vadd.f32 %v14707_v36, %v14706_v32  ;;  %v14709_v41 = vpop.f32.mrb[2].mxu1  ;;  %v14688_v45 = vpop.f32.mrb[3].mxu0  ;;  %14962 = vmatprep.subr.bf16.mxu0 %v16261_v17  ;;  %v2426_v32 = vld [vmem:[#allocation2 + $0x54] sm:$0xff] }
 0x18c   :  { %v14710_v46 = vpop.f32.mrb[3].mxu1  ;;  %v1222_v48 = vadd.f32 %v14686_v38, %v18102_v26  ;;  %14983 = vmatpush3.bf16.msra.mxu1 %v16260_v27  ;;  %v16295_v36 = vld [vmem:[#allocation5 + $0x7b8] sm:$0xff]   ;;  %v13448_v37 = vcombine.high %v2426_v32, %v2426_v32  ;;  %v16300_v41 = vld [vmem:[#allocation5 + $0x900] sm:$0xff]  }
 0x18d   :  { %14984 = vmatprep.subr.bf16.mxu1 %v16262_v43  ;;  %v16296_v39 = vld [vmem:[#allocation5 + $0x838] sm:$0xff]   ;;  %v13447_v43 = vcombine.low %v2426_v32, %v2426_v32  ;;  %v16303_v45 = vld [vmem:[#allocation5 + $0x8c0] sm:$0xff]   ;;  %v16304_v46 = vld [vmem:[#allocation5 + $0x888] sm:$0xff]  }
 0x18e   :  { %v18123_v51 = vadd.f32 %v14708_v40, %v1222_v48  ;;  %14963 = vmatpush3.bf16.msra.mxu0 %v16263_v44  ;;  %v16299_v40 = vld [vmem:[#allocation5 + $0x880] sm:$0xff]  }
 0x18f   :  { %14964 = vmatprep.subr.bf16.mxu0 %v16265_v49  ;;  %v16302_v44 = vld [vmem:[#allocation5 + $0x840] sm:$0xff]   ;;  %v16305_v49 = vld [vmem:[#allocation5 + $0x908] sm:$0xff]  }
 0x190   :  { %14985 = vmatpush3.bf16.msra.mxu1 %v16264_v47  ;;  %v17620_v47 = vpack.c.bf16 %v18118_v34, %v18118_v34  ;;  %v16301_v48 = vld [vmem:[#allocation2 + $0x5c] ss:$0 sps:$4 sm:$0xff]   ;;  %v16310_v34 = vld [vmem:[#allocation5 + $0x850] sm:$0xff]  }
 0x191   :  { %14986 = vmatprep.subr.bf16.mxu1 %v16266_v50  ;;  %v17621_v50 = vpack.c.bf16 %v18139_v9, %v18139_v9 }
 0x192   :  { %14965 = vmatpush3.bf16.msra.mxu0 %v16267_v52  ;;  %v16307_v52 = vld [vmem:[#allocation5 + $0x8c8] sm:$0xff]  }
 0x193   :  { %14994 = vmatprep.subr.bf16.mxu0 %v16273_v54  ;;  %v16309_v54 = vld [vmem:[#allocation5 + $0x910] sm:$0xff]  }
 0x194   :  { %14987 = vmatpush3.bf16.msra.mxu1 %v16268_v53  ;;  %v16308_v53 = vld [vmem:[#allocation5 + $0x890] sm:$0xff]  }
 0x195   :  { %3284 = vmatmul.mubr.bf16.vlgmr.msra.gmra.mrb[28].mxu0 %v13443_v56  ;;  %15788 = vmatprep.subr.bf16.mxu1 %v17844_v15  ;;  %v16312_v56 = vld [vmem:[#allocation5 + $0x898] sm:$0xff]  }
 0x196   :  { %14995 = vmatpush3.bf16.msra.mxu0 %v16274_v60  ;;  %3363 = vmatprep.mubr.bf16.mxu0 %v13448_v37  ;;  %v16316_v60 = vld [vmem:[#allocation5 + $0x8a0] sm:$0xff]   ;;  %v16338_v37 = vld [vmem:[#allocation5 + $0x948] sm:$0xff]  }
 0x197   :  { %3324 = vmatmul.mubr.bf16.vlgmr.msra.gmra.mrb[28].mxu1 %v13445_v61  ;;  %14996 = vmatprep.subr.bf16.mxu0 %v16276_v62  ;;  %v16317_v61 = vld [vmem:[#allocation5 + $0x920] sm:$0xff]  }
 0x198   :  { %15789 = vmatpush3.bf16.msra.mxu1 %v16275_v63  ;;  %15804 = vmatprep.mubr.msk.bf16.mxu1 %vm17845_vm0, %v17844_v15  ;;  %v16318_v62 = vld [vmem:[#allocation5 + $0x860] sm:$0xff]  }
 0x199   :  { %15790 = vmatprep.subr.bf16.mxu1 %v17844_v15  ;;  %v16319_v63 = vld [vmem:[#allocation5 + $0x8e0] sm:$0xff]  }
 0x19a   :  { %14997 = vmatpush3.bf16.msra.mxu0 %v16277_v0  ;;  %v16320_v0 = vld [vmem:[#allocation5 + $0x8a8] sm:$0xff]  }
 0x19b   :  { %14998 = vmatprep.subr.bf16.mxu0 %v16279_v42  ;;  %v16321_v42 = vld [vmem:[#allocation5 + $0x928] sm:$0xff]  }
 0x19c   :  { %15791 = vmatpush3.bf16.msra.mxu1 %v16278_v1  ;;  %v16322_v1 = vld [vmem:[#allocation5 + $0x868] sm:$0xff]  }
 0x19d   :  { %15792 = vmatprep.subr.bf16.mxu1 %v17844_v15 }
 0x19e   :  { %14999 = vmatpush3.bf16.msra.mxu0 %v16280_v2  ;;  %v16323_v2 = vld [vmem:[#allocation5 + $0x8e8] sm:$0xff]  }
 0x19f   :  { %15000 = vmatprep.subr.bf16.mxu0 %v16282_v3  ;;  %v16324_v3 = vld [vmem:[#allocation5 + $0x8b0] sm:$0xff]  }
 0x1a0   :  { %15793 = vmatpush3.bf16.msra.mxu1 %v16281_v4 }
 0x1a1   :  { %15794 = vmatprep.subr.bf16.mxu1 %v17844_v15 }
 0x1a2   :  { %15001 = vmatpush3.bf16.msra.mxu0 %v16283_v5  ;;  %v16325_v5 = vld [vmem:[#allocation5 + $0x930] sm:$0xff]  }
 0x1a3   :  { %15002 = vmatprep.subr.bf16.mxu0 %v16285_v6 }
 0x1a4   :  { %15795 = vmatpush3.bf16.msra.mxu1 %v16284_v7  ;;  %v16326_v7 = vld [vmem:[#allocation5 + $0x870] sm:$0xff]  }
 0x1a5   :  { %15796 = vmatprep.subr.bf16.mxu1 %v17844_v15 }
 0x1a6   :  { %15003 = vmatpush3.bf16.msra.mxu0 %v16286_v10 }
 0x1a7   :  { %15004 = vmatprep.subr.bf16.mxu0 %v16288_v12  ;;  %v16327_v12 = vld [vmem:[#allocation5 + $0x8f0] sm:$0xff]  }
 0x1a8   :  { %15797 = vmatpush3.bf16.msra.mxu1 %v16287_v13  ;;  %v14728_v18 = vpop.f32.mrb[4].mxu0  ;;  %v16328_v13 = vld [vmem:[#allocation5 + $0x8b8] sm:$0xff]  }
 0x1a9   :  { %v14729_v20 = vpop.f32.mrb[5].mxu0  ;;  %15798 = vmatprep.subr.bf16.mxu1 %v17844_v15  ;;  %v14750_v21 = vpop.f32.mrb[4].mxu1 }
 0x1aa   :  { %v14730_v23 = vadd.f32 %v14729_v20, %v14728_v18  ;;  %v14731_v24 = vpop.f32.mrb[6].mxu0  ;;  %15005 = vmatpush3.bf16.msra.mxu0 %v16289_v14  ;;  %v14751_v25 = vpop.f32.mrb[5].mxu1  ;;  %v16329_v20 = vld [vmem:[#allocation5 + $0x938] sm:$0xff]  }
 0x1ab   :  { %v14732_v27 = vpop.f32.mrb[7].mxu0  ;;  %v14752_v28 = vadd.f32 %v14751_v25, %v14750_v21  ;;  %v14753_v29 = vpop.f32.mrb[6].mxu1  ;;  %15006 = vmatprep.subr.bf16.mxu0 %v16291_v16  ;;  %v16331_v24 = vld [vmem:[#allocation5 + $0x8f8] sm:$0xff]   ;;  %v16332_v25 = vld [vmem:[#allocation5 + $0x980] sm:$0xff]  }
 0x1ac   :  { %v1302_v17 = vadd.f32 %v14730_v23, %v18123_v51  ;;  %15799 = vmatpush3.bf16.msra.mxu1 %v16290_v19  ;;  %v14754_v33 = vpop.f32.mrb[7].mxu1  ;;  %v16306_v51 = vld [vmem:[#allocation5 + $0x848] sm:$0xff]   ;;  %v17622_v29 = vpack.c.bf16 %v18113_v30, %v18113_v30  ;;  %v16340_v30 = vld [vmem:[#allocation5 + $0x990] sm:$0xff]  }
 0x1ad   :  { %15800 = vmatprep.subr.bf16.mxu1 %v17844_v15  ;;  %v17623_v33 = vpack.c.bf16 %v18133_v8, %v18133_v8  ;;  %v16344_v8 = vld [vmem:[#allocation5 + $0x998] sm:$0xff]  }
 0x1ae   :  { %v18147_v38 = vadd.f32 %v14752_v28, %v1302_v17  ;;  %15007 = vmatpush3.bf16.msra.mxu0 %v16292_v22  ;;  %v16330_v22 = vld [vmem:[#allocation5 + $0x878] sm:$0xff]   ;;  %v16333_v28 = vld [vmem:[#allocation5 + $0xa00] sm:$0xff]  }
 0x1af   :  { %15008 = vmatprep.subr.bf16.mxu0 %v16294_v31  ;;  %v16334_v31 = vld [vmem:[#allocation5 + $0x940] sm:$0xff]  }
 0x1b0   :  { %15801 = vmatpush3.bf16.msra.mxu1 %v16293_v35  ;;  %v16335_v17 = vld [vmem:[#allocation5 + $0x9c0] sm:$0xff]   ;;  %v16336_v35 = vld [vmem:[#allocation5 + $0x988] sm:$0xff]  }
 0x1b1   :  { %15802 = vmatprep.subr.bf16.mxu1 %v17844_v15 }
 0x1b2   :  { %15009 = vmatpush3.bf16.msra.mxu0 %v16295_v36  ;;  %v16337_v36 = vld [vmem:[#allocation5 + $0xa08] sm:$0xff]  }
 0x1b3   :  { %15025 = vmatprep.subr.bf16.mxu0 %v16299_v40  ;;  %v16342_v40 = vld [vmem:[#allocation5 + $0x950] sm:$0xff]  }
 0x1b4   :  { %15803 = vmatpush3.bf16.msra.mxu1 %v16296_v39  ;;  %v16341_v39 = vld [vmem:[#allocation5 + $0xa10] sm:$0xff]  }
 0x1b5   :  { %3364 = vmatmul.mubr.bf16.vlgmr.msra.gmra.mrb[32].mxu0 %v13447_v43  ;;  %15047 = vmatprep.subr.bf16.mxu1 %v16300_v41  ;;  %v16343_v41 = vld [vmem:[#allocation5 + $0x9d0] sm:$0xff]   ;;  %v16345_v43 = vld [vmem:[#allocation5 + $0xa18] sm:$0xff]  }
 0x1b6   :  { %15026 = vmatpush3.bf16.msra.mxu0 %v16302_v44  ;;  %4195 = vmatprep.mubr.bf16.mxu0 %v17620_v47  ;;  %v16346_v44 = vld [vmem:[#allocation5 + $0x958] sm:$0xff]   ;;  %v16349_v47 = vld [vmem:[#allocation5 + $0xa20] sm:$0xff]  }
 0x1b7   :  { %15805 = vmatmul.mubr.bf16.vlgmr.msra.gmra.mrb[32].mxu1 %v16301_v48  ;;  %15027 = vmatprep.subr.bf16.mxu0 %v16304_v46  ;;  %v16348_v46 = vld [vmem:[#allocation5 + $0x9a0] sm:$0xff]  }
 0x1b8   :  { %15048 = vmatpush3.bf16.msra.mxu1 %v16303_v45  ;;  %4235 = vmatprep.mubr.bf16.mxu1 %v17621_v50  ;;  %v16347_v45 = vld [vmem:[#allocation5 + $0x9d8] sm:$0xff]   ;;  %v16350_v48 = vld [vmem:[#allocation5 + $0x960] sm:$0xff]   ;;  %v16352_v50 = vld [vmem:[#allocation5 + $0x9a8] sm:$0xff]  }
 0x1b9   :  { %15049 = vmatprep.subr.bf16.mxu1 %v16305_v49  ;;  %v16351_v49 = vld [vmem:[#allocation5 + $0x9e0] sm:$0xff]  }
 0x1ba   :  { %15028 = vmatpush3.bf16.msra.mxu0 %v16306_v51  ;;  %v158_v51 = vld [vmem:[%s18611_s0 + $0xc0] sm:$0xff] }
 0x1bb   :  { %15029 = vmatprep.subr.bf16.mxu0 %v16308_v53  ;;  %v160_v53 = vld [vmem:[%s18611_s0 + $0xd0] sm:$0xff] }
 0x1bc   :  { %15050 = vmatpush3.bf16.msra.mxu1 %v16307_v52  ;;  %v159_v52 = vld [vmem:[%s18611_s0 + $0xc8] sm:$0xff] }
 0x1bd   :  { %15051 = vmatprep.subr.bf16.mxu1 %v16309_v54  ;;  %v161_v54 = vld [vmem:[%s18611_s0 + $0xd8] sm:$0xff] }
 0x1be   :  { %15030 = vmatpush3.bf16.msra.mxu0 %v16310_v34  ;;  %v16353_v34 = vld [vmem:[#allocation5 + $0xa28] sm:$0xff]  }
 0x1bf   :  { %15031 = vmatprep.subr.bf16.mxu0 %v16312_v56  ;;  %v16354_v56 = vld [vmem:[#allocation5 + $0x968] sm:$0xff]  }
 0x1c0   :  { %15052 = vmatpush3.bf16.msra.mxu1 %v16311_v55  ;;  %v14648_v55 = vpack.c.bf16 %v161_v54, %v160_v53 }
 0x1c1   :  { %15053 = vmatprep.subr.bf16.mxu1 %v16313_v57  ;;  %v17624_v57 = vpack.c.bf16 %v159_v52, %v159_v52 }
 0x1c2   :  { %15032 = vmatpush3.bf16.msra.mxu0 %v16314_v58  ;;  %v16356_v58 = vld [vmem:[#allocation5 + $0x9b0] sm:$0xff]   ;;  %417 = vst [vmem:[#allocation2 + $0x68] sm:$0xff] %v14648_v55 }
 0x1c3   :  { %15033 = vmatprep.subr.bf16.mxu0 %v16316_v60 }
 0x1c4   :  { %15054 = vmatpush3.bf16.msra.mxu1 %v16315_v59  ;;  %v17625_v59 = vpack.c.bf16 %v161_v54, %v161_v54 }
 0x1c5   :  { %15055 = vmatprep.subr.bf16.mxu1 %v16317_v61  ;;  %v16355_v61 = vld [vmem:[#allocation5 + $0x9e8] sm:$0xff]  }
 0x1c6   :  { %15034 = vmatpush3.bf16.msra.mxu0 %v16318_v62 }
 0x1c7   :  { %15035 = vmatprep.subr.bf16.mxu0 %v16320_v0 }
 0x1c8   :  { %15056 = vmatpush3.bf16.msra.mxu1 %v16319_v63  ;;  %v14772_v4 = vpop.f32.mrb[8].mxu0  ;;  %v16357_v63 = vld [vmem:[#allocation5 + $0xa30] sm:$0xff]  }
 0x1c9   :  { %v14773_v6 = vpop.f32.mrb[9].mxu0  ;;  %15057 = vmatprep.subr.bf16.mxu1 %v16321_v42 }
 0x1ca   :  { %v14774_v9 = vadd.f32 %v14773_v6, %v14772_v4  ;;  %v14775_v10 = vpop.f32.mrb[10].mxu0  ;;  %15036 = vmatpush3.bf16.msra.mxu0 %v16322_v1  ;;  %v1421_v11 = vpop.f32.mrb[8].mxu1 }
 0x1cb   :  { %v14776_v14 = vpop.f32.mrb[11].mxu0  ;;  %v15766_v16 = vpop.f32.mrb[9].mxu1  ;;  %15037 = vmatprep.subr.bf16.mxu0 %v16324_v3  ;;  %v16360_v3 = vld [vmem:[#allocation5 + $0x9b8] sm:$0xff]   ;;  %v16359_v10 = vld [vmem:[#allocation5 + $0x9f0] sm:$0xff]  }
 0x1cc   :  { %15058 = vmatpush3.bf16.msra.mxu1 %v16323_v2  ;;  %v1382_v18 = vadd.f32 %v14774_v9, %v18147_v38  ;;  %v1424_v19 = vpop.f32.mrb[10].mxu1  ;;  %v16339_v38 = vld [vmem:[#allocation5 + $0x9c8] sm:$0xff]   ;;  %v16358_v2 = vld [vmem:[#allocation5 + $0x970] sm:$0xff]   ;;  %v16362_v14 = vld [vmem:[#allocation5 + $0x978] sm:$0xff]  }
 0x1cd   :  { %15059 = vmatprep.subr.bf16.mxu1 %v16325_v5  ;;  %v15767_v21 = vpop.f32.mrb[11].mxu1  ;;  %v16364_v16 = vld [vmem:[#allocation5 + $0xa80] sm:$0xff]   ;;  %v17626_v19 = vpack.c.bf16 %v158_v51, %v158_v51 }
 0x1ce   :  { %v1422_v23 = vadd.f32 %v1421_v11, %v1382_v18  ;;  %15038 = vmatpush3.bf16.msra.mxu0 %v16326_v7  ;;  %v16363_v18 = vld [vmem:[#allocation5 + $0x9f8] sm:$0xff]   ;;  %v16367_v21 = vld [vmem:[#allocation5 + $0xa88] sm:$0xff]  }
 0x1cf   :  { %15039 = vmatprep.subr.bf16.mxu0 %v16328_v13 }
 0x1d0   :  { %v1427_v27 = vmax.f32 %v1422_v23, 0.0  ;;  %15060 = vmatpush3.bf16.msra.mxu1 %v16327_v12  ;;  %v16361_v12 = vld [vmem:[#allocation5 + $0xa38] sm:$0xff]   ;;  %v16368_v23 = vld [vmem:[#allocation5 + $0xa48] sm:$0xff]  }
 0x1d1   :  { %15061 = vmatprep.subr.bf16.mxu1 %v16329_v20  ;;  %v16365_v20 = vld [vmem:[#allocation5 + $0xa40] sm:$0xff]  }
 0x1d2   :  { %v1428_v32 = vpack.c.bf16 %v1427_v27, %v1427_v27  ;;  %15040 = vmatpush3.bf16.msra.mxu0 %v16330_v22  ;;  %v16366_v22 = vld [vmem:[#allocation5 + $0xac0] sm:$0xff]   ;;  %v16371_v27 = vld [vmem:[#allocation5 + $0xa50] sm:$0xff]  }
 0x1d3   :  { %15069 = vmatprep.subr.bf16.mxu0 %v16332_v25  ;;  %v16369_v25 = vld [vmem:[#allocation5 + $0xac8] sm:$0xff]  }
 0x1d4   :  { %1429 = vst [vmem:[#allocation3] sm:$0xf] %v1428_v32  ;;  %15062 = vmatpush3.bf16.msra.mxu1 %v16331_v24  ;;  %v16370_v24 = vld [vmem:[#allocation5 + $0xa90] sm:$0xff]  }
 0x1d5   :  { %4196 = vmatmul.mubr.bf16.vlgmr.msra.gmra.mrb[36].mxu0 %v17622_v29  ;;  %15091 = vmatprep.subr.bf16.mxu1 %v16333_v28  ;;  %v16373_v28 = vld [vmem:[#allocation5 + $0xa98] sm:$0xff]   ;;  %v16372_v29 = vld [vmem:[#allocation5 + $0xad0] sm:$0xff]  }
 0x1d6   :  { %15070 = vmatpush3.bf16.msra.mxu0 %v16334_v31  ;;  %4275 = vmatprep.mubr.bf16.mxu0 %v17624_v57  ;;  %v18181_v31 = vld [vmem:[%s18611_s0 + $0xe0] sm:$0xff]  ;;  %v163_v32 = vld [vmem:[%s18611_s0 + $0xe8] sm:$0xff] }
 0x1d7   :  { %4236 = vmatmul.mubr.bf16.vlgmr.msra.gmra.mrb[36].mxu1 %v17623_v33  ;;  %15071 = vmatprep.subr.bf16.mxu0 %v16336_v35  ;;  %v14649_v33 = vpack.c.bf16 %v163_v32, %v18181_v31  ;;  %v16376_v35 = vld [vmem:[#allocation5 + $0xaa0] sm:$0xff]   ;;  %v16384_v57 = vld [vmem:[#allocation5 + $0xaf0] sm:$0xff]  }
 0x1d8   :  { %15092 = vmatpush3.bf16.msra.mxu1 %v16335_v17  ;;  %4315 = vmatprep.mubr.bf16.mxu1 %v17625_v59  ;;  %v16374_v17 = vld [vmem:[#allocation5 + $0xa58] sm:$0xff]  }
 0x1d9   :  { %15093 = vmatprep.subr.bf16.mxu1 %v16337_v36  ;;  %v164_v36 = vld [vmem:[%s18611_s0 + $0xf0] sm:$0xff]  ;;  %418 = vst [vmem:[#allocation2 + $0x70] sm:$0xff] %v14649_v33 }
 0x1da   :  { %15072 = vmatpush3.bf16.msra.mxu0 %v16338_v37  ;;  %v165_v37 = vld [vmem:[%s18611_s0 + $0xf8] sm:$0xff]  ;;  %v16386_v59 = vld [vmem:[#allocation5 + $0xa78] sm:$0xff]  }
 0x1db   :  { %15073 = vmatprep.subr.bf16.mxu0 %v16340_v30  ;;  %v17628_v30 = vpack.c.bf16 %v163_v32, %v163_v32 }
 0x1dc   :  { %15094 = vmatpush3.bf16.msra.mxu1 %v16339_v38  ;;  %v16375_v38 = vld [vmem:[#allocation5 + $0xad8] sm:$0xff]  }
 0x1dd   :  { %15095 = vmatprep.subr.bf16.mxu1 %v16341_v39  ;;  %v14650_v39 = vpack.c.bf16 %v165_v37, %v164_v36 }
 0x1de   :  { %15074 = vmatpush3.bf16.msra.mxu0 %v16342_v40  ;;  %v16377_v40 = vld [vmem:[#allocation5 + $0xa60] sm:$0xff]  }
 0x1df   :  { %15075 = vmatprep.subr.bf16.mxu0 %v16344_v8  ;;  %419 = vst [vmem:[#allocation2 + $0x78] sm:$0xff] %v14650_v39  ;;  %v16378_v8 = vld [vmem:[#allocation5 + $0xae0] sm:$0xff]  }
 0x1e0   :  { %15096 = vmatpush3.bf16.msra.mxu1 %v16343_v41  ;;  %v16379_v41 = vld [vmem:[#allocation5 + $0xaa8] sm:$0xff]  }
 0x1e1   :  { %15097 = vmatprep.subr.bf16.mxu1 %v16345_v43  ;;  %v16380_v43 = vld [vmem:[#allocation5 + $0xa68] sm:$0xff]  }
 0x1e2   :  { %15076 = vmatpush3.bf16.msra.mxu0 %v16346_v44  ;;  %v16382_v44 = vld [vmem:[#allocation5 + $0xab0] sm:$0xff]  }
 0x1e3   :  { %15077 = vmatprep.subr.bf16.mxu0 %v16348_v46  ;;  %v16381_v46 = vld [vmem:[#allocation5 + $0xae8] sm:$0xff]  }
 0x1e4   :  { %15098 = vmatpush3.bf16.msra.mxu1 %v16347_v45 }
 0x1e5   :  { %15099 = vmatprep.subr.bf16.mxu1 %v16349_v47 }
 0x1e6   :  { %15078 = vmatpush3.bf16.msra.mxu0 %v16350_v48  ;;  %v16383_v48 = vld [vmem:[#allocation5 + $0xa70] sm:$0xff]  }
 0x1e7   :  { %15079 = vmatprep.subr.bf16.mxu0 %v16352_v50 }
 0x1e8   :  { %15100 = vmatpush3.bf16.msra.mxu1 %v16351_v49  ;;  %v14803_v60 = vpop.f32.mrb[12].mxu0  ;;  %v16385_v49 = vld [vmem:[#allocation5 + $0xab8] sm:$0xff]  }
 0x1e9   :  { %v14804_v62 = vpop.f32.mrb[13].mxu0  ;;  %15101 = vmatprep.subr.bf16.mxu1 %v16353_v34 }
 0x1ea   :  { %v14805_v0 = vadd.f32 %v14804_v62, %v14803_v60  ;;  %v14806_v42 = vpop.f32.mrb[14].mxu0  ;;  %v14825_v1 = vpop.f32.mrb[12].mxu1  ;;  %15080 = vmatpush3.bf16.msra.mxu0 %v16354_v56  ;;  %v16388_v62 = vld [vmem:[#allocation5 + $0x40] sm:$0xff]  }
 0x1eb   :  { %v14807_v4 = vpop.f32.mrb[15].mxu0  ;;  %v14826_v5 = vpop.f32.mrb[13].mxu1  ;;  %15081 = vmatprep.subr.bf16.mxu0 %v16356_v58  ;;  %v16391_v42 = vld [vmem:[#allocation5] sm:$0xff]  }
 0x1ec   :  { %v2214_v6 = vadd.f32 %v14805_v0, %v18102_v26  ;;  %15102 = vmatpush3.bf16.msra.mxu1 %v16355_v61  ;;  %v14827_v7 = vadd.f32 %v14826_v5, %v14825_v1  ;;  %v14828_v9 = vpop.f32.mrb[14].mxu1  ;;  %v17627_v26 = vpack.c.bf16 %v160_v53, %v160_v53  ;;  %v16387_v61 = vld [vmem:[#allocation5 + $0xaf8] sm:$0xff]   ;;  %v17629_v0 = vpack.c.bf16 %v18181_v31, %v18181_v31  ;;  %v16392_v1 = vld [vmem:[#allocation5 + $0x80] sm:$0xff]   ;;  %v16394_v4 = vld [vmem:[#allocation5 + $0xc8] sm:$0xff]  }
 0x1ed   :  { %15103 = vmatprep.subr.bf16.mxu1 %v16357_v63  ;;  %v14829_v11 = vpop.f32.mrb[15].mxu1  ;;  %v16389_v63 = vld [vmem:[#allocation5 + $0xc0] sm:$0xff]   ;;  %v16395_v5 = vld [vmem:[#allocation5 + $0x8] sm:$0xff]   ;;  %v16398_v9 = vld [vmem:[#allocation5 + $0xd0] sm:$0xff]  }
 0x1ee   :  { %v18172_v13 = vadd.f32 %v14827_v7, %v2214_v6  ;;  %15082 = vmatpush3.bf16.msra.mxu0 %v16358_v2  ;;  %v16393_v2 = vld [vmem:[#allocation5 + $0x48] sm:$0xff]   ;;  %v16397_v7 = vld [vmem:[#allocation5 + $0x50] sm:$0xff]  }
 0x1ef   :  { %15083 = vmatprep.subr.bf16.mxu0 %v16360_v3  ;;  %v16390_v3 = vld [vmem:[#allocation2 + $0x78] ss:$0 sps:$4 sm:$0xff]   ;;  %v16396_v6 = vld [vmem:[#allocation5 + $0x88] sm:$0xff]   ;;  %v16400_v11 = vld [vmem:[#allocation5 + $0x90] sm:$0xff]  }
 0x1f0   :  { %15104 = vmatpush3.bf16.msra.mxu1 %v16359_v10  ;;  %v16399_v10 = vld [vmem:[#allocation5 + $0x10] sm:$0xff]  }
 0x1f1   :  { %15105 = vmatprep.subr.bf16.mxu1 %v16361_v12  ;;  %v16401_v12 = vld [vmem:[#allocation5 + $0x58] sm:$0xff]   ;;  %v16413_v31 = vld [vmem:[#allocation5 + $0x70] sm:$0xff]  }
 0x1f2   :  { %15084 = vmatpush3.bf16.msra.mxu0 %v16362_v14  ;;  %v16403_v14 = vld [vmem:[#allocation5 + $0x18] sm:$0xff]  }
 0x1f3   :  { %15113 = vmatprep.subr.bf16.mxu0 %v16364_v16  ;;  %v16404_v16 = vld [vmem:[#allocation5 + $0x98] sm:$0xff]  }
 0x1f4   :  { %15106 = vmatpush3.bf16.msra.mxu1 %v16363_v18  ;;  %v16405_v18 = vld [vmem:[#allocation5 + $0x60] sm:$0xff]  }
 0x1f5   :  { %4276 = vmatmul.mubr.bf16.vlgmr.msra.gmra.mrb[40].mxu0 %v17626_v19  ;;  %15808 = vmatprep.subr.bf16.mxu1 %v17844_v15  ;;  %v18204_v19 = vld [vmem:[#allocation2 + $0x6c] sm:$0xff] }
 0x1f6   :  { %15114 = vmatpush3.bf16.msra.mxu0 %v16365_v20  ;;  %4355 = vmatprep.mubr.bf16.mxu0 %v17628_v30  ;;  %v18206_v20 = vld [vmem:[#allocation2 + $0x74] sm:$0xff] }
 0x1f7   :  { %4316 = vmatmul.mubr.bf16.vlgmr.msra.gmra.mrb[40].mxu1 %v17627_v26  ;;  %15115 = vmatprep.subr.bf16.mxu0 %v16367_v21  ;;  %v16406_v26 = vld [vmem:[#allocation5 + $0xe0] sm:$0xff]   ;;  %v13638_v21 = vcombine.high %v18204_v19, %v18204_v19 }
 0x1f8   :  { %15809 = vmatpush3.bf16.msra.mxu1 %v16366_v22  ;;  %15824 = vmatprep.mubr.msk.bf16.mxu1 %vm17845_vm0, %v17844_v15  ;;  %v13640_v22 = vcombine.high %v18206_v20, %v18206_v20 }
 0x1f9   :  { %15810 = vmatprep.subr.bf16.mxu1 %v17844_v15 }
 0x1fa   :  { %15116 = vmatpush3.bf16.msra.mxu0 %v16368_v23  ;;  %v16407_v23 = vld [vmem:[#allocation5 + $0x20] sm:$0xff]  }
 0x1fb   :  { %15117 = vmatprep.subr.bf16.mxu0 %v16370_v24  ;;  %v16408_v24 = vld [vmem:[#allocation5 + $0xa0] sm:$0xff]  }
 0x1fc   :  { %15811 = vmatpush3.bf16.msra.mxu1 %v16369_v25  ;;  %v16409_v25 = vld [vmem:[#allocation5 + $0x68] sm:$0xff]  }
 0x1fd   :  { %15812 = vmatprep.subr.bf16.mxu1 %v17844_v15 }
 0x1fe   :  { %15118 = vmatpush3.bf16.msra.mxu0 %v16371_v27  ;;  %v16410_v27 = vld [vmem:[#allocation5 + $0xe8] sm:$0xff]  }
 0x1ff   :  { %15119 = vmatprep.subr.bf16.mxu0 %v16373_v28  ;;  %v16411_v28 = vld [vmem:[#allocation5 + $0x28] sm:$0xff]  }
 0x200   :  { %15813 = vmatpush3.bf16.msra.mxu1 %v16372_v29  ;;  %v16412_v29 = vld [vmem:[#allocation5 + $0xa8] sm:$0xff]  }
 0x201   :  { %15814 = vmatprep.subr.bf16.mxu1 %v17844_v15 }
 0x202   :  { %15120 = vmatpush3.bf16.msra.mxu0 %v16374_v17  ;;  %v16414_v17 = vld [vmem:[#allocation5 + $0xf0] sm:$0xff]  }
 0x203   :  { %15121 = vmatprep.subr.bf16.mxu0 %v16376_v35  ;;  %v16415_v35 = vld [vmem:[#allocation5 + $0x30] sm:$0xff]  }
 0x204   :  { %15815 = vmatpush3.bf16.msra.mxu1 %v16375_v38 }
 0x205   :  { %15816 = vmatprep.subr.bf16.mxu1 %v17844_v15 }
 0x206   :  { %15122 = vmatpush3.bf16.msra.mxu0 %v16377_v40  ;;  %v16416_v40 = vld [vmem:[#allocation5 + $0xb0] sm:$0xff]  }
 0x207   :  { %15123 = vmatprep.subr.bf16.mxu0 %v16379_v41  ;;  %v16417_v41 = vld [vmem:[#allocation5 + $0x78] sm:$0xff]  }
 0x208   :  { %15817 = vmatpush3.bf16.msra.mxu1 %v16378_v8  ;;  %v14847_v45 = vpop.f32.mrb[16].mxu0 }
 0x209   :  { %v14848_v47 = vpop.f32.mrb[17].mxu0  ;;  %15818 = vmatprep.subr.bf16.mxu1 %v17844_v15 }
 0x20a   :  { %v14849_v50 = vadd.f32 %v14848_v47, %v14847_v45  ;;  %v14850_v51 = vpop.f32.mrb[18].mxu0  ;;  %v14869_v52 = vpop.f32.mrb[16].mxu1  ;;  %15124 = vmatpush3.bf16.msra.mxu0 %v16380_v43 }
 0x20b   :  { %v14851_v53 = vpop.f32.mrb[19].mxu0  ;;  %v14870_v54 = vpop.f32.mrb[17].mxu1  ;;  %15125 = vmatprep.subr.bf16.mxu0 %v16382_v44  ;;  %v16418_v44 = vld [vmem:[#allocation5 + $0xf8] sm:$0xff]   ;;  %v16426_v51 = vld [vmem:[#allocation5 + $0x1c0] sm:$0xff]  }
 0x20c   :  { %v2294_v34 = vadd.f32 %v14849_v50, %v18172_v13  ;;  %15819 = vmatpush3.bf16.msra.mxu1 %v16381_v46  ;;  %v14871_v55 = vadd.f32 %v14870_v54, %v14869_v52  ;;  %v14872_v56 = vpop.f32.mrb[18].mxu1  ;;  %v16402_v13 = vld [vmem:[#allocation5 + $0xd8] sm:$0xff]   ;;  %v13637_v52 = vcombine.low %v18204_v19, %v18204_v19  ;;  %v16427_v53 = vld [vmem:[#allocation5 + $0x100] sm:$0xff]   ;;  %v16448_v19 = vld [vmem:[#allocation5 + $0x1a8] sm:$0xff]  }
 0x20d   :  { %15820 = vmatprep.subr.bf16.mxu1 %v17844_v15  ;;  %v14873_v58 = vpop.f32.mrb[19].mxu1  ;;  %v16419_v46 = vld [vmem:[#allocation5 + $0x38] sm:$0xff]   ;;  %v16429_v56 = vld [vmem:[#allocation5 + $0x148] sm:$0xff]  }
 0x20e   :  { %v18199_v60 = vadd.f32 %v14871_v55, %v2294_v34  ;;  %15126 = vmatpush3.bf16.msra.mxu0 %v16383_v48  ;;  %v16420_v48 = vld [vmem:[#allocation5 + $0xb8] sm:$0xff]   ;;  %v16428_v34 = vld [vmem:[#allocation5 + $0x180] sm:$0xff]   ;;  %v13639_v55 = vcombine.low %v18206_v20, %v18206_v20  ;;  %v16431_v58 = vld [vmem:[#allocation5 + $0x108] sm:$0xff]  }
 0x20f   :  { %15127 = vmatprep.subr.bf16.mxu0 %v16385_v49  ;;  %v16425_v49 = vld [vmem:[#allocation5 + $0x140] sm:$0xff]   ;;  %v16449_v20 = vld [vmem:[#allocation5 + $0x170] sm:$0xff]  }
 0x210   :  { %15821 = vmatpush3.bf16.msra.mxu1 %v16384_v57  ;;  %v16430_v57 = vld [vmem:[#allocation5 + $0x1c8] sm:$0xff]  }
 0x211   :  { %15822 = vmatprep.subr.bf16.mxu1 %v17844_v15 }
 0x212   :  { %15128 = vmatpush3.bf16.msra.mxu0 %v16386_v59  ;;  %v16432_v59 = vld [vmem:[#allocation5 + $0x188] sm:$0xff]  }
 0x213   :  { %15144 = vmatprep.subr.bf16.mxu0 %v16388_v62  ;;  %v16435_v62 = vld [vmem:[#allocation5 + $0x110] sm:$0xff]  }
 0x214   :  { %15823 = vmatpush3.bf16.msra.mxu1 %v16387_v61  ;;  %v16434_v61 = vld [vmem:[#allocation5 + $0x1d0] sm:$0xff]  }
 0x215   :  { %4356 = vmatmul.mubr.bf16.vlgmr.msra.gmra.mrb[44].mxu0 %v17629_v0  ;;  %15166 = vmatprep.subr.bf16.mxu1 %v16389_v63  ;;  %v16436_v63 = vld [vmem:[#allocation5 + $0x190] sm:$0xff]   ;;  %v16437_v0 = vld [vmem:[#allocation5 + $0x158] sm:$0xff]  }
 0x216   :  { %15145 = vmatpush3.bf16.msra.mxu0 %v16391_v42  ;;  %5187 = vmatprep.mubr.bf16.mxu0 %v13638_v21  ;;  %v16438_v42 = vld [vmem:[#allocation5 + $0x1d8] sm:$0xff]   ;;  %v16450_v21 = vld [vmem:[#allocation5 + $0x1f0] sm:$0xff]  }
 0x217   :  { %15825 = vmatmul.mubr.bf16.vlgmr.msra.gmra.mrb[44].mxu1 %v16390_v3  ;;  %15146 = vmatprep.subr.bf16.mxu0 %v16393_v2  ;;  %v16440_v2 = vld [vmem:[#allocation5 + $0x198] sm:$0xff]   ;;  %v16441_v3 = vld [vmem:[#allocation5 + $0x160] sm:$0xff]  }
 0x218   :  { %15167 = vmatpush3.bf16.msra.mxu1 %v16392_v1  ;;  %5227 = vmatprep.mubr.bf16.mxu1 %v13640_v22  ;;  %v16439_v1 = vld [vmem:[#allocation5 + $0x118] sm:$0xff]  }
 0x219   :  { %15168 = vmatprep.subr.bf16.mxu1 %v16394_v4  ;;  %v16442_v4 = vld [vmem:[#allocation5 + $0x1e0] sm:$0xff]  }
 0x21a   :  { %15147 = vmatpush3.bf16.msra.mxu0 %v16395_v5  ;;  %v16443_v5 = vld [vmem:[#allocation5 + $0x120] sm:$0xff]  }
 0x21b   :  { %15148 = vmatprep.subr.bf16.mxu0 %v16397_v7  ;;  %v167_v7 = vld [vmem:[%s18611_s0 + $0x108] sm:$0xff] }
 0x21c   :  { %15169 = vmatpush3.bf16.msra.mxu1 %v16396_v6  ;;  %v166_v6 = vld [vmem:[%s18611_s0 + $0x100] sm:$0xff] }
 0x21d   :  { %15170 = vmatprep.subr.bf16.mxu1 %v16398_v9  ;;  %v14651_v9 = vpack.c.bf16 %v167_v7, %v166_v6  ;;  %v16480_v7 = vld [vmem:[#allocation5 + $0x230] sm:$0xff]  }
 0x21e   :  { %15149 = vmatpush3.bf16.msra.mxu0 %v16399_v10  ;;  %v168_v10 = vld [vmem:[%s18611_s0 + $0x110] sm:$0xff] }
 0x21f   :  { %15150 = vmatprep.subr.bf16.mxu0 %v16401_v12  ;;  %v16444_v12 = vld [vmem:[#allocation5 + $0x1a0] sm:$0xff]   ;;  %420 = vst [vmem:[#allocation2 + $0x80] sm:$0xff] %v14651_v9 }
 0x220   :  { %15171 = vmatpush3.bf16.msra.mxu1 %v16400_v11  ;;  %v169_v11 = vld [vmem:[%s18611_s0 + $0x118] sm:$0xff] }
 0x221   :  { %15172 = vmatprep.subr.bf16.mxu1 %v16402_v13  ;;  %v14652_v13 = vpack.c.bf16 %v169_v11, %v168_v10 }
 0x222   :  { %15151 = vmatpush3.bf16.msra.mxu0 %v16403_v14  ;;  %v16445_v14 = vld [vmem:[#allocation5 + $0x168] sm:$0xff]  }
 0x223   :  { %15152 = vmatprep.subr.bf16.mxu0 %v16405_v18  ;;  %421 = vst [vmem:[#allocation2 + $0x88] sm:$0xff] %v14652_v13  ;;  %v16447_v18 = vld [vmem:[#allocation5 + $0x128] sm:$0xff]  }
 0x224   :  { %15173 = vmatpush3.bf16.msra.mxu1 %v16404_v16  ;;  %v16446_v16 = vld [vmem:[#allocation5 + $0x1e8] sm:$0xff]  }
 0x225   :  { %15174 = vmatprep.subr.bf16.mxu1 %v16406_v26 }
 0x226   :  { %15153 = vmatpush3.bf16.msra.mxu0 %v16407_v23  ;;  %v16451_v23 = vld [vmem:[#allocation5 + $0x130] sm:$0xff]  }
 0x227   :  { %15154 = vmatprep.subr.bf16.mxu0 %v16409_v25 }
 0x228   :  { %15175 = vmatpush3.bf16.msra.mxu1 %v16408_v24  ;;  %v14891_v32 = vpop.f32.mrb[20].mxu0 }
 0x229   :  { %v14892_v33 = vpop.f32.mrb[21].mxu0  ;;  %15176 = vmatprep.subr.bf16.mxu1 %v16410_v27 }
 0x22a   :  { %v14893_v36 = vadd.f32 %v14892_v33, %v14891_v32  ;;  %v14894_v37 = vpop.f32.mrb[22].mxu0  ;;  %15155 = vmatpush3.bf16.msra.mxu0 %v16411_v28  ;;  %v2413_v38 = vpop.f32.mrb[20].mxu1  ;;  %v16452_v28 = vld [vmem:[#allocation5 + $0x1b0] sm:$0xff]  }
 0x22b   :  { %v14895_v30 = vpop.f32.mrb[23].mxu0  ;;  %v15786_v39 = vpop.f32.mrb[21].mxu1  ;;  %15156 = vmatprep.subr.bf16.mxu0 %v16413_v31 }
 0x22c   :  { %15177 = vmatpush3.bf16.msra.mxu1 %v16412_v29  ;;  %v2374_v8 = vadd.f32 %v14893_v36, %v18199_v60  ;;  %v2416_v43 = vpop.f32.mrb[22].mxu1  ;;  %v16433_v60 = vld [vmem:[#allocation5 + $0x150] sm:$0xff]   ;;  %v4408_v29 = vld [vmem:[#allocation2 + $0x7c] sm:$0xff]  ;;  %v18229_v36 = vld [vmem:[#allocation7] ss:$0 sm:$0xff] }
 0x22d   :  { %15178 = vmatprep.subr.bf16.mxu1 %v16414_v17  ;;  %v15787_v45 = vpop.f32.mrb[23].mxu1  ;;  %v16453_v17 = vld [vmem:[#allocation5 + $0x178] sm:$0xff]   ;;  %v13642_v33 = vcombine.high %v4408_v29, %v4408_v29 }
 0x22e   :  { %v2414_v47 = vadd.f32 %v2413_v38, %v2374_v8  ;;  %15157 = vmatpush3.bf16.msra.mxu0 %v16415_v35  ;;  %v4409_v35 = vld [vmem:[#allocation2 + $0x84] sm:$0xff]  ;;  %v16454_v39 = vld [vmem:[#allocation5 + $0x1f8] sm:$0xff]  }
 0x22f   :  { %15158 = vmatprep.subr.bf16.mxu0 %v16417_v41  ;;  %v16455_v8 = vld [vmem:[#allocation5 + $0x138] sm:$0xff]  }
 0x230   :  { %v2419_v50 = vmax.f32 %v2414_v47, 0.0  ;;  %15179 = vmatpush3.bf16.msra.mxu1 %v16416_v40  ;;  %v18232_v40 = vcombine.high %v4409_v35, %v4409_v35  ;;  %v16456_v45 = vld [vmem:[#allocation5 + $0x1b8] sm:$0xff]   ;;  %v16462_v47 = vld [vmem:[#allocation5 + $0x200] sm:$0xff]  }
 0x231   :  { %15180 = vmatprep.subr.bf16.mxu1 %v16418_v44  ;;  %v16461_v44 = vld [vmem:[#allocation5 + $0x240] sm:$0xff]  }
 0x232   :  { %v2420_v54 = vpack.c.bf16 %v2419_v50, %v2419_v50  ;;  %15159 = vmatpush3.bf16.msra.mxu0 %v16419_v46  ;;  %v13641_v46 = vcombine.low %v4408_v29, %v4408_v29  ;;  %v16463_v50 = vld [vmem:[#allocation5 + $0x280] sm:$0xff]  }
 0x233   :  { %15188 = vmatprep.subr.bf16.mxu0 %v16425_v49  ;;  %v16464_v49 = vld [vmem:[#allocation5 + $0x248] sm:$0xff]   ;;  %v16491_v29 = vld [vmem:[#allocation5 + $0x340] sm:$0xff]  }
 0x234   :  { %2421 = vst [vmem:[#allocation3 + $0x4] sm:$0xf] %v2420_v54  ;;  %15181 = vmatpush3.bf16.msra.mxu1 %v16420_v48  ;;  %v18237_v48 = vcombine.low %v4409_v35, %v4409_v35  ;;  %v16468_v54 = vld [vmem:[#allocation5 + $0x210] sm:$0xff]   ;;  %v16495_v35 = vld [vmem:[#allocation5 + $0x348] sm:$0xff]  }
 0x235   :  { %5188 = vmatmul.mubr.bf16.vlgmr.msra.gmra.mrb[48].mxu0 %v13637_v52  ;;  %15210 = vmatprep.subr.bf16.mxu1 %v16426_v51  ;;  %v16465_v51 = vld [vmem:[#allocation5 + $0x208] sm:$0xff]   ;;  %v16467_v52 = vld [vmem:[#allocation5 + $0x250] sm:$0xff]  }
 0x236   :  { %15189 = vmatpush3.bf16.msra.mxu0 %v16427_v53  ;;  %5267 = vmatprep.mubr.bf16.mxu0 %v13642_v33  ;;  %v16466_v53 = vld [vmem:[#allocation5 + $0x288] sm:$0xff]  }
 0x237   :  { %5228 = vmatmul.mubr.bf16.vlgmr.msra.gmra.mrb[48].mxu1 %v13639_v55  ;;  %15190 = vmatprep.subr.bf16.mxu0 %v16429_v56  ;;  %v171_v55 = vld [vmem:[%s18611_s0 + $0x128] sm:$0xff]  ;;  %v16470_v56 = vld [vmem:[#allocation5 + $0x258] sm:$0xff]   ;;  %v16494_v33 = vld [vmem:[#allocation5 + $0x2c8] sm:$0xff]  }
 0x238   :  { %15211 = vmatpush3.bf16.msra.mxu1 %v16428_v34  ;;  %5307 = vmatprep.mubr.bf16.mxu1 %v18232_v40  ;;  %v170_v34 = vld [vmem:[%s18611_s0 + $0x120] sm:$0xff] }
 0x239   :  { %15212 = vmatprep.subr.bf16.mxu1 %v16430_v57  ;;  %v14653_v57 = vpack.c.bf16 %v171_v55, %v170_v34  ;;  %v16513_v34 = vld [vmem:[#allocation5 + $0x3b0] sm:$0xff]  }
 0x23a   :  { %15191 = vmatpush3.bf16.msra.mxu0 %v16431_v58  ;;  %v16469_v58 = vld [vmem:[#allocation5 + $0x290] sm:$0xff]  }
 0x23b   :  { %15192 = vmatprep.subr.bf16.mxu0 %v16433_v60  ;;  %422 = vst [vmem:[#allocation2 + $0x90] sm:$0xff] %v14653_v57  ;;  %v16473_v60 = vld [vmem:[#allocation5 + $0x260] sm:$0xff]  }
 0x23c   :  { %15213 = vmatpush3.bf16.msra.mxu1 %v16432_v59  ;;  %v16471_v59 = vld [vmem:[#allocation5 + $0x218] sm:$0xff]  }
 0x23d   :  { %15214 = vmatprep.subr.bf16.mxu1 %v16434_v61  ;;  %v16472_v61 = vld [vmem:[#allocation5 + $0x298] sm:$0xff]  }
 0x23e   :  { %15193 = vmatpush3.bf16.msra.mxu0 %v16435_v62  ;;  %v16474_v62 = vld [vmem:[#allocation5 + $0x220] sm:$0xff]  }
 0x23f   :  { %15194 = vmatprep.subr.bf16.mxu0 %v16437_v0  ;;  %v16475_v0 = vld [vmem:[#allocation5 + $0x2a0] sm:$0xff]  }
 0x240   :  { %15215 = vmatpush3.bf16.msra.mxu1 %v16436_v63  ;;  %v16476_v63 = vld [vmem:[#allocation5 + $0x268] sm:$0xff]  }
 0x241   :  { %15216 = vmatprep.subr.bf16.mxu1 %v16438_v42 }
 0x242   :  { %15195 = vmatpush3.bf16.msra.mxu0 %v16439_v1  ;;  %v4410_v42 = vld [vmem:[#allocation2 + $0x8c] sm:$0xff] }
 0x243   :  { %15196 = vmatprep.subr.bf16.mxu0 %v16441_v3  ;;  %v13646_v1 = vcombine.high %v4410_v42, %v4410_v42  ;;  %v16479_v3 = vld [vmem:[#allocation5 + $0x270] sm:$0xff]  }
 0x244   :  { %15217 = vmatpush3.bf16.msra.mxu1 %v16440_v2  ;;  %v16477_v2 = vld [vmem:[#allocation5 + $0x228] sm:$0xff]  }
 0x245   :  { %15218 = vmatprep.subr.bf16.mxu1 %v16442_v4 }
 0x246   :  { %15197 = vmatpush3.bf16.msra.mxu0 %v16443_v5  ;;  %v16478_v5 = vld [vmem:[#allocation5 + $0x2a8] sm:$0xff]  }
 0x247   :  { %15198 = vmatprep.subr.bf16.mxu0 %v16445_v14  ;;  %v16482_v14 = vld [vmem:[#allocation5 + $0x278] sm:$0xff]  }
 0x248   :  { %15219 = vmatpush3.bf16.msra.mxu1 %v16444_v12  ;;  %v14922_v26 = vpop.f32.mrb[24].mxu0 }
 0x249   :  { %v14923_v22 = vpop.f32.mrb[25].mxu0  ;;  %15220 = vmatprep.subr.bf16.mxu1 %v16446_v16 }
 0x24a   :  { %v14924_v24 = vadd.f32 %v14923_v22, %v14922_v26  ;;  %v14925_v25 = vpop.f32.mrb[26].mxu0  ;;  %v14944_v27 = vpop.f32.mrb[24].mxu1  ;;  %15199 = vmatpush3.bf16.msra.mxu0 %v16447_v18 }
 0x24b   :  { %v14926_v31 = vpop.f32.mrb[27].mxu0  ;;  %v14945_v32 = vpop.f32.mrb[25].mxu1  ;;  %15200 = vmatprep.subr.bf16.mxu0 %v16449_v20  ;;  %v16481_v20 = vld [vmem:[#allocation5 + $0x2b0] sm:$0xff]   ;;  %v16488_v25 = vld [vmem:[#allocation5 + $0x380] sm:$0xff]  }
 0x24c   :  { %v3206_v37 = vadd.f32 %v18229_v36, %v14924_v24  ;;  %15221 = vmatpush3.bf16.msra.mxu1 %v16448_v19  ;;  %v14946_v38 = vadd.f32 %v14945_v32, %v14944_v27  ;;  %v14947_v30 = vpop.f32.mrb[26].mxu1  ;;  %v16487_v24 = vld [vmem:[#allocation5 + $0x300] sm:$0xff]   ;;  %v18259_v27 = vcombine.low %v4410_v42, %v4410_v42  ;;  %v16492_v31 = vld [vmem:[#allocation5 + $0x308] sm:$0xff]   ;;  %v16489_v32 = vld [vmem:[#allocation2 + $0x94] ss:$0 sps:$4 sm:$0xff]  }
 0x24d   :  { %15222 = vmatprep.subr.bf16.mxu1 %v16450_v21  ;;  %v14948_v41 = vpop.f32.mrb[27].mxu1  ;;  %v16483_v21 = vld [vmem:[#allocation5 + $0x238] sm:$0xff]   ;;  %v16498_v30 = vld [vmem:[#allocation5 + $0x2d0] sm:$0xff]  }
 0x24e   :  { %v18234_v43 = vadd.f32 %v14946_v38, %v3206_v37  ;;  %15201 = vmatpush3.bf16.msra.mxu0 %v16451_v23  ;;  %v16484_v23 = vld [vmem:[#allocation5 + $0x2b8] sm:$0xff]   ;;  %v16496_v37 = vld [vmem:[#allocation5 + $0x310] sm:$0xff]  }
 0x24f   :  { %15202 = vmatprep.subr.bf16.mxu0 %v16453_v17  ;;  %v16493_v17 = vld [vmem:[#allocation5 + $0x388] sm:$0xff]   ;;  %v16497_v38 = vld [vmem:[#allocation5 + $0x390] sm:$0xff]   ;;  %v16500_v41 = vld [vmem:[#allocation5 + $0x318] sm:$0xff]  }
 0x250   :  { %15223 = vmatpush3.bf16.msra.mxu1 %v16452_v28  ;;  %v16490_v28 = vld [vmem:[#allocation5 + $0x2c0] sm:$0xff]  }
 0x251   :  { %15224 = vmatprep.subr.bf16.mxu1 %v16454_v39  ;;  %v16499_v39 = vld [vmem:[#allocation5 + $0x350] sm:$0xff]  }
 0x252   :  { %15203 = vmatpush3.bf16.msra.mxu0 %v16455_v8  ;;  %v16501_v8 = vld [vmem:[#allocation5 + $0x398] sm:$0xff]  }
 0x253   :  { %15232 = vmatprep.subr.bf16.mxu0 %v16461_v44  ;;  %v16503_v44 = vld [vmem:[#allocation5 + $0x358] sm:$0xff]  }
 0x254   :  { %15225 = vmatpush3.bf16.msra.mxu1 %v16456_v45  ;;  %v16505_v45 = vld [vmem:[#allocation5 + $0x3a0] sm:$0xff]  }
 0x255   :  { %5268 = vmatmul.mubr.bf16.vlgmr.msra.gmra.mrb[52].mxu0 %v13641_v46  ;;  %15828 = vmatprep.subr.bf16.mxu1 %v17844_v15  ;;  %v16506_v46 = vld [vmem:[#allocation5 + $0x2e0] sm:$0xff]  }
 0x256   :  { %15233 = vmatpush3.bf16.msra.mxu0 %v16462_v47  ;;  %5347 = vmatprep.mubr.bf16.mxu0 %v13646_v1  ;;  %v16507_v47 = vld [vmem:[#allocation5 + $0x360] sm:$0xff]  }
 0x257   :  { %5308 = vmatmul.mubr.bf16.vlgmr.msra.gmra.mrb[52].mxu1 %v18237_v48  ;;  %15234 = vmatprep.subr.bf16.mxu0 %v16464_v49  ;;  %v16508_v49 = vld [vmem:[#allocation5 + $0x328] sm:$0xff]  }
 0x258   :  { %15829 = vmatpush3.bf16.msra.mxu1 %v16463_v50  ;;  %15844 = vmatprep.mubr.msk.bf16.mxu1 %vm17845_vm0, %v17844_v15  ;;  %v16509_v50 = vld [vmem:[#allocation5 + $0x3a8] sm:$0xff]  }
 0x259   :  { %15830 = vmatprep.subr.bf16.mxu1 %v17844_v15 }
 0x25a   :  { %15235 = vmatpush3.bf16.msra.mxu0 %v16465_v51  ;;  %v16510_v51 = vld [vmem:[#allocation5 + $0x2e8] sm:$0xff]  }
 0x25b   :  { %15236 = vmatprep.subr.bf16.mxu0 %v16467_v52  ;;  %v16511_v52 = vld [vmem:[#allocation5 + $0x368] sm:$0xff]  }
 0x25c   :  { %15831 = vmatpush3.bf16.msra.mxu1 %v16466_v53  ;;  %v16512_v53 = vld [vmem:[#allocation5 + $0x330] sm:$0xff]  }
 0x25d   :  { %15832 = vmatprep.subr.bf16.mxu1 %v17844_v15 }
 0x25e   :  { %15237 = vmatpush3.bf16.msra.mxu0 %v16468_v54 }
 0x25f   :  { %15238 = vmatprep.subr.bf16.mxu0 %v16470_v56  ;;  %v16514_v56 = vld [vmem:[#allocation5 + $0x2f0] sm:$0xff]  }
 0x260   :  { %15833 = vmatpush3.bf16.msra.mxu1 %v16469_v58 }
 0x261   :  { %15834 = vmatprep.subr.bf16.mxu1 %v17844_v15 }
 0x262   :  { %15239 = vmatpush3.bf16.msra.mxu0 %v16471_v59 }
 0x263   :  { %15240 = vmatprep.subr.bf16.mxu0 %v16473_v60  ;;  %v16515_v60 = vld [vmem:[#allocation5 + $0x370] sm:$0xff]  }
 0x264   :  { %15835 = vmatpush3.bf16.msra.mxu1 %v16472_v61  ;;  %v16516_v61 = vld [vmem:[#allocation5 + $0x338] sm:$0xff]  }
 0x265   :  { %15836 = vmatprep.subr.bf16.mxu1 %v17844_v15 }
 0x266   :  { %15241 = vmatpush3.bf16.msra.mxu0 %v16474_v62 }
 0x267   :  { %15242 = vmatprep.subr.bf16.mxu0 %v16476_v63 }
 0x268   :  { %15837 = vmatpush3.bf16.msra.mxu1 %v16475_v0  ;;  %v14966_v4 = vpop.f32.mrb[28].mxu0 }
 0x269   :  { %v14967_v6 = vpop.f32.mrb[29].mxu0  ;;  %15838 = vmatprep.subr.bf16.mxu1 %v17844_v15 }
 0x26a   :  { %v14968_v9 = vadd.f32 %v14967_v6, %v14966_v4  ;;  %v14969_v10 = vpop.f32.mrb[30].mxu0  ;;  %v14988_v11 = vpop.f32.mrb[28].mxu1  ;;  %15243 = vmatpush3.bf16.msra.mxu0 %v16477_v2  ;;  %v16520_v6 = vld [vmem:[#allocation5 + $0x400] sm:$0xff]  }
 0x26b   :  { %v14970_v12 = vpop.f32.mrb[31].mxu0  ;;  %v14989_v13 = vpop.f32.mrb[29].mxu1  ;;  %15244 = vmatprep.subr.bf16.mxu0 %v16479_v3  ;;  %v16518_v3 = vld [vmem:[#allocation5 + $0x2f8] sm:$0xff]   ;;  %v16522_v10 = vld [vmem:[#allocation5 + $0x3c0] sm:$0xff]  }
 0x26c   :  { %v3286_v16 = vadd.f32 %v14968_v9, %v18234_v43  ;;  %15839 = vmatpush3.bf16.msra.mxu1 %v16478_v5  ;;  %v14990_v18 = vadd.f32 %v14989_v13, %v14988_v11  ;;  %v14991_v19 = vpop.f32.mrb[30].mxu1  ;;  %v16502_v43 = vld [vmem:[#allocation5 + $0x2d8] sm:$0xff]   ;;  %v16521_v9 = vld [vmem:[#allocation5 + $0x480] sm:$0xff]   ;;  %v16524_v13 = vld [vmem:[#allocation5 + $0x408] sm:$0xff]  }
 0x26d   :  { %15840 = vmatprep.subr.bf16.mxu1 %v17844_v15  ;;  %v14992_v26 = vpop.f32.mrb[31].mxu1  ;;  %v16519_v5 = vld [vmem:[#allocation5 + $0x378] sm:$0xff]   ;;  %v16523_v12 = vld [vmem:[#allocation5 + $0x440] sm:$0xff]   ;;  %v16528_v19 = vld [vmem:[#allocation5 + $0x410] sm:$0xff]  }
 0x26e   :  { %v18256_v22 = vadd.f32 %v14990_v18, %v3286_v16  ;;  %15245 = vmatpush3.bf16.msra.mxu0 %v16480_v7  ;;  %v16526_v16 = vld [vmem:[#allocation5 + $0x3c8] sm:$0xff]   ;;  %v16530_v26 = vld [vmem:[#allocation5 + $0x3d0] sm:$0xff]  }
 0x26f   :  { %15246 = vmatprep.subr.bf16.mxu0 %v16482_v14  ;;  %v16525_v14 = vld [vmem:[#allocation5 + $0x488] sm:$0xff]  }
 0x270   :  { %15841 = vmatpush3.bf16.msra.mxu1 %v16481_v20  ;;  %v16527_v18 = vld [vmem:[#allocation5 + $0x448] sm:$0xff]   ;;  %v16529_v20 = vld [vmem:[#allocation5 + $0x490] sm:$0xff]  }
 0x271   :  { %15842 = vmatprep.subr.bf16.mxu1 %v17844_v15 }
 0x272   :  { %15247 = vmatpush3.bf16.msra.mxu0 %v16483_v21  ;;  %v16531_v21 = vld [vmem:[#allocation5 + $0x450] sm:$0xff]  }
 0x273   :  { %15263 = vmatprep.subr.bf16.mxu0 %v16487_v24  ;;  %v16534_v24 = vld [vmem:[#allocation5 + $0x3d8] sm:$0xff]  }
 0x274   :  { %15843 = vmatpush3.bf16.msra.mxu1 %v16484_v23  ;;  %v16533_v23 = vld [vmem:[#allocation5 + $0x498] sm:$0xff]  }
 0x275   :  { %5348 = vmatmul.mubr.bf16.vlgmr.msra.gmra.mrb[56].mxu0 %v18259_v27  ;;  %15285 = vmatprep.subr.bf16.mxu1 %v16488_v25  ;;  %v173_v25 = vld [vmem:[%s18611_s0 + $0x138] sm:$0xff] }
 0x276   :  { %15264 = vmatpush3.bf16.msra.mxu0 %v16490_v28  ;;  %6179 = vmatprep.mubr.bf16.mxu0 %v18232_v40  ;;  %v16504_v40 = vld [vmem:[#allocation5 + $0x320] sm:$0xff]   ;;  %v18280_v28 = vld [vmem:[%s18611_s0 + $0x148] sm:$0xff] }
 0x277   :  { %15845 = vmatmul.mubr.bf16.vlgmr.msra.gmra.mrb[56].mxu1 %v16489_v32  ;;  %15265 = vmatprep.subr.bf16.mxu0 %v16492_v31 }
 0x278   :  { %15286 = vmatpush3.bf16.msra.mxu1 %v16491_v29  ;;  %6219 = vmatprep.mubr.bf16.mxu1 %v13646_v1  ;;  %v16517_v1 = vld [vmem:[#allocation5 + $0x3b8] sm:$0xff]  }
 0x279   :  { %15287 = vmatprep.subr.bf16.mxu1 %v16493_v17  ;;  %v16535_v29 = vld [vmem:[#allocation5 + $0x458] sm:$0xff]   ;;  %v16536_v17 = vld [vmem:[#allocation5 + $0x420] sm:$0xff]  }
 0x27a   :  { %15266 = vmatpush3.bf16.msra.mxu0 %v16494_v33  ;;  %v16537_v33 = vld [vmem:[#allocation5 + $0x4a0] sm:$0xff]  }
 0x27b   :  { %15267 = vmatprep.subr.bf16.mxu0 %v16496_v37  ;;  %v16539_v37 = vld [vmem:[#allocation5 + $0x460] sm:$0xff]  }
 0x27c   :  { %15288 = vmatpush3.bf16.msra.mxu1 %v16495_v35  ;;  %v16538_v35 = vld [vmem:[#allocation5 + $0x3e0] sm:$0xff]  }
 0x27d   :  { %15289 = vmatprep.subr.bf16.mxu1 %v16497_v38  ;;  %v16540_v38 = vld [vmem:[#allocation5 + $0x428] sm:$0xff]  }
 0x27e   :  { %15268 = vmatpush3.bf16.msra.mxu0 %v16498_v30  ;;  %v16541_v30 = vld [vmem:[#allocation5 + $0x4a8] sm:$0xff]  }
 0x27f   :  { %15269 = vmatprep.subr.bf16.mxu0 %v16500_v41  ;;  %v16544_v41 = vld [vmem:[#allocation5 + $0x430] sm:$0xff]  }
 0x280   :  { %15290 = vmatpush3.bf16.msra.mxu1 %v16499_v39  ;;  %v16542_v39 = vld [vmem:[#allocation5 + $0x3e8] sm:$0xff]  }
 0x281   :  { %15291 = vmatprep.subr.bf16.mxu1 %v16501_v8 }
 0x282   :  { %15270 = vmatpush3.bf16.msra.mxu0 %v16502_v43 }
 0x283   :  { %15271 = vmatprep.subr.bf16.mxu0 %v16504_v40  ;;  %v16543_v40 = vld [vmem:[#allocation5 + $0x468] sm:$0xff]  }
 0x284   :  { %15292 = vmatpush3.bf16.msra.mxu1 %v16503_v44 }
 0x285   :  { %15293 = vmatprep.subr.bf16.mxu1 %v16505_v45 }
 0x286   :  { %15272 = vmatpush3.bf16.msra.mxu0 %v16506_v46 }
 0x287   :  { %15273 = vmatprep.subr.bf16.mxu0 %v16508_v49  ;;  %v16545_v49 = vld [vmem:[#allocation5 + $0x4b0] sm:$0xff]  }
 0x288   :  { %15294 = vmatpush3.bf16.msra.mxu1 %v16507_v47  ;;  %v15010_v54 = vpop.f32.mrb[32].mxu0 }
 0x289   :  { %v15011_v55 = vpop.f32.mrb[33].mxu0  ;;  %15295 = vmatprep.subr.bf16.mxu1 %v16509_v50 }
 0x28a   :  { %v15012_v57 = vadd.f32 %v15011_v55, %v15010_v54  ;;  %v15013_v58 = vpop.f32.mrb[34].mxu0  ;;  %15274 = vmatpush3.bf16.msra.mxu0 %v16510_v51  ;;  %v3405_v59 = vpop.f32.mrb[32].mxu1  ;;  %v16548_v54 = vld [vmem:[#allocation5 + $0x438] sm:$0xff]  }
 0x28b   :  { %v15014_v62 = vpop.f32.mrb[35].mxu0  ;;  %v15806_v63 = vpop.f32.mrb[33].mxu1  ;;  %15275 = vmatprep.subr.bf16.mxu0 %v16512_v53  ;;  %v16546_v53 = vld [vmem:[#allocation5 + $0x3f0] sm:$0xff]  }
 0x28c   :  { %15296 = vmatpush3.bf16.msra.mxu1 %v16511_v52  ;;  %v3366_v0 = vadd.f32 %v15012_v57, %v18256_v22  ;;  %v3408_v42 = vpop.f32.mrb[34].mxu1  ;;  %v16532_v22 = vld [vmem:[#allocation5 + $0x418] sm:$0xff]  }
 0x28d   :  { %15297 = vmatprep.subr.bf16.mxu1 %v16513_v34  ;;  %v15807_v2 = vpop.f32.mrb[35].mxu1  ;;  %v16550_v63 = vld [vmem:[#allocation5 + $0x3f8] sm:$0xff]  }
 0x28e   :  { %v3406_v4 = vadd.f32 %v3405_v59, %v3366_v0  ;;  %15276 = vmatpush3.bf16.msra.mxu0 %v16514_v56  ;;  %v16547_v59 = vld [vmem:[#allocation5 + $0x470] sm:$0xff]   ;;  %v16556_v0 = vld [vmem:[#allocation5 + $0x500] sm:$0xff]   ;;  %v16551_v42 = vld [vmem:[#allocation5 + $0x478] sm:$0xff]  }
 0x28f   :  { %15277 = vmatprep.subr.bf16.mxu0 %v16516_v61  ;;  %v16549_v61 = vld [vmem:[#allocation5 + $0x4b8] sm:$0xff]   ;;  %v16557_v2 = vld [vmem:[#allocation5 + $0x4c0] sm:$0xff]  }
 0x290   :  { %v3411_v7 = vmax.f32 %v3406_v4, 0.0  ;;  %15298 = vmatpush3.bf16.msra.mxu1 %v16515_v60  ;;  %v16558_v4 = vld [vmem:[#allocation5 + $0x540] sm:$0xff]  }
 0x291   :  { %15299 = vmatprep.subr.bf16.mxu1 %v16517_v1 }
 0x292   :  { %v3412_v11 = vpack.c.bf16 %v3411_v7, %v3411_v7  ;;  %15278 = vmatpush3.bf16.msra.mxu0 %v16518_v3  ;;  %v16559_v3 = vld [vmem:[#allocation5 + $0x508] sm:$0xff]   ;;  %v18291_v7 = vld [vmem:[%s18611_s0 + $0x150] sm:$0xff] }
 0x293   :  { %15307 = vmatprep.subr.bf16.mxu0 %v16520_v6  ;;  %v16562_v6 = vld [vmem:[#allocation5 + $0x510] sm:$0xff]  }
 0x294   :  { %3413 = vst [vmem:[#allocation3 + $0x8] sm:$0xf] %v3412_v11  ;;  %15300 = vmatpush3.bf16.msra.mxu1 %v16519_v5  ;;  %v16560_v5 = vld [vmem:[#allocation5 + $0x4c8] sm:$0xff]  }
 0x295   :  { %6180 = vmatmul.mubr.bf16.vlgmr.msra.gmra.mrb[60].mxu0 %v18237_v48  ;;  %15329 = vmatprep.subr.bf16.mxu1 %v16521_v9  ;;  %v172_v48 = vld [vmem:[%s18611_s0 + $0x130] sm:$0xff]  ;;  %v18296_v9 = vld [vmem:[%s18611_s0 + $0x158] sm:$0xff] }
 0x296   :  { %15308 = vmatpush3.bf16.msra.mxu0 %v16522_v10  ;;  %v14654_v31 = vpack.c.bf16 %v173_v25, %v172_v48  ;;  %v16561_v10 = vld [vmem:[#allocation5 + $0x548] sm:$0xff]   ;;  %v14656_v11 = vpack.c.bf16 %v18296_v9, %v18291_v7  ;;  %v16574_v48 = vld [vmem:[#allocation5 + $0x530] sm:$0xff]  }
 0x297   :  { %6220 = vmatmul.mubr.bf16.vlgmr.msra.gmra.mrb[60].mxu1 %v18259_v27  ;;  %15309 = vmatprep.subr.bf16.mxu0 %v16524_v13  ;;  %v18275_v27 = vld [vmem:[%s18611_s0 + $0x140] sm:$0xff]  ;;  %v16565_v13 = vld [vmem:[#allocation5 + $0x518] sm:$0xff]  }
 0x298   :  { %15330 = vmatpush3.bf16.msra.mxu1 %v16523_v12  ;;  %v14655_v32 = vpack.c.bf16 %v18280_v28, %v18275_v27  ;;  %423 = vst [vmem:[#allocation2 + $0x98] sm:$0xff] %v14654_v31  ;;  %v16563_v12 = vld [vmem:[#allocation5 + $0x4d0] sm:$0xff]   ;;  %425 = vst [vmem:[#allocation2 + $0xa8] sm:$0xff] %v14656_v11 }
 0x299   :  { %15331 = vmatprep.subr.bf16.mxu1 %v16525_v14  ;;  %v16564_v14 = vld [vmem:[#allocation5 + $0x550] sm:$0xff]  }
 0x29a   :  { %15310 = vmatpush3.bf16.msra.mxu0 %v16526_v16  ;;  %424 = vst [vmem:[#allocation2 + $0xa0] sm:$0xff] %v14655_v32  ;;  %v16566_v16 = vld [vmem:[#allocation5 + $0x4d8] sm:$0xff]  }
 0x29b   :  { %15311 = vmatprep.subr.bf16.mxu0 %v16528_v19  ;;  %v16567_v19 = vld [vmem:[#allocation5 + $0x558] sm:$0xff]  }
 0x29c   :  { %15332 = vmatpush3.bf16.msra.mxu1 %v16527_v18  ;;  %v16568_v18 = vld [vmem:[#allocation5 + $0x520] sm:$0xff]  }
 0x29d   :  { %15333 = vmatprep.subr.bf16.mxu1 %v16529_v20 }
 0x29e   :  { %15312 = vmatpush3.bf16.msra.mxu0 %v16530_v26  ;;  %v16569_v26 = vld [vmem:[#allocation5 + $0x4e0] sm:$0xff]  }
 0x29f   :  { %15313 = vmatprep.subr.bf16.mxu0 %v16532_v22  ;;  %v5400_v8 = vld [vmem:[#allocation2 + $0x94] sm:$0xff]  ;;  %v16571_v22 = vld [vmem:[#allocation5 + $0x528] sm:$0xff]  }
 0x2a0   :  { %15334 = vmatpush3.bf16.msra.mxu1 %v16531_v21  ;;  %v13741_v45 = vcombine.high %v5400_v8, %v5400_v8  ;;  %v13740_v1 = vcombine.low %v5400_v8, %v5400_v8 }
 0x2a1   :  { %15335 = vmatprep.subr.bf16.mxu1 %v16533_v23  ;;  %v5401_v43 = vld [vmem:[#allocation2 + $0x9c] sm:$0xff]  ;;  %v5402_v20 = vld [vmem:[#allocation2 + $0xa4] sm:$0xff] }
 0x2a2   :  { %15314 = vmatpush3.bf16.msra.mxu0 %v16534_v24  ;;  %v13743_v46 = vcombine.high %v5401_v43, %v5401_v43  ;;  %6259 = vmatprep.mubr.bf16.mxu0 %v13741_v45  ;;  %v13745_v21 = vcombine.high %v5402_v20, %v5402_v20  ;;  %v16570_v23 = vld [vmem:[#allocation5 + $0x560] sm:$0xff]   ;;  %v16572_v24 = vld [vmem:[#allocation5 + $0x4e8] sm:$0xff]  }
 0x2a3   :  { %15315 = vmatprep.subr.bf16.mxu0 %v16536_v17 }
 0x2a4   :  { %15336 = vmatpush3.bf16.msra.mxu1 %v16535_v29  ;;  %6299 = vmatprep.mubr.bf16.mxu1 %v13743_v46  ;;  %v16573_v29 = vld [vmem:[#allocation5 + $0x568] sm:$0xff]   ;;  %v16579_v46 = vld [vmem:[#allocation5 + $0x578] sm:$0xff]  }
 0x2a5   :  { %15337 = vmatprep.subr.bf16.mxu1 %v16537_v33 }
 0x2a6   :  { %15316 = vmatpush3.bf16.msra.mxu0 %v16538_v35  ;;  %v16575_v35 = vld [vmem:[#allocation5 + $0x4f0] sm:$0xff]  }
 0x2a7   :  { %15317 = vmatprep.subr.bf16.mxu0 %v16540_v38 }
 0x2a8   :  { %15338 = vmatpush3.bf16.msra.mxu1 %v16539_v37  ;;  %v15041_v44 = vpop.f32.mrb[36].mxu0  ;;  %v16577_v37 = vld [vmem:[#allocation5 + $0x538] sm:$0xff]  }
 0x2a9   :  { %v15042_v47 = vpop.f32.mrb[37].mxu0  ;;  %15339 = vmatprep.subr.bf16.mxu1 %v16541_v30 }
 0x2aa   :  { %v15043_v50 = vadd.f32 %v15042_v47, %v15041_v44  ;;  %v15044_v51 = vpop.f32.mrb[38].mxu0  ;;  %v15063_v52 = vpop.f32.mrb[36].mxu1  ;;  %15318 = vmatpush3.bf16.msra.mxu0 %v16542_v39  ;;  %v16582_v47 = vld [vmem:[#allocation5 + $0x5c0] sm:$0xff]  }
 0x2ab   :  { %v15045_v34 = vpop.f32.mrb[39].mxu0  ;;  %v15064_v55 = vpop.f32.mrb[37].mxu1  ;;  %15319 = vmatprep.subr.bf16.mxu0 %v16544_v41  ;;  %v16585_v51 = vld [vmem:[#allocation5 + $0x580] sm:$0xff]  }
 0x2ac   :  { %v4198_v56 = vadd.f32 %v18229_v36, %v15043_v50  ;;  %15340 = vmatpush3.bf16.msra.mxu1 %v16543_v40  ;;  %v15065_v57 = vadd.f32 %v15064_v55, %v15063_v52  ;;  %v15066_v58 = vpop.f32.mrb[38].mxu1  ;;  %v13742_v36 = vcombine.low %v5401_v43, %v5401_v43  ;;  %v16576_v43 = vld [vmem:[#allocation5 + $0x570] sm:$0xff]   ;;  %v16578_v40 = vld [vmem:[#allocation5 + $0x4f8] sm:$0xff]   ;;  %v13744_v50 = vcombine.low %v5402_v20, %v5402_v20  ;;  %v16586_v52 = vld [vmem:[#allocation5 + $0x600] sm:$0xff]  }
 0x2ad   :  { %15341 = vmatprep.subr.bf16.mxu1 %v16545_v49  ;;  %v15067_v60 = vpop.f32.mrb[39].mxu1  ;;  %v16583_v49 = vld [vmem:[#allocation5 + $0x640] sm:$0xff]   ;;  %v16584_v34 = vld [vmem:[#allocation2 + $0xac] ss:$0 sps:$4 sm:$0xff]   ;;  %v16588_v55 = vld [vmem:[#allocation5 + $0x648] sm:$0xff]  }
 0x2ae   :  { %v18285_v62 = vadd.f32 %v15065_v57, %v4198_v56  ;;  %15320 = vmatpush3.bf16.msra.mxu0 %v16546_v53  ;;  %v16587_v53 = vld [vmem:[#allocation5 + $0x5c8] sm:$0xff]   ;;  %v17631_v56 = vpack.c.bf16 %v18296_v9, %v18296_v9  ;;  %v16592_v60 = vld [vmem:[#allocation5 + $0x650] sm:$0xff]  }
 0x2af   :  { %15321 = vmatprep.subr.bf16.mxu0 %v16548_v54  ;;  %v17630_v54 = vpack.c.bf16 %v18280_v28, %v18280_v28  ;;  %v16589_v57 = vld [vmem:[#allocation5 + $0x588] sm:$0xff]   ;;  %v16593_v28 = vld [vmem:[#allocation5 + $0x590] sm:$0xff]  }
 0x2b0   :  { %15342 = vmatpush3.bf16.msra.mxu1 %v16547_v59  ;;  %v16590_v58 = vld [vmem:[#allocation5 + $0x608] sm:$0xff]   ;;  %v16591_v59 = vld [vmem:[#allocation5 + $0x5d0] sm:$0xff]  }
 0x2b1   :  { %15343 = vmatprep.subr.bf16.mxu1 %v16549_v61  ;;  %v16594_v61 = vld [vmem:[#allocation5 + $0x610] sm:$0xff]   ;;  %v16606_v9 = vld [vmem:[#allocation5 + $0x628] sm:$0xff]  }
 0x2b2   :  { %15322 = vmatpush3.bf16.msra.mxu0 %v16550_v63  ;;  %v16596_v63 = vld [vmem:[#allocation5 + $0x658] sm:$0xff]  }
 0x2b3   :  { %15351 = vmatprep.subr.bf16.mxu0 %v16556_v0  ;;  %v16597_v0 = vld [vmem:[#allocation5 + $0x598] sm:$0xff]  }
 0x2b4   :  { %15344 = vmatpush3.bf16.msra.mxu1 %v16551_v42  ;;  %v16598_v42 = vld [vmem:[#allocation5 + $0x618] sm:$0xff]  }
 0x2b5   :  { %6260 = vmatmul.mubr.bf16.vlgmr.msra.gmra.mrb[64].mxu0 %v13740_v1  ;;  %15848 = vmatprep.subr.bf16.mxu1 %v17844_v15  ;;  %v16599_v1 = vld [vmem:[#allocation5 + $0x5e0] sm:$0xff]  }
 0x2b6   :  { %15352 = vmatpush3.bf16.msra.mxu0 %v16557_v2  ;;  %6339 = vmatprep.mubr.bf16.mxu0 %v13745_v21  ;;  %v16600_v2 = vld [vmem:[#allocation5 + $0x660] sm:$0xff]   ;;  %v16610_v21 = vld [vmem:[#allocation5 + $0x630] sm:$0xff]  }
 0x2b7   :  { %6300 = vmatmul.mubr.bf16.vlgmr.msra.gmra.mrb[64].mxu1 %v13742_v36  ;;  %15353 = vmatprep.subr.bf16.mxu0 %v16559_v3  ;;  %v16601_v36 = vld [vmem:[#allocation5 + $0x5a0] sm:$0xff]  }
 0x2b8   :  { %15849 = vmatpush3.bf16.msra.mxu1 %v16558_v4  ;;  %15864 = vmatprep.mubr.msk.bf16.mxu1 %vm17845_vm0, %v17844_v15  ;;  %v16602_v3 = vld [vmem:[#allocation5 + $0x620] sm:$0xff]   ;;  %v16603_v4 = vld [vmem:[#allocation5 + $0x5e8] sm:$0xff]  }
 0x2b9   :  { %15850 = vmatprep.subr.bf16.mxu1 %v17844_v15 }
 0x2ba   :  { %15354 = vmatpush3.bf16.msra.mxu0 %v16560_v5  ;;  %v16604_v5 = vld [vmem:[#allocation5 + $0x668] sm:$0xff]  }
 0x2bb   :  { %15355 = vmatprep.subr.bf16.mxu0 %v16562_v6  ;;  %v16605_v6 = vld [vmem:[#allocation5 + $0x5a8] sm:$0xff]  }
 0x2bc   :  { %15851 = vmatpush3.bf16.msra.mxu1 %v16561_v10  ;;  %v16607_v10 = vld [vmem:[#allocation5 + $0x5f0] sm:$0xff]  }
 0x2bd   :  { %15852 = vmatprep.subr.bf16.mxu1 %v17844_v15 }
 0x2be   :  { %15356 = vmatpush3.bf16.msra.mxu0 %v16563_v12  ;;  %v16608_v12 = vld [vmem:[#allocation5 + $0x670] sm:$0xff]  }
 0x2bf   :  { %15357 = vmatprep.subr.bf16.mxu0 %v16565_v13 }
 0x2c0   :  { %15853 = vmatpush3.bf16.msra.mxu1 %v16564_v14  ;;  %v16609_v14 = vld [vmem:[#allocation5 + $0x5b0] sm:$0xff]  }
 0x2c1   :  { %15854 = vmatprep.subr.bf16.mxu1 %v17844_v15 }
 0x2c2   :  { %15358 = vmatpush3.bf16.msra.mxu0 %v16566_v16 }
 0x2c3   :  { %15359 = vmatprep.subr.bf16.mxu0 %v16568_v18 }
 0x2c4   :  { %15855 = vmatpush3.bf16.msra.mxu1 %v16567_v19 }
 0x2c5   :  { %15856 = vmatprep.subr.bf16.mxu1 %v17844_v15 }
 0x2c6   :  { %15360 = vmatpush3.bf16.msra.mxu0 %v16569_v26 }
 0x2c7   :  { %15361 = vmatprep.subr.bf16.mxu0 %v16571_v22  ;;  %v16611_v22 = vld [vmem:[#allocation5 + $0x5f8] sm:$0xff]  }
 0x2c8   :  { %15857 = vmatpush3.bf16.msra.mxu1 %v16570_v23  ;;  %v15085_v25 = vpop.f32.mrb[40].mxu0 }
 0x2c9   :  { %v15086_v31 = vpop.f32.mrb[41].mxu0  ;;  %15858 = vmatprep.subr.bf16.mxu1 %v17844_v15 }
 0x2ca   :  { %v15087_v32 = vadd.f32 %v15086_v31, %v15085_v25  ;;  %v15088_v17 = vpop.f32.mrb[42].mxu0  ;;  %v15107_v33 = vpop.f32.mrb[40].mxu1  ;;  %15362 = vmatpush3.bf16.msra.mxu0 %v16572_v24 }
 0x2cb   :  { %v15089_v38 = vpop.f32.mrb[43].mxu0  ;;  %v15108_v30 = vpop.f32.mrb[41].mxu1  ;;  %15363 = vmatprep.subr.bf16.mxu0 %v16574_v48  ;;  %v16612_v48 = vld [vmem:[#allocation5 + $0x678] sm:$0xff]   ;;  %v16615_v17 = vld [vmem:[#allocation5 + $0x6c0] sm:$0xff]  }
 0x2cc   :  { %v4278_v39 = vadd.f32 %v15087_v32, %v18285_v62  ;;  %15859 = vmatpush3.bf16.msra.mxu1 %v16573_v29  ;;  %v15109_v41 = vadd.f32 %v15108_v30, %v15107_v33  ;;  %v15110_v8 = vpop.f32.mrb[42].mxu1  ;;  %v16595_v62 = vld [vmem:[#allocation5 + $0x5d8] sm:$0xff]   ;;  %v16617_v38 = vld [vmem:[#allocation5 + $0x680] sm:$0xff]  }
 0x2cd   :  { %15860 = vmatprep.subr.bf16.mxu1 %v17844_v15  ;;  %v15111_v44 = vpop.f32.mrb[43].mxu1  ;;  %v16613_v29 = vld [vmem:[#allocation5 + $0x5b8] sm:$0xff]   ;;  %v16619_v8 = vld [vmem:[#allocation5 + $0x6c8] sm:$0xff]  }
 0x2ce   :  { %v18309_v45 = vadd.f32 %v15109_v41, %v4278_v39  ;;  %15364 = vmatpush3.bf16.msra.mxu0 %v16575_v35  ;;  %v16614_v32 = vld [vmem:[#allocation5 + $0x638] sm:$0xff]   ;;  %v16616_v35 = vld [vmem:[#allocation5 + $0x740] sm:$0xff]   ;;  %v17633_v41 = vpack.c.bf16 %v18291_v7, %v18291_v7  ;;  %v16621_v44 = vld [vmem:[#allocation5 + $0x688] sm:$0xff]  }
 0x2cf   :  { %15365 = vmatprep.subr.bf16.mxu0 %v16577_v37  ;;  %v17632_v37 = vpack.c.bf16 %v18275_v27, %v18275_v27  ;;  %v16618_v39 = vld [vmem:[#allocation5 + $0x700] sm:$0xff]   ;;  %v16623_v27 = vld [vmem:[#allocation5 + $0x6d0] sm:$0xff]   ;;  %v18324_v7 = vld [vmem:[%s18611_s0 + $0x160] sm:$0xff] }
 0x2d0   :  { %15861 = vmatpush3.bf16.msra.mxu1 %v16576_v43  ;;  %v16620_v43 = vld [vmem:[#allocation5 + $0x748] sm:$0xff]  }
 0x2d1   :  { %15862 = vmatprep.subr.bf16.mxu1 %v17844_v15 }
 0x2d2   :  { %15366 = vmatpush3.bf16.msra.mxu0 %v16578_v40  ;;  %v16622_v40 = vld [vmem:[#allocation5 + $0x708] sm:$0xff]  }
 0x2d3   :  { %15382 = vmatprep.subr.bf16.mxu0 %v16582_v47  ;;  %v179_v47 = vld [vmem:[%s18611_s0 + $0x168] sm:$0xff] }
 0x2d4   :  { %15863 = vmatpush3.bf16.msra.mxu1 %v16579_v46  ;;  %v16625_v46 = vld [vmem:[#allocation5 + $0x690] sm:$0xff]  }
 0x2d5   :  { %6340 = vmatmul.mubr.bf16.vlgmr.msra.gmra.mrb[68].mxu0 %v13744_v50  ;;  %15404 = vmatprep.subr.bf16.mxu1 %v16583_v49  ;;  %v18332_v49 = vld [vmem:[%s18611_s0 + $0x170] sm:$0xff]  ;;  %v181_v50 = vld [vmem:[%s18611_s0 + $0x178] sm:$0xff] }
 0x2d6   :  { %15383 = vmatpush3.bf16.msra.mxu0 %v16585_v51  ;;  %7171 = vmatprep.mubr.bf16.mxu0 %v17630_v54  ;;  %v16627_v51 = vld [vmem:[#allocation5 + $0x6d8] sm:$0xff]  }
 0x2d7   :  { %15865 = vmatmul.mubr.bf16.vlgmr.msra.gmra.mrb[68].mxu1 %v16584_v34  ;;  %15384 = vmatprep.subr.bf16.mxu0 %v16587_v53  ;;  %v17634_v53 = vpack.c.bf16 %v179_v47, %v179_v47  ;;  %v16628_v54 = vld [vmem:[#allocation5 + $0x758] sm:$0xff]   ;;  %v17635_v34 = vpack.c.bf16 %v181_v50, %v181_v50  ;;  %v16663_v47 = vld [vmem:[#allocation5 + $0x7a8] sm:$0xff]  }
 0x2d8   :  { %15405 = vmatpush3.bf16.msra.mxu1 %v16586_v52  ;;  %7211 = vmatprep.mubr.bf16.mxu1 %v17631_v56  ;;  %v16626_v52 = vld [vmem:[#allocation5 + $0x710] sm:$0xff]   ;;  %v16631_v56 = vld [vmem:[#allocation5 + $0x6e0] sm:$0xff]  }
 0x2d9   :  { %15406 = vmatprep.subr.bf16.mxu1 %v16588_v55  ;;  %v16629_v55 = vld [vmem:[#allocation5 + $0x698] sm:$0xff]  }
 0x2da   :  { %15385 = vmatpush3.bf16.msra.mxu0 %v16589_v57  ;;  %v16630_v57 = vld [vmem:[#allocation5 + $0x718] sm:$0xff]  }
 0x2db   :  { %15386 = vmatprep.subr.bf16.mxu0 %v16591_v59  ;;  %v16633_v59 = vld [vmem:[#allocation5 + $0x6a0] sm:$0xff]  }
 0x2dc   :  { %15407 = vmatpush3.bf16.msra.mxu1 %v16590_v58  ;;  %v16632_v58 = vld [vmem:[#allocation5 + $0x760] sm:$0xff]  }
 0x2dd   :  { %15408 = vmatprep.subr.bf16.mxu1 %v16592_v60  ;;  %v16635_v60 = vld [vmem:[#allocation5 + $0x6e8] sm:$0xff]  }
 0x2de   :  { %15387 = vmatpush3.bf16.msra.mxu0 %v16593_v28  ;;  %v16634_v28 = vld [vmem:[#allocation5 + $0x720] sm:$0xff]  }
 0x2df   :  { %15388 = vmatprep.subr.bf16.mxu0 %v16595_v62  ;;  %v16637_v62 = vld [vmem:[#allocation5 + $0x6a8] sm:$0xff]  }
 0x2e0   :  { %15409 = vmatpush3.bf16.msra.mxu1 %v16594_v61  ;;  %v16636_v61 = vld [vmem:[#allocation5 + $0x768] sm:$0xff]  }
 0x2e1   :  { %15410 = vmatprep.subr.bf16.mxu1 %v16596_v63  ;;  %v16639_v63 = vld [vmem:[#allocation5 + $0x6f0] sm:$0xff]  }
 0x2e2   :  { %15389 = vmatpush3.bf16.msra.mxu0 %v16597_v0 }
 0x2e3   :  { %15390 = vmatprep.subr.bf16.mxu0 %v16599_v1 }
 0x2e4   :  { %15411 = vmatpush3.bf16.msra.mxu1 %v16598_v42  ;;  %v16638_v42 = vld [vmem:[#allocation5 + $0x728] sm:$0xff]  }
 0x2e5   :  { %15412 = vmatprep.subr.bf16.mxu1 %v16600_v2  ;;  %v16640_v2 = vld [vmem:[#allocation5 + $0x770] sm:$0xff]  }
 0x2e6   :  { %15391 = vmatpush3.bf16.msra.mxu0 %v16601_v36 }
 0x2e7   :  { %15392 = vmatprep.subr.bf16.mxu0 %v16603_v4 }
 0x2e8   :  { %15413 = vmatpush3.bf16.msra.mxu1 %v16602_v3  ;;  %v15129_v11 = vpop.f32.mrb[44].mxu0 }
 0x2e9   :  { %v15130_v13 = vpop.f32.mrb[45].mxu0  ;;  %15414 = vmatprep.subr.bf16.mxu1 %v16604_v5  ;;  %v16641_v5 = vld [vmem:[#allocation5 + $0x6b0] sm:$0xff]  }
 0x2ea   :  { %v15131_v16 = vadd.f32 %v15130_v13, %v15129_v11  ;;  %v15132_v18 = vpop.f32.mrb[46].mxu0  ;;  %15393 = vmatpush3.bf16.msra.mxu0 %v16605_v6  ;;  %v4397_v19 = vpop.f32.mrb[44].mxu1  ;;  %v16643_v6 = vld [vmem:[#allocation5 + $0x6f8] sm:$0xff]   ;;  %v18337_v11 = vld [vmem:[#allocation7] ss:$0 sm:$0xff] }
 0x2eb   :  { %v15133_v20 = vpop.f32.mrb[47].mxu0  ;;  %v15826_v26 = vpop.f32.mrb[45].mxu1  ;;  %15394 = vmatprep.subr.bf16.mxu0 %v16607_v10 }
 0x2ec   :  { %15415 = vmatpush3.bf16.msra.mxu1 %v16606_v9  ;;  %v4358_v23 = vadd.f32 %v15131_v16, %v18309_v45  ;;  %v4400_v24 = vpop.f32.mrb[46].mxu1  ;;  %v16624_v45 = vld [vmem:[#allocation5 + $0x750] sm:$0xff]   ;;  %v16645_v26 = vld [vmem:[#allocation5 + $0x6b8] sm:$0xff]  }
 0x2ed   :  { %15416 = vmatprep.subr.bf16.mxu1 %v16608_v12  ;;  %v15827_v25 = vpop.f32.mrb[47].mxu1  ;;  %v16642_v16 = vld [vmem:[#allocation5 + $0x730] sm:$0xff]   ;;  %v16648_v24 = vld [vmem:[#allocation5 + $0x780] sm:$0xff]  }
 0x2ee   :  { %v4398_v31 = vadd.f32 %v4397_v19, %v4358_v23  ;;  %15395 = vmatpush3.bf16.msra.mxu0 %v16609_v14  ;;  %v16644_v19 = vld [vmem:[#allocation5 + $0x778] sm:$0xff]   ;;  %v17636_v23 = vpack.c.bf16 %v18324_v7, %v18324_v7  ;;  %v16650_v25 = vld [vmem:[#allocation5 + $0x7c8] sm:$0xff]   ;;  %v16661_v7 = vld [vmem:[#allocation5 + $0x820] sm:$0xff]  }
 0x2ef   :  { %15396 = vmatprep.subr.bf16.mxu0 %v16611_v22  ;;  %v16646_v22 = vld [vmem:[#allocation5 + $0x738] sm:$0xff]  }
 0x2f0   :  { %v4403_v33 = vmax.f32 %v4398_v31, 0.0  ;;  %15417 = vmatpush3.bf16.msra.mxu1 %v16610_v21  ;;  %v16647_v21 = vld [vmem:[#allocation5 + $0x7c0] sm:$0xff]   ;;  %v18349_v31 = vld [vmem:[%s18611_s0 + $0x180] sm:$0xff] }
 0x2f1   :  { %15418 = vmatprep.subr.bf16.mxu1 %v16612_v48  ;;  %v16649_v48 = vld [vmem:[#allocation5 + $0x800] sm:$0xff]  }
 0x2f2   :  { %v4404_v30 = vpack.c.bf16 %v4403_v33, %v4403_v33  ;;  %15397 = vmatpush3.bf16.msra.mxu0 %v16613_v29  ;;  %v17637_v29 = vpack.c.bf16 %v18332_v49, %v18332_v49  ;;  %v185_v33 = vld [vmem:[%s18611_s0 + $0x198] sm:$0xff]  ;;  %v16665_v49 = vld [vmem:[#allocation5 + $0x7f0] sm:$0xff]  }
 0x2f3   :  { %15426 = vmatprep.subr.bf16.mxu0 %v16615_v17  ;;  %v184_v17 = vld [vmem:[%s18611_s0 + $0x190] sm:$0xff] }
 0x2f4   :  { %4405 = vst [vmem:[#allocation3 + $0xc] sm:$0xf] %v4404_v30  ;;  %15419 = vmatpush3.bf16.msra.mxu1 %v16614_v32  ;;  %v183_v32 = vld [vmem:[%s18611_s0 + $0x188] sm:$0xff] }
 0x2f5   :  { %7172 = vmatmul.mubr.bf16.vlgmr.msra.gmra.mrb[72].mxu0 %v17632_v37  ;;  %15448 = vmatprep.subr.bf16.mxu1 %v16616_v35  ;;  %v14660_v35 = vpack.c.bf16 %v185_v33, %v184_v17  ;;  %v16651_v37 = vld [vmem:[#allocation5 + $0x788] sm:$0xff]   ;;  %v16653_v30 = vld [vmem:[#allocation5 + $0x7d0] sm:$0xff]  }
 0x2f6   :  { %15427 = vmatpush3.bf16.msra.mxu0 %v16617_v38  ;;  %7251 = vmatprep.mubr.bf16.mxu0 %v17634_v53  ;;  %v17638_v38 = vpack.c.bf16 %v183_v32, %v183_v32  ;;  %v16702_v32 = vld [vmem:[#allocation9 + $0x3b0] ss:$36 sps:$4 sm:$0xff]   ;;  %v16699_v17 = vld [vmem:[#allocation9 + $0x168] ss:$36 sps:$4 sm:$0xff]  }
 0x2f7   :  { %7212 = vmatmul.mubr.bf16.vlgmr.msra.gmra.mrb[72].mxu1 %v17633_v41  ;;  %15428 = vmatprep.subr.bf16.mxu0 %v16619_v8  ;;  %429 = vst [vmem:[#allocation2 + $0xc8] sm:$0xff] %v14660_v35  ;;  %v16654_v41 = vld [vmem:[#allocation5 + $0x790] sm:$0xff]   ;;  %v16656_v8 = vld [vmem:[#allocation5 + $0x7d8] sm:$0xff]  }
 0x2f8   :  { %15449 = vmatpush3.bf16.msra.mxu1 %v16618_v39  ;;  %7291 = vmatprep.mubr.bf16.mxu1 %v17635_v34  ;;  %v16652_v39 = vld [vmem:[#allocation5 + $0x808] sm:$0xff]   ;;  %v16706_v33 = vld [vmem:[#allocation9 + $0x1b4] ss:$36 sps:$4 sm:$0xff]  }
 0x2f9   :  { %15450 = vmatprep.subr.bf16.mxu1 %v16620_v43  ;;  %v16655_v43 = vld [vmem:[#allocation5 + $0x810] sm:$0xff]  }
 0x2fa   :  { %15429 = vmatpush3.bf16.msra.mxu0 %v16621_v44  ;;  %v16657_v44 = vld [vmem:[#allocation5 + $0x798] sm:$0xff]  }
 0x2fb   :  { %15430 = vmatprep.subr.bf16.mxu0 %v16623_v27  ;;  %v16658_v27 = vld [vmem:[#allocation5 + $0x818] sm:$0xff]  }
 0x2fc   :  { %15451 = vmatpush3.bf16.msra.mxu1 %v16622_v40  ;;  %v16659_v40 = vld [vmem:[#allocation5 + $0x7e0] sm:$0xff]  }
 0x2fd   :  { %15452 = vmatprep.subr.bf16.mxu1 %v16624_v45  ;;  %v16660_v45 = vld [vmem:[#allocation5 + $0x7a0] sm:$0xff]  }
 0x2fe   :  { %15431 = vmatpush3.bf16.msra.mxu0 %v16625_v46  ;;  %v16662_v46 = vld [vmem:[#allocation5 + $0x7e8] sm:$0xff]  }
 0x2ff   :  { %15432 = vmatprep.subr.bf16.mxu0 %v16627_v51  ;;  %v16664_v51 = vld [vmem:[#allocation5 + $0x828] sm:$0xff]  }
 0x300   :  { %15453 = vmatpush3.bf16.msra.mxu1 %v16626_v52 }
 0x301   :  { %15454 = vmatprep.subr.bf16.mxu1 %v16628_v54 }
 0x302   :  { %15433 = vmatpush3.bf16.msra.mxu0 %v16629_v55  ;;  %v16666_v55 = vld [vmem:[#allocation5 + $0x7b0] sm:$0xff]  }
 0x303   :  { %15434 = vmatprep.subr.bf16.mxu0 %v16631_v56  ;;  %v16668_v56 = vld [vmem:[#allocation5 + $0x7f8] sm:$0xff]  }
 0x304   :  { %15455 = vmatpush3.bf16.msra.mxu1 %v16630_v57 }
 0x305   :  { %15456 = vmatprep.subr.bf16.mxu1 %v16632_v58 }
 0x306   :  { %15435 = vmatpush3.bf16.msra.mxu0 %v16633_v59 }
 0x307   :  { %15436 = vmatprep.subr.bf16.mxu0 %v16635_v60 }
 0x308   :  { %15457 = vmatpush3.bf16.msra.mxu1 %v16634_v28  ;;  %v15160_v0 = vpop.f32.mrb[48].mxu0 }
 0x309   :  { %v15161_v1 = vpop.f32.mrb[49].mxu0  ;;  %15458 = vmatprep.subr.bf16.mxu1 %v16636_v61  ;;  %v16667_v61 = vld [vmem:[#allocation5 + $0x830] sm:$0xff]  }
 0x30a   :  { %v15162_v36 = vadd.f32 %v15161_v1, %v15160_v0  ;;  %v15163_v3 = vpop.f32.mrb[50].mxu0  ;;  %v15182_v4 = vpop.f32.mrb[48].mxu1  ;;  %15437 = vmatpush3.bf16.msra.mxu0 %v16637_v62  ;;  %v16669_v0 = vld [vmem:[#allocation5 + $0x7b8] sm:$0xff]   ;;  %v16674_v1 = vld [vmem:[#allocation9 + $0x4] ss:$36 sps:$4 sm:$0xff]  }
 0x30b   :  { %v15164_v9 = vpop.f32.mrb[51].mxu0  ;;  %v15183_v10 = vpop.f32.mrb[49].mxu1  ;;  %15438 = vmatprep.subr.bf16.mxu0 %v16639_v63  ;;  %v16675_v3 = vld [vmem:[#allocation9 + $0x248] ss:$36 sps:$4 sm:$0xff]  }
 0x30c   :  { %v5190_v12 = vadd.f32 %v18337_v11, %v15162_v36  ;;  %15459 = vmatpush3.bf16.msra.mxu1 %v16638_v42  ;;  %v15184_v13 = vadd.f32 %v15183_v10, %v15182_v4  ;;  %v15185_v14 = vpop.f32.mrb[50].mxu1  ;;  %v16670_v42 = vld [vmem:[#allocation5 + $0x838] sm:$0xff]   ;;  %v17639_v36 = vpack.c.bf16 %v18349_v31, %v18349_v31  ;;  %v18375_v4 = vld [vmem:[#allocation3] sm:$0xff]  ;;  %v16678_v10 = vld [vmem:[#allocation9 + $0x8] ss:$36 sps:$4 sm:$0xff]  }
 0x30d   :  { %15460 = vmatprep.subr.bf16.mxu1 %v16640_v2  ;;  %v15186_v18 = vpop.f32.mrb[51].mxu1  ;;  %v16672_v2 = vld [vmem:[#allocation9] ss:$36 sps:$4 sm:$0xff]   ;;  %v13935_v9 = vcombine.high %v18375_v4, %v18375_v4  ;;  %v16686_v14 = vld [vmem:[#allocation9 + $0x94] ss:$36 sps:$4 sm:$0xff]  }
 0x30e   :  { %v18340_v20 = vadd.f32 %v15184_v13, %v5190_v12  ;;  %15439 = vmatpush3.bf16.msra.mxu0 %v16641_v5  ;;  %v16681_v5 = vld [vmem:[#allocation9 + $0x4c] ss:$36 sps:$4 sm:$0xff]   ;;  %v16687_v18 = vld [vmem:[#allocation9 + $0x2d8] ss:$36 sps:$4 sm:$0xff]  }
 0x30f   :  { %15440 = vmatprep.subr.bf16.mxu0 %v16643_v6  ;;  %v16671_v6 = vld [vmem:[#allocation2 + $0xc8] ss:$0 sps:$4 sm:$0xff]   ;;  %v16682_v12 = vld [vmem:[#allocation9 + $0x290] ss:$36 sps:$4 sm:$0xff]  }
 0x310   :  { %15461 = vmatpush3.bf16.msra.mxu1 %v16642_v16  ;;  %v16679_v13 = vld [vmem:[#allocation9 + $0x48] ss:$36 sps:$4 sm:$0xff]   ;;  %v16683_v16 = vld [vmem:[#allocation9 + $0x50] ss:$36 sps:$4 sm:$0xff]  }
 0x311   :  { %15462 = vmatprep.subr.bf16.mxu1 %v16644_v19  ;;  %v16684_v19 = vld [vmem:[#allocation9 + $0x90] ss:$36 sps:$4 sm:$0xff]   ;;  %v16698_v31 = vld [vmem:[#allocation9 + $0x128] ss:$36 sps:$4 sm:$0xff]  }
 0x312   :  { %15441 = vmatpush3.bf16.msra.mxu0 %v16645_v26  ;;  %v16688_v26 = vld [vmem:[#allocation9 + $0x98] ss:$36 sps:$4 sm:$0xff]  }
 0x313   :  { %15470 = vmatprep.subr.bf16.mxu0 %v16647_v21  ;;  %v16692_v21 = vld [vmem:[#allocation9 + $0x320] ss:$36 sps:$4 sm:$0xff]  }
 0x314   :  { %15463 = vmatpush3.bf16.msra.mxu1 %v16646_v22  ;;  %v16689_v22 = vld [vmem:[#allocation9 + $0xd8] ss:$36 sps:$4 sm:$0xff]  }
 0x315   :  { %7252 = vmatmul.mubr.bf16.vlgmr.msra.gmra.mrb[76].mxu0 %v17636_v23  ;;  %15868 = vmatprep.subr.bf16.mxu1 %v17844_v15  ;;  %v16696_v23 = vld [vmem:[#allocation9 + $0x124] ss:$36 sps:$4 sm:$0xff]  }
 0x316   :  { %15471 = vmatpush3.bf16.msra.mxu0 %v16648_v24  ;;  %7331 = vmatprep.mubr.bf16.mxu0 %v17638_v38  ;;  %v16693_v24 = vld [vmem:[#allocation9 + $0xe0] ss:$36 sps:$4 sm:$0xff]  }
 0x317   :  { %7292 = vmatmul.mubr.bf16.vlgmr.msra.gmra.mrb[76].mxu1 %v17637_v29  ;;  %15472 = vmatprep.subr.bf16.mxu0 %v16650_v25  ;;  %v16694_v25 = vld [vmem:[#allocation9 + $0x120] ss:$36 sps:$4 sm:$0xff]   ;;  %v16701_v29 = vld [vmem:[#allocation9 + $0x16c] ss:$36 sps:$4 sm:$0xff]  }
 0x318   :  { %15869 = vmatpush3.bf16.msra.mxu1 %v16649_v48  ;;  %15884 = vmatprep.mubr.msk.bf16.mxu1 %vm17845_vm0, %v17844_v15  ;;  %v16697_v48 = vld [vmem:[#allocation9 + $0x368] ss:$36 sps:$4 sm:$0xff]  }
 0x319   :  { %15870 = vmatprep.subr.bf16.mxu1 %v17844_v15 }
 0x31a   :  { %15473 = vmatpush3.bf16.msra.mxu0 %v16651_v37  ;;  %v16703_v37 = vld [vmem:[#allocation9 + $0x170] ss:$36 sps:$4 sm:$0xff]  }
 0x31b   :  { %15474 = vmatprep.subr.bf16.mxu0 %v16653_v30  ;;  %v16704_v30 = vld [vmem:[#allocation9 + $0x1b0] ss:$36 sps:$4 sm:$0xff]  }
 0x31c   :  { %15871 = vmatpush3.bf16.msra.mxu1 %v16652_v39  ;;  %v16707_v39 = vld [vmem:[#allocation9 + $0x3f8] ss:$36 sps:$4 sm:$0xff]  }
 0x31d   :  { %15872 = vmatprep.subr.bf16.mxu1 %v17844_v15 }
 0x31e   :  { %15475 = vmatpush3.bf16.msra.mxu0 %v16654_v41 }
 0x31f   :  { %15476 = vmatprep.subr.bf16.mxu0 %v16656_v8 }
 0x320   :  { %15873 = vmatpush3.bf16.msra.mxu1 %v16655_v43 }
 0x321   :  { %15874 = vmatprep.subr.bf16.mxu1 %v17844_v15 }
 0x322   :  { %15477 = vmatpush3.bf16.msra.mxu0 %v16657_v44 }
 0x323   :  { %15478 = vmatprep.subr.bf16.mxu0 %v16659_v40 }
 0x324   :  { %15875 = vmatpush3.bf16.msra.mxu1 %v16658_v27  ;;  %v16711_v27 = vld [vmem:[#allocation9 + $0x1fc] ss:$36 sps:$4 sm:$0xff]  }
 0x325   :  { %15876 = vmatprep.subr.bf16.mxu1 %v17844_v15 }
 0x326   :  { %15479 = vmatpush3.bf16.msra.mxu0 %v16660_v45 }
 0x327   :  { %15480 = vmatprep.subr.bf16.mxu0 %v16662_v46 }
 0x328   :  { %15877 = vmatpush3.bf16.msra.mxu1 %v16661_v7  ;;  %v15204_v50 = vpop.f32.mrb[52].mxu0  ;;  %v16708_v7 = vld [vmem:[#allocation9 + $0x1b8] ss:$36 sps:$4 sm:$0xff]  }
 0x329   :  { %v15205_v52 = vpop.f32.mrb[53].mxu0  ;;  %15878 = vmatprep.subr.bf16.mxu1 %v17844_v15 }
 0x32a   :  { %v15206_v53 = vadd.f32 %v15205_v52, %v15204_v50  ;;  %v15207_v54 = vpop.f32.mrb[54].mxu0  ;;  %v15226_v34 = vpop.f32.mrb[52].mxu1  ;;  %15481 = vmatpush3.bf16.msra.mxu0 %v16663_v47  ;;  %v16716_v52 = vld [vmem:[#allocation9 + $0x244] ss:$36 sps:$4 sm:$0xff]  }
 0x32b   :  { %v15208_v57 = vpop.f32.mrb[55].mxu0  ;;  %v15227_v58 = vpop.f32.mrb[53].mxu1  ;;  %15482 = vmatprep.subr.bf16.mxu0 %v16665_v49  ;;  %v16712_v49 = vld [vmem:[#allocation9 + $0x440] ss:$36 sps:$4 sm:$0xff]  }
 0x32c   :  { %v5270_v59 = vadd.f32 %v15206_v53, %v18340_v20  ;;  %15879 = vmatpush3.bf16.msra.mxu1 %v16664_v51  ;;  %v15228_v60 = vadd.f32 %v15227_v58, %v15226_v34  ;;  %v15229_v28 = vpop.f32.mrb[54].mxu1  ;;  %v16691_v20 = vld [vmem:[#allocation9 + $0xdc] ss:$36 sps:$4 sm:$0xff]   ;;  %v16717_v34 = vld [vmem:[#allocation9 + $0x6c8] ss:$36 sps:$4 sm:$0xff]  }
 0x32d   :  { %15880 = vmatprep.subr.bf16.mxu1 %v17844_v15  ;;  %v15230_v62 = vpop.f32.mrb[55].mxu1  ;;  %v16709_v51 = vld [vmem:[#allocation9 + $0x1f8] ss:$36 sps:$4 sm:$0xff]   ;;  %v16713_v54 = vld [vmem:[#allocation9 + $0x200] ss:$36 sps:$4 sm:$0xff]  }
 0x32e   :  { %v18370_v63 = vadd.f32 %v15228_v60, %v5270_v59  ;;  %15483 = vmatpush3.bf16.msra.mxu0 %v16666_v55  ;;  %v18380_v57 = vld [vmem:[#allocation3 + $0x8] sm:$0xff]  ;;  %v18384_v60 = vcombine.low %v18375_v4, %v18375_v4  ;;  %v16724_v28 = vld [vmem:[#allocation9 + $0x710] ss:$36 sps:$4 sm:$0xff]   ;;  %v16731_v4 = vld [vmem:[#allocation9 + $0x318] ss:$36 sps:$4 sm:$0xff]  }
 0x32f   :  { %15484 = vmatprep.subr.bf16.mxu0 %v16668_v56  ;;  %v16714_v56 = vld [vmem:[#allocation9 + $0x240] ss:$36 sps:$4 sm:$0xff]   ;;  %v16723_v58 = vld [vmem:[#allocation9 + $0x28c] ss:$36 sps:$4 sm:$0xff]  }
 0x330   :  { %15881 = vmatpush3.bf16.msra.mxu1 %v16667_v61  ;;  %v16718_v59 = vld [vmem:[#allocation9 + $0x488] ss:$36 sps:$4 sm:$0xff]   ;;  %v18388_v61 = vcombine.high %v18380_v57, %v18380_v57 }
 0x331   :  { %15882 = vmatprep.subr.bf16.mxu1 %v17844_v15  ;;  %v16721_v62 = vld [vmem:[#allocation9 + $0x288] ss:$36 sps:$4 sm:$0xff]  }
 0x332   :  { %15485 = vmatpush3.bf16.msra.mxu0 %v16669_v0  ;;  %v16725_v0 = vld [vmem:[#allocation9 + $0x4d0] ss:$36 sps:$4 sm:$0xff]  }
 0x333   :  { %8548 = vmatprep.subr.bf16.mxu0 %v16674_v1  ;;  %v16726_v1 = vld [vmem:[#allocation9 + $0x2d0] ss:$36 sps:$4 sm:$0xff]  }
 0x334   :  { %15883 = vmatpush3.bf16.msra.mxu1 %v16670_v42  ;;  %v16729_v42 = vld [vmem:[#allocation9 + $0x758] ss:$36 sps:$4 sm:$0xff]  }
 0x335   :  { %7332 = vmatmul.mubr.bf16.vlgmr.msra.gmra.mrb[80].mxu0 %v17639_v36  ;;  %15501 = vmatprep.subr.bf16.mxu1 %v16675_v3  ;;  %v16730_v36 = vld [vmem:[#allocation9 + $0x518] ss:$36 sps:$4 sm:$0xff]   ;;  %v16734_v3 = vld [vmem:[#allocation9 + $0x7a0] ss:$36 sps:$4 sm:$0xff]  }
 0x336   :  { %8549 = vmatpush1.bf16.msra.mxu0 %v16672_v2  ;;  %8580 = vmatprep.mubr.bf16.mxu0 %v13935_v9  ;;  %v16733_v2 = vld [vmem:[#allocation9 + $0x31c] ss:$36 sps:$4 sm:$0xff]  }
 0x337   :  { %15885 = vmatmul.mubr.bf16.vlgmr.msra.gmra.mrb[80].mxu1 %v16671_v6  ;;  %8550 = vmatprep.subr.bf16.mxu0 %v16681_v5  ;;  %v16738_v5 = vld [vmem:[#allocation9 + $0x364] ss:$36 sps:$4 sm:$0xff]  }
 0x338   :  { %15502 = vmatpush3.bf16.msra.mxu1 %v16678_v10  ;;  %8744 = vmatprep.mubr.bf16.mxu1 %v13935_v9  ;;  %v16735_v6 = vld [vmem:[#allocation9 + $0x560] ss:$36 sps:$4 sm:$0xff]   ;;  %v16739_v9 = vld [vmem:[#allocation9 + $0x7e8] ss:$36 sps:$4 sm:$0xff]  }
 0x339   :  { %15503 = vmatprep.subr.bf16.mxu1 %v16682_v12  ;;  %v16736_v10 = vld [vmem:[#allocation9 + $0x360] ss:$36 sps:$4 sm:$0xff]   ;;  %v16743_v12 = vld [vmem:[#allocation9 + $0x3ac] ss:$36 sps:$4 sm:$0xff]  }
 0x33a   :  { %8551 = vmatpush1.bf16.msra.mxu0 %v16679_v13  ;;  %v16740_v13 = vld [vmem:[#allocation9 + $0x5a8] ss:$36 sps:$4 sm:$0xff]  }
 0x33b   :  { %8552 = vmatprep.subr.bf16.mxu0 %v16686_v14  ;;  %v16741_v14 = vld [vmem:[#allocation9 + $0x3a8] ss:$36 sps:$4 sm:$0xff]  }
 0x33c   :  { %15504 = vmatpush3.bf16.msra.mxu1 %v16683_v16  ;;  %v16744_v16 = vld [vmem:[#allocation9 + $0x830] ss:$36 sps:$4 sm:$0xff]  }
 0x33d   :  { %15505 = vmatprep.subr.bf16.mxu1 %v16687_v18  ;;  %v16745_v18 = vld [vmem:[#allocation9 + $0x5f0] ss:$36 sps:$4 sm:$0xff]  }
 0x33e   :  { %8553 = vmatpush1.bf16.msra.mxu0 %v16684_v19  ;;  %v16748_v19 = vld [vmem:[#allocation9 + $0x3f4] ss:$36 sps:$4 sm:$0xff]  }
 0x33f   :  { %8554 = vmatprep.subr.bf16.mxu0 %v16691_v20 }
 0x340   :  { %15506 = vmatpush3.bf16.msra.mxu1 %v16688_v26  ;;  %v16746_v26 = vld [vmem:[#allocation9 + $0x3f0] ss:$36 sps:$4 sm:$0xff]  }
 0x341   :  { %15507 = vmatprep.subr.bf16.mxu1 %v16692_v21 }
 0x342   :  { %8555 = vmatpush1.bf16.msra.mxu0 %v16689_v22  ;;  %v16749_v22 = vld [vmem:[#allocation9 + $0x878] ss:$36 sps:$4 sm:$0xff]  }
 0x343   :  { %8556 = vmatprep.subr.bf16.mxu0 %v16696_v23 }
 0x344   :  { %15508 = vmatpush3.bf16.msra.mxu1 %v16693_v24 }
 0x345   :  { %15509 = vmatprep.subr.bf16.mxu1 %v16697_v48 }
 0x346   :  { %8557 = vmatpush1.bf16.msra.mxu0 %v16694_v25 }
 0x347   :  { %8558 = vmatprep.subr.bf16.mxu0 %v16701_v29 }
 0x348   :  { %15510 = vmatpush3.bf16.msra.mxu1 %v16698_v31  ;;  %v15248_v35 = vpop.f32.mrb[56].mxu0  ;;  %v16753_v31 = vld [vmem:[#allocation9 + $0x43c] ss:$36 sps:$4 sm:$0xff]  }
 0x349   :  { %v15249_v38 = vpop.f32.mrb[57].mxu0  ;;  %15511 = vmatprep.subr.bf16.mxu1 %v16702_v32 }
 0x34a   :  { %v15250_v41 = vadd.f32 %v15249_v38, %v15248_v35  ;;  %v15251_v8 = vpop.f32.mrb[58].mxu0  ;;  %8559 = vmatpush1.bf16.msra.mxu0 %v16699_v17  ;;  %v5389_v43 = vpop.f32.mrb[56].mxu1  ;;  %v16750_v35 = vld [vmem:[#allocation9 + $0x638] ss:$36 sps:$4 sm:$0xff]   ;;  %v16754_v38 = vld [vmem:[#allocation9 + $0x8c0] ss:$36 sps:$4 sm:$0xff]  }
 0x34b   :  { %v15252_v44 = vpop.f32.mrb[59].mxu0  ;;  %v15846_v40 = vpop.f32.mrb[57].mxu1  ;;  %8560 = vmatprep.subr.bf16.mxu0 %v16706_v33  ;;  %v16755_v8 = vld [vmem:[#allocation9 + $0x680] ss:$36 sps:$4 sm:$0xff]  }
 0x34c   :  { %15512 = vmatpush3.bf16.msra.mxu1 %v16703_v37  ;;  %v5350_v45 = vadd.f32 %v15250_v41, %v18370_v63  ;;  %v5392_v46 = vpop.f32.mrb[58].mxu1  ;;  %v16728_v63 = vld [vmem:[#allocation9 + $0x2d4] ss:$36 sps:$4 sm:$0xff]   ;;  %v16758_v41 = vld [vmem:[#allocation9 + $0x484] ss:$36 sps:$4 sm:$0xff]  }
 0x34d   :  { %15513 = vmatprep.subr.bf16.mxu1 %v16707_v39  ;;  %v15847_v47 = vpop.f32.mrb[59].mxu1  ;;  %v16751_v39 = vld [vmem:[#allocation9 + $0x438] ss:$36 sps:$4 sm:$0xff]   ;;  %v16756_v44 = vld [vmem:[#allocation9 + $0x480] ss:$36 sps:$4 sm:$0xff]  }
 0x34e   :  { %v5390_v50 = vadd.f32 %v5389_v43, %v5350_v45  ;;  %8561 = vmatpush1.bf16.msra.mxu0 %v16704_v30  ;;  %v16789_v43 = vld [vmem:[#allocation9 + $0xb48] ss:$36 sps:$4 sm:$0xff]   ;;  %v16794_v45 = vld [vmem:[#allocation9 + $0xb90] ss:$36 sps:$4 sm:$0xff]  }
 0x34f   :  { %8562 = vmatprep.subr.bf16.mxu0 %v16711_v27  ;;  %v16790_v40 = vld [vmem:[#allocation9 + $0x908] ss:$36 sps:$4 sm:$0xff]   ;;  %v18397_v27 = vcombine.low %v18380_v57, %v18380_v57  ;;  %v16795_v47 = vld [vmem:[#allocation9 + $0x950] ss:$36 sps:$4 sm:$0xff]   ;;  %v16768_v57 = vld [vmem:[#allocation9 + $0x5a0] ss:$36 sps:$4 sm:$0xff]  }
 0x350   :  { %v5395_v53 = vmax.f32 %v5390_v50, 0.0  ;;  %15514 = vmatpush3.bf16.msra.mxu1 %v16708_v7  ;;  %v16759_v46 = vld [vmem:[#allocation9 + $0x4c8] ss:$36 sps:$4 sm:$0xff]   ;;  %v16764_v7 = vld [vmem:[#allocation9 + $0x514] ss:$36 sps:$4 sm:$0xff]  }
 0x351   :  { %15515 = vmatprep.subr.bf16.mxu1 %v16712_v49  ;;  %v16799_v49 = vld [vmem:[#allocation9 + $0xbd8] ss:$36 sps:$4 sm:$0xff]   ;;  %v16762_v50 = vld [vmem:[#allocation9 + $0x510] ss:$36 sps:$4 sm:$0xff]  }
 0x352   :  { %v5396_v55 = vpack.c.bf16 %v5395_v53, %v5395_v53  ;;  %8563 = vmatpush1.bf16.msra.mxu0 %v16709_v51  ;;  %v16767_v51 = vld [vmem:[#allocation9 + $0x55c] ss:$36 sps:$4 sm:$0xff]  }
 0x353   :  { %8564 = vmatprep.subr.bf16.mxu0 %v16716_v52  ;;  %v16800_v52 = vld [vmem:[#allocation9 + $0x998] ss:$36 sps:$4 sm:$0xff]   ;;  %v16804_v53 = vld [vmem:[#allocation9 + $0xc20] ss:$36 sps:$4 sm:$0xff]  }
 0x354   :  { %5397 = vst [vmem:[#allocation3 + $0x10] sm:$0xf] %v5396_v55  ;;  %15516 = vmatpush3.bf16.msra.mxu1 %v16713_v54  ;;  %v16765_v54 = vld [vmem:[#allocation9 + $0x558] ss:$36 sps:$4 sm:$0xff]   ;;  %v16805_v55 = vld [vmem:[#allocation9 + $0x9e0] ss:$36 sps:$4 sm:$0xff]  }
 0x355   :  { %15523 = vmatprep.subr.bf16.mxu1 %v16717_v34  ;;  %v16770_v34 = vld [vmem:[#allocation9 + $0x5a4] ss:$36 sps:$4 sm:$0xff]  }
 0x356   :  { %8565 = vmatpush1.bf16.msra.mxu0 %v16714_v56  ;;  %v16809_v56 = vld [vmem:[#allocation9 + $0xc68] ss:$36 sps:$4 sm:$0xff]  }
 0x357   :  { %8745 = vmatmul.mubr.bf16.vlgmr.msra.gmra.mrb[84].mxu1 %v18384_v60  ;;  %8566 = vmatprep.subr.bf16.mxu0 %v16723_v58  ;;  %v16773_v58 = vld [vmem:[#allocation9 + $0x5ec] ss:$36 sps:$4 sm:$0xff]  }
 0x358   :  { %15524 = vmatpush3.bf16.msra.mxu1 %v16718_v59  ;;  %8784 = vmatprep.mubr.bf16.mxu1 %v18388_v61  ;;  %v16810_v59 = vld [vmem:[#allocation9 + $0xa28] ss:$36 sps:$4 sm:$0xff]  }
 0x359   :  { %15525 = vmatprep.subr.bf16.mxu1 %v16724_v28  ;;  %v16771_v28 = vld [vmem:[#allocation9 + $0x5e8] ss:$36 sps:$4 sm:$0xff]  }
 0x35a   :  { %8567 = vmatpush1.bf16.msra.mxu0 %v16721_v62 }
 0x35b   :  { %8568 = vmatprep.subr.bf16.mxu0 %v16728_v63  ;;  %v16815_v63 = vld [vmem:[#allocation9 + $0xa70] ss:$36 sps:$4 sm:$0xff]  }
 0x35c   :  { %15526 = vmatpush3.bf16.msra.mxu1 %v16725_v0  ;;  %v16819_v0 = vld [vmem:[#allocation9 + $0xcf8] ss:$36 sps:$4 sm:$0xff]  }
 0x35d   :  { %15527 = vmatprep.subr.bf16.mxu1 %v16729_v42 }
 0x35e   :  { %8569 = vmatpush1.bf16.msra.mxu0 %v16726_v1 }
 0x35f   :  { %8570 = vmatprep.subr.bf16.mxu0 %v16733_v2 }
 0x360   :  { %15528 = vmatpush3.bf16.msra.mxu1 %v16730_v36 }
 0x361   :  { %15529 = vmatprep.subr.bf16.mxu1 %v16734_v3  ;;  %v16774_v3 = vld [vmem:[#allocation9 + $0x630] ss:$36 sps:$4 sm:$0xff]  }
 0x362   :  { %8571 = vmatpush1.bf16.msra.mxu0 %v16731_v4 }
 0x363   :  { %8572 = vmatprep.subr.bf16.mxu0 %v16738_v5 }
 0x364   :  { %15530 = vmatpush3.bf16.msra.mxu1 %v16735_v6  ;;  %v16779_v6 = vld [vmem:[#allocation9 + $0x67c] ss:$36 sps:$4 sm:$0xff]  }
 0x365   :  { %15531 = vmatprep.subr.bf16.mxu1 %v16739_v9  ;;  %v16820_v9 = vld [vmem:[#allocation9 + $0xab8] ss:$36 sps:$4 sm:$0xff]  }
 0x366   :  { %8573 = vmatpush1.bf16.msra.mxu0 %v16736_v10 }
 0x367   :  { %8574 = vmatprep.subr.bf16.mxu0 %v16743_v12 }
 0x368   :  { %15532 = vmatpush3.bf16.msra.mxu1 %v16740_v13  ;;  %v15279_v20 = vpop.f32.mrb[60].mxu0 }
 0x369   :  { %v15280_v21 = vpop.f32.mrb[61].mxu0  ;;  %15533 = vmatprep.subr.bf16.mxu1 %v16744_v16  ;;  %v16824_v16 = vld [vmem:[#allocation9 + $0xd40] ss:$36 sps:$4 sm:$0xff]  }
 0x36a   :  { %v15281_v23 = vadd.f32 %v15280_v21, %v15279_v20  ;;  %v15282_v24 = vpop.f32.mrb[62].mxu0  ;;  %v15301_v48 = vpop.f32.mrb[60].mxu1  ;;  %8575 = vmatpush1.bf16.msra.mxu0 %v16741_v14  ;;  %v16782_v20 = vld [vmem:[#allocation9 + $0x6c4] ss:$36 sps:$4 sm:$0xff]  }
 0x36b   :  { %v15283_v25 = vpop.f32.mrb[63].mxu0  ;;  %v15302_v29 = vpop.f32.mrb[61].mxu1  ;;  %8576 = vmatprep.subr.bf16.mxu0 %v16748_v19  ;;  %v16777_v19 = vld [vmem:[#allocation9 + $0x678] ss:$36 sps:$4 sm:$0xff]   ;;  %v16825_v21 = vld [vmem:[#allocation9 + $0xb00] ss:$36 sps:$4 sm:$0xff]  }
 0x36c   :  { %v6182_v32 = vadd.f32 %v18337_v11, %v15281_v23  ;;  %15534 = vmatpush3.bf16.msra.mxu1 %v16745_v18  ;;  %v15303_v17 = vadd.f32 %v15302_v29, %v15301_v48  ;;  %v15304_v33 = vpop.f32.mrb[62].mxu1  ;;  %v16761_v11 = vld [vmem:[#allocation9 + $0x4cc] ss:$36 sps:$4 sm:$0xff]   ;;  %v16788_v24 = vld [vmem:[#allocation9 + $0x754] ss:$36 sps:$4 sm:$0xff]  }
 0x36d   :  { %15535 = vmatprep.subr.bf16.mxu1 %v16749_v22  ;;  %v15305_v37 = vpop.f32.mrb[63].mxu1  ;;  %v16785_v22 = vld [vmem:[#allocation9 + $0x70c] ss:$36 sps:$4 sm:$0xff]   ;;  %v16793_v25 = vld [vmem:[#allocation9 + $0x79c] ss:$36 sps:$4 sm:$0xff]  }
 0x36e   :  { %v18393_v30 = vadd.f32 %v15303_v17, %v6182_v32  ;;  %8577 = vmatpush1.bf16.msra.mxu0 %v16746_v26  ;;  %v16780_v26 = vld [vmem:[#allocation9 + $0x6c0] ss:$36 sps:$4 sm:$0xff]   ;;  %v16783_v23 = vld [vmem:[#allocation9 + $0x708] ss:$36 sps:$4 sm:$0xff]   ;;  %v16786_v48 = vld [vmem:[#allocation9 + $0x750] ss:$36 sps:$4 sm:$0xff]  }
 0x36f   :  { %8578 = vmatprep.subr.bf16.mxu0 %v16753_v31  ;;  %v16791_v29 = vld [vmem:[#allocation9 + $0x798] ss:$36 sps:$4 sm:$0xff]   ;;  %v16798_v31 = vld [vmem:[#allocation9 + $0x7e4] ss:$36 sps:$4 sm:$0xff]   ;;  %v16803_v17 = vld [vmem:[#allocation9 + $0x82c] ss:$36 sps:$4 sm:$0xff]  }
 0x370   :  { %15536 = vmatpush3.bf16.msra.mxu1 %v16750_v35  ;;  %v16796_v32 = vld [vmem:[#allocation9 + $0x7e0] ss:$36 sps:$4 sm:$0xff]   ;;  %v16801_v33 = vld [vmem:[#allocation9 + $0x828] ss:$36 sps:$4 sm:$0xff]   ;;  %v16808_v35 = vld [vmem:[#allocation9 + $0x874] ss:$36 sps:$4 sm:$0xff]  }
 0x371   :  { %15537 = vmatprep.subr.bf16.mxu1 %v16754_v38  ;;  %v16806_v38 = vld [vmem:[#allocation9 + $0x870] ss:$36 sps:$4 sm:$0xff]  }
 0x372   :  { %8579 = vmatpush1.bf16.msra.mxu0 %v16751_v39 }
 0x373   :  { %8589 = vmatprep.subr.bf16.mxu0 %v16758_v41 }
 0x374   :  { %15538 = vmatpush3.bf16.msra.mxu1 %v16755_v8 }
 0x375   :  { %8581 = vmatmul.mubr.bf16.vlgmr.msra.gmra.mrb[84].mxu0 %v18384_v60  ;;  %15545 = vmatprep.subr.bf16.mxu1 %v16789_v43  ;;  %v16814_v60 = vld [vmem:[#allocation9 + $0xcb0] ss:$36 sps:$4 sm:$0xff]   ;;  %v16813_v43 = vld [vmem:[#allocation9 + $0x8bc] ss:$36 sps:$4 sm:$0xff]  }
 0x376   :  { %8590 = vmatpush1.bf16.msra.mxu0 %v16756_v44  ;;  %8621 = vmatprep.mubr.bf16.mxu0 %v18388_v61  ;;  %v16776_v61 = vld [vmem:[#allocation9 + $0x634] ss:$36 sps:$4 sm:$0xff]  }
 0x377   :  { %8785 = vmatmul.mubr.bf16.vlgmr.msra.gmra.mrb[88].mxu1 %v18397_v27  ;;  %8591 = vmatprep.subr.bf16.mxu0 %v16761_v11 }
 0x378   :  { %15546 = vmatpush3.bf16.msra.mxu1 %v16790_v40 }
 0x379   :  { %15547 = vmatprep.subr.bf16.mxu1 %v16794_v45 }
 0x37a   :  { %8592 = vmatpush1.bf16.msra.mxu0 %v16759_v46 }
 0x37b   :  { %8593 = vmatprep.subr.bf16.mxu0 %v16764_v7 }
 0x37c   :  { %15548 = vmatpush3.bf16.msra.mxu1 %v16795_v47  ;;  %v16811_v47 = vld [vmem:[#allocation9 + $0x8b8] ss:$36 sps:$4 sm:$0xff]  }
 0x37d   :  { %15549 = vmatprep.subr.bf16.mxu1 %v16799_v49  ;;  %v16818_v49 = vld [vmem:[#allocation9 + $0x904] ss:$36 sps:$4 sm:$0xff]  }
 0x37e   :  { %8594 = vmatpush1.bf16.msra.mxu0 %v16762_v50 }
 0x37f   :  { %8595 = vmatprep.subr.bf16.mxu0 %v16767_v51 }
 0x380   :  { %15550 = vmatpush3.bf16.msra.mxu1 %v16800_v52  ;;  %v16816_v52 = vld [vmem:[#allocation9 + $0x900] ss:$36 sps:$4 sm:$0xff]  }
 0x381   :  { %15551 = vmatprep.subr.bf16.mxu1 %v16804_v53  ;;  %v16823_v53 = vld [vmem:[#allocation9 + $0x94c] ss:$36 sps:$4 sm:$0xff]  }
 0x382   :  { %8596 = vmatpush1.bf16.msra.mxu0 %v16765_v54  ;;  %v16821_v54 = vld [vmem:[#allocation9 + $0x948] ss:$36 sps:$4 sm:$0xff]  }
 0x383   :  { %8597 = vmatprep.subr.bf16.mxu0 %v16770_v34  ;;  %v16828_v34 = vld [vmem:[#allocation9 + $0x994] ss:$36 sps:$4 sm:$0xff]  }
 0x384   :  { %15552 = vmatpush3.bf16.msra.mxu1 %v16805_v55  ;;  %v16826_v55 = vld [vmem:[#allocation9 + $0x990] ss:$36 sps:$4 sm:$0xff]  }
 0x385   :  { %15553 = vmatprep.subr.bf16.mxu1 %v16809_v56 }
 0x386   :  { %8598 = vmatpush1.bf16.msra.mxu0 %v16768_v57  ;;  %v16833_v57 = vld [vmem:[#allocation9 + $0x9dc] ss:$36 sps:$4 sm:$0xff]  }
 0x387   :  { %8599 = vmatprep.subr.bf16.mxu0 %v16773_v58  ;;  %v16873_v58 = vld [vmem:[#allocation9 + $0xd88] ss:$36 sps:$4 sm:$0xff]  }
 0x388   :  { %v15323_v62 = vpop.f32.mrb[64].mxu0  ;;  %15554 = vmatpush3.bf16.msra.mxu1 %v16810_v59 }
 0x389   :  { %v15324_v42 = vpop.f32.mrb[65].mxu0  ;;  %15555 = vmatprep.subr.bf16.mxu1 %v16814_v60 }
 0x38a   :  { %v15325_v1 = vadd.f32 %v15324_v42, %v15323_v62  ;;  %v15326_v2 = vpop.f32.mrb[66].mxu0  ;;  %v15345_v36 = vpop.f32.mrb[64].mxu1  ;;  %8600 = vmatpush1.bf16.msra.mxu0 %v16771_v28  ;;  %v16831_v28 = vld [vmem:[#allocation9 + $0x9d8] ss:$36 sps:$4 sm:$0xff]   ;;  %v16834_v62 = vld [vmem:[#allocation9 + $0xa20] ss:$36 sps:$4 sm:$0xff]  }
 0x38b   :  { %v15327_v4 = vpop.f32.mrb[67].mxu0  ;;  %v15346_v5 = vpop.f32.mrb[65].mxu1  ;;  %8601 = vmatprep.subr.bf16.mxu0 %v16776_v61  ;;  %v16877_v61 = vld [vmem:[#allocation9 + $0xdd0] ss:$36 sps:$4 sm:$0xff]   ;;  %v16837_v42 = vld [vmem:[#allocation9 + $0xa68] ss:$36 sps:$4 sm:$0xff]  }
 0x38c   :  { %v6262_v10 = vadd.f32 %v15325_v1, %v18393_v30  ;;  %v15347_v12 = vadd.f32 %v15346_v5, %v15345_v36  ;;  %v15348_v13 = vpop.f32.mrb[66].mxu1  ;;  %15556 = vmatpush3.bf16.msra.mxu1 %v16815_v63  ;;  %v16839_v63 = vld [vmem:[#allocation9 + $0xa6c] ss:$36 sps:$4 sm:$0xff]   ;;  %v16842_v1 = vld [vmem:[#allocation9 + $0xab4] ss:$36 sps:$4 sm:$0xff]  }
 0x38d   :  { %v15349_v14 = vpop.f32.mrb[67].mxu1  ;;  %15557 = vmatprep.subr.bf16.mxu1 %v16819_v0  ;;  %v16881_v0 = vld [vmem:[#allocation9 + $0xe18] ss:$36 sps:$4 sm:$0xff]   ;;  %v16885_v2 = vld [vmem:[#allocation9 + $0xe60] ss:$36 sps:$4 sm:$0xff]  }
 0x38e   :  { %v6302_v18 = vadd.f32 %v15347_v12, %v6262_v10  ;;  %8602 = vmatpush1.bf16.msra.mxu0 %v16774_v3  ;;  %v16840_v3 = vld [vmem:[#allocation9 + $0xab0] ss:$36 sps:$4 sm:$0xff]   ;;  %v16845_v5 = vld [vmem:[#allocation9 + $0xafc] ss:$36 sps:$4 sm:$0xff]   ;;  %v16889_v14 = vld [vmem:[#allocation9 + $0xea8] ss:$36 sps:$4 sm:$0xff]  }
 0x38f   :  { %8603 = vmatprep.subr.bf16.mxu0 %v16779_v6 }
 0x390   :  { %15558 = vmatpush3.bf16.msra.mxu1 %v16820_v9 }
 0x391   :  { %15559 = vmatprep.subr.bf16.mxu1 %v16824_v16  ;;  %v17602_v16 = vld [vmem:[#allocation7] ss:$0 sm:$0xff] }
 0x392   :  { %8604 = vmatpush1.bf16.msra.mxu0 %v16777_v19 }
 0x393   :  { %8605 = vmatprep.subr.bf16.mxu0 %v16782_v20 }
 0x394   :  { %15560 = vmatpush3.bf16.msra.mxu1 %v16825_v21 }
 0x395   :  { %15888 = vmatprep.subr.bf16.mxu1 %v17844_v15 }
 0x396   :  { %8606 = vmatpush1.bf16.msra.mxu0 %v16780_v26 }
 0x397   :  { %8607 = vmatprep.subr.bf16.mxu0 %v16785_v22  ;;  %v16843_v22 = vld [vmem:[#allocation9 + $0xaf8] ss:$36 sps:$4 sm:$0xff]  }
 0x39a   :  { %8608 = vmatpush1.bf16.msra.mxu0 %v16783_v23  ;;  %v16848_v23 = vld [vmem:[#allocation9 + $0xb44] ss:$36 sps:$4 sm:$0xff]  }
 0x39b   :  { %8609 = vmatprep.subr.bf16.mxu0 %v16788_v24  ;;  %v16893_v24 = vld [vmem:[#allocation9 + $0xef0] ss:$36 sps:$4 sm:$0xff]  }
 0x39e   :  { %8610 = vmatpush1.bf16.msra.mxu0 %v16786_v48  ;;  %v16846_v48 = vld [vmem:[#allocation9 + $0xb40] ss:$36 sps:$4 sm:$0xff]  }
 0x39f   :  { %8611 = vmatprep.subr.bf16.mxu0 %v16793_v25  ;;  %v16851_v25 = vld [vmem:[#allocation9 + $0xb8c] ss:$36 sps:$4 sm:$0xff]  }
 0x3a2   :  { %8612 = vmatpush1.bf16.msra.mxu0 %v16791_v29  ;;  %v16897_v29 = vld [vmem:[#allocation9 + $0xf38] ss:$36 sps:$4 sm:$0xff]  }
 0x3a3   :  { %8613 = vmatprep.subr.bf16.mxu0 %v16798_v31  ;;  %v16849_v31 = vld [vmem:[#allocation9 + $0xb88] ss:$36 sps:$4 sm:$0xff]  }
 0x3a6   :  { %8614 = vmatpush1.bf16.msra.mxu0 %v16796_v32  ;;  %v16854_v32 = vld [vmem:[#allocation9 + $0xbd4] ss:$36 sps:$4 sm:$0xff]  }
 0x3a7   :  { %8615 = vmatprep.subr.bf16.mxu0 %v16803_v17  ;;  %v16901_v17 = vld [vmem:[#allocation9 + $0xf80] ss:$36 sps:$4 sm:$0xff]  }
 0x3a8   :  { %v15367_v37 = vpop.f32.mrb[68].mxu0 }
 0x3a9   :  { %v15368_v30 = vpop.f32.mrb[69].mxu0 }
 0x3aa   :  { %v15369_v39 = vadd.f32 %v15368_v30, %v15367_v37  ;;  %v15370_v41 = vpop.f32.mrb[70].mxu0  ;;  %8616 = vmatpush1.bf16.msra.mxu0 %v16801_v33  ;;  %v6381_v8 = vpop.f32.mrb[68].mxu1  ;;  %v16852_v33 = vld [vmem:[#allocation9 + $0xbd0] ss:$36 sps:$4 sm:$0xff]   ;;  %v16857_v37 = vld [vmem:[#allocation9 + $0xc1c] ss:$36 sps:$4 sm:$0xff]  }
 0x3ab   :  { %v15371_v44 = vpop.f32.mrb[71].mxu0  ;;  %v15866_v11 = vpop.f32.mrb[69].mxu1  ;;  %8617 = vmatprep.subr.bf16.mxu0 %v16808_v35  ;;  %v16907_v35 = vld [vmem:[#allocation9 + $0x490] ss:$36 sps:$4 sm:$0xff]   ;;  %v16860_v30 = vld [vmem:[#allocation9 + $0xc64] ss:$36 sps:$4 sm:$0xff]  }
 0x3ac   :  { %v6342_v40 = vadd.f32 %v15369_v39, %v6302_v18  ;;  %v6384_v45 = vpop.f32.mrb[70].mxu1  ;;  %v16858_v39 = vld [vmem:[#allocation9 + $0xc60] ss:$36 sps:$4 sm:$0xff]   ;;  %v16863_v41 = vld [vmem:[#allocation9 + $0xcac] ss:$36 sps:$4 sm:$0xff]  }
 0x3ad   :  { %v15867_v46 = vpop.f32.mrb[71].mxu1 }
 0x3ae   :  { %v6382_v7 = vadd.f32 %v6381_v8, %v6342_v40  ;;  %8618 = vmatpush1.bf16.msra.mxu0 %v16806_v38  ;;  %v16855_v38 = vld [vmem:[#allocation9 + $0xc18] ss:$36 sps:$4 sm:$0xff]   ;;  %v16861_v8 = vld [vmem:[#allocation9 + $0xca8] ss:$36 sps:$4 sm:$0xff]  }
 0x3af   :  { %8619 = vmatprep.subr.bf16.mxu0 %v16813_v43  ;;  %v16866_v43 = vld [vmem:[#allocation9 + $0xcf4] ss:$36 sps:$4 sm:$0xff]  }
 0x3b0   :  { %v6387_v50 = vmax.f32 %v6382_v7, 0.0  ;;  %v16864_v7 = vld [vmem:[#allocation9 + $0xcf0] ss:$36 sps:$4 sm:$0xff]  }
 0x3b2   :  { %v6388_v51 = vpack.c.bf16 %v6387_v50, %v6387_v50  ;;  %8620 = vmatpush1.bf16.msra.mxu0 %v16811_v47  ;;  %v16869_v50 = vld [vmem:[#allocation9 + $0xd3c] ss:$36 sps:$4 sm:$0xff]  }
 0x3b3   :  { %8630 = vmatprep.subr.bf16.mxu0 %v16818_v49 }
 0x3b4   :  { %6389 = vst [vmem:[#allocation3 + $0x14] sm:$0xf] %v6388_v51 }
 0x3b5   :  { %8622 = vmatmul.mubr.bf16.vlgmr.msra.gmra.mrb[84].mxu0 %v18397_v27  ;;  %v16836_v27 = vld [vmem:[#allocation9 + $0xa24] ss:$36 sps:$4 sm:$0xff]  }
 0x3b6   :  { %8631 = vmatpush1.bf16.msra.mxu0 %v16816_v52 }
 0x3b7   :  { %8632 = vmatprep.subr.bf16.mxu0 %v16823_v53 }
 0x3ba   :  { %8633 = vmatpush1.bf16.msra.mxu0 %v16821_v54 }
 0x3bb   :  { %8634 = vmatprep.subr.bf16.mxu0 %v16828_v34  ;;  %v7384_v56 = vld [vmem:[#allocation3 + $0x10] sm:$0xff] }
 0x3bc   :  { %v18405_v59 = vcombine.low %v7384_v56, %v7384_v56  ;;  %v18407_v60 = vcombine.high %v7384_v56, %v7384_v56  ;;  %v16872_v56 = vld [vmem:[#allocation9 + $0xd84] ss:$36 sps:$4 sm:$0xff]  }
 0x3be   :  { %8635 = vmatpush1.bf16.msra.mxu0 %v16826_v55  ;;  %8662 = vmatprep.mubr.bf16.mxu0 %v18407_v60  ;;  %v16867_v55 = vld [vmem:[#allocation9 + $0xd38] ss:$36 sps:$4 sm:$0xff]  }
 0x3bf   :  { %8824 = vmatprep.mubr.bf16.mxu1 %v18407_v60  ;;  %8636 = vmatprep.subr.bf16.mxu0 %v16833_v57  ;;  %v16870_v57 = vld [vmem:[#allocation9 + $0xd80] ss:$36 sps:$4 sm:$0xff]  }
 0x3c0   :  { %8825 = vmatmul.mubr.bf16.vlgmr.msra.gmra.mrb[92].mxu1 %v18405_v59 }
 0x3c1   :  { %15889 = vmatpush3.bf16.msra.mxu1 %v16873_v58  ;;  %15904 = vmatprep.mubr.msk.bf16.mxu1 %vm17845_vm0, %v17844_v15  ;;  %v16876_v58 = vld [vmem:[#allocation9 + $0xdcc] ss:$36 sps:$4 sm:$0xff]  }
 0x3c2   :  { %8637 = vmatpush1.bf16.msra.mxu0 %v16831_v28  ;;  %15890 = vmatprep.subr.bf16.mxu1 %v17844_v15  ;;  %v16874_v28 = vld [vmem:[#allocation9 + $0xdc8] ss:$36 sps:$4 sm:$0xff]  }
 0x3c3   :  { %8638 = vmatprep.subr.bf16.mxu0 %v16836_v27  ;;  %v17846_v27 = vmov 0  }
 0x3c5   :  { %15891 = vmatpush3.bf16.msra.mxu1 %v16877_v61  ;;  %v16880_v61 = vld [vmem:[#allocation9 + $0xe14] ss:$36 sps:$4 sm:$0xff]  }
 0x3c6   :  { %8639 = vmatpush1.bf16.msra.mxu0 %v16834_v62  ;;  %15892 = vmatprep.subr.bf16.mxu1 %v17844_v15  ;;  %v16878_v62 = vld [vmem:[#allocation9 + $0xe10] ss:$36 sps:$4 sm:$0xff]  }
 0x3c7   :  { %8640 = vmatprep.subr.bf16.mxu0 %v16839_v63  ;;  %v16884_v63 = vld [vmem:[#allocation9 + $0xe5c] ss:$36 sps:$4 sm:$0xff]  }
 0x3c8   :  { %v15398_v36 = vpop.f32.mrb[72].mxu0 }
 0x3c9   :  { %v15399_v4 = vpop.f32.mrb[73].mxu0  ;;  %15893 = vmatpush3.bf16.msra.mxu1 %v16881_v0  ;;  %v16882_v0 = vld [vmem:[#allocation9 + $0xe58] ss:$36 sps:$4 sm:$0xff]  }
 0x3ca   :  { %v15400_v6 = vadd.f32 %v15399_v4, %v15398_v36  ;;  %v15401_v9 = vpop.f32.mrb[74].mxu0  ;;  %v15420_v10 = vpop.f32.mrb[72].mxu1  ;;  %8641 = vmatpush1.bf16.msra.mxu0 %v16837_v42  ;;  %15894 = vmatprep.subr.bf16.mxu1 %v17844_v15  ;;  %v16888_v42 = vld [vmem:[#allocation9 + $0xea4] ss:$36 sps:$4 sm:$0xff]  }
 0x3cb   :  { %v15402_v12 = vpop.f32.mrb[75].mxu0  ;;  %v15421_v13 = vpop.f32.mrb[73].mxu1  ;;  %8642 = vmatprep.subr.bf16.mxu0 %v16842_v1  ;;  %v16886_v1 = vld [vmem:[#allocation9 + $0xea0] ss:$36 sps:$4 sm:$0xff]   ;;  %v16890_v36 = vld [vmem:[#allocation9 + $0xee8] ss:$36 sps:$4 sm:$0xff]  }
 0x3cc   :  { %v7174_v18 = vadd.f32 %v17602_v16, %v15400_v6  ;;  %v15422_v19 = vadd.f32 %v15421_v13, %v15420_v10  ;;  %v15423_v20 = vpop.f32.mrb[74].mxu1  ;;  %v16894_v12 = vld [vmem:[#allocation9 + $0xf30] ss:$36 sps:$4 sm:$0xff]   ;;  %v16900_v16 = vld [vmem:[#allocation9 + $0xf7c] ss:$36 sps:$4 sm:$0xff]  }
 0x3cd   :  { %v15424_v26 = vpop.f32.mrb[75].mxu1  ;;  %15895 = vmatpush3.bf16.msra.mxu1 %v16885_v2  ;;  %v16892_v2 = vld [vmem:[#allocation9 + $0xeec] ss:$36 sps:$4 sm:$0xff]  }
 0x3ce   :  { %v7214_v21 = vadd.f32 %v15422_v19, %v7174_v18  ;;  %8643 = vmatpush1.bf16.msra.mxu0 %v16840_v3  ;;  %15896 = vmatprep.subr.bf16.mxu1 %v17844_v15  ;;  %v16896_v3 = vld [vmem:[#allocation9 + $0xf34] ss:$36 sps:$4 sm:$0xff]  }
 0x3cf   :  { %8644 = vmatprep.subr.bf16.mxu0 %v16845_v5 }
 0x3d1   :  { %15897 = vmatpush3.bf16.msra.mxu1 %v16889_v14 }
 0x3d2   :  { %8645 = vmatpush1.bf16.msra.mxu0 %v16843_v22  ;;  %15898 = vmatprep.subr.bf16.mxu1 %v17844_v15  ;;  %v16904_v22 = vld [vmem:[#allocation9 + $0x10] ss:$36 sps:$4 sm:$0xff]  }
 0x3d3   :  { %8646 = vmatprep.subr.bf16.mxu0 %v16848_v23 }
 0x3d5   :  { %15899 = vmatpush3.bf16.msra.mxu1 %v16893_v24 }
 0x3d6   :  { %8647 = vmatpush1.bf16.msra.mxu0 %v16846_v48  ;;  %15900 = vmatprep.subr.bf16.mxu1 %v17844_v15  ;;  %v16902_v48 = vld [vmem:[#allocation9 + $0xc] ss:$36 sps:$4 sm:$0xff]  }
 0x3d7   :  { %8648 = vmatprep.subr.bf16.mxu0 %v16851_v25  ;;  %v16905_v25 = vld [vmem:[#allocation9 + $0x48c] ss:$36 sps:$4 sm:$0xff]  }
 0x3d9   :  { %15901 = vmatpush3.bf16.msra.mxu1 %v16897_v29  ;;  %v18423_v29 = vld [vmem:[#allocation3] sm:$0xff] }
 0x3da   :  { %8649 = vmatpush1.bf16.msra.mxu0 %v16849_v31  ;;  %15902 = vmatprep.subr.bf16.mxu1 %v17844_v15  ;;  %v18425_v31 = vld [vmem:[#allocation3 + $0x8] sm:$0xff] }
 0x3db   :  { %8650 = vmatprep.subr.bf16.mxu0 %v16854_v32  ;;  %v16915_v32 = vld [vmem:[#allocation9 + $0x58] ss:$36 sps:$4 sm:$0xff]  }
 0x3dd   :  { %15903 = vmatpush3.bf16.msra.mxu1 %v16901_v17  ;;  %v16918_v17 = vld [vmem:[#allocation9 + $0x4d8] ss:$36 sps:$4 sm:$0xff]  }
 0x3de   :  { %8651 = vmatpush1.bf16.msra.mxu0 %v16852_v33  ;;  %10097 = vmatprep.subr.bf16.mxu1 %v16907_v35  ;;  %v18429_v35 = vcombine.high %v18423_v29, %v18423_v29 }
 0x3df   :  { %8652 = vmatprep.subr.bf16.mxu0 %v16857_v37  ;;  %v18433_v37 = vcombine.high %v18425_v31, %v18425_v31 }
 0x3e2   :  { %8653 = vmatpush1.bf16.msra.mxu0 %v16855_v38  ;;  %v16913_v38 = vld [vmem:[#allocation9 + $0x54] ss:$36 sps:$4 sm:$0xff]  }
 0x3e3   :  { %8654 = vmatprep.subr.bf16.mxu0 %v16860_v30  ;;  %v16916_v30 = vld [vmem:[#allocation9 + $0x4d4] ss:$36 sps:$4 sm:$0xff]  }
 0x3e6   :  { %8655 = vmatpush1.bf16.msra.mxu0 %v16858_v39  ;;  %v16921_v39 = vld [vmem:[#allocation9 + $0xa0] ss:$36 sps:$4 sm:$0xff]  }
 0x3e7   :  { %8656 = vmatprep.subr.bf16.mxu0 %v16863_v41  ;;  %v16924_v41 = vld [vmem:[#allocation9 + $0x520] ss:$36 sps:$4 sm:$0xff]  }
 0x3e8   :  { %v15442_v44 = vpop.f32.mrb[76].mxu0 }
 0x3e9   :  { %v15443_v11 = vpop.f32.mrb[77].mxu0 }
 0x3ea   :  { %v15444_v40 = vadd.f32 %v15443_v11, %v15442_v44  ;;  %v15445_v45 = vpop.f32.mrb[78].mxu0  ;;  %v15464_v46 = vpop.f32.mrb[76].mxu1  ;;  %8657 = vmatpush1.bf16.msra.mxu0 %v16861_v8  ;;  %v16919_v8 = vld [vmem:[#allocation9 + $0x9c] ss:$36 sps:$4 sm:$0xff]   ;;  %v16927_v44 = vld [vmem:[#allocation9 + $0xe8] ss:$36 sps:$4 sm:$0xff]  }
 0x3eb   :  { %v15446_v47 = vpop.f32.mrb[79].mxu0  ;;  %v15465_v49 = vpop.f32.mrb[77].mxu1  ;;  %8658 = vmatprep.subr.bf16.mxu0 %v16866_v43  ;;  %v16922_v43 = vld [vmem:[#allocation9 + $0x51c] ss:$36 sps:$4 sm:$0xff]   ;;  %v16930_v11 = vld [vmem:[#allocation9 + $0x568] ss:$36 sps:$4 sm:$0xff]  }
 0x3ec   :  { %v7254_v51 = vadd.f32 %v15444_v40, %v7214_v21  ;;  %v15466_v52 = vadd.f32 %v15465_v49, %v15464_v46  ;;  %v15467_v53 = vpop.f32.mrb[78].mxu1  ;;  %v16898_v21 = vld [vmem:[#allocation9 + $0xf78] ss:$36 sps:$4 sm:$0xff]   ;;  %v16925_v40 = vld [vmem:[#allocation9 + $0xe4] ss:$36 sps:$4 sm:$0xff]  }
 0x3ed   :  { %v15468_v54 = vpop.f32.mrb[79].mxu1  ;;  %v16928_v45 = vld [vmem:[#allocation9 + $0x564] ss:$36 sps:$4 sm:$0xff]   ;;  %v16933_v46 = vld [vmem:[#allocation9 + $0x130] ss:$36 sps:$4 sm:$0xff]  }
 0x3ee   :  { %v7294_v34 = vadd.f32 %v15466_v52, %v7254_v51  ;;  %8659 = vmatpush1.bf16.msra.mxu0 %v16864_v7  ;;  %v16936_v7 = vld [vmem:[#allocation9 + $0x5b0] ss:$36 sps:$4 sm:$0xff]   ;;  %v16939_v52 = vld [vmem:[#allocation9 + $0x178] ss:$36 sps:$4 sm:$0xff]  }
 0x3ef   :  { %8660 = vmatprep.subr.bf16.mxu0 %v16869_v50  ;;  %v16931_v47 = vld [vmem:[#allocation9 + $0x12c] ss:$36 sps:$4 sm:$0xff]   ;;  %v16942_v53 = vld [vmem:[#allocation9 + $0x5f8] ss:$36 sps:$4 sm:$0xff]  }
 0x3f0   :  { %v16934_v50 = vld [vmem:[#allocation9 + $0x5ac] ss:$36 sps:$4 sm:$0xff]  }
 0x3f2   :  { %8661 = vmatpush1.bf16.msra.mxu0 %v16867_v55  ;;  %v16937_v55 = vld [vmem:[#allocation9 + $0x174] ss:$36 sps:$4 sm:$0xff]  }
 0x3f3   :  { %8671 = vmatprep.subr.bf16.mxu0 %v16872_v56 }
 0x3f5   :  { %8663 = vmatmul.mubr.bf16.vlgmr.msra.gmra.mrb[84].mxu0 %v18405_v59 }
 0x3f6   :  { %8672 = vmatpush1.bf16.msra.mxu0 %v16870_v57  ;;  %8703 = vmatprep.mubr.bf16.mxu0 %v17846_v27  ;;  %v16940_v57 = vld [vmem:[#allocation9 + $0x5f4] ss:$36 sps:$4 sm:$0xff]  }
 0x3f7   :  { %8673 = vmatprep.subr.bf16.mxu0 %v16876_v58  ;;  %v16945_v58 = vld [vmem:[#allocation9 + $0x1c0] ss:$36 sps:$4 sm:$0xff]  }
 0x3fa   :  { %8674 = vmatpush1.bf16.msra.mxu0 %v16874_v28  ;;  %v16948_v28 = vld [vmem:[#allocation9 + $0x640] ss:$36 sps:$4 sm:$0xff]  }
 0x3fb   :  { %8675 = vmatprep.subr.bf16.mxu0 %v16880_v61  ;;  %v16943_v61 = vld [vmem:[#allocation9 + $0x1bc] ss:$36 sps:$4 sm:$0xff]  }
 0x3fe   :  { %8676 = vmatpush1.bf16.msra.mxu0 %v16878_v62  ;;  %v16946_v62 = vld [vmem:[#allocation9 + $0x63c] ss:$36 sps:$4 sm:$0xff]  }
 0x3ff   :  { %8677 = vmatprep.subr.bf16.mxu0 %v16884_v63  ;;  %v16951_v63 = vld [vmem:[#allocation9 + $0x208] ss:$36 sps:$4 sm:$0xff]  }
 0x402   :  { %8678 = vmatpush1.bf16.msra.mxu0 %v16882_v0  ;;  %v16954_v0 = vld [vmem:[#allocation9 + $0x688] ss:$36 sps:$4 sm:$0xff]  }
 0x403   :  { %8679 = vmatprep.subr.bf16.mxu0 %v16888_v42  ;;  %v16949_v42 = vld [vmem:[#allocation9 + $0x204] ss:$36 sps:$4 sm:$0xff]  }
 0x406   :  { %8680 = vmatpush1.bf16.msra.mxu0 %v16886_v1  ;;  %v16952_v1 = vld [vmem:[#allocation9 + $0x684] ss:$36 sps:$4 sm:$0xff]  }
 0x407   :  { %8681 = vmatprep.subr.bf16.mxu0 %v16892_v2  ;;  %v16957_v2 = vld [vmem:[#allocation9 + $0x250] ss:$36 sps:$4 sm:$0xff]  }
 0x408   :  { %v15486_v4 = vpop.f32.mrb[80].mxu0 }
 0x409   :  { %v15487_v5 = vpop.f32.mrb[81].mxu0 }
 0x40a   :  { %v15488_v6 = vadd.f32 %v15487_v5, %v15486_v4  ;;  %v15489_v9 = vpop.f32.mrb[82].mxu0  ;;  %v7373_v10 = vpop.f32.mrb[80].mxu1  ;;  %8682 = vmatpush1.bf16.msra.mxu0 %v16890_v36  ;;  %v16960_v36 = vld [vmem:[#allocation9 + $0x6d0] ss:$36 sps:$4 sm:$0xff]   ;;  %v16963_v5 = vld [vmem:[#allocation9 + $0x298] ss:$36 sps:$4 sm:$0xff]  }
 0x40b   :  { %v15490_v13 = vpop.f32.mrb[83].mxu0  ;;  %v15886_v14 = vpop.f32.mrb[81].mxu1  ;;  %8683 = vmatprep.subr.bf16.mxu0 %v16896_v3  ;;  %v16955_v3 = vld [vmem:[#allocation9 + $0x24c] ss:$36 sps:$4 sm:$0xff]   ;;  %v16966_v9 = vld [vmem:[#allocation9 + $0x718] ss:$36 sps:$4 sm:$0xff]  }
 0x40c   :  { %v7334_v18 = vadd.f32 %v15488_v6, %v7294_v34  ;;  %v7376_v19 = vpop.f32.mrb[82].mxu1  ;;  %v16958_v4 = vld [vmem:[#allocation9 + $0x6cc] ss:$36 sps:$4 sm:$0xff]   ;;  %v7612_v6 = vlaneseq  ;;  %v16969_v13 = vld [vmem:[#allocation9 + $0x2e0] ss:$36 sps:$4 sm:$0xff]  }
 0x40d   :  { %v15887_v20 = vpop.f32.mrb[83].mxu1  ;;  %v16970_v19 = vld [vmem:[#allocation9 + $0x75c] ss:$36 sps:$4 sm:$0xff]  }
 0x40e   :  { %v7374_v26 = vadd.f32 %v7373_v10, %v7334_v18  ;;  %8684 = vmatpush1.bf16.msra.mxu0 %v16894_v12  ;;  %v16961_v10 = vld [vmem:[#allocation9 + $0x294] ss:$36 sps:$4 sm:$0xff]   ;;  %v18439_v14 = vshrl.u32 %v7612_v6, 7  ;;  %v16967_v18 = vld [vmem:[#allocation9 + $0x2dc] ss:$36 sps:$4 sm:$0xff]  }
 0x40f   :  { %8685 = vmatprep.subr.bf16.mxu0 %v16900_v16  ;;  %v16964_v12 = vld [vmem:[#allocation9 + $0x714] ss:$36 sps:$4 sm:$0xff]   ;;  %v16972_v16 = vld [vmem:[#allocation9 + $0x760] ss:$36 sps:$4 sm:$0xff]   ;;  %v16975_v20 = vld [vmem:[#allocation9 + $0x328] ss:$36 sps:$4 sm:$0xff]  }
 0x410   :  { %v7379_v23 = vmax.f32 %v7374_v26, 0.0  ;;  %v7610_v26 = vld [vmem:[#allocation10] sm:$0x7]  ;;  %v17026_v6 = vld [vmem:[#allocation9 + $0x374] ss:$36 sps:$4 sm:$0xff]  }
 0x412   :  { %v7380_v24 = vpack.c.bf16 %v7379_v23, %v7379_v23  ;;  %8686 = vmatpush1.bf16.msra.mxu0 %v16898_v21  ;;  %v16978_v21 = vld [vmem:[#allocation9 + $0x7a8] ss:$36 sps:$4 sm:$0xff]  }
 0x413   :  { %10056 = vmatprep.subr.bf16.mxu0 %v16904_v22  ;;  %v18442_v22 = vsub.s32 2, %v18439_v14  ;;  %v16973_v23 = vld [vmem:[#allocation9 + $0x324] ss:$36 sps:$4 sm:$0xff]  }
 0x414   :  { %7381 = vst [vmem:[#allocation3 + $0x18] sm:$0xf] %v7380_v24  ;;  %v16976_v24 = vld [vmem:[#allocation9 + $0x7a4] ss:$36 sps:$4 sm:$0xff]  }
 0x41b   :  { %v16908_v33 = vld [vmem:[#allocation3 + $0x18] ss:$0 sps:$4 sm:$0xff]  }
 0x41c   :  { %8704 = vmatmul.mubr.bf16.vlgmr.msra.gmra.mrb[84].mxu0 %v16908_v33  ;;  %15905 = vmatmul.mubr.bf16.vlgmr.msra.gmra.mrb[96].mxu1 %v16908_v33  ;;  %v16982_v33 = vld [vmem:[#allocation9 + $0x7ec] ss:$36 sps:$4 sm:$0xff]  }
 0x41d   :  { %10057 = vmatpush1.bf16.msra.mxu0 %v16902_v48  ;;  %10098 = vmatpush1.bf16.msra.mxu1 %v16905_v25  ;;  %v16981_v48 = vld [vmem:[#allocation9 + $0x370] ss:$36 sps:$4 sm:$0xff]  }
 0x41e   :  { %10088 = vmatprep.mubr.bf16.mxu0 %v18429_v35  ;;  %10129 = vmatprep.mubr.bf16.mxu1 %v18433_v37  ;;  %v16984_v25 = vld [vmem:[#allocation9 + $0x7f0] ss:$36 sps:$4 sm:$0xff]  }
 0x41f   :  { %10058 = vmatprep.subr.bf16.mxu0 %v16915_v32  ;;  %10099 = vmatprep.subr.bf16.mxu1 %v16918_v17  ;;  %v7623_v32 = vrot.slane %v7610_v26, %v18442_v22  ;;  %v16979_v17 = vld [vmem:[#allocation9 + $0x36c] ss:$36 sps:$4 sm:$0xff]   ;;  %v17037_v26 = vld [vmem:[#allocation9 + $0x1c4] ss:$36 sps:$4 sm:$0xff]  }
 0x421   :  { %10059 = vmatpush1.bf16.msra.mxu0 %v16913_v38  ;;  %10100 = vmatpush1.bf16.msra.mxu1 %v16916_v30  ;;  %v16987_v38 = vld [vmem:[#allocation9 + $0x3b8] ss:$36 sps:$4 sm:$0xff]  }
 0x422   :  { %10060 = vmatprep.subr.bf16.mxu0 %v16921_v39  ;;  %10101 = vmatprep.subr.bf16.mxu1 %v16924_v41  ;;  %v16990_v41 = vld [vmem:[#allocation9 + $0x838] ss:$36 sps:$4 sm:$0xff]  }
 0x425   :  { %10061 = vmatpush1.bf16.msra.mxu0 %v16919_v8  ;;  %10102 = vmatpush1.bf16.msra.mxu1 %v16922_v43 }
 0x426   :  { %10062 = vmatprep.subr.bf16.mxu0 %v16927_v44  ;;  %10103 = vmatprep.subr.bf16.mxu1 %v16930_v11  ;;  %v16985_v11 = vld [vmem:[#allocation9 + $0x3b4] ss:$36 sps:$4 sm:$0xff]  }
 0x429   :  { %10063 = vmatpush1.bf16.msra.mxu0 %v16925_v40  ;;  %10104 = vmatpush1.bf16.msra.mxu1 %v16928_v45  ;;  %v16988_v40 = vld [vmem:[#allocation9 + $0x834] ss:$36 sps:$4 sm:$0xff]  }
 0x42a   :  { %v15517_v49 = vpop.f32.mrb[84].mxu1  ;;  %10064 = vmatprep.subr.bf16.mxu0 %v16933_v46  ;;  %10105 = vmatprep.subr.bf16.mxu1 %v16936_v7  ;;  %v16993_v46 = vld [vmem:[#allocation9 + $0x400] ss:$36 sps:$4 sm:$0xff]  }
 0x42b   :  { %v15518_v51 = vpop.f32.mrb[85].mxu1 }
 0x42c   :  { %v18437_v54 = vadd.f32 %v15518_v51, %v15517_v49  ;;  %v15520_v34 = vpop.f32.mrb[86].mxu1  ;;  %v16991_v49 = vld [vmem:[#allocation9 + $0x3fc] ss:$36 sps:$4 sm:$0xff]   ;;  %v16999_v51 = vld [vmem:[#allocation9 + $0x448] ss:$36 sps:$4 sm:$0xff]  }
 0x42d   :  { %v15521_v56 = vpop.f32.mrb[87].mxu1  ;;  %10065 = vmatpush1.bf16.msra.mxu0 %v16931_v47  ;;  %10106 = vmatpush1.bf16.msra.mxu1 %v16934_v50  ;;  %v16996_v47 = vld [vmem:[#allocation9 + $0x880] ss:$36 sps:$4 sm:$0xff]   ;;  %v17005_v34 = vld [vmem:[#allocation9 + $0x910] ss:$36 sps:$4 sm:$0xff]  }
 0x42e   :  { %10066 = vmatprep.subr.bf16.mxu0 %v16939_v52  ;;  %10107 = vmatprep.subr.bf16.mxu1 %v16942_v53  ;;  %v8747_v8 = vadd.f32 %v18437_v54, %v7623_v32  ;;  %v16994_v50 = vld [vmem:[#allocation9 + $0x87c] ss:$36 sps:$4 sm:$0xff]   ;;  %v17002_v52 = vld [vmem:[#allocation9 + $0x8c8] ss:$36 sps:$4 sm:$0xff]   ;;  %v17046_v32 = vld [vmem:[#allocation9 + $0x6d4] ss:$36 sps:$4 sm:$0xff]  }
 0x42f   :  { %v16997_v53 = vld [vmem:[#allocation9 + $0x444] ss:$36 sps:$4 sm:$0xff]   ;;  %v17003_v56 = vld [vmem:[#allocation9 + $0x90c] ss:$36 sps:$4 sm:$0xff]  }
 0x430   :  { %v17000_v54 = vld [vmem:[#allocation9 + $0x8c4] ss:$36 sps:$4 sm:$0xff]  }
 0x431   :  { %10067 = vmatpush1.bf16.msra.mxu0 %v16937_v55  ;;  %10108 = vmatpush1.bf16.msra.mxu1 %v16940_v57  ;;  %v17006_v55 = vld [vmem:[#allocation9 + $0x254] ss:$36 sps:$4 sm:$0xff]  }
 0x432   :  { %10068 = vmatprep.subr.bf16.mxu0 %v16945_v58  ;;  %10109 = vmatprep.subr.bf16.mxu1 %v16948_v28  ;;  %v17007_v57 = vld [vmem:[#allocation9 + $0x14] ss:$36 sps:$4 sm:$0xff]   ;;  %v18450_v28 = vcombine.low %v18423_v29, %v18423_v29  ;;  %v17015_v29 = vld [vmem:[#allocation9 + $0x9a0] ss:$36 sps:$4 sm:$0xff]  }
 0x433   :  { %v17010_v58 = vld [vmem:[#allocation9 + $0x958] ss:$36 sps:$4 sm:$0xff]  }
 0x435   :  { %10069 = vmatpush1.bf16.msra.mxu0 %v16943_v61  ;;  %10110 = vmatpush1.bf16.msra.mxu1 %v16946_v62  ;;  %v18454_v61 = vcombine.low %v18425_v31, %v18425_v31  ;;  %v17011_v62 = vld [vmem:[#allocation9 + $0x29c] ss:$36 sps:$4 sm:$0xff]  }
 0x436   :  { %10070 = vmatprep.subr.bf16.mxu0 %v16951_v63  ;;  %10111 = vmatprep.subr.bf16.mxu1 %v16954_v0  ;;  %v17008_v63 = vld [vmem:[#allocation9 + $0x954] ss:$36 sps:$4 sm:$0xff]   ;;  %v17012_v0 = vld [vmem:[#allocation9 + $0x5c] ss:$36 sps:$4 sm:$0xff]  }
 0x437   :  { %v17013_v31 = vld [vmem:[#allocation9 + $0x99c] ss:$36 sps:$4 sm:$0xff]  }
 0x439   :  { %10071 = vmatpush1.bf16.msra.mxu0 %v16949_v42  ;;  %10112 = vmatpush1.bf16.msra.mxu1 %v16952_v1  ;;  %v17016_v42 = vld [vmem:[#allocation9 + $0x2e4] ss:$36 sps:$4 sm:$0xff]  }
 0x43a   :  { %10072 = vmatprep.subr.bf16.mxu0 %v16957_v2  ;;  %10113 = vmatprep.subr.bf16.mxu1 %v16960_v36  ;;  %v17017_v1 = vld [vmem:[#allocation9 + $0xa4] ss:$36 sps:$4 sm:$0xff]  }
 0x43b   :  { %v17020_v2 = vld [vmem:[#allocation9 + $0x9e8] ss:$36 sps:$4 sm:$0xff]  }
 0x43c   :  { %v17018_v36 = vld [vmem:[#allocation9 + $0x9e4] ss:$36 sps:$4 sm:$0xff]  }
 0x43d   :  { %10073 = vmatpush1.bf16.msra.mxu0 %v16955_v3  ;;  %10114 = vmatpush1.bf16.msra.mxu1 %v16958_v4  ;;  %v17021_v3 = vld [vmem:[#allocation9 + $0x32c] ss:$36 sps:$4 sm:$0xff]  }
 0x43e   :  { %10074 = vmatprep.subr.bf16.mxu0 %v16963_v5  ;;  %10115 = vmatprep.subr.bf16.mxu1 %v16966_v9  ;;  %v17022_v4 = vld [vmem:[#allocation9 + $0xec] ss:$36 sps:$4 sm:$0xff]   ;;  %v17027_v9 = vld [vmem:[#allocation9 + $0x134] ss:$36 sps:$4 sm:$0xff]  }
 0x43f   :  { %v17025_v5 = vld [vmem:[#allocation9 + $0xa30] ss:$36 sps:$4 sm:$0xff]  }
 0x441   :  { %10075 = vmatpush1.bf16.msra.mxu0 %v16961_v10  ;;  %10116 = vmatpush1.bf16.msra.mxu1 %v16964_v12  ;;  %v17030_v10 = vld [vmem:[#allocation9 + $0xa78] ss:$36 sps:$4 sm:$0xff]  }
 0x442   :  { %10076 = vmatprep.subr.bf16.mxu0 %v16969_v13  ;;  %10117 = vmatprep.subr.bf16.mxu1 %v16972_v16  ;;  %v17028_v12 = vld [vmem:[#allocation9 + $0xa74] ss:$36 sps:$4 sm:$0xff]   ;;  %v17031_v13 = vld [vmem:[#allocation9 + $0x3bc] ss:$36 sps:$4 sm:$0xff]  }
 0x443   :  { %v17032_v16 = vld [vmem:[#allocation9 + $0x17c] ss:$36 sps:$4 sm:$0xff]  }
 0x445   :  { %10077 = vmatpush1.bf16.msra.mxu0 %v16967_v18  ;;  %10118 = vmatpush1.bf16.msra.mxu1 %v16970_v19  ;;  %v17035_v18 = vld [vmem:[#allocation9 + $0xac0] ss:$36 sps:$4 sm:$0xff]  }
 0x446   :  { %10078 = vmatprep.subr.bf16.mxu0 %v16975_v20  ;;  %10119 = vmatprep.subr.bf16.mxu1 %v16978_v21  ;;  %v17036_v19 = vld [vmem:[#allocation9 + $0x404] ss:$36 sps:$4 sm:$0xff]   ;;  %v17033_v20 = vld [vmem:[#allocation9 + $0xabc] ss:$36 sps:$4 sm:$0xff]  }
 0x447   :  { %v17040_v21 = vld [vmem:[#allocation9 + $0xb08] ss:$36 sps:$4 sm:$0xff]  }
 0x449   :  { %10079 = vmatpush1.bf16.msra.mxu0 %v16973_v23  ;;  %10120 = vmatpush1.bf16.msra.mxu1 %v16976_v24  ;;  %v17041_v23 = vld [vmem:[#allocation9 + $0x44c] ss:$36 sps:$4 sm:$0xff]   ;;  %v17038_v24 = vld [vmem:[#allocation9 + $0xb04] ss:$36 sps:$4 sm:$0xff]  }
 0x44a   :  { %v15539_v30 = vpop.f32.mrb[88].mxu1  ;;  %10080 = vmatprep.subr.bf16.mxu0 %v16981_v48  ;;  %10121 = vmatprep.subr.bf16.mxu1 %v16984_v25  ;;  %v17042_v48 = vld [vmem:[#allocation9 + $0x20c] ss:$36 sps:$4 sm:$0xff]  }
 0x44b   :  { %v15540_v39 = vpop.f32.mrb[89].mxu1  ;;  %v17045_v25 = vld [vmem:[#allocation9 + $0xb50] ss:$36 sps:$4 sm:$0xff]  }
 0x44c   :  { %v15541_v43 = vadd.f32 %v15540_v39, %v15539_v30  ;;  %v15542_v44 = vpop.f32.mrb[90].mxu1  ;;  %v17051_v30 = vld [vmem:[#allocation9 + $0x71c] ss:$36 sps:$4 sm:$0xff]   ;;  %v17048_v39 = vld [vmem:[#allocation9 + $0xb94] ss:$36 sps:$4 sm:$0xff]  }
 0x44d   :  { %v15543_v45 = vpop.f32.mrb[91].mxu1  ;;  %10081 = vmatpush1.bf16.msra.mxu0 %v16979_v17  ;;  %10122 = vmatpush1.bf16.msra.mxu1 %v16982_v33  ;;  %v17043_v17 = vld [vmem:[#allocation9 + $0xb4c] ss:$36 sps:$4 sm:$0xff]   ;;  %v17047_v33 = vld [vmem:[#allocation9 + $0x494] ss:$36 sps:$4 sm:$0xff]  }
 0x44e   :  { %v18446_v7 = vadd.f32 %v15541_v43, %v8747_v8  ;;  %10082 = vmatprep.subr.bf16.mxu0 %v16987_v38  ;;  %10123 = vmatprep.subr.bf16.mxu1 %v16990_v41  ;;  %v17050_v38 = vld [vmem:[#allocation9 + $0xb98] ss:$36 sps:$4 sm:$0xff]   ;;  %v17055_v8 = vld [vmem:[#allocation9 + $0xbe0] ss:$36 sps:$4 sm:$0xff]  }
 0x44f   :  { %v17052_v41 = vld [vmem:[#allocation9 + $0x4dc] ss:$36 sps:$4 sm:$0xff]   ;;  %v17056_v44 = vld [vmem:[#allocation9 + $0x764] ss:$36 sps:$4 sm:$0xff]  }
 0x450   :  { %v17053_v43 = vld [vmem:[#allocation9 + $0xbdc] ss:$36 sps:$4 sm:$0xff]   ;;  %v17058_v45 = vld [vmem:[#allocation9 + $0xc24] ss:$36 sps:$4 sm:$0xff]  }
 0x451   :  { %10083 = vmatpush1.bf16.msra.mxu0 %v16985_v11  ;;  %10124 = vmatpush1.bf16.msra.mxu1 %v16988_v40  ;;  %v17057_v11 = vld [vmem:[#allocation9 + $0x524] ss:$36 sps:$4 sm:$0xff]  }
 0x452   :  { %10084 = vmatprep.subr.bf16.mxu0 %v16993_v46  ;;  %10125 = vmatprep.subr.bf16.mxu1 %v16996_v47  ;;  %v17060_v40 = vld [vmem:[#allocation9 + $0xc28] ss:$36 sps:$4 sm:$0xff]  }
 0x453   :  { %v17061_v46 = vld [vmem:[#allocation9 + $0x7ac] ss:$36 sps:$4 sm:$0xff]  }
 0x454   :  { %v17062_v47 = vld [vmem:[#allocation9 + $0x56c] ss:$36 sps:$4 sm:$0xff]  }
 0x455   :  { %10085 = vmatpush1.bf16.msra.mxu0 %v16991_v49  ;;  %10126 = vmatpush1.bf16.msra.mxu1 %v16994_v50  ;;  %v17065_v49 = vld [vmem:[#allocation9 + $0xc70] ss:$36 sps:$4 sm:$0xff]  }
 0x456   :  { %10086 = vmatprep.subr.bf16.mxu0 %v16999_v51  ;;  %10127 = vmatprep.subr.bf16.mxu1 %v17002_v52  ;;  %v17066_v50 = vld [vmem:[#allocation9 + $0x7f4] ss:$36 sps:$4 sm:$0xff]  }
 0x457   :  { %v17067_v51 = vld [vmem:[#allocation9 + $0x5b4] ss:$36 sps:$4 sm:$0xff]  }
 0x458   :  { %v17070_v52 = vld [vmem:[#allocation9 + $0xcb8] ss:$36 sps:$4 sm:$0xff]  }
 0x459   :  { %10087 = vmatpush1.bf16.msra.mxu0 %v16997_v53  ;;  %10128 = vmatpush1.bf16.msra.mxu1 %v17000_v54  ;;  %v17068_v53 = vld [vmem:[#allocation9 + $0xcb4] ss:$36 sps:$4 sm:$0xff]   ;;  %v17071_v54 = vld [vmem:[#allocation9 + $0x83c] ss:$36 sps:$4 sm:$0xff]  }
 0x45a   :  { %10138 = vmatprep.subr.bf16.mxu1 %v17005_v34  ;;  %15576 = vmatprep.subr.bf16.mxu0 %v17006_v55  ;;  %v17072_v34 = vld [vmem:[#allocation9 + $0x5fc] ss:$36 sps:$4 sm:$0xff]  }
 0x45b   :  { %v17075_v55 = vld [vmem:[#allocation9 + $0xd00] ss:$36 sps:$4 sm:$0xff]  }
 0x45c   :  { %10089 = vmatmul.mubr.bf16.vlgmr.msra.gmra.mrb[88].mxu0 %v18450_v28  ;;  %10130 = vmatmul.mubr.bf16.vlgmr.msra.gmra.mrb[100].mxu1 %v18454_v61 }
 0x45d   :  { %10139 = vmatpush1.bf16.msra.mxu1 %v17003_v56  ;;  %10170 = vmatprep.mubr.bf16.mxu1 %v18407_v60  ;;  %v17073_v56 = vld [vmem:[#allocation9 + $0xcfc] ss:$36 sps:$4 sm:$0xff]  }
 0x45e   :  { %15577 = vmatpush3.bf16.msra.mxu0 %v17007_v57  ;;  %10252 = vmatprep.mubr.bf16.mxu0 %v18429_v35  ;;  %v17023_v35 = vld [vmem:[#allocation9 + $0xa2c] ss:$36 sps:$4 sm:$0xff]   ;;  %v17076_v57 = vld [vmem:[#allocation9 + $0x884] ss:$36 sps:$4 sm:$0xff]  }
 0x45f   :  { %10140 = vmatprep.subr.bf16.mxu1 %v17010_v58  ;;  %15578 = vmatprep.subr.bf16.mxu0 %v17011_v62  ;;  %v17080_v62 = vld [vmem:[#allocation9 + $0xd48] ss:$36 sps:$4 sm:$0xff]  }
 0x461   :  { %10141 = vmatpush1.bf16.msra.mxu1 %v17008_v63 }
 0x462   :  { %15579 = vmatpush3.bf16.msra.mxu0 %v17012_v0  ;;  %10142 = vmatprep.subr.bf16.mxu1 %v17015_v29  ;;  %v17078_v0 = vld [vmem:[#allocation9 + $0xd44] ss:$36 sps:$4 sm:$0xff]   ;;  %v17081_v29 = vld [vmem:[#allocation9 + $0x8cc] ss:$36 sps:$4 sm:$0xff]  }
 0x463   :  { %15580 = vmatprep.subr.bf16.mxu0 %v17016_v42 }
 0x465   :  { %10143 = vmatpush1.bf16.msra.mxu1 %v17013_v31 }
 0x466   :  { %15581 = vmatpush3.bf16.msra.mxu0 %v17017_v1  ;;  %10144 = vmatprep.subr.bf16.mxu1 %v17020_v2  ;;  %v17082_v2 = vld [vmem:[#allocation9 + $0x68c] ss:$36 sps:$4 sm:$0xff]  }
 0x467   :  { %15582 = vmatprep.subr.bf16.mxu0 %v17021_v3 }
 0x469   :  { %10145 = vmatpush1.bf16.msra.mxu1 %v17018_v36  ;;  %v17085_v36 = vld [vmem:[#allocation9 + $0xd90] ss:$36 sps:$4 sm:$0xff]  }
 0x46a   :  { %15583 = vmatpush3.bf16.msra.mxu0 %v17022_v4  ;;  %10146 = vmatprep.subr.bf16.mxu1 %v17025_v5  ;;  %v17083_v4 = vld [vmem:[#allocation9 + $0xd8c] ss:$36 sps:$4 sm:$0xff]   ;;  %v17086_v5 = vld [vmem:[#allocation9 + $0xb54] ss:$36 sps:$4 sm:$0xff]  }
 0x46b   :  { %15584 = vmatprep.subr.bf16.mxu0 %v17026_v6  ;;  %v17090_v6 = vld [vmem:[#allocation9 + $0xdd8] ss:$36 sps:$4 sm:$0xff]  }
 0x46d   :  { %10147 = vmatpush1.bf16.msra.mxu1 %v17023_v35  ;;  %v17087_v35 = vld [vmem:[#allocation9 + $0x914] ss:$36 sps:$4 sm:$0xff]  }
 0x46e   :  { %15585 = vmatpush3.bf16.msra.mxu0 %v17027_v9  ;;  %10148 = vmatprep.subr.bf16.mxu1 %v17030_v10  ;;  %v17091_v9 = vld [vmem:[#allocation9 + $0xb9c] ss:$36 sps:$4 sm:$0xff]   ;;  %v17088_v10 = vld [vmem:[#allocation9 + $0xdd4] ss:$36 sps:$4 sm:$0xff]  }
 0x46f   :  { %15586 = vmatprep.subr.bf16.mxu0 %v17031_v13  ;;  %v17096_v13 = vld [vmem:[#allocation9 + $0xbe4] ss:$36 sps:$4 sm:$0xff]  }
 0x471   :  { %10149 = vmatpush1.bf16.msra.mxu1 %v17028_v12  ;;  %v17095_v12 = vld [vmem:[#allocation9 + $0xe20] ss:$36 sps:$4 sm:$0xff]  }
 0x472   :  { %15587 = vmatpush3.bf16.msra.mxu0 %v17032_v16  ;;  %10150 = vmatprep.subr.bf16.mxu1 %v17035_v18  ;;  %v17093_v16 = vld [vmem:[#allocation9 + $0xe1c] ss:$36 sps:$4 sm:$0xff]   ;;  %v17097_v18 = vld [vmem:[#allocation9 + $0x9a4] ss:$36 sps:$4 sm:$0xff]  }
 0x473   :  { %15588 = vmatprep.subr.bf16.mxu0 %v17036_v19  ;;  %v17100_v19 = vld [vmem:[#allocation9 + $0xe68] ss:$36 sps:$4 sm:$0xff]  }
 0x475   :  { %10151 = vmatpush1.bf16.msra.mxu1 %v17033_v20  ;;  %v17101_v20 = vld [vmem:[#allocation9 + $0xc2c] ss:$36 sps:$4 sm:$0xff]  }
 0x476   :  { %15589 = vmatpush3.bf16.msra.mxu0 %v17037_v26  ;;  %10152 = vmatprep.subr.bf16.mxu1 %v17040_v21  ;;  %v17105_v26 = vld [vmem:[#allocation9 + $0xeb0] ss:$36 sps:$4 sm:$0xff]  }
 0x477   :  { %15590 = vmatprep.subr.bf16.mxu0 %v17041_v23  ;;  %v17106_v21 = vld [vmem:[#allocation9 + $0xc74] ss:$36 sps:$4 sm:$0xff]   ;;  %v17103_v23 = vld [vmem:[#allocation9 + $0xeac] ss:$36 sps:$4 sm:$0xff]  }
 0x479   :  { %10153 = vmatpush1.bf16.msra.mxu1 %v17038_v24  ;;  %v17107_v24 = vld [vmem:[#allocation9 + $0xa34] ss:$36 sps:$4 sm:$0xff]  }
 0x47a   :  { %15591 = vmatpush3.bf16.msra.mxu0 %v17042_v48  ;;  %10154 = vmatprep.subr.bf16.mxu1 %v17045_v25  ;;  %v17110_v48 = vld [vmem:[#allocation9 + $0xef8] ss:$36 sps:$4 sm:$0xff]  }
 0x47b   :  { %15598 = vmatprep.subr.bf16.mxu0 %v17046_v32  ;;  %v17111_v25 = vld [vmem:[#allocation9 + $0xcbc] ss:$36 sps:$4 sm:$0xff]   ;;  %v17108_v32 = vld [vmem:[#allocation9 + $0xef4] ss:$36 sps:$4 sm:$0xff]  }
 0x47d   :  { %10253 = vmatmul.mubr.bf16.vlgmr.msra.gmra.mrb[92].mxu0 %v18450_v28  ;;  %10155 = vmatpush1.bf16.msra.mxu1 %v17043_v17  ;;  %v17077_v28 = vld [vmem:[#allocation9 + $0x644] ss:$36 sps:$4 sm:$0xff]   ;;  %v17112_v17 = vld [vmem:[#allocation9 + $0xa7c] ss:$36 sps:$4 sm:$0xff]  }
 0x47e   :  { %15599 = vmatpush3.bf16.msra.mxu0 %v17047_v33  ;;  %10292 = vmatprep.mubr.bf16.mxu0 %v18433_v37  ;;  %v17063_v37 = vld [vmem:[#allocation9 + $0xc6c] ss:$36 sps:$4 sm:$0xff]   ;;  %v17115_v33 = vld [vmem:[#allocation9 + $0xf40] ss:$36 sps:$4 sm:$0xff]  }
 0x47f   :  { %10156 = vmatprep.subr.bf16.mxu1 %v17050_v38  ;;  %15600 = vmatprep.subr.bf16.mxu0 %v17051_v30  ;;  %v17116_v38 = vld [vmem:[#allocation9 + $0xd04] ss:$36 sps:$4 sm:$0xff]   ;;  %v17113_v30 = vld [vmem:[#allocation9 + $0xf3c] ss:$36 sps:$4 sm:$0xff]  }
 0x481   :  { %10157 = vmatpush1.bf16.msra.mxu1 %v17048_v39  ;;  %v17117_v39 = vld [vmem:[#allocation9 + $0xac4] ss:$36 sps:$4 sm:$0xff]  }
 0x482   :  { %15601 = vmatpush3.bf16.msra.mxu0 %v17052_v41  ;;  %10158 = vmatprep.subr.bf16.mxu1 %v17055_v8  ;;  %v17120_v41 = vld [vmem:[#allocation9 + $0xf88] ss:$36 sps:$4 sm:$0xff]  }
 0x483   :  { %15602 = vmatprep.subr.bf16.mxu0 %v17056_v44  ;;  %v17121_v8 = vld [vmem:[#allocation9 + $0xd4c] ss:$36 sps:$4 sm:$0xff]  }
 0x484   :  { %v17122_v44 = vld [vmem:[#allocation9 + $0xb0c] ss:$36 sps:$4 sm:$0xff]  }
 0x485   :  { %10159 = vmatpush1.bf16.msra.mxu1 %v17053_v43  ;;  %v17118_v43 = vld [vmem:[#allocation9 + $0xf84] ss:$36 sps:$4 sm:$0xff]  }
 0x486   :  { %15603 = vmatpush3.bf16.msra.mxu0 %v17057_v11  ;;  %10160 = vmatprep.subr.bf16.mxu1 %v17060_v40  ;;  %v17124_v11 = vld [vmem:[#allocation9 + $0x260] ss:$36 sps:$4 sm:$0xff]  }
 0x487   :  { %15604 = vmatprep.subr.bf16.mxu0 %v17061_v46  ;;  %v17126_v40 = vld [vmem:[#allocation9 + $0x20] ss:$36 sps:$4 sm:$0xff]   ;;  %v18471_v46 = vld [vmem:[#allocation3 + $0x18] ss:$0 sps:$4 sm:$0xff]  }
 0x489   :  { %10161 = vmatpush1.bf16.msra.mxu1 %v17058_v45  ;;  %v18469_v45 = vld [vmem:[#allocation3] sm:$0xff] }
 0x48a   :  { %15605 = vmatpush3.bf16.msra.mxu0 %v17062_v47  ;;  %10162 = vmatprep.subr.bf16.mxu1 %v17065_v49  ;;  %v17125_v47 = vld [vmem:[#allocation9 + $0xd94] ss:$36 sps:$4 sm:$0xff]   ;;  %v17129_v49 = vld [vmem:[#allocation9 + $0x2a8] ss:$36 sps:$4 sm:$0xff]  }
 0x48b   :  { %15606 = vmatprep.subr.bf16.mxu0 %v17066_v50  ;;  %v17131_v50 = vld [vmem:[#allocation9 + $0x68] ss:$36 sps:$4 sm:$0xff]  }
 0x48d   :  { %10163 = vmatpush1.bf16.msra.mxu1 %v17063_v37  ;;  %v18477_v37 = vcombine.high %v18469_v45, %v18469_v45 }
 0x48e   :  { %15607 = vmatpush3.bf16.msra.mxu0 %v17067_v51  ;;  %10164 = vmatprep.subr.bf16.mxu1 %v17070_v52  ;;  %v17130_v51 = vld [vmem:[#allocation9 + $0xddc] ss:$36 sps:$4 sm:$0xff]   ;;  %v17132_v52 = vld [vmem:[#allocation9 + $0x2f0] ss:$36 sps:$4 sm:$0xff]  }
 0x48f   :  { %15608 = vmatprep.subr.bf16.mxu0 %v17071_v54  ;;  %v17133_v54 = vld [vmem:[#allocation9 + $0xe24] ss:$36 sps:$4 sm:$0xff]  }
 0x491   :  { %10165 = vmatpush1.bf16.msra.mxu1 %v17068_v53  ;;  %v17134_v53 = vld [vmem:[#allocation9 + $0xb0] ss:$36 sps:$4 sm:$0xff]  }
 0x492   :  { %15609 = vmatpush3.bf16.msra.mxu0 %v17072_v34  ;;  %10166 = vmatprep.subr.bf16.mxu1 %v17075_v55  ;;  %v17135_v34 = vld [vmem:[#allocation9 + $0x338] ss:$36 sps:$4 sm:$0xff]   ;;  %v17136_v55 = vld [vmem:[#allocation9 + $0xe6c] ss:$36 sps:$4 sm:$0xff]  }
 0x493   :  { %v15561_v58 = vpop.f32.mrb[92].mxu1  ;;  %15610 = vmatprep.subr.bf16.mxu0 %v17076_v57  ;;  %v17140_v57 = vld [vmem:[#allocation9 + $0x140] ss:$36 sps:$4 sm:$0xff]  }
 0x494   :  { %v15562_v63 = vpop.f32.mrb[93].mxu1 }
 0x495   :  { %v15563_v31 = vadd.f32 %v15562_v63, %v15561_v58  ;;  %v15564_v42 = vpop.f32.mrb[94].mxu1  ;;  %10167 = vmatpush1.bf16.msra.mxu1 %v17073_v56  ;;  %v17138_v56 = vld [vmem:[#allocation9 + $0x380] ss:$36 sps:$4 sm:$0xff]   ;;  %v17139_v58 = vld [vmem:[#allocation9 + $0xeb4] ss:$36 sps:$4 sm:$0xff]  }
 0x496   :  { %v15565_v1 = vpop.f32.mrb[95].mxu1  ;;  %15611 = vmatpush3.bf16.msra.mxu0 %v17077_v28  ;;  %10168 = vmatprep.subr.bf16.mxu1 %v17080_v62  ;;  %v17141_v28 = vld [vmem:[#allocation9 + $0x3c8] ss:$36 sps:$4 sm:$0xff]   ;;  %v17142_v63 = vld [vmem:[#allocation9 + $0xefc] ss:$36 sps:$4 sm:$0xff]  }
 0x497   :  { %v18463_v3 = vadd.f32 %v15563_v31, %v18446_v7  ;;  %15612 = vmatprep.subr.bf16.mxu0 %v17081_v29  ;;  %v17092_v7 = vld [vmem:[#allocation9 + $0x95c] ss:$36 sps:$4 sm:$0xff]   ;;  %v17143_v62 = vld [vmem:[#allocation9 + $0x188] ss:$36 sps:$4 sm:$0xff]   ;;  %v17146_v29 = vld [vmem:[#allocation9 + $0x1d0] ss:$36 sps:$4 sm:$0xff]  }
 0x498   :  { %v17145_v31 = vld [vmem:[#allocation9 + $0xf44] ss:$36 sps:$4 sm:$0xff]   ;;  %v17147_v42 = vld [vmem:[#allocation9 + $0x458] ss:$36 sps:$4 sm:$0xff]  }
 0x499   :  { %10169 = vmatpush1.bf16.msra.mxu1 %v17078_v0  ;;  %v17144_v0 = vld [vmem:[#allocation9 + $0x410] ss:$36 sps:$4 sm:$0xff]   ;;  %v17149_v1 = vld [vmem:[#allocation9 + $0x218] ss:$36 sps:$4 sm:$0xff]  }
 0x49a   :  { %15613 = vmatpush3.bf16.msra.mxu0 %v17082_v2  ;;  %10179 = vmatprep.subr.bf16.mxu1 %v17085_v36  ;;  %v17148_v2 = vld [vmem:[#allocation9 + $0xf8c] ss:$36 sps:$4 sm:$0xff]   ;;  %v17153_v36 = vld [vmem:[#allocation9 + $0x6e0] ss:$36 sps:$4 sm:$0xff]  }
 0x49b   :  { %15620 = vmatprep.subr.bf16.mxu0 %v17086_v5  ;;  %v17154_v5 = vld [vmem:[#allocation9 + $0x4a0] ss:$36 sps:$4 sm:$0xff]  }
 0x49c   :  { %10171 = vmatmul.mubr.bf16.vlgmr.msra.gmra.mrb[100].mxu1 %v18405_v59 }
 0x49d   :  { %10293 = vmatmul.mubr.bf16.vlgmr.msra.gmra.mrb[96].mxu0 %v18454_v61  ;;  %10180 = vmatpush1.bf16.msra.mxu1 %v17083_v4  ;;  %v17098_v61 = vld [vmem:[#allocation9 + $0xe64] ss:$36 sps:$4 sm:$0xff]   ;;  %v17152_v4 = vld [vmem:[#allocation9 + $0x1c] ss:$36 sps:$4 sm:$0xff]  }
 0x49e   :  { %15621 = vmatpush3.bf16.msra.mxu0 %v17087_v35  ;;  %10332 = vmatprep.mubr.bf16.mxu0 %v18407_v60  ;;  %v17102_v60 = vld [vmem:[#allocation9 + $0x9ec] ss:$36 sps:$4 sm:$0xff]   ;;  %v18492_v35 = vcombine.low %v18469_v45, %v18469_v45 }
 0x49f   :  { %10181 = vmatprep.subr.bf16.mxu1 %v17090_v6  ;;  %15622 = vmatprep.subr.bf16.mxu0 %v17091_v9  ;;  %v17150_v6 = vld [vmem:[#allocation9 + $0x18] ss:$36 sps:$4 sm:$0xff]   ;;  %v18494_v9 = vld [vmem:[#allocation3 + $0x8] sm:$0xff] }
 0x4a0   :  { %10211 = vmatprep.mubr.bf16.mxu1 %v17846_v27  ;;  %v17184_v45 = vld [vmem:[#allocation9 + $0x1cc] ss:$36 sps:$4 sm:$0xff]  }
 0x4a1   :  { %10182 = vmatpush1.bf16.msra.mxu1 %v17088_v10  ;;  %v17159_v10 = vld [vmem:[#allocation9 + $0x64] ss:$36 sps:$4 sm:$0xff]  }
 0x4a2   :  { %15623 = vmatpush3.bf16.msra.mxu0 %v17092_v7  ;;  %10183 = vmatprep.subr.bf16.mxu1 %v17095_v12  ;;  %v17160_v7 = vld [vmem:[#allocation9 + $0x728] ss:$36 sps:$4 sm:$0xff]   ;;  %v18500_v12 = vcombine.high %v18494_v9, %v18494_v9 }
 0x4a3   :  { %15624 = vmatprep.subr.bf16.mxu0 %v17096_v13  ;;  %v17161_v13 = vld [vmem:[#allocation9 + $0x4e8] ss:$36 sps:$4 sm:$0xff]  }
 0x4a5   :  { %10184 = vmatpush1.bf16.msra.mxu1 %v17093_v16  ;;  %v17157_v16 = vld [vmem:[#allocation9 + $0x60] ss:$36 sps:$4 sm:$0xff]  }
 0x4a6   :  { %15625 = vmatpush3.bf16.msra.mxu0 %v17097_v18  ;;  %10185 = vmatprep.subr.bf16.mxu1 %v17100_v19  ;;  %v17165_v18 = vld [vmem:[#allocation9 + $0x770] ss:$36 sps:$4 sm:$0xff]  }
 0x4a7   :  { %15626 = vmatprep.subr.bf16.mxu0 %v17101_v20  ;;  %v17164_v19 = vld [vmem:[#allocation9 + $0xac] ss:$36 sps:$4 sm:$0xff]  }
 0x4a8   :  { %v17166_v20 = vld [vmem:[#allocation9 + $0x530] ss:$36 sps:$4 sm:$0xff]  }
 0x4a9   :  { %10186 = vmatpush1.bf16.msra.mxu1 %v17098_v61  ;;  %v17162_v61 = vld [vmem:[#allocation9 + $0xa8] ss:$36 sps:$4 sm:$0xff]  }
 0x4aa   :  { %15627 = vmatpush3.bf16.msra.mxu0 %v17102_v60  ;;  %10187 = vmatprep.subr.bf16.mxu1 %v17105_v26  ;;  %v17170_v60 = vld [vmem:[#allocation9 + $0x7b8] ss:$36 sps:$4 sm:$0xff]  }
 0x4ab   :  { %15628 = vmatprep.subr.bf16.mxu0 %v17106_v21  ;;  %v17169_v26 = vld [vmem:[#allocation9 + $0xf4] ss:$36 sps:$4 sm:$0xff]  }
 0x4ac   :  { %v17171_v21 = vld [vmem:[#allocation9 + $0x578] ss:$36 sps:$4 sm:$0xff]  }
 0x4ad   :  { %10188 = vmatpush1.bf16.msra.mxu1 %v17103_v23  ;;  %v17167_v23 = vld [vmem:[#allocation9 + $0xf0] ss:$36 sps:$4 sm:$0xff]  }
 0x4ae   :  { %15629 = vmatpush3.bf16.msra.mxu0 %v17107_v24  ;;  %10189 = vmatprep.subr.bf16.mxu1 %v17110_v48  ;;  %v17175_v24 = vld [vmem:[#allocation9 + $0x800] ss:$36 sps:$4 sm:$0xff]  }
 0x4af   :  { %15630 = vmatprep.subr.bf16.mxu0 %v17111_v25  ;;  %v17174_v48 = vld [vmem:[#allocation9 + $0x13c] ss:$36 sps:$4 sm:$0xff]   ;;  %v18505_v25 = vsub.s32 0, %v18439_v14 }
 0x4b1   :  { %10190 = vmatpush1.bf16.msra.mxu1 %v17108_v32  ;;  %v17176_v32 = vld [vmem:[#allocation9 + $0x5c0] ss:$36 sps:$4 sm:$0xff]  }
 0x4b2   :  { %15631 = vmatpush3.bf16.msra.mxu0 %v17112_v17  ;;  %10191 = vmatprep.subr.bf16.mxu1 %v17115_v33  ;;  %v18508_v17 = vsub.s32 1, %v18439_v14  ;;  %v17172_v33 = vld [vmem:[#allocation9 + $0x138] ss:$36 sps:$4 sm:$0xff]  }
 0x4b3   :  { %15632 = vmatprep.subr.bf16.mxu0 %v17116_v38  ;;  %v17180_v38 = vld [vmem:[#allocation9 + $0x848] ss:$36 sps:$4 sm:$0xff]  }
 0x4b5   :  { %10192 = vmatpush1.bf16.msra.mxu1 %v17113_v30  ;;  %v17179_v30 = vld [vmem:[#allocation9 + $0x184] ss:$36 sps:$4 sm:$0xff]  }
 0x4b6   :  { %15633 = vmatpush3.bf16.msra.mxu0 %v17117_v39  ;;  %10193 = vmatprep.subr.bf16.mxu1 %v17120_v41  ;;  %v17603_v39 = vld [vmem:[#allocation10] sm:$0x7] }
 0x4b7   :  { %15634 = vmatprep.subr.bf16.mxu0 %v17121_v8  ;;  %v7615_v41 = vrot.slane %v17603_v39, %v18505_v25  ;;  %v7619_v8 = vrot.slane %v17603_v39, %v18508_v17  ;;  %v17228_v39 = vld [vmem:[#allocation9 + $0xad0] ss:$36 sps:$4 sm:$0xff]  }
 0x4b9   :  { %10194 = vmatpush1.bf16.msra.mxu1 %v17118_v43  ;;  %v17181_v43 = vld [vmem:[#allocation9 + $0x608] ss:$36 sps:$4 sm:$0xff]  }
 0x4ba   :  { %15635 = vmatpush3.bf16.msra.mxu0 %v17122_v44  ;;  %15651 = vmatprep.subr.bf16.mxu1 %v17124_v11  ;;  %v17177_v44 = vld [vmem:[#allocation9 + $0x180] ss:$36 sps:$4 sm:$0xff]   ;;  %v17185_v11 = vld [vmem:[#allocation9 + $0x890] ss:$36 sps:$4 sm:$0xff]  }
 0x4bb   :  { %15908 = vmatprep.subr.bf16.mxu0 %v17844_v15 }
 0x4bc   :  { %10212 = vmatmul.mubr.bf16.vlgmr.msra.gmra.mrb[100].mxu1 %v18471_v46 }
 0x4bd   :  { %10333 = vmatmul.mubr.bf16.vlgmr.msra.gmra.mrb[100].mxu0 %v18405_v59  ;;  %15652 = vmatpush3.bf16.msra.mxu1 %v17126_v40  ;;  %v17137_v59 = vld [vmem:[#allocation9 + $0xf8] ss:$36 sps:$4 sm:$0xff]  }
 0x4be   :  { %15909 = vmatpush3.bf16.msra.mxu0 %v17125_v47  ;;  %11760 = vmatprep.mubr.bf16.mxu1 %v18477_v37 }
 0x4bf   :  { %15910 = vmatprep.subr.bf16.mxu0 %v17844_v15  ;;  %15653 = vmatprep.subr.bf16.mxu1 %v17129_v49 }
 0x4c0   :  { %15924 = vmatprep.mubr.msk.bf16.mxu0 %vm17845_vm0, %v17844_v15 }
 0x4c1   :  { %15654 = vmatpush3.bf16.msra.mxu1 %v17131_v50 }
 0x4c2   :  { %15911 = vmatpush3.bf16.msra.mxu0 %v17130_v51  ;;  %15655 = vmatprep.subr.bf16.mxu1 %v17132_v52 }
 0x4c3   :  { %15912 = vmatprep.subr.bf16.mxu0 %v17844_v15 }
 0x4c5   :  { %15656 = vmatpush3.bf16.msra.mxu1 %v17134_v53  ;;  %v17182_v53 = vld [vmem:[#allocation9 + $0x1c8] ss:$36 sps:$4 sm:$0xff]  }
 0x4c6   :  { %15913 = vmatpush3.bf16.msra.mxu0 %v17133_v54  ;;  %15657 = vmatprep.subr.bf16.mxu1 %v17135_v34  ;;  %v17186_v54 = vld [vmem:[#allocation9 + $0x650] ss:$36 sps:$4 sm:$0xff]  }
 0x4c7   :  { %15914 = vmatprep.subr.bf16.mxu0 %v17844_v15 }
 0x4c9   :  { %15658 = vmatpush3.bf16.msra.mxu1 %v17137_v59 }
 0x4ca   :  { %15915 = vmatpush3.bf16.msra.mxu0 %v17136_v55  ;;  %15659 = vmatprep.subr.bf16.mxu1 %v17138_v56 }
 0x4cb   :  { %15916 = vmatprep.subr.bf16.mxu0 %v17844_v15 }
 0x4cd   :  { %15660 = vmatpush3.bf16.msra.mxu1 %v17140_v57  ;;  %v17190_v57 = vld [vmem:[#allocation9 + $0x8d8] ss:$36 sps:$4 sm:$0xff]  }
 0x4ce   :  { %15917 = vmatpush3.bf16.msra.mxu0 %v17139_v58  ;;  %15661 = vmatprep.subr.bf16.mxu1 %v17141_v28 }
 0x4cf   :  { %15918 = vmatprep.subr.bf16.mxu0 %v17844_v15 }
 0x4d1   :  { %15662 = vmatpush3.bf16.msra.mxu1 %v17143_v62  ;;  %v17191_v62 = vld [vmem:[#allocation9 + $0x698] ss:$36 sps:$4 sm:$0xff]  }
 0x4d2   :  { %15919 = vmatpush3.bf16.msra.mxu0 %v17142_v63  ;;  %15663 = vmatprep.subr.bf16.mxu1 %v17144_v0  ;;  %v17187_v63 = vld [vmem:[#allocation9 + $0x210] ss:$36 sps:$4 sm:$0xff]   ;;  %v17195_v0 = vld [vmem:[#allocation9 + $0xb60] ss:$36 sps:$4 sm:$0xff]  }
 0x4d3   :  { %15920 = vmatprep.subr.bf16.mxu0 %v17844_v15 }
 0x4d5   :  { %15664 = vmatpush3.bf16.msra.mxu1 %v17146_v29  ;;  %v17194_v29 = vld [vmem:[#allocation9 + $0x25c] ss:$36 sps:$4 sm:$0xff]  }
 0x4d6   :  { %15921 = vmatpush3.bf16.msra.mxu0 %v17145_v31  ;;  %15665 = vmatprep.subr.bf16.mxu1 %v17147_v42  ;;  %v18519_v31 = vld [vmem:[#allocation3 + $0x10] sm:$0xff]  ;;  %v17196_v42 = vld [vmem:[#allocation9 + $0x920] ss:$36 sps:$4 sm:$0xff]  }
 0x4d7   :  { %15922 = vmatprep.subr.bf16.mxu0 %v17844_v15 }
 0x4d9   :  { %15666 = vmatpush3.bf16.msra.mxu1 %v17149_v1  ;;  %v18523_v1 = vcombine.low %v18494_v9, %v18494_v9  ;;  %v17207_v9 = vld [vmem:[#allocation9 + $0xbf0] ss:$36 sps:$4 sm:$0xff]  }
 0x4da   :  { %15923 = vmatpush3.bf16.msra.mxu0 %v17148_v2  ;;  %15673 = vmatprep.subr.bf16.mxu1 %v17153_v36  ;;  %v17192_v2 = vld [vmem:[#allocation9 + $0x258] ss:$36 sps:$4 sm:$0xff]   ;;  %v17202_v36 = vld [vmem:[#allocation9 + $0xba8] ss:$36 sps:$4 sm:$0xff]  }
 0x4db   :  { %11564 = vmatprep.subr.bf16.mxu0 %v17152_v4  ;;  %v18527_v4 = vcombine.high %v18519_v31, %v18519_v31 }
 0x4dc   :  { %11761 = vmatmul.mubr.bf16.vlgmr.msra.gmra.mrb[104].mxu1 %v18492_v35 }
 0x4dd   :  { %15925 = vmatmul.mubr.bf16.vlgmr.msra.gmra.mrb[104].mxu0 %v18471_v46  ;;  %15674 = vmatpush3.bf16.msra.mxu1 %v17154_v5  ;;  %v17201_v5 = vld [vmem:[#allocation9 + $0x2a4] ss:$36 sps:$4 sm:$0xff]  }
 0x4de   :  { %11565 = vmatpush1.bf16.msra.mxu0 %v17150_v6  ;;  %11596 = vmatprep.mubr.bf16.mxu0 %v18477_v37  ;;  %v17203_v6 = vld [vmem:[#allocation9 + $0x968] ss:$36 sps:$4 sm:$0xff]  }
 0x4df   :  { %11800 = vmatprep.mubr.bf16.mxu1 %v18500_v12  ;;  %11566 = vmatprep.subr.bf16.mxu0 %v17159_v10  ;;  %v17199_v10 = vld [vmem:[#allocation9 + $0x2a0] ss:$36 sps:$4 sm:$0xff]  }
 0x4e0   :  { %15675 = vmatprep.subr.bf16.mxu1 %v17160_v7  ;;  %v17206_v7 = vld [vmem:[#allocation9 + $0x2ec] ss:$36 sps:$4 sm:$0xff]  }
 0x4e1   :  { %15676 = vmatpush3.bf16.msra.mxu1 %v17161_v13  ;;  %v17208_v13 = vld [vmem:[#allocation9 + $0x9b0] ss:$36 sps:$4 sm:$0xff]  }
 0x4e2   :  { %11567 = vmatpush1.bf16.msra.mxu0 %v17157_v16  ;;  %15677 = vmatprep.subr.bf16.mxu1 %v17165_v18  ;;  %v17204_v16 = vld [vmem:[#allocation9 + $0x2e8] ss:$36 sps:$4 sm:$0xff]   ;;  %v17212_v18 = vld [vmem:[#allocation9 + $0xc38] ss:$36 sps:$4 sm:$0xff]  }
 0x4e3   :  { %11568 = vmatprep.subr.bf16.mxu0 %v17164_v19  ;;  %v17211_v19 = vld [vmem:[#allocation9 + $0x334] ss:$36 sps:$4 sm:$0xff]  }
 0x4e5   :  { %15678 = vmatpush3.bf16.msra.mxu1 %v17166_v20  ;;  %v17213_v20 = vld [vmem:[#allocation9 + $0x9f8] ss:$36 sps:$4 sm:$0xff]  }
 0x4e6   :  { %11569 = vmatpush1.bf16.msra.mxu0 %v17162_v61  ;;  %15679 = vmatprep.subr.bf16.mxu1 %v17170_v60  ;;  %v17209_v61 = vld [vmem:[#allocation9 + $0x330] ss:$36 sps:$4 sm:$0xff]   ;;  %v17217_v60 = vld [vmem:[#allocation9 + $0xc80] ss:$36 sps:$4 sm:$0xff]  }
 0x4e7   :  { %11570 = vmatprep.subr.bf16.mxu0 %v17169_v26  ;;  %v17216_v26 = vld [vmem:[#allocation9 + $0x37c] ss:$36 sps:$4 sm:$0xff]  }
 0x4e9   :  { %15680 = vmatpush3.bf16.msra.mxu1 %v17171_v21  ;;  %v17218_v21 = vld [vmem:[#allocation9 + $0xa40] ss:$36 sps:$4 sm:$0xff]  }
 0x4ea   :  { %11571 = vmatpush1.bf16.msra.mxu0 %v17167_v23  ;;  %15681 = vmatprep.subr.bf16.mxu1 %v17175_v24  ;;  %v17214_v23 = vld [vmem:[#allocation9 + $0x378] ss:$36 sps:$4 sm:$0xff]   ;;  %v17222_v24 = vld [vmem:[#allocation9 + $0xcc8] ss:$36 sps:$4 sm:$0xff]  }
 0x4eb   :  { %11572 = vmatprep.subr.bf16.mxu0 %v17174_v48  ;;  %v17221_v48 = vld [vmem:[#allocation9 + $0x3c4] ss:$36 sps:$4 sm:$0xff]  }
 0x4ed   :  { %15682 = vmatpush3.bf16.msra.mxu1 %v17176_v32  ;;  %v17223_v32 = vld [vmem:[#allocation9 + $0xa88] ss:$36 sps:$4 sm:$0xff]  }
 0x4ee   :  { %11573 = vmatpush1.bf16.msra.mxu0 %v17172_v33  ;;  %15683 = vmatprep.subr.bf16.mxu1 %v17180_v38  ;;  %v17219_v33 = vld [vmem:[#allocation9 + $0x3c0] ss:$36 sps:$4 sm:$0xff]   ;;  %v17227_v38 = vld [vmem:[#allocation9 + $0xd10] ss:$36 sps:$4 sm:$0xff]  }
 0x4ef   :  { %v8705_v40 = vpop.f32.mrb[84].mxu0  ;;  %v8866_v14 = vpop.f32.mrb[96].mxu1  ;;  %11574 = vmatprep.subr.bf16.mxu0 %v17179_v30  ;;  %v17226_v30 = vld [vmem:[#allocation9 + $0x40c] ss:$36 sps:$4 sm:$0xff]  }
 0x4f0   :  { %v18512_v46 = vadd.f32 %v8705_v40, %v7615_v41  ;;  %v8867_v47 = vadd.f32 %v8866_v14, %v18463_v3  ;;  %v8707_v49 = vpop.f32.mrb[85].mxu0  ;;  %v15906_v37 = vpop.f32.mrb[97].mxu1  ;;  %v17189_v3 = vld [vmem:[#allocation9 + $0x214] ss:$36 sps:$4 sm:$0xff]   ;;  %v17224_v41 = vld [vmem:[#allocation9 + $0x408] ss:$36 sps:$4 sm:$0xff]  }
 0x4f1   :  { %v18515_v50 = vadd.f32 %v8707_v49, %v7619_v8  ;;  %15684 = vmatpush3.bf16.msra.mxu1 %v17181_v43  ;;  %v8709_v51 = vpop.f32.mrb[86].mxu0  ;;  %v8869_v52 = vpop.f32.mrb[98].mxu1  ;;  %v17232_v8 = vld [vmem:[#allocation9 + $0xd58] ss:$36 sps:$4 sm:$0xff]   ;;  %v17237_v14 = vld [vmem:[#allocation9 + $0xda0] ss:$36 sps:$4 sm:$0xff]  }
 0x4f2   :  { %v8872_v34 = vmax.f32 %v18512_v46, 0.0  ;;  %v8874_v59 = vmax.f32 %v8867_v47, 0.0  ;;  %11575 = vmatpush1.bf16.msra.mxu0 %v17177_v44  ;;  %v8710_v55 = vpop.f32.mrb[87].mxu0  ;;  %v15907_v56 = vpop.f32.mrb[99].mxu1  ;;  %15685 = vmatprep.subr.bf16.mxu1 %v17185_v11  ;;  %v17231_v43 = vld [vmem:[#allocation9 + $0x454] ss:$36 sps:$4 sm:$0xff]  }
 0x4f3   :  { %v8873_v58 = vmax.f32 %v18515_v50, 0.0  ;;  %11576 = vmatprep.subr.bf16.mxu0 %v17184_v45  ;;  %v17233_v44 = vld [vmem:[#allocation9 + $0xb18] ss:$36 sps:$4 sm:$0xff]   ;;  %v17229_v11 = vld [vmem:[#allocation9 + $0x450] ss:$36 sps:$4 sm:$0xff]   ;;  %v18533_v45 = vcombine.low %v18519_v31, %v18519_v31 }
 0x4f4   :  { %v14663_v28 = vpack.c.bf16 %v8874_v59, %v8874_v59  ;;  %v17236_v40 = vld [vmem:[#allocation9 + $0x49c] ss:$36 sps:$4 sm:$0xff]   ;;  %v17240_v49 = vld [vmem:[#allocation9 + $0x4e4] ss:$36 sps:$4 sm:$0xff]   ;;  %v17244_v52 = vld [vmem:[#allocation9 + $0x52c] ss:$36 sps:$4 sm:$0xff]  }
 0x4f5   :  { %15686 = vmatpush3.bf16.msra.mxu1 %v17186_v54  ;;  %v17234_v47 = vld [vmem:[#allocation9 + $0x498] ss:$36 sps:$4 sm:$0xff]   ;;  %v17241_v37 = vld [vmem:[#allocation9 + $0xde8] ss:$36 sps:$4 sm:$0xff]   ;;  %v17238_v51 = vld [vmem:[#allocation9 + $0x4e0] ss:$36 sps:$4 sm:$0xff]  }
 0x4f6   :  { %8889 = vst [vmem:[#allocation4 + $0x8] sm:$0xf] %v14663_v28  ;;  %11577 = vmatpush1.bf16.msra.mxu0 %v17182_v53  ;;  %15687 = vmatprep.subr.bf16.mxu1 %v17190_v57  ;;  %v17245_v53 = vld [vmem:[#allocation9 + $0xe30] ss:$36 sps:$4 sm:$0xff]   ;;  %v17242_v54 = vld [vmem:[#allocation9 + $0x528] ss:$36 sps:$4 sm:$0xff]  }
 0x4f7   :  { %11578 = vmatprep.subr.bf16.mxu0 %v17189_v3  ;;  %v17249_v59 = vld [vmem:[#allocation9 + $0xe78] ss:$36 sps:$4 sm:$0xff]   ;;  %v17253_v56 = vld [vmem:[#allocation9 + $0xec0] ss:$36 sps:$4 sm:$0xff]   ;;  %v17257_v28 = vld [vmem:[#allocation9 + $0xf08] ss:$36 sps:$4 sm:$0xff]  }
 0x4f8   :  { %v17252_v55 = vld [vmem:[#allocation9 + $0x5bc] ss:$36 sps:$4 sm:$0xff]   ;;  %v17256_v3 = vld [vmem:[#allocation9 + $0x604] ss:$36 sps:$4 sm:$0xff]  }
 0x4f9   :  { %15688 = vmatpush3.bf16.msra.mxu1 %v17191_v62  ;;  %v17250_v57 = vld [vmem:[#allocation9 + $0x5b8] ss:$36 sps:$4 sm:$0xff]   ;;  %v17254_v62 = vld [vmem:[#allocation9 + $0x600] ss:$36 sps:$4 sm:$0xff]   ;;  %v17375_v46 = vld [vmem:[#allocation9 + $0xbe8] ss:$36 sps:$4 sm:$0xff]  }
 0x4fa   :  { %11579 = vmatpush1.bf16.msra.mxu0 %v17187_v63  ;;  %15695 = vmatprep.subr.bf16.mxu1 %v17195_v0  ;;  %v17260_v0 = vld [vmem:[#allocation9 + $0x64c] ss:$36 sps:$4 sm:$0xff]   ;;  %v17290_v50 = vld [vmem:[#allocation12 + $0x34] ss:$8 sps:$4 sm:$0xff]  }
 0x4fb   :  { %11580 = vmatprep.subr.bf16.mxu0 %v17194_v29 }
 0x4fc   :  { %11801 = vmatmul.mubr.bf16.vlgmr.msra.gmra.mrb[108].mxu1 %v18523_v1 }
 0x4fd   :  { %15696 = vmatpush3.bf16.msra.mxu1 %v17196_v42  ;;  %11840 = vmatprep.mubr.bf16.mxu1 %v18527_v4  ;;  %v17261_v42 = vld [vmem:[#allocation9 + $0xf50] ss:$36 sps:$4 sm:$0xff]  }
 0x4fe   :  { %11581 = vmatpush1.bf16.msra.mxu0 %v17192_v2  ;;  %15697 = vmatprep.subr.bf16.mxu1 %v17202_v36  ;;  %v17258_v36 = vld [vmem:[#allocation9 + $0x648] ss:$36 sps:$4 sm:$0xff]  }
 0x4ff   :  { %11582 = vmatprep.subr.bf16.mxu0 %v17201_v5  ;;  %v17264_v5 = vld [vmem:[#allocation9 + $0x694] ss:$36 sps:$4 sm:$0xff]  }
 0x501   :  { %15698 = vmatpush3.bf16.msra.mxu1 %v17203_v6  ;;  %v17265_v6 = vld [vmem:[#allocation9 + $0xf98] ss:$36 sps:$4 sm:$0xff]  }
 0x502   :  { %11583 = vmatpush1.bf16.msra.mxu0 %v17199_v10  ;;  %15699 = vmatprep.subr.bf16.mxu1 %v17207_v9  ;;  %v17262_v10 = vld [vmem:[#allocation9 + $0x690] ss:$36 sps:$4 sm:$0xff]  }
 0x503   :  { %11584 = vmatprep.subr.bf16.mxu0 %v17206_v7  ;;  %v17272_v9 = vld [vmem:[#allocation12 + $0x4] ss:$8 sps:$4 sm:$0xff]   ;;  %v17268_v7 = vld [vmem:[#allocation9 + $0x6dc] ss:$36 sps:$4 sm:$0xff]  }
 0x505   :  { %15700 = vmatpush3.bf16.msra.mxu1 %v17208_v13  ;;  %v17270_v13 = vld [vmem:[#allocation12] ss:$8 sps:$4 sm:$0xff]  }
 0x506   :  { %11585 = vmatpush1.bf16.msra.mxu0 %v17204_v16  ;;  %15701 = vmatprep.subr.bf16.mxu1 %v17212_v18  ;;  %v17266_v16 = vld [vmem:[#allocation9 + $0x6d8] ss:$36 sps:$4 sm:$0xff]   ;;  %v18552_v18 = vld [vmem:[#allocation3 + $0x18] ss:$0 sps:$4 sm:$0xff]  }
 0x507   :  { %11586 = vmatprep.subr.bf16.mxu0 %v17211_v19  ;;  %v17278_v19 = vld [vmem:[#allocation12 + $0x14] ss:$8 sps:$4 sm:$0xff]  }
 0x509   :  { %15702 = vmatpush3.bf16.msra.mxu1 %v17213_v20  ;;  %v17640_v20 = vpack.c.bf16 %v8873_v58, %v8873_v58  ;;  %v17287_v58 = vld [vmem:[#allocation9 + $0x7b4] ss:$36 sps:$4 sm:$0xff]  }
 0x50a   :  { %11587 = vmatpush1.bf16.msra.mxu0 %v17209_v61  ;;  %15703 = vmatprep.subr.bf16.mxu1 %v17217_v60  ;;  %v17275_v61 = vld [vmem:[#allocation9 + $0x724] ss:$36 sps:$4 sm:$0xff]  }
 0x50b   :  { %11588 = vmatprep.subr.bf16.mxu0 %v17216_v26  ;;  %v17273_v60 = vld [vmem:[#allocation9 + $0x720] ss:$36 sps:$4 sm:$0xff]   ;;  %v17284_v26 = vld [vmem:[#allocation12 + $0x24] ss:$8 sps:$4 sm:$0xff]  }
 0x50d   :  { %15704 = vmatpush3.bf16.msra.mxu1 %v17218_v21  ;;  %v17281_v21 = vld [vmem:[#allocation9 + $0x76c] ss:$36 sps:$4 sm:$0xff]  }
 0x50e   :  { %11589 = vmatpush1.bf16.msra.mxu0 %v17214_v23  ;;  %15705 = vmatprep.subr.bf16.mxu1 %v17222_v24  ;;  %v17282_v23 = vld [vmem:[#allocation12 + $0x20] ss:$8 sps:$4 sm:$0xff]  }
 0x50f   :  { %11590 = vmatprep.subr.bf16.mxu0 %v17221_v48  ;;  %v17279_v24 = vld [vmem:[#allocation9 + $0x768] ss:$36 sps:$4 sm:$0xff]   ;;  %v17288_v48 = vld [vmem:[#allocation12 + $0x30] ss:$8 sps:$4 sm:$0xff]  }
 0x511   :  { %15706 = vmatpush3.bf16.msra.mxu1 %v17223_v32  ;;  %v17285_v32 = vld [vmem:[#allocation9 + $0x7b0] ss:$36 sps:$4 sm:$0xff]  }
 0x512   :  { %11591 = vmatpush1.bf16.msra.mxu0 %v17219_v33  ;;  %15707 = vmatprep.subr.bf16.mxu1 %v17227_v38  ;;  %v17296_v33 = vld [vmem:[#allocation12 + $0x44] ss:$8 sps:$4 sm:$0xff]   ;;  %v17293_v38 = vld [vmem:[#allocation9 + $0x7fc] ss:$36 sps:$4 sm:$0xff]  }
 0x513   :  { %11592 = vmatprep.subr.bf16.mxu0 %v17226_v30  ;;  %v17294_v30 = vld [vmem:[#allocation12 + $0x40] ss:$8 sps:$4 sm:$0xff]  }
 0x515   :  { %15708 = vmatpush3.bf16.msra.mxu1 %v17228_v39  ;;  %v17291_v39 = vld [vmem:[#allocation9 + $0x7f8] ss:$36 sps:$4 sm:$0xff]  }
 0x516   :  { %11593 = vmatpush1.bf16.msra.mxu0 %v17224_v41  ;;  %15709 = vmatprep.subr.bf16.mxu1 %v17232_v8  ;;  %v17302_v41 = vld [vmem:[#allocation12 + $0x54] ss:$8 sps:$4 sm:$0xff]  }
 0x517   :  { %11594 = vmatprep.subr.bf16.mxu0 %v17231_v43  ;;  %v17299_v8 = vld [vmem:[#allocation9 + $0x844] ss:$36 sps:$4 sm:$0xff]  }
 0x518   :  { %v17300_v43 = vld [vmem:[#allocation12 + $0x50] ss:$8 sps:$4 sm:$0xff]  }
 0x519   :  { %15710 = vmatpush3.bf16.msra.mxu1 %v17233_v44  ;;  %v17297_v44 = vld [vmem:[#allocation9 + $0x840] ss:$36 sps:$4 sm:$0xff]  }
 0x51a   :  { %11595 = vmatpush1.bf16.msra.mxu0 %v17229_v11  ;;  %15928 = vmatprep.subr.bf16.mxu1 %v17844_v15  ;;  %v17308_v11 = vld [vmem:[#allocation12 + $0x64] ss:$8 sps:$4 sm:$0xff]  }
 0x51b   :  { %11605 = vmatprep.subr.bf16.mxu0 %v17236_v40  ;;  %v17305_v40 = vld [vmem:[#allocation9 + $0x88c] ss:$36 sps:$4 sm:$0xff]  }
 0x51c   :  { %11841 = vmatmul.mubr.bf16.vlgmr.msra.gmra.mrb[112].mxu1 %v18533_v45 }
 0x51d   :  { %11597 = vmatmul.mubr.bf16.vlgmr.msra.gmra.mrb[108].mxu0 %v18492_v35  ;;  %15929 = vmatpush3.bf16.msra.mxu1 %v17237_v14  ;;  %v17248_v35 = vld [vmem:[#allocation9 + $0x574] ss:$36 sps:$4 sm:$0xff]  }
 0x51e   :  { %11606 = vmatpush1.bf16.msra.mxu0 %v17234_v47  ;;  %11637 = vmatprep.mubr.bf16.mxu0 %v18500_v12  ;;  %v17246_v12 = vld [vmem:[#allocation9 + $0x570] ss:$36 sps:$4 sm:$0xff]  }
 0x51f   :  { %11607 = vmatprep.subr.bf16.mxu0 %v17240_v49  ;;  %15930 = vmatprep.subr.bf16.mxu1 %v17844_v15  ;;  %v17306_v49 = vld [vmem:[#allocation12 + $0x60] ss:$8 sps:$4 sm:$0xff]  }
 0x520   :  { %15944 = vmatprep.mubr.msk.bf16.mxu1 %vm17845_vm0, %v17844_v15 }
 0x521   :  { %15931 = vmatpush3.bf16.msra.mxu1 %v17241_v37 }
 0x522   :  { %11608 = vmatpush1.bf16.msra.mxu0 %v17238_v51  ;;  %15932 = vmatprep.subr.bf16.mxu1 %v17844_v15 }
 0x523   :  { %11609 = vmatprep.subr.bf16.mxu0 %v17244_v52  ;;  %v17303_v52 = vld [vmem:[#allocation9 + $0x888] ss:$36 sps:$4 sm:$0xff]  }
 0x525   :  { %15933 = vmatpush3.bf16.msra.mxu1 %v17245_v53  ;;  %v17314_v53 = vld [vmem:[#allocation12 + $0x74] ss:$8 sps:$4 sm:$0xff]  }
 0x526   :  { %11610 = vmatpush1.bf16.msra.mxu0 %v17242_v54  ;;  %15934 = vmatprep.subr.bf16.mxu1 %v17844_v15 }
 0x527   :  { %11611 = vmatprep.subr.bf16.mxu0 %v17248_v35  ;;  %v17311_v35 = vld [vmem:[#allocation9 + $0x8d4] ss:$36 sps:$4 sm:$0xff]  }
 0x529   :  { %15935 = vmatpush3.bf16.msra.mxu1 %v17249_v59  ;;  %v17312_v59 = vld [vmem:[#allocation12 + $0x70] ss:$8 sps:$4 sm:$0xff]  }
 0x52a   :  { %11612 = vmatpush1.bf16.msra.mxu0 %v17246_v12  ;;  %15936 = vmatprep.subr.bf16.mxu1 %v17844_v15  ;;  %v17309_v12 = vld [vmem:[#allocation9 + $0x8d0] ss:$36 sps:$4 sm:$0xff]  }
 0x52b   :  { %11613 = vmatprep.subr.bf16.mxu0 %v17252_v55  ;;  %v17320_v55 = vld [vmem:[#allocation12 + $0x84] ss:$8 sps:$4 sm:$0xff]  }
 0x52d   :  { %15937 = vmatpush3.bf16.msra.mxu1 %v17253_v56  ;;  %v17317_v56 = vld [vmem:[#allocation9 + $0x91c] ss:$36 sps:$4 sm:$0xff]  }
 0x52e   :  { %11614 = vmatpush1.bf16.msra.mxu0 %v17250_v57  ;;  %15938 = vmatprep.subr.bf16.mxu1 %v17844_v15  ;;  %v17318_v57 = vld [vmem:[#allocation12 + $0x80] ss:$8 sps:$4 sm:$0xff]  }
 0x52f   :  { %v18546_v63 = vpop.f32.mrb[88].mxu0  ;;  %11615 = vmatprep.subr.bf16.mxu0 %v17256_v3  ;;  %v17315_v3 = vld [vmem:[#allocation9 + $0x918] ss:$36 sps:$4 sm:$0xff]  }
 0x530   :  { %v18548_v29 = vpop.f32.mrb[89].mxu0 }
 0x531   :  { %v10094_v31 = vpop.f32.mrb[90].mxu0  ;;  %15939 = vmatpush3.bf16.msra.mxu1 %v17257_v28  ;;  %v17323_v28 = vld [vmem:[#allocation9 + $0x964] ss:$36 sps:$4 sm:$0xff]  }
 0x532   :  { %11616 = vmatpush1.bf16.msra.mxu0 %v17254_v62  ;;  %v10095_v2 = vpop.f32.mrb[91].mxu0  ;;  %15940 = vmatprep.subr.bf16.mxu1 %v17844_v15  ;;  %v17326_v62 = vld [vmem:[#allocation12 + $0x94] ss:$8 sps:$4 sm:$0xff]  }
 0x533   :  { %11617 = vmatprep.subr.bf16.mxu0 %v17260_v0  ;;  %v17324_v0 = vld [vmem:[#allocation12 + $0x90] ss:$8 sps:$4 sm:$0xff]   ;;  %v17329_v2 = vld [vmem:[#allocation9 + $0x9ac] ss:$36 sps:$4 sm:$0xff]  }
 0x534   :  { %v17321_v31 = vld [vmem:[#allocation9 + $0x960] ss:$36 sps:$4 sm:$0xff]  }
 0x535   :  { %15941 = vmatpush3.bf16.msra.mxu1 %v17261_v42  ;;  %v17332_v42 = vld [vmem:[#allocation12 + $0xa4] ss:$8 sps:$4 sm:$0xff]  }
 0x536   :  { %11618 = vmatpush1.bf16.msra.mxu0 %v17258_v36  ;;  %15942 = vmatprep.subr.bf16.mxu1 %v17844_v15  ;;  %v17276_v15 = vld [vmem:[#allocation12 + $0x10] ss:$8 sps:$4 sm:$0xff]   ;;  %v17330_v36 = vld [vmem:[#allocation12 + $0xa0] ss:$8 sps:$4 sm:$0xff]  }
 0x537   :  { %11619 = vmatprep.subr.bf16.mxu0 %v17264_v5  ;;  %v17327_v5 = vld [vmem:[#allocation9 + $0x9a8] ss:$36 sps:$4 sm:$0xff]  }
 0x539   :  { %15943 = vmatpush3.bf16.msra.mxu1 %v17265_v6  ;;  %v17338_v6 = vld [vmem:[#allocation12 + $0xb4] ss:$8 sps:$4 sm:$0xff]  }
 0x53a   :  { %11620 = vmatpush1.bf16.msra.mxu0 %v17262_v10  ;;  %12819 = vmatprep.subr.bf16.mxu1 %v17272_v9  ;;  %v17335_v10 = vld [vmem:[#allocation9 + $0x9f4] ss:$36 sps:$4 sm:$0xff]  }
 0x53b   :  { %11621 = vmatprep.subr.bf16.mxu0 %v17268_v7  ;;  %v17333_v9 = vld [vmem:[#allocation9 + $0x9f0] ss:$36 sps:$4 sm:$0xff]  }
 0x53c   :  { %15945 = vmatmul.mubr.bf16.vlgmr.msra.gmra.mrb[116].mxu1 %v18552_v18  ;;  %v17344_v7 = vld [vmem:[#allocation12 + $0xc4] ss:$8 sps:$4 sm:$0xff]  }
 0x53d   :  { %12820 = vmatpush1.bf16.msra.mxu1 %v17270_v13  ;;  %12851 = vmatprep.mubr.bf16.mxu1 %v17640_v20  ;;  %v17342_v13 = vld [vmem:[#allocation12 + $0xc0] ss:$8 sps:$4 sm:$0xff]  }
 0x53e   :  { %11622 = vmatpush1.bf16.msra.mxu0 %v17266_v16  ;;  %12821 = vmatprep.subr.bf16.mxu1 %v17278_v19  ;;  %v17339_v16 = vld [vmem:[#allocation9 + $0xa38] ss:$36 sps:$4 sm:$0xff]   ;;  %v17347_v20 = vld [vmem:[#allocation9 + $0xa84] ss:$36 sps:$4 sm:$0xff]  }
 0x53f   :  { %11623 = vmatprep.subr.bf16.mxu0 %v17275_v61  ;;  %v17350_v19 = vld [vmem:[#allocation12 + $0xd4] ss:$8 sps:$4 sm:$0xff]   ;;  %v18562_v61 = vld [vmem:[#allocation10 + $0x3] sm:$0x7] }
 0x541   :  { %12822 = vmatpush1.bf16.msra.mxu1 %v17276_v15  ;;  %v17348_v15 = vld [vmem:[#allocation12 + $0xd0] ss:$8 sps:$4 sm:$0xff]  }
 0x542   :  { %11624 = vmatpush1.bf16.msra.mxu0 %v17273_v60  ;;  %12823 = vmatprep.subr.bf16.mxu1 %v17284_v26  ;;  %v9131_v60 = vrot.slane %v18562_v61, %v18442_v22  ;;  %v17345_v26 = vld [vmem:[#allocation9 + $0xa80] ss:$36 sps:$4 sm:$0xff]  }
 0x543   :  { %11625 = vmatprep.subr.bf16.mxu0 %v17281_v21  ;;  %v17356_v21 = vld [vmem:[#allocation12 + $0xe4] ss:$8 sps:$4 sm:$0xff]  }
 0x545   :  { %12824 = vmatpush1.bf16.msra.mxu1 %v17282_v23  ;;  %v17353_v23 = vld [vmem:[#allocation9 + $0xacc] ss:$36 sps:$4 sm:$0xff]  }
 0x546   :  { %11626 = vmatpush1.bf16.msra.mxu0 %v17279_v24  ;;  %12825 = vmatprep.subr.bf16.mxu1 %v17290_v50 }
 0x547   :  { %11627 = vmatprep.subr.bf16.mxu0 %v17287_v58  ;;  %v17354_v58 = vld [vmem:[#allocation12 + $0xe0] ss:$8 sps:$4 sm:$0xff]  }
 0x549   :  { %12826 = vmatpush1.bf16.msra.mxu1 %v17288_v48 }
 0x54a   :  { %11628 = vmatpush1.bf16.msra.mxu0 %v17285_v32  ;;  %12827 = vmatprep.subr.bf16.mxu1 %v17296_v33 }
 0x54b   :  { %11629 = vmatprep.subr.bf16.mxu0 %v17293_v38  ;;  %v17351_v38 = vld [vmem:[#allocation9 + $0xac8] ss:$36 sps:$4 sm:$0xff]  }
 0x54d   :  { %12828 = vmatpush1.bf16.msra.mxu1 %v17294_v30  ;;  %v17362_v30 = vld [vmem:[#allocation12 + $0xf4] ss:$8 sps:$4 sm:$0xff]  }
 0x54e   :  { %11630 = vmatpush1.bf16.msra.mxu0 %v17291_v39  ;;  %12829 = vmatprep.subr.bf16.mxu1 %v17302_v41  ;;  %v17359_v41 = vld [vmem:[#allocation9 + $0xb14] ss:$36 sps:$4 sm:$0xff]  }
 0x54f   :  { %11631 = vmatprep.subr.bf16.mxu0 %v17299_v8 }
 0x550   :  { %v15592_v14 = vpop.f32.mrb[92].mxu0 }
 0x551   :  { %v15593_v47 = vpop.f32.mrb[93].mxu0  ;;  %12830 = vmatpush1.bf16.msra.mxu1 %v17300_v43  ;;  %v17360_v43 = vld [vmem:[#allocation12 + $0xf0] ss:$8 sps:$4 sm:$0xff]  }
 0x552   :  { %v18558_v37 = vadd.f32 %v15593_v47, %v15592_v14  ;;  %v15595_v51 = vpop.f32.mrb[94].mxu0  ;;  %11632 = vmatpush1.bf16.msra.mxu0 %v17297_v44  ;;  %12831 = vmatprep.subr.bf16.mxu1 %v17308_v11  ;;  %v17357_v44 = vld [vmem:[#allocation9 + $0xb10] ss:$36 sps:$4 sm:$0xff]   ;;  %v17641_v47 = vpack.c.bf16 %v8872_v34, %v8872_v34  ;;  %v17386_v34 = vld [vmem:[#allocation12 + $0x134] ss:$8 sps:$4 sm:$0xff]  }
 0x553   :  { %v15596_v54 = vpop.f32.mrb[95].mxu0  ;;  %11633 = vmatprep.subr.bf16.mxu0 %v17305_v40  ;;  %v17368_v11 = vld [vmem:[#allocation12 + $0x104] ss:$8 sps:$4 sm:$0xff]   ;;  %v17365_v40 = vld [vmem:[#allocation9 + $0xb5c] ss:$36 sps:$4 sm:$0xff]  }
 0x554   :  { %v10255_v48 = vadd.f32 %v18558_v37, %v9131_v60  ;;  %v17366_v14 = vld [vmem:[#allocation12 + $0x100] ss:$8 sps:$4 sm:$0xff]   ;;  %v17374_v37 = vld [vmem:[#allocation12 + $0x114] ss:$8 sps:$4 sm:$0xff]   ;;  %v17380_v54 = vld [vmem:[#allocation12 + $0x124] ss:$8 sps:$4 sm:$0xff]  }
 0x555   :  { %12832 = vmatpush1.bf16.msra.mxu1 %v17306_v49  ;;  %v17363_v49 = vld [vmem:[#allocation9 + $0xb58] ss:$36 sps:$4 sm:$0xff]   ;;  %v17371_v51 = vld [vmem:[#allocation9 + $0xba4] ss:$36 sps:$4 sm:$0xff]  }
 0x556   :  { %11634 = vmatpush1.bf16.msra.mxu0 %v17303_v52  ;;  %12833 = vmatprep.subr.bf16.mxu1 %v17314_v53  ;;  %v17372_v52 = vld [vmem:[#allocation12 + $0x110] ss:$8 sps:$4 sm:$0xff]   ;;  %v17402_v60 = vld [vmem:[#allocation12 + $0x160] ss:$8 sps:$4 sm:$0xff]  }
 0x557   :  { %11635 = vmatprep.subr.bf16.mxu0 %v17311_v35  ;;  %v17369_v53 = vld [vmem:[#allocation9 + $0xba0] ss:$36 sps:$4 sm:$0xff]   ;;  %v17377_v35 = vld [vmem:[#allocation9 + $0xbec] ss:$36 sps:$4 sm:$0xff]  }
 0x559   :  { %12834 = vmatpush1.bf16.msra.mxu1 %v17312_v59  ;;  %v17378_v59 = vld [vmem:[#allocation12 + $0x120] ss:$8 sps:$4 sm:$0xff]  }
 0x55a   :  { %11636 = vmatpush1.bf16.msra.mxu0 %v17309_v12  ;;  %12835 = vmatprep.subr.bf16.mxu1 %v17320_v55  ;;  %v17383_v12 = vld [vmem:[#allocation9 + $0xc34] ss:$36 sps:$4 sm:$0xff]  }
 0x55b   :  { %11646 = vmatprep.subr.bf16.mxu0 %v17317_v56  ;;  %v17384_v55 = vld [vmem:[#allocation12 + $0x130] ss:$8 sps:$4 sm:$0xff]   ;;  %v17381_v56 = vld [vmem:[#allocation9 + $0xc30] ss:$36 sps:$4 sm:$0xff]  }
 0x55d   :  { %11638 = vmatmul.mubr.bf16.vlgmr.msra.gmra.mrb[108].mxu0 %v18523_v1  ;;  %12836 = vmatpush1.bf16.msra.mxu1 %v17318_v57  ;;  %v17336_v1 = vld [vmem:[#allocation12 + $0xb0] ss:$8 sps:$4 sm:$0xff]   ;;  %v17392_v57 = vld [vmem:[#allocation12 + $0x144] ss:$8 sps:$4 sm:$0xff]  }
 0x55e   :  { %11647 = vmatpush1.bf16.msra.mxu0 %v17315_v3  ;;  %11678 = vmatprep.mubr.bf16.mxu0 %v18527_v4  ;;  %v17341_v4 = vld [vmem:[#allocation9 + $0xa3c] ss:$36 sps:$4 sm:$0xff]  }
 0x55f   :  { %11648 = vmatprep.subr.bf16.mxu0 %v17323_v28  ;;  %12837 = vmatprep.subr.bf16.mxu1 %v17326_v62  ;;  %v17389_v3 = vld [vmem:[#allocation9 + $0xc7c] ss:$36 sps:$4 sm:$0xff]   ;;  %v17390_v28 = vld [vmem:[#allocation12 + $0x140] ss:$8 sps:$4 sm:$0xff]   ;;  %v9123_v62 = vrot.slane %v18562_v61, %v18505_v25 }
 0x561   :  { %12838 = vmatpush1.bf16.msra.mxu1 %v17324_v0  ;;  %v17387_v0 = vld [vmem:[#allocation9 + $0xc78] ss:$36 sps:$4 sm:$0xff]  }
 0x562   :  { %11649 = vmatpush1.bf16.msra.mxu0 %v17321_v31  ;;  %12839 = vmatprep.subr.bf16.mxu1 %v17332_v42  ;;  %v17398_v31 = vld [vmem:[#allocation12 + $0x154] ss:$8 sps:$4 sm:$0xff]   ;;  %v9127_v42 = vrot.slane %v18562_v61, %v18508_v17 }
 0x563   :  { %11650 = vmatprep.subr.bf16.mxu0 %v17329_v2  ;;  %v17395_v2 = vld [vmem:[#allocation9 + $0xcc4] ss:$36 sps:$4 sm:$0xff]  }
 0x565   :  { %12840 = vmatpush1.bf16.msra.mxu1 %v17330_v36  ;;  %v17396_v36 = vld [vmem:[#allocation12 + $0x150] ss:$8 sps:$4 sm:$0xff]  }
 0x566   :  { %11651 = vmatpush1.bf16.msra.mxu0 %v17327_v5  ;;  %12841 = vmatprep.subr.bf16.mxu1 %v17338_v6  ;;  %v10091_v5 = vadd.f32 %v18546_v63, %v9123_v62  ;;  %v17393_v6 = vld [vmem:[#allocation9 + $0xcc0] ss:$36 sps:$4 sm:$0xff]  }
 0x567   :  { %11652 = vmatprep.subr.bf16.mxu0 %v17335_v10  ;;  %v17404_v10 = vld [vmem:[#allocation12 + $0x164] ss:$8 sps:$4 sm:$0xff]  }
 0x569   :  { %12842 = vmatpush1.bf16.msra.mxu1 %v17336_v1  ;;  %v10093_v1 = vadd.f32 %v18548_v29, %v9127_v42 }
 0x56a   :  { %11653 = vmatpush1.bf16.msra.mxu0 %v17333_v9  ;;  %12843 = vmatprep.subr.bf16.mxu1 %v17344_v7  ;;  %v17401_v7 = vld [vmem:[#allocation9 + $0xd0c] ss:$36 sps:$4 sm:$0xff]  }
 0x56b   :  { %11654 = vmatprep.subr.bf16.mxu0 %v17341_v4 }
 0x56d   :  { %12844 = vmatpush1.bf16.msra.mxu1 %v17342_v13 }
 0x56e   :  { %11655 = vmatpush1.bf16.msra.mxu0 %v17339_v16  ;;  %12845 = vmatprep.subr.bf16.mxu1 %v17350_v19 }
 0x56f   :  { %11656 = vmatprep.subr.bf16.mxu0 %v17347_v20 }
 0x570   :  { %v15614_v24 = vpop.f32.mrb[96].mxu0 }
 0x571   :  { %v15615_v50 = vpop.f32.mrb[97].mxu0  ;;  %12846 = vmatpush1.bf16.msra.mxu1 %v17348_v15  ;;  %v17399_v15 = vld [vmem:[#allocation9 + $0xd08] ss:$36 sps:$4 sm:$0xff]  }
 0x572   :  { %v15616_v32 = vadd.f32 %v15615_v50, %v15614_v24  ;;  %v15617_v33 = vpop.f32.mrb[98].mxu0  ;;  %11657 = vmatpush1.bf16.msra.mxu0 %v17345_v26  ;;  %12847 = vmatprep.subr.bf16.mxu1 %v17356_v21  ;;  %v17410_v24 = vld [vmem:[#allocation12 + $0x174] ss:$8 sps:$4 sm:$0xff]  }
 0x573   :  { %v15618_v39 = vpop.f32.mrb[99].mxu0  ;;  %11658 = vmatprep.subr.bf16.mxu0 %v17353_v23  ;;  %v17408_v33 = vld [vmem:[#allocation12 + $0x170] ss:$8 sps:$4 sm:$0xff]  }
 0x574   :  { %v18567_v8 = vadd.f32 %v15616_v32, %v10255_v48  ;;  %v17413_v39 = vld [vmem:[#allocation9 + $0xd9c] ss:$36 sps:$4 sm:$0xff]  }
 0x575   :  { %12848 = vmatpush1.bf16.msra.mxu1 %v17354_v58  ;;  %v17407_v58 = vld [vmem:[#allocation9 + $0xd54] ss:$36 sps:$4 sm:$0xff]  }
 0x576   :  { %11659 = vmatpush1.bf16.msra.mxu0 %v17351_v38  ;;  %12849 = vmatprep.subr.bf16.mxu1 %v17362_v30  ;;  %v17405_v38 = vld [vmem:[#allocation9 + $0xd50] ss:$36 sps:$4 sm:$0xff]  }
 0x577   :  { %11660 = vmatprep.subr.bf16.mxu0 %v17359_v41  ;;  %v17416_v30 = vld [vmem:[#allocation12 + $0x184] ss:$8 sps:$4 sm:$0xff]   ;;  %v17414_v41 = vld [vmem:[#allocation12 + $0x180] ss:$8 sps:$4 sm:$0xff]  }
 0x579   :  { %12850 = vmatpush1.bf16.msra.mxu1 %v17360_v43  ;;  %v17411_v43 = vld [vmem:[#allocation9 + $0xd98] ss:$36 sps:$4 sm:$0xff]  }
 0x57a   :  { %11661 = vmatpush1.bf16.msra.mxu0 %v17357_v44  ;;  %12860 = vmatprep.subr.bf16.mxu1 %v17368_v11  ;;  %v17422_v44 = vld [vmem:[#allocation12 + $0x194] ss:$8 sps:$4 sm:$0xff]  }
 0x57b   :  { %11662 = vmatprep.subr.bf16.mxu0 %v17365_v40  ;;  %v17419_v11 = vld [vmem:[#allocation9 + $0xde4] ss:$36 sps:$4 sm:$0xff]  }
 0x57c   :  { %12852 = vmatmul.mubr.bf16.vlgmr.msra.gmra.mrb[120].mxu1 %v17641_v47  ;;  %v17417_v40 = vld [vmem:[#allocation9 + $0xde0] ss:$36 sps:$4 sm:$0xff]   ;;  %v17430_v47 = vld [vmem:[#allocation12 + $0x1a4] ss:$8 sps:$4 sm:$0xff]  }
 0x57d   :  { %12861 = vmatpush1.bf16.msra.mxu1 %v17366_v14 }
 0x57e   :  { %11663 = vmatpush1.bf16.msra.mxu0 %v17363_v49  ;;  %12862 = vmatprep.subr.bf16.mxu1 %v17374_v37  ;;  %v17427_v37 = vld [vmem:[#allocation9 + $0xe2c] ss:$36 sps:$4 sm:$0xff]  }
 0x57f   :  { %11664 = vmatprep.subr.bf16.mxu0 %v17371_v51  ;;  %v17428_v51 = vld [vmem:[#allocation12 + $0x1a0] ss:$8 sps:$4 sm:$0xff]  }
 0x581   :  { %12863 = vmatpush1.bf16.msra.mxu1 %v17372_v52  ;;  %v17436_v52 = vld [vmem:[#allocation12 + $0x1b4] ss:$8 sps:$4 sm:$0xff]  }
 0x582   :  { %11665 = vmatpush1.bf16.msra.mxu0 %v17369_v53  ;;  %12864 = vmatprep.subr.bf16.mxu1 %v17380_v54  ;;  %v17433_v53 = vld [vmem:[#allocation9 + $0xe74] ss:$36 sps:$4 sm:$0xff]  }
 0x583   :  { %11666 = vmatprep.subr.bf16.mxu0 %v17377_v35  ;;  %v17434_v54 = vld [vmem:[#allocation12 + $0x1b0] ss:$8 sps:$4 sm:$0xff]   ;;  %v17431_v35 = vld [vmem:[#allocation9 + $0xe70] ss:$36 sps:$4 sm:$0xff]  }
 0x585   :  { %12865 = vmatpush1.bf16.msra.mxu1 %v17378_v59  ;;  %v17442_v59 = vld [vmem:[#allocation12 + $0x1c4] ss:$8 sps:$4 sm:$0xff]  }
 0x586   :  { %11667 = vmatpush1.bf16.msra.mxu0 %v17375_v46  ;;  %12866 = vmatprep.subr.bf16.mxu1 %v17386_v34  ;;  %v17439_v46 = vld [vmem:[#allocation9 + $0xebc] ss:$36 sps:$4 sm:$0xff]   ;;  %v17440_v34 = vld [vmem:[#allocation12 + $0x1c0] ss:$8 sps:$4 sm:$0xff]  }
 0x587   :  { %11668 = vmatprep.subr.bf16.mxu0 %v17383_v12  ;;  %v17437_v12 = vld [vmem:[#allocation9 + $0xeb8] ss:$36 sps:$4 sm:$0xff]  }
 0x589   :  { %12867 = vmatpush1.bf16.msra.mxu1 %v17384_v55  ;;  %v17448_v55 = vld [vmem:[#allocation12 + $0x1d4] ss:$8 sps:$4 sm:$0xff]  }
 0x58a   :  { %11669 = vmatpush1.bf16.msra.mxu0 %v17381_v56  ;;  %12868 = vmatprep.subr.bf16.mxu1 %v17392_v57  ;;  %v17445_v56 = vld [vmem:[#allocation9 + $0xf04] ss:$36 sps:$4 sm:$0xff]  }
 0x58b   :  { %11670 = vmatprep.subr.bf16.mxu0 %v17389_v3  ;;  %v17446_v57 = vld [vmem:[#allocation12 + $0x1d0] ss:$8 sps:$4 sm:$0xff]  }
 0x58c   :  { %v17443_v3 = vld [vmem:[#allocation9 + $0xf00] ss:$36 sps:$4 sm:$0xff]  }
 0x58d   :  { %12869 = vmatpush1.bf16.msra.mxu1 %v17390_v28  ;;  %v17454_v28 = vld [vmem:[#allocation12 + $0x1e4] ss:$8 sps:$4 sm:$0xff]  }
 0x58e   :  { %11671 = vmatpush1.bf16.msra.mxu0 %v17387_v0  ;;  %12870 = vmatprep.subr.bf16.mxu1 %v17398_v31  ;;  %v17451_v0 = vld [vmem:[#allocation9 + $0xf4c] ss:$36 sps:$4 sm:$0xff]  }
 0x58f   :  { %v10213_v9 = vpop.f32.mrb[100].mxu1  ;;  %11672 = vmatprep.subr.bf16.mxu0 %v17395_v2 }
 0x590   :  { %v15951_v4 = vadd.f32 %v10213_v9, %v10091_v5  ;;  %v15636_v13 = vpop.f32.mrb[100].mxu0  ;;  %v10215_v16 = vpop.f32.mrb[101].mxu1 }
 0x591   :  { %v15953_v19 = vadd.f32 %v10215_v16, %v10093_v1  ;;  %v15637_v20 = vpop.f32.mrb[101].mxu0  ;;  %v10217_v61 = vpop.f32.mrb[102].mxu1  ;;  %12871 = vmatpush1.bf16.msra.mxu1 %v17396_v36 }
 0x592   :  { %v10380_v26 = vmax.f32 %v15951_v4, 0.0  ;;  %v15638_v63 = vadd.f32 %v15637_v20, %v15636_v13  ;;  %v15639_v21 = vpop.f32.mrb[102].mxu0  ;;  %11673 = vmatpush1.bf16.msra.mxu0 %v17393_v6  ;;  %v10218_v23 = vpop.f32.mrb[103].mxu1  ;;  %12872 = vmatprep.subr.bf16.mxu1 %v17404_v10  ;;  %v17452_v10 = vld [vmem:[#allocation12 + $0x1e0] ss:$8 sps:$4 sm:$0xff]  }
 0x593   :  { %v10381_v29 = vmax.f32 %v15953_v19, 0.0  ;;  %v15640_v50 = vpop.f32.mrb[103].mxu0  ;;  %11674 = vmatprep.subr.bf16.mxu0 %v17401_v7  ;;  %v17449_v7 = vld [vmem:[#allocation9 + $0xf48] ss:$36 sps:$4 sm:$0xff]   ;;  %v17457_v19 = vld [vmem:[#allocation9 + $0xf94] ss:$36 sps:$4 sm:$0xff]  }
 0x594   :  { %v18579_v48 = vadd.f32 %v15638_v63, %v18567_v8  ;;  %v17420_v8 = vld [vmem:[#allocation12 + $0x190] ss:$8 sps:$4 sm:$0xff]   ;;  %v17460_v4 = vld [vmem:[#allocation12 + $0x1f4] ss:$8 sps:$4 sm:$0xff]  }
 0x595   :  { %v14664_v32 = vpack.c.bf16 %v10381_v29, %v10380_v26  ;;  %12873 = vmatpush1.bf16.msra.mxu1 %v17402_v60  ;;  %v17458_v61 = vld [vmem:[#allocation12 + $0x1f0] ss:$8 sps:$4 sm:$0xff]   ;;  %v17463_v60 = vld [vmem:[#allocation12 + $0x204] ss:$8 sps:$4 sm:$0xff]   ;;  %v17461_v26 = vld [vmem:[#allocation12 + $0x200] ss:$8 sps:$4 sm:$0xff]  }
 0x596   :  { %11675 = vmatpush1.bf16.msra.mxu0 %v17399_v15  ;;  %12874 = vmatprep.subr.bf16.mxu1 %v17410_v24  ;;  %v17455_v15 = vld [vmem:[#allocation9 + $0xf90] ss:$36 sps:$4 sm:$0xff]   ;;  %v17466_v21 = vld [vmem:[#allocation12 + $0x214] ss:$8 sps:$4 sm:$0xff]   ;;  %v17464_v23 = vld [vmem:[#allocation12 + $0x210] ss:$8 sps:$4 sm:$0xff]  }
 0x597   :  { %10396 = vst [vmem:[#allocation4 + $0xc] sm:$0xff] %v14664_v32  ;;  %11676 = vmatprep.subr.bf16.mxu0 %v17407_v58  ;;  %v17471_v29 = vld [vmem:[#allocation12 + $0x224] ss:$8 sps:$4 sm:$0xff]   ;;  %v17469_v58 = vld [vmem:[#allocation12 + $0x220] ss:$8 sps:$4 sm:$0xff]  }
 0x598   :  { %v17472_v32 = vld [vmem:[#allocation12 + $0x230] ss:$8 sps:$4 sm:$0xff]  }
 0x599   :  { %12875 = vmatpush1.bf16.msra.mxu1 %v17408_v33  ;;  %v17477_v33 = vld [vmem:[#allocation12 + $0x244] ss:$8 sps:$4 sm:$0xff]  }
 0x59a   :  { %11677 = vmatpush1.bf16.msra.mxu0 %v17405_v38  ;;  %12876 = vmatprep.subr.bf16.mxu1 %v17416_v30  ;;  %v18595_v38 = vld [vmem:[#allocation10 + $0x6] sm:$0x7] }
 0x59b   :  { %11687 = vmatprep.subr.bf16.mxu0 %v17413_v39  ;;  %v17480_v30 = vld [vmem:[#allocation12 + $0x254] ss:$8 sps:$4 sm:$0xff]   ;;  %v10639_v39 = vrot.slane %v18595_v38, %v18442_v22  ;;  %v17487_v22 = vld [vmem:[#allocation12 + $0x280] ss:$8 sps:$4 sm:$0xff]  }
 0x59d   :  { %11679 = vmatmul.mubr.bf16.vlgmr.msra.gmra.mrb[108].mxu0 %v18533_v45  ;;  %12877 = vmatpush1.bf16.msra.mxu1 %v17414_v41  ;;  %v17425_v45 = vld [vmem:[#allocation9 + $0xe28] ss:$36 sps:$4 sm:$0xff]   ;;  %v17478_v41 = vld [vmem:[#allocation12 + $0x250] ss:$8 sps:$4 sm:$0xff]  }
 0x59e   :  { %11688 = vmatpush1.bf16.msra.mxu0 %v17411_v43  ;;  %12878 = vmatprep.subr.bf16.mxu1 %v17422_v44  ;;  %v18582_v14 = vld [vmem:[#allocation4 + $0x8] sm:$0xff]  ;;  %v17483_v43 = vld [vmem:[#allocation12 + $0x264] ss:$8 sps:$4 sm:$0xff]  }
 0x59f   :  { %11689 = vmatprep.subr.bf16.mxu0 %v17419_v11  ;;  %v14468_v49 = vcombine.high %v18582_v14, %v18582_v14  ;;  %11719 = vmatprep.mubr.bf16.mxu0 %v17846_v27  ;;  %v14467_v63 = vcombine.low %v18582_v14, %v18582_v14 }
 0x5a1   :  { %12879 = vmatpush1.bf16.msra.mxu1 %v17420_v8  ;;  %12892 = vmatprep.mubr.bf16.mxu1 %v14468_v49 }
 0x5a2   :  { %11690 = vmatpush1.bf16.msra.mxu0 %v17417_v40  ;;  %12880 = vmatprep.subr.bf16.mxu1 %v17430_v47  ;;  %v17481_v47 = vld [vmem:[#allocation12 + $0x260] ss:$8 sps:$4 sm:$0xff]  }
 0x5a3   :  { %11691 = vmatprep.subr.bf16.mxu0 %v17427_v37  ;;  %v17486_v37 = vld [vmem:[#allocation12 + $0x274] ss:$8 sps:$4 sm:$0xff]  }
 0x5a5   :  { %12881 = vmatpush1.bf16.msra.mxu1 %v17428_v51 }
 0x5a6   :  { %11692 = vmatpush1.bf16.msra.mxu0 %v17425_v45  ;;  %12882 = vmatprep.subr.bf16.mxu1 %v17436_v52  ;;  %v17484_v45 = vld [vmem:[#allocation12 + $0x270] ss:$8 sps:$4 sm:$0xff]   ;;  %v17489_v52 = vld [vmem:[#allocation12 + $0x284] ss:$8 sps:$4 sm:$0xff]  }
 0x5a7   :  { %11693 = vmatprep.subr.bf16.mxu0 %v17433_v53  ;;  %v17492_v53 = vld [vmem:[#allocation12 + $0x294] ss:$8 sps:$4 sm:$0xff]  }
 0x5a9   :  { %12883 = vmatpush1.bf16.msra.mxu1 %v17434_v54  ;;  %v17490_v54 = vld [vmem:[#allocation12 + $0x290] ss:$8 sps:$4 sm:$0xff]  }
 0x5aa   :  { %11694 = vmatpush1.bf16.msra.mxu0 %v17431_v35  ;;  %12884 = vmatprep.subr.bf16.mxu1 %v17442_v59  ;;  %v17495_v35 = vld [vmem:[#allocation12 + $0x2a4] ss:$8 sps:$4 sm:$0xff]   ;;  %v17493_v59 = vld [vmem:[#allocation12 + $0x2a0] ss:$8 sps:$4 sm:$0xff]  }
 0x5ab   :  { %11695 = vmatprep.subr.bf16.mxu0 %v17439_v46  ;;  %v17498_v46 = vld [vmem:[#allocation12 + $0x2b4] ss:$8 sps:$4 sm:$0xff]  }
 0x5ad   :  { %12885 = vmatpush1.bf16.msra.mxu1 %v17440_v34  ;;  %v17496_v34 = vld [vmem:[#allocation12 + $0x2b0] ss:$8 sps:$4 sm:$0xff]  }
 0x5ae   :  { %11696 = vmatpush1.bf16.msra.mxu0 %v17437_v12  ;;  %12886 = vmatprep.subr.bf16.mxu1 %v17448_v55  ;;  %v17501_v12 = vld [vmem:[#allocation12 + $0x2c4] ss:$8 sps:$4 sm:$0xff]   ;;  %v17499_v55 = vld [vmem:[#allocation12 + $0x2c0] ss:$8 sps:$4 sm:$0xff]  }
 0x5af   :  { %v15667_v62 = vpop.f32.mrb[104].mxu1  ;;  %11697 = vmatprep.subr.bf16.mxu0 %v17445_v56  ;;  %v17504_v56 = vld [vmem:[#allocation12 + $0x2d4] ss:$8 sps:$4 sm:$0xff]  }
 0x5b0   :  { %v10374_v31 = vpop.f32.mrb[104].mxu0  ;;  %v15668_v42 = vpop.f32.mrb[105].mxu1 }
 0x5b1   :  { %v10375_v2 = vadd.f32 %v10374_v31, %v18579_v48  ;;  %v15926_v36 = vpop.f32.mrb[105].mxu0  ;;  %v15669_v5 = vadd.f32 %v15668_v42, %v15667_v62  ;;  %v15670_v6 = vpop.f32.mrb[106].mxu1  ;;  %12887 = vmatpush1.bf16.msra.mxu1 %v17446_v57  ;;  %v17474_v48 = vld [vmem:[#allocation12 + $0x234] ss:$8 sps:$4 sm:$0xff]   ;;  %v17502_v57 = vld [vmem:[#allocation12 + $0x2d0] ss:$8 sps:$4 sm:$0xff]  }
 0x5b2   :  { %v10377_v1 = vpop.f32.mrb[106].mxu0  ;;  %11698 = vmatpush1.bf16.msra.mxu0 %v17443_v3  ;;  %v15671_v9 = vpop.f32.mrb[107].mxu1  ;;  %12888 = vmatprep.subr.bf16.mxu1 %v17454_v28  ;;  %v17507_v3 = vld [vmem:[#allocation12 + $0x2e4] ss:$8 sps:$4 sm:$0xff]   ;;  %v17505_v42 = vld [vmem:[#allocation12 + $0x2e0] ss:$8 sps:$4 sm:$0xff]  }
 0x5b3   :  { %v10382_v13 = vmax.f32 %v10375_v2, 0.0  ;;  %v15927_v16 = vpop.f32.mrb[107].mxu0  ;;  %11699 = vmatprep.subr.bf16.mxu0 %v17451_v0  ;;  %v11763_v8 = vadd.f32 %v15669_v5, %v10639_v39  ;;  %v17510_v36 = vld [vmem:[#allocation12 + $0x2f4] ss:$8 sps:$4 sm:$0xff]   ;;  %v17508_v6 = vld [vmem:[#allocation12 + $0x2f0] ss:$8 sps:$4 sm:$0xff]  }
 0x5b4   :  { %v17511_v1 = vld [vmem:[#allocation12 + $0x300] ss:$8 sps:$4 sm:$0xff]  }
 0x5b5   :  { %v14665_v20 = vpack.c.bf16 %v10382_v13, %v10382_v13  ;;  %12889 = vmatpush1.bf16.msra.mxu1 %v17452_v10  ;;  %v17513_v10 = vld [vmem:[#allocation12 + $0x304] ss:$8 sps:$4 sm:$0xff]   ;;  %v17517_v16 = vld [vmem:[#allocation12 + $0x320] ss:$8 sps:$4 sm:$0xff]  }
 0x5b6   :  { %11700 = vmatpush1.bf16.msra.mxu0 %v17449_v7  ;;  %12890 = vmatprep.subr.bf16.mxu1 %v17460_v4  ;;  %v17516_v7 = vld [vmem:[#allocation12 + $0x314] ss:$8 sps:$4 sm:$0xff]   ;;  %v17514_v4 = vld [vmem:[#allocation12 + $0x310] ss:$8 sps:$4 sm:$0xff]   ;;  %v17519_v13 = vld [vmem:[#allocation12 + $0x324] ss:$8 sps:$4 sm:$0xff]  }
 0x5b7   :  { %10397 = vst [vmem:[#allocation4 + $0x14] sm:$0xf] %v14665_v20  ;;  %11701 = vmatprep.subr.bf16.mxu0 %v17457_v19  ;;  %v17522_v19 = vld [vmem:[#allocation12 + $0x334] ss:$8 sps:$4 sm:$0xff]   ;;  %v17520_v20 = vld [vmem:[#allocation12 + $0x330] ss:$8 sps:$4 sm:$0xff]  }
 0x5b8   :  { %v17535_v39 = vld [vmem:[#allocation12 + $0x380] ss:$8 sps:$4 sm:$0xff]  }
 0x5b9   :  { %12891 = vmatpush1.bf16.msra.mxu1 %v17458_v61  ;;  %v17525_v61 = vld [vmem:[#allocation12 + $0x344] ss:$8 sps:$4 sm:$0xff]  }
 0x5ba   :  { %11702 = vmatpush1.bf16.msra.mxu0 %v17455_v15  ;;  %12901 = vmatprep.subr.bf16.mxu1 %v17463_v60  ;;  %v17523_v15 = vld [vmem:[#allocation12 + $0x340] ss:$8 sps:$4 sm:$0xff]   ;;  %v17528_v60 = vld [vmem:[#allocation12 + $0x354] ss:$8 sps:$4 sm:$0xff]  }
 0x5bc   :  { %12893 = vmatmul.mubr.bf16.vlgmr.msra.gmra.mrb[120].mxu1 %v14467_v63  ;;  %v17531_v63 = vld [vmem:[#allocation12 + $0x364] ss:$8 sps:$4 sm:$0xff]  }
 0x5bd   :  { %11720 = vmatmul.mubr.bf16.vlgmr.msra.gmra.mrb[108].mxu0 %v18552_v18  ;;  %12902 = vmatpush1.bf16.msra.mxu1 %v17461_v26  ;;  %v17475_v18 = vld [vmem:[#allocation12 + $0x240] ss:$8 sps:$4 sm:$0xff]   ;;  %v17526_v26 = vld [vmem:[#allocation12 + $0x350] ss:$8 sps:$4 sm:$0xff]  }
 0x5be   :  { %12903 = vmatprep.subr.bf16.mxu1 %v17466_v21  ;;  %v18591_v24 = vld [vmem:[#allocation4 + $0x10] sm:$0xff] }
 0x5bf   :  { %v14470_v50 = vcombine.high %v18591_v24, %v18591_v24  ;;  %v14469_v9 = vcombine.low %v18591_v24, %v18591_v24 }
 0x5c1   :  { %12933 = vmatprep.mubr.bf16.mxu1 %v14470_v50  ;;  %12904 = vmatpush1.bf16.msra.mxu1 %v17464_v23  ;;  %v17529_v50 = vld [vmem:[#allocation12 + $0x360] ss:$8 sps:$4 sm:$0xff]  }
 0x5c2   :  { %12905 = vmatprep.subr.bf16.mxu1 %v17471_v29 }
 0x5c5   :  { %12906 = vmatpush1.bf16.msra.mxu1 %v17469_v58 }
 0x5c6   :  { %12907 = vmatprep.subr.bf16.mxu1 %v17474_v48 }
 0x5c9   :  { %12908 = vmatpush1.bf16.msra.mxu1 %v17472_v32  ;;  %v17534_v32 = vld [vmem:[#allocation12 + $0x374] ss:$8 sps:$4 sm:$0xff]  }
 0x5ca   :  { %12909 = vmatprep.subr.bf16.mxu1 %v17477_v33 }
 0x5cd   :  { %12910 = vmatpush1.bf16.msra.mxu1 %v17475_v18  ;;  %v17532_v18 = vld [vmem:[#allocation12 + $0x370] ss:$8 sps:$4 sm:$0xff]  }
 0x5ce   :  { %12911 = vmatprep.subr.bf16.mxu1 %v17480_v30  ;;  %v17537_v30 = vld [vmem:[#allocation12 + $0x384] ss:$8 sps:$4 sm:$0xff]  }
 0x5cf   :  { %v15689_v44 = vpop.f32.mrb[108].mxu1 }
 0x5d0   :  { %v15690_v11 = vpop.f32.mrb[109].mxu1 }
 0x5d1   :  { %v15691_v40 = vadd.f32 %v15690_v11, %v15689_v44  ;;  %v15692_v14 = vpop.f32.mrb[110].mxu1  ;;  %12912 = vmatpush1.bf16.msra.mxu1 %v17478_v41  ;;  %v17540_v41 = vld [vmem:[#allocation12 + $0x394] ss:$8 sps:$4 sm:$0xff]   ;;  %v17543_v44 = vld [vmem:[#allocation12 + $0x3a4] ss:$8 sps:$4 sm:$0xff]  }
 0x5d2   :  { %v15693_v49 = vpop.f32.mrb[111].mxu1  ;;  %12913 = vmatprep.subr.bf16.mxu1 %v17483_v43  ;;  %v17538_v43 = vld [vmem:[#allocation12 + $0x390] ss:$8 sps:$4 sm:$0xff]   ;;  %v17541_v11 = vld [vmem:[#allocation12 + $0x3a0] ss:$8 sps:$4 sm:$0xff]  }
 0x5d3   :  { %v11803_v51 = vadd.f32 %v15691_v40, %v11763_v8  ;;  %v17546_v8 = vld [vmem:[#allocation12 + $0x3b4] ss:$8 sps:$4 sm:$0xff]   ;;  %v17544_v40 = vld [vmem:[#allocation12 + $0x3b0] ss:$8 sps:$4 sm:$0xff]   ;;  %v17549_v14 = vld [vmem:[#allocation12 + $0x3c4] ss:$8 sps:$4 sm:$0xff]  }
 0x5d4   :  { %v17552_v49 = vld [vmem:[#allocation12 + $0x3d4] ss:$8 sps:$4 sm:$0xff]  }
 0x5d5   :  { %12914 = vmatpush1.bf16.msra.mxu1 %v17481_v47  ;;  %v17547_v47 = vld [vmem:[#allocation12 + $0x3c0] ss:$8 sps:$4 sm:$0xff]  }
 0x5d6   :  { %12915 = vmatprep.subr.bf16.mxu1 %v17486_v37  ;;  %v17550_v37 = vld [vmem:[#allocation12 + $0x3d0] ss:$8 sps:$4 sm:$0xff]  }
 0x5d9   :  { %12916 = vmatpush1.bf16.msra.mxu1 %v17484_v45  ;;  %v17553_v45 = vld [vmem:[#allocation12 + $0x3e0] ss:$8 sps:$4 sm:$0xff]  }
 0x5da   :  { %12917 = vmatprep.subr.bf16.mxu1 %v17489_v52  ;;  %v17558_v52 = vld [vmem:[#allocation12 + $0x3f4] ss:$8 sps:$4 sm:$0xff]  }
 0x5dd   :  { %12918 = vmatpush1.bf16.msra.mxu1 %v17487_v22  ;;  %v17556_v22 = vld [vmem:[#allocation12 + $0x3f0] ss:$8 sps:$4 sm:$0xff]  }
 0x5de   :  { %12919 = vmatprep.subr.bf16.mxu1 %v17492_v53  ;;  %v17561_v53 = vld [vmem:[#allocation12 + $0x404] ss:$8 sps:$4 sm:$0xff]  }
 0x5e1   :  { %12920 = vmatpush1.bf16.msra.mxu1 %v17490_v54  ;;  %v17584_v54 = vld [vmem:[#allocation15 + $0x40] sm:$0xff]  }
 0x5e2   :  { %12921 = vmatprep.subr.bf16.mxu1 %v17495_v35  ;;  %v17585_v35 = vld [vmem:[#allocation15] sm:$0xff]   ;;  %15726 = vmatprep.subr.bf16.mxu0 %v17584_v54 }
 0x5e3   :  { %15727 = vmatpush3.bf16.msra.mxu0 %v17585_v35 }
 0x5e5   :  { %12922 = vmatpush1.bf16.msra.mxu1 %v17493_v59  ;;  %v17586_v59 = vld [vmem:[#allocation15 + $0x48] sm:$0xff]  }
 0x5e6   :  { %12923 = vmatprep.subr.bf16.mxu1 %v17498_v46  ;;  %v17587_v46 = vld [vmem:[#allocation15 + $0x8] sm:$0xff]   ;;  %15728 = vmatprep.subr.bf16.mxu0 %v17586_v59 }
 0x5e7   :  { %15729 = vmatpush3.bf16.msra.mxu0 %v17587_v46 }
 0x5e9   :  { %12924 = vmatpush1.bf16.msra.mxu1 %v17496_v34  ;;  %v17588_v34 = vld [vmem:[#allocation15 + $0x50] sm:$0xff]  }
 0x5ea   :  { %12925 = vmatprep.subr.bf16.mxu1 %v17501_v12  ;;  %v17589_v12 = vld [vmem:[#allocation15 + $0x10] sm:$0xff]   ;;  %15730 = vmatprep.subr.bf16.mxu0 %v17588_v34 }
 0x5eb   :  { %15731 = vmatpush3.bf16.msra.mxu0 %v17589_v12 }
 0x5ed   :  { %12926 = vmatpush1.bf16.msra.mxu1 %v17499_v55  ;;  %v17590_v55 = vld [vmem:[#allocation15 + $0x58] sm:$0xff]  }
 0x5ee   :  { %12927 = vmatprep.subr.bf16.mxu1 %v17504_v56  ;;  %v17591_v56 = vld [vmem:[#allocation15 + $0x18] sm:$0xff]   ;;  %15732 = vmatprep.subr.bf16.mxu0 %v17590_v55 }
 0x5ef   :  { %v15711_v28 = vpop.f32.mrb[112].mxu1  ;;  %15733 = vmatpush3.bf16.msra.mxu0 %v17591_v56 }
 0x5f0   :  { %v15712_v62 = vpop.f32.mrb[113].mxu1 }
 0x5f1   :  { %v15713_v0 = vadd.f32 %v15712_v62, %v15711_v28  ;;  %v15714_v31 = vpop.f32.mrb[114].mxu1  ;;  %12928 = vmatpush1.bf16.msra.mxu1 %v17502_v57  ;;  %v17592_v57 = vld [vmem:[#allocation15 + $0x60] sm:$0xff]   ;;  %v17594_v28 = vld [vmem:[#allocation15 + $0x68] sm:$0xff]  }
 0x5f2   :  { %v15715_v2 = vpop.f32.mrb[115].mxu1  ;;  %12929 = vmatprep.subr.bf16.mxu1 %v17507_v3  ;;  %v17593_v3 = vld [vmem:[#allocation15 + $0x20] sm:$0xff]   ;;  %15734 = vmatprep.subr.bf16.mxu0 %v17592_v57  ;;  %v17595_v62 = vld [vmem:[#allocation15 + $0x28] sm:$0xff]   ;;  %v10635_v31 = vrot.slane %v18595_v38, %v18508_v17 }
 0x5f3   :  { %v11843_v5 = vadd.f32 %v15713_v0, %v11803_v51  ;;  %v17555_v51 = vld [vmem:[#allocation12 + $0x3e4] ss:$8 sps:$4 sm:$0xff]   ;;  %15735 = vmatpush3.bf16.msra.mxu0 %v17593_v3  ;;  %v10631_v0 = vrot.slane %v18595_v38, %v18505_v25 }
 0x5f4   :  { %15736 = vmatprep.subr.bf16.mxu0 %v17594_v28  ;;  %v17567_v38 = vld [vmem:[#allocation12 + $0x424] ss:$8 sps:$4 sm:$0xff]  }
 0x5f5   :  { %12930 = vmatpush1.bf16.msra.mxu1 %v17505_v42 }
 0x5f6   :  { %12931 = vmatprep.subr.bf16.mxu1 %v17510_v36 }
 0x5f7   :  { %15737 = vmatpush3.bf16.msra.mxu0 %v17595_v62 }
 0x5f9   :  { %12932 = vmatpush1.bf16.msra.mxu1 %v17508_v6 }
 0x5fa   :  { %12942 = vmatprep.subr.bf16.mxu1 %v17513_v10 }
 0x5fc   :  { %12934 = vmatmul.mubr.bf16.vlgmr.msra.gmra.mrb[120].mxu1 %v14469_v9 }
 0x5fd   :  { %12943 = vmatpush1.bf16.msra.mxu1 %v17511_v1 }
 0x5fe   :  { %12944 = vmatprep.subr.bf16.mxu1 %v17516_v7 }
 0x601   :  { %12945 = vmatpush1.bf16.msra.mxu1 %v17514_v4 }
 0x602   :  { %12946 = vmatprep.subr.bf16.mxu1 %v17519_v13  ;;  %v17559_v13 = vld [vmem:[#allocation12 + $0x400] ss:$8 sps:$4 sm:$0xff]  }
 0x605   :  { %12947 = vmatpush1.bf16.msra.mxu1 %v17517_v16  ;;  %v17564_v16 = vld [vmem:[#allocation12 + $0x414] ss:$8 sps:$4 sm:$0xff]  }
 0x606   :  { %12948 = vmatprep.subr.bf16.mxu1 %v17522_v19  ;;  %v17562_v19 = vld [vmem:[#allocation12 + $0x410] ss:$8 sps:$4 sm:$0xff]  }
 0x609   :  { %12949 = vmatpush1.bf16.msra.mxu1 %v17520_v20  ;;  %v17565_v20 = vld [vmem:[#allocation12 + $0x420] ss:$8 sps:$4 sm:$0xff]  }
 0x60a   :  { %12950 = vmatprep.subr.bf16.mxu1 %v17525_v61  ;;  %v17570_v61 = vld [vmem:[#allocation12 + $0x434] ss:$8 sps:$4 sm:$0xff]  }
 0x60d   :  { %12951 = vmatpush1.bf16.msra.mxu1 %v17523_v15  ;;  %v17568_v15 = vld [vmem:[#allocation12 + $0x430] ss:$8 sps:$4 sm:$0xff]  }
 0x60e   :  { %12952 = vmatprep.subr.bf16.mxu1 %v17528_v60  ;;  %v17573_v60 = vld [vmem:[#allocation12 + $0x444] ss:$8 sps:$4 sm:$0xff]  }
 0x60f   :  { %v11882_v21 = vpop.f32.mrb[116].mxu1 }
 0x610   :  { %v11883_v23 = vadd.f32 %v11882_v21, %v11843_v5  ;;  %v15946_v24 = vpop.f32.mrb[117].mxu1  ;;  %v17574_v21 = vld [vmem:[#allocation12 + $0x450] ss:$8 sps:$4 sm:$0xff]  }
 0x611   :  { %v11885_v29 = vpop.f32.mrb[118].mxu1  ;;  %12953 = vmatpush1.bf16.msra.mxu1 %v17526_v26  ;;  %v17571_v26 = vld [vmem:[#allocation12 + $0x440] ss:$8 sps:$4 sm:$0xff]   ;;  %v17582_v24 = vld [vmem:[#allocation12 + $0x474] ss:$8 sps:$4 sm:$0xff]  }
 0x612   :  { %v11890_v58 = vmax.f32 %v11883_v23, 0.0  ;;  %v15947_v48 = vpop.f32.mrb[119].mxu1  ;;  %12954 = vmatprep.subr.bf16.mxu1 %v17531_v63  ;;  %v17576_v63 = vld [vmem:[#allocation12 + $0x454] ss:$8 sps:$4 sm:$0xff]   ;;  %v17579_v23 = vld [vmem:[#allocation12 + $0x464] ss:$8 sps:$4 sm:$0xff]  }
 0x613   :  { %v17580_v29 = vld [vmem:[#allocation12 + $0x470] ss:$8 sps:$4 sm:$0xff]  }
 0x614   :  { %v14667_v33 = vpack.c.bf16 %v11890_v58, %v11890_v58  ;;  %v17596_v58 = vld [vmem:[#allocation15 + $0x70] sm:$0xff]  }
 0x615   :  { %12955 = vmatpush1.bf16.msra.mxu1 %v17529_v50  ;;  %v17597_v48 = vld [vmem:[#allocation15 + $0x30] sm:$0xff]   ;;  %15738 = vmatprep.subr.bf16.mxu0 %v17596_v58 }
 0x616   :  { %11905 = vst [vmem:[#allocation4 + $0x20] sm:$0xf] %v14667_v33  ;;  %12956 = vmatprep.subr.bf16.mxu1 %v17534_v32  ;;  %v17598_v32 = vld [vmem:[#allocation15 + $0x78] sm:$0xff]   ;;  %15739 = vmatpush3.bf16.msra.mxu0 %v17597_v48 }
 0x617   :  { %v17599_v33 = vld [vmem:[#allocation15 + $0x38] sm:$0xff]   ;;  %15740 = vmatprep.subr.bf16.mxu0 %v17598_v32 }
 0x619   :  { %12957 = vmatpush1.bf16.msra.mxu1 %v17532_v18  ;;  %v12055_v18 = vld [vmem:[#allocation13] sm:$0x3] }
 0x61a   :  { %12958 = vmatprep.subr.bf16.mxu1 %v17537_v30  ;;  %15741 = vmatpush3.bf16.msra.mxu0 %v17599_v33  ;;  %v12060_v30 = vrot.slane %v12055_v18, %v18505_v25 }
 0x61d   :  { %12959 = vmatpush1.bf16.msra.mxu1 %v17535_v39  ;;  %v17583_v50 = vld [vmem:[#allocation4 + $0x20] ss:$0 sps:$4 sm:$0xff]   ;;  %v12064_v39 = vrot.slane %v12055_v18, %v18508_v17 }
 0x61e   :  { %12960 = vmatprep.subr.bf16.mxu1 %v17540_v41 }
 0x621   :  { %12961 = vmatpush1.bf16.msra.mxu1 %v17538_v43 }
 0x622   :  { %12962 = vmatprep.subr.bf16.mxu1 %v17543_v44 }
 0x625   :  { %12963 = vmatpush1.bf16.msra.mxu1 %v17541_v11 }
 0x626   :  { %12964 = vmatprep.subr.bf16.mxu1 %v17546_v8 }
 0x629   :  { %12965 = vmatpush1.bf16.msra.mxu1 %v17544_v40 }
 0x62a   :  { %12966 = vmatprep.subr.bf16.mxu1 %v17549_v14 }
 0x62d   :  { %12967 = vmatpush1.bf16.msra.mxu1 %v17547_v47 }
 0x62e   :  { %12968 = vmatprep.subr.bf16.mxu1 %v17552_v49 }
 0x631   :  { %12969 = vmatpush1.bf16.msra.mxu1 %v17550_v37 }
 0x632   :  { %12970 = vmatprep.subr.bf16.mxu1 %v17555_v51 }
 0x635   :  { %12971 = vmatpush1.bf16.msra.mxu1 %v17553_v45  ;;  %v14618_v45 = vld [vmem:[#allocation16] ss:$0 sm:$0xff] }
 0x636   :  { %12972 = vmatprep.subr.bf16.mxu1 %v17558_v52 }
 0x639   :  { %12973 = vmatpush1.bf16.msra.mxu1 %v17556_v22 }
 0x63a   :  { %12983 = vmatprep.subr.bf16.mxu1 %v17561_v53 }
 0x690   :  { %v11721_v42 = vpop.f32.mrb[108].mxu0 }
 0x691   :  { %v15954_v2 = vadd.f32 %v11721_v42, %v10631_v0  ;;  %v11723_v36 = vpop.f32.mrb[109].mxu0 }
 0x692   :  { %v15955_v5 = vadd.f32 %v11723_v36, %v10635_v31  ;;  %v11725_v6 = vpop.f32.mrb[110].mxu0 }
 0x693   :  { %v11888_v10 = vmax.f32 %v15954_v2, 0.0  ;;  %v11726_v1 = vpop.f32.mrb[111].mxu0 }
 0x694   :  { %v11889_v9 = vmax.f32 %v15955_v5, 0.0 }
 0x695   :  { %v17642_v7 = vpack.c.bf16 %v11888_v10, %v11888_v10 }
 0x696   :  { %v17643_v4 = vpack.c.bf16 %v11889_v9, %v11889_v9 }
 0x698   :  { %12974 = vmatprep.mubr.bf16.mxu1 %v17643_v4 }
 0x699   :  { %12975 = vmatmul.mubr.bf16.vlgmr.msra.gmra.mrb[120].mxu1 %v17642_v7 }
 0x69a   :  { %12984 = vmatpush1.bf16.msra.mxu1 %v17559_v13  ;;  %13015 = vmatprep.mubr.bf16.mxu1 %v17846_v27  ;;  %v17577_v27 = vld [vmem:[#allocation12 + $0x460] ss:$8 sps:$4 sm:$0xff]  }
 0x69b   :  { %12985 = vmatprep.subr.bf16.mxu1 %v17564_v16 }
 0x69e   :  { %12986 = vmatpush1.bf16.msra.mxu1 %v17562_v19 }
 0x69f   :  { %12987 = vmatprep.subr.bf16.mxu1 %v17567_v38 }
 0x6a2   :  { %12988 = vmatpush1.bf16.msra.mxu1 %v17565_v20 }
 0x6a3   :  { %12989 = vmatprep.subr.bf16.mxu1 %v17570_v61 }
 0x6a6   :  { %12990 = vmatpush1.bf16.msra.mxu1 %v17568_v15 }
 0x6a7   :  { %12991 = vmatprep.subr.bf16.mxu1 %v17573_v60 }
 0x6aa   :  { %12992 = vmatpush1.bf16.msra.mxu1 %v17571_v26 }
 0x6ab   :  { %12993 = vmatprep.subr.bf16.mxu1 %v17576_v63 }
 0x6ae   :  { %12994 = vmatpush1.bf16.msra.mxu1 %v17574_v21 }
 0x6af   :  { %12995 = vmatprep.subr.bf16.mxu1 %v17579_v23 }
 0x6b2   :  { %12996 = vmatpush1.bf16.msra.mxu1 %v17577_v27 }
 0x6b3   :  { %12997 = vmatprep.subr.bf16.mxu1 %v17582_v24 }
 0x6b6   :  { %12998 = vmatpush1.bf16.msra.mxu1 %v17580_v29 }
 0x6b9   :  { %13016 = vmatmul.mubr.bf16.vlgmr.msra.gmra.mrb[120].mxu1 %v17583_v50 }
 0x78c   :  { %v13017_v41 = vpop.f32.mrb[120].mxu1 }
 0x78d   :  { %v15956_v43 = vadd.f32 %v13017_v41, %v12060_v30  ;;  %v13019_v44 = vpop.f32.mrb[121].mxu1 }
 0x78e   :  { %v15957_v11 = vadd.f32 %v13019_v44, %v12064_v39  ;;  %v13021_v8 = vpop.f32.mrb[122].mxu1 }
 0x78f   :  { %v13024_v40 = vmax.f32 %v15956_v43, 0.0  ;;  %v13022_v14 = vpop.f32.mrb[123].mxu1 }
 0x790   :  { %v13025_v47 = vmax.f32 %v15957_v11, 0.0 }
 0x791   :  { %v13026_v37 = vpack.c.bf16 %v13024_v40, %v13024_v40 }
 0x792   :  { %v13027_v49 = vpack.c.bf16 %v13025_v47, %v13025_v47 }
 0x794   :  { %13195 = vmatprep.mubr.bf16.mxu0 %v13027_v49 }
 0x795   :  { %13196 = vmatmul.mubr.bf16.vlgmr.msra.gmra.mrb[112].mxu0 %v13026_v37 }
 0x868   :  { %v15742_v51 = vpop.f32.mrb[112].mxu0 }
 0x869   :  { %v15743_v52 = vpop.f32.mrb[113].mxu0 }
 0x86a   :  { %v15744_v22 = vadd.f32 %v15743_v52, %v15742_v51  ;;  %v15745_v53 = vpop.f32.mrb[114].mxu0 }
 0x86b   :  { %v15746_v25 = vpop.f32.mrb[115].mxu0 }
 0x86c   :  { %v13198_v54 = vadd.f32 %v15744_v22, %v14618_v45 }
 0x86e   :  { %13203 = vst [vmem:[%s18620_s9] sm:$0xff] %v13198_v54 }
 0x86f   :  { %13208 = vsyncpa [#allocation6], 1 }
 0x870   :  { %13209 = vsyncpa [#allocation8], 1 }
 0x871   :  { %13210 = vsyncpa [#allocation11], 1 }
 0x872   :  { %13211 = vsyncpa [#allocation14], 1 }
 0x873   :  { %13212 = vsyncpa [#allocation17], 1 }

</bundles_post_ra>
